<compile_context>
chip_gen: v5e
topology: v5e:2x2
jax: 0.10.0
libtpu: 0.0.40
codegen_flags: <defaults>
</compile_context>

<pallas_src>
import functools

import jax
import jax.numpy as jnp
from jax.experimental import pallas as pl
from jax.experimental.pallas import tpu as pltpu

K = 7            # involution kernel size
G = 4            # involution groups
PAD = K // 2     # involution padding (stride = 1)


# ------------------------------ Pallas kernel -------------------------------

def _invres_kernel(x_ref, w1_ref, b1_ref, wr_ref, br_ref, wse_ref, bse_ref,
                   mask_ref, wtail_ref, bt_ref, o_ref, h1e_ref,
                   *, W, N, nh, Cr, lpad):
    xfT = x_ref[...]                                   # (Ci, N), lanes = batch*spatial

    # convpath[0]: 1x1 conv + BN (scale pre-folded into the weight) + ReLU
    h1T = jnp.maximum(
        jnp.dot(w1_ref[...], xfT, preferred_element_type=jnp.float32) + b1_ref[...],
        0.0)                                           # (nh, N)

    # Involution kernel-generation: reduce (1x1 + BN + ReLU).  The span 1x1 is
    # applied on the fly inside the tap loop (Cr rank-1 VPU updates per tap).
    rT = jnp.maximum(
        jnp.dot(wr_ref[...], h1T, preferred_element_type=jnp.float32) + br_ref[...],
        0.0)                                           # (Cr, N)
    # Hoisted sublane-broadcasts of the reduce rows (reused by all 49 taps).
    r_rows = [jnp.broadcast_to(rT[r:r + 1, :], (nh, N)) for r in range(Cr)]

    # Zero only the two pad regions; the interior is overwritten right after.
    h1e_ref[:, :lpad] = jnp.zeros((nh, lpad), jnp.float32)
    h1e_ref[:, lpad + N:] = jnp.zeros((nh, lpad), jnp.float32)
    h1e_ref[:, lpad:lpad + N] = h1T

    # Involution core: spatial shifts of h1 are static lane-window loads from
    # the zero-padded copy; the per-pixel kernel for each tap is generated
    # in-register (span weights pre-expanded per-channel, boundary mask folded
    # in with a single broadcast multiply).
    acc = jnp.zeros((nh, N), jnp.float32)
    for kk in range(K):
        for jj in range(K):
            idx = kk * K + jj
            off = (kk - PAD) * W + (jj - PAD)
            ktap = bse_ref[idx * nh:(idx + 1) * nh, :]          # (nh, 1)
            for r in range(Cr):
                ktap = ktap + wse_ref[idx * nh:(idx + 1) * nh, r:r + 1] * r_rows[r]
            ktap = ktap * mask_ref[idx:idx + 1, :]              # (nh, N), masked
            xs = h1e_ref[:, lpad + off:lpad + off + N]          # shifted h1
            acc = acc + xs * ktap

    # convpath[2] (1x1 + BN) + idpath (1x1 + BN) fused into ONE matmul,
    # + residual bias + final ReLU.
    y = jnp.dot(wtail_ref[...], jnp.concatenate([acc, xfT], axis=0),
                preferred_element_type=jnp.float32) + bt_ref[...]
    o_ref[...] = jnp.maximum(y, 0.0)


# --------------------------------- wrapper -----------------------------------

def inv_res_block(x_nchw, p, batch_tile=None):
    B, Ci, H, W = x_nchw.shape
    nh = p["w1"].shape[1]        # nh1 == nh2
    Cr = p["wr"].shape[1]
    Co = p["w3"].shape[1]
    D = nh // G
    HW = H * W
    KK = K * K
    Bt = B if batch_tile is None else batch_tile
    assert B % Bt == 0, "batch_tile must divide the batch"
    N = Bt * HW
    assert HW % 128 == 0, "flattened spatial axis must be lane aligned"
    lpad = ((PAD * W + PAD + 127) // 128) * 128        # lane-aligned halo padding

    # Fold BN scales into the 1x1 weights; store as (out_ch, in_ch) for the
    # channels-first layout used inside the kernel.
    w1t = (p["w1"] * p["s1"]).T                        # (nh, Ci)
    b1t = p["b1"].T                                    # (nh, 1)
    wrt = (p["wr"] * p["sr"]).T                        # (Cr, nh)
    brt = p["br"].T                                    # (Cr, 1)
    # Span weights expanded from per-group to per-channel:
    # row idx*nh + g*D + d holds the original column idx*G + g.
    ws_e = jnp.repeat(p["ws"].reshape(Cr, KK, G), D, axis=2).reshape(Cr, KK * nh)
    bs_e = jnp.repeat(p["bs"].reshape(1, KK, G), D, axis=2).reshape(1, KK * nh)
    wset, bset = ws_e.T, bs_e.T                        # (KK*nh, Cr), (KK*nh, 1)
    # conv3 and idpath fused into one weight / one bias.
    wtail = jnp.concatenate([(p["w3"] * p["s3"]).T, (p["wid"] * p["sid"]).T],
                            axis=1)                    # (Co, nh+Ci)
    btail = (p["b3"] + p["bid"]).T                     # (Co, 1)

    # Per-image spatial-validity mask (KK, HW) — identical across channels —
    # tiled along the batch-lane axis.  Kills out-of-image taps, row wrap, and
    # cross-image leakage at the batch concatenation seams.
    sp = jnp.arange(HW)
    hh, ww = sp // W, sp % W
    rows = []
    for kk in range(K):
        for jj in range(K):
            dk, dj = kk - PAD, jj - PAD
            rows.append((hh + dk >= 0) & (hh + dk < H)
                        & (ww + dj >= 0) & (ww + dj < W))
    mask = jnp.tile(jnp.stack(rows, 0).astype(jnp.float32), (1, Bt))   # (KK, N)

    # Channels-first, batch-on-lanes layout (tiny wrapper-side transpose).
    x_l = x_nchw.reshape(B, Ci, HW).transpose(1, 0, 2).reshape(Ci, B * HW)

    kern = functools.partial(_invres_kernel, W=W, N=N, nh=nh, Cr=Cr, lpad=lpad)
    out = pl.pallas_call(
        kern,
        out_shape=jax.ShapeDtypeStruct((Co, B * HW), jnp.float32),
        grid=(B // Bt,),
        in_specs=[
            pl.BlockSpec((Ci, N), lambda b: (0, b)),
            pl.BlockSpec((nh, Ci), lambda b: (0, 0)),
            pl.BlockSpec((nh, 1), lambda b: (0, 0)),
            pl.BlockSpec((Cr, nh), lambda b: (0, 0)),
            pl.BlockSpec((Cr, 1), lambda b: (0, 0)),
            pl.BlockSpec((KK * nh, Cr), lambda b: (0, 0)),
            pl.BlockSpec((KK * nh, 1), lambda b: (0, 0)),
            pl.BlockSpec((KK, N), lambda b: (0, 0)),
            pl.BlockSpec((Co, nh + Ci), lambda b: (0, 0)),
            pl.BlockSpec((Co, 1), lambda b: (0, 0)),
        ],
        out_specs=pl.BlockSpec((Co, N), lambda b: (0, b)),
        scratch_shapes=[
            pltpu.VMEM((nh, N + 2 * lpad), jnp.float32),   # zero-padded h1
        ],
        compiler_params=pltpu.CompilerParams(dimension_semantics=("parallel",)),
    )(x_l, w1t, b1t, wrt, brt, wset, bset, mask, wtail, btail)
    return out.reshape(Co, B, HW).transpose(1, 0, 2).reshape(B, Co, H, W)


# -------------------------------- reference ----------------------------------

def ref_forward(x_nchw, p):
    B, Ci, H, W = x_nchw.shape
    nh = p["w1"].shape[1]
    Co = p["w3"].shape[1]
    D = nh // G
    hp = jax.lax.Precision.HIGHEST
    xf = x_nchw.transpose(0, 2, 3, 1).reshape(-1, Ci)
    h1 = jnp.maximum(jnp.dot(xf, p["w1"], precision=hp) * p["s1"] + p["b1"], 0.0)
    r = jnp.maximum(jnp.dot(h1, p["wr"], precision=hp) * p["sr"] + p["br"], 0.0)
    ker = jnp.dot(r, p["ws"], precision=hp) + p["bs"]
    h1g = h1.reshape(B, H, W, G, D).transpose(0, 3, 4, 1, 2)
    xpad = jnp.pad(h1g, ((0, 0), (0, 0), (0, 0), (PAD, PAD), (PAD, PAD)))
    kerg = ker.reshape(B, H, W, K * K, G).transpose(0, 3, 4, 1, 2)
    inv = jnp.zeros((B, G, D, H, W), jnp.float32)
    for kk in range(K):
        for jj in range(K):
            idx = kk * K + jj
            inv = inv + xpad[:, :, :, kk:kk + H, jj:jj + W] * kerg[:, idx][:, :, None]
    invf = inv.transpose(0, 3, 4, 1, 2).reshape(-1, nh)
    a = jnp.dot(invf, p["w3"], precision=hp) * p["s3"] + p["b3"]
    b = jnp.dot(xf, p["wid"], precision=hp) * p["sid"] + p["bid"]
    of = jnp.maximum(a + b, 0.0)
    return of.reshape(B, H, W, Co).transpose(0, 3, 1, 2)


# -------------------------------- parameters ---------------------------------

def init_params(key, ni, nf, expansion=1):
    ci, co = ni * expansion, nf * expansion
    nh = nf                       # nh1 = nh2 = nf (InvResBlock defaults)
    cr = max(1, nh // 4)          # Involution reduction_ratio = 4
    ks = jax.random.split(key, 12)
    def n(k, s, sc=0.1):
        return sc * jax.random.normal(k, s, jnp.float32)
    return dict(
        w1=n(ks[0], (ci, nh)), s1=1.0 + n(ks[1], (1, nh)), b1=n(ks[2], (1, nh), 0.05),
        wr=n(ks[3], (nh, cr)), sr=1.0 + n(ks[4], (1, cr)), br=n(ks[5], (1, cr), 0.05),
        ws=n(ks[6], (cr, K * K * G)), bs=n(ks[7], (1, K * K * G), 0.05),
        w3=n(ks[8], (nh, co)), s3=1.0 + n(ks[9], (1, co)), b3=n(ks[10], (1, co), 0.05),
        wid=n(ks[11], (ci, co)),
        sid=jnp.ones((1, co), jnp.float32),
        bid=jnp.zeros((1, co), jnp.float32),
    )


if __name__ == "__main__":
    B, ni, nf, H, W = 2, 4, 8, 16, 16
    key = jax.random.PRNGKey(0)
    kx, kp = jax.random.split(key)
    x = jax.random.normal(kx, (B, ni, H, W), jnp.float32)
    params = init_params(kp, ni, nf, expansion=1)

    out = jax.block_until_ready(inv_res_block(x, params))
    ref = ref_forward(x, params)

    assert out.shape == (B, nf, H, W), out.shape
    err = float(jnp.max(jnp.abs(out - ref)))
    if err <= 1e-2:
        print("KERNEL_OK")
    else:
        raise SystemExit(f"max abs error too large: {err}")
</pallas_src>

<mosaic_0001>
module attributes {stable_mosaic.version = 11 : i64} {
  func.func @_invres_kernel(%arg0: i32, %arg1: memref<4x512xf32, #tpu.memory_space<vmem>>, %arg2: memref<8x4xf32, #tpu.memory_space<vmem>>, %arg3: memref<8x1xf32, #tpu.memory_space<vmem>>, %arg4: memref<2x8xf32, #tpu.memory_space<vmem>>, %arg5: memref<2x1xf32, #tpu.memory_space<vmem>>, %arg6: memref<392x2xf32, #tpu.memory_space<vmem>>, %arg7: memref<392x1xf32, #tpu.memory_space<vmem>>, %arg8: memref<49x512xf32, #tpu.memory_space<vmem>>, %arg9: memref<8x12xf32, #tpu.memory_space<vmem>>, %arg10: memref<8x1xf32, #tpu.memory_space<vmem>>, %arg11: memref<8x512xf32, #tpu.memory_space<vmem>>, %arg12: memref<8x768xf32, #tpu.memory_space<vmem>>) attributes {dimension_semantics = [#tpu.dimension_semantics<parallel>], iteration_bounds = array<i64: 1>, scalar_prefetch = 0 : i64, scratch_operands = 1 : i64, tpu.core_type = #tpu.core_type<tc>, window_params = [{transform_indices = @transform_0, window_bounds = array<i64: 4, 512>}, {pipeline_mode = #tpu.pipeline_mode<synchronous>, transform_indices = @transform_1, window_bounds = array<i64: 8, 4>}, {pipeline_mode = #tpu.pipeline_mode<synchronous>, transform_indices = @transform_2, window_bounds = array<i64: 8, 1>}, {pipeline_mode = #tpu.pipeline_mode<synchronous>, transform_indices = @transform_3, window_bounds = array<i64: 2, 8>}, {pipeline_mode = #tpu.pipeline_mode<synchronous>, transform_indices = @transform_4, window_bounds = array<i64: 2, 1>}, {pipeline_mode = #tpu.pipeline_mode<synchronous>, transform_indices = @transform_5, window_bounds = array<i64: 392, 2>}, {pipeline_mode = #tpu.pipeline_mode<synchronous>, transform_indices = @transform_6, window_bounds = array<i64: 392, 1>}, {pipeline_mode = #tpu.pipeline_mode<synchronous>, transform_indices = @transform_7, window_bounds = array<i64: 49, 512>}, {pipeline_mode = #tpu.pipeline_mode<synchronous>, transform_indices = @transform_8, window_bounds = array<i64: 8, 12>}, {pipeline_mode = #tpu.pipeline_mode<synchronous>, transform_indices = @transform_9, window_bounds = array<i64: 8, 1>}, {transform_indices = @transform_10, window_bounds = array<i64: 8, 512>}]} {
    %c0 = arith.constant 0 : index
    %c0_0 = arith.constant 0 : index
    %0 = vector.load %arg1[%c0, %c0_0] : memref<4x512xf32, #tpu.memory_space<vmem>>, vector<4x512xf32>
    %c0_1 = arith.constant 0 : index
    %c0_2 = arith.constant 0 : index
    %1 = vector.load %arg2[%c0_1, %c0_2] : memref<8x4xf32, #tpu.memory_space<vmem>>, vector<8x4xf32>
    %cst = arith.constant dense<0.000000e+00> : vector<8x512xf32>
    %2 = tpu.matmul %1, %0, %cst {dimension_numbers = #tpu.dot_dimension_numbers<[1], [0], [0], [1], [0, 0, 1, 1], [], []>} : vector<8x4xf32>, vector<4x512xf32>, vector<8x512xf32> -> vector<8x512xf32>
    %c0_3 = arith.constant 0 : index
    %c0_4 = arith.constant 0 : index
    %3 = vector.load %arg3[%c0_3, %c0_4] : memref<8x1xf32, #tpu.memory_space<vmem>>, vector<8x1xf32>
    %4 = vector.broadcast %3 : vector<8x1xf32> to vector<8x512xf32>
    %5 = arith.addf %2, %4 : vector<8x512xf32>
    %cst_5 = arith.constant 0.000000e+00 : f32
    %6 = vector.broadcast %cst_5 : f32 to vector<8x512xf32>
    %7 = arith.maximumf %5, %6 : vector<8x512xf32>
    %c0_6 = arith.constant 0 : index
    %c0_7 = arith.constant 0 : index
    %8 = vector.load %arg4[%c0_6, %c0_7] : memref<2x8xf32, #tpu.memory_space<vmem>>, vector<2x8xf32>
    %cst_8 = arith.constant dense<0.000000e+00> : vector<2x512xf32>
    %9 = tpu.matmul %8, %7, %cst_8 {dimension_numbers = #tpu.dot_dimension_numbers<[1], [0], [0], [1], [0, 0, 1, 1], [], []>} : vector<2x8xf32>, vector<8x512xf32>, vector<2x512xf32> -> vector<2x512xf32>
    %c0_9 = arith.constant 0 : index
    %c0_10 = arith.constant 0 : index
    %10 = vector.load %arg5[%c0_9, %c0_10] : memref<2x1xf32, #tpu.memory_space<vmem>>, vector<2x1xf32>
    %11 = vector.broadcast %10 : vector<2x1xf32> to vector<2x512xf32>
    %12 = arith.addf %9, %11 : vector<2x512xf32>
    %cst_11 = arith.constant 0.000000e+00 : f32
    %13 = vector.broadcast %cst_11 : f32 to vector<2x512xf32>
    %14 = arith.maximumf %12, %13 : vector<2x512xf32>
    %15 = vector.extract_strided_slice %14 {offsets = [0, 0], sizes = [1, 512], strides = [1, 1]} : vector<2x512xf32> to vector<1x512xf32>
    %16 = vector.shape_cast %15 : vector<1x512xf32> to vector<1x512xf32>
    %17 = vector.broadcast %16 : vector<1x512xf32> to vector<8x512xf32>
    %18 = vector.extract_strided_slice %14 {offsets = [1, 0], sizes = [1, 512], strides = [1, 1]} : vector<2x512xf32> to vector<1x512xf32>
    %19 = vector.shape_cast %18 : vector<1x512xf32> to vector<1x512xf32>
    %20 = vector.broadcast %19 : vector<1x512xf32> to vector<8x512xf32>
    %cst_12 = arith.constant 0.000000e+00 : f32
    %21 = vector.broadcast %cst_12 : f32 to vector<8x128xf32>
    %c0_13 = arith.constant 0 : index
    %c0_14 = arith.constant 0 : index
    %22 = vector.load %arg12[%c0_13, %c0_14] : memref<8x768xf32, #tpu.memory_space<vmem>>, vector<8x128xf32>
    tpu.vector_store %arg12[%c0_13, %c0_14], %21 {strides = array<i32>} : memref<8x768xf32, #tpu.memory_space<vmem>>, vector<8x128xf32>,
    %cst_15 = arith.constant 0.000000e+00 : f32
    %23 = vector.broadcast %cst_15 : f32 to vector<8x128xf32>
    %c0_16 = arith.constant 0 : index
    %c640 = arith.constant 640 : index
    %24 = vector.load %arg12[%c0_16, %c640] : memref<8x768xf32, #tpu.memory_space<vmem>>, vector<8x128xf32>
    tpu.vector_store %arg12[%c0_16, %c640], %23 {strides = array<i32>} : memref<8x768xf32, #tpu.memory_space<vmem>>, vector<8x128xf32>,
    %c0_17 = arith.constant 0 : index
    %c128 = arith.constant 128 : index
    %25 = vector.load %arg12[%c0_17, %c128] : memref<8x768xf32, #tpu.memory_space<vmem>>, vector<8x512xf32>
    tpu.vector_store %arg12[%c0_17, %c128], %7 {strides = array<i32>} : memref<8x768xf32, #tpu.memory_space<vmem>>, vector<8x512xf32>,
    %cst_18 = arith.constant 0.000000e+00 : f32
    %26 = vector.broadcast %cst_18 : f32 to vector<8x512xf32>
    %c0_19 = arith.constant 0 : index
    %c0_20 = arith.constant 0 : index
    %27 = vector.load %arg7[%c0_19, %c0_20] : memref<392x1xf32, #tpu.memory_space<vmem>>, vector<8x1xf32>
    %c0_21 = arith.constant 0 : index
    %c0_22 = arith.constant 0 : index
    %28 = vector.load %arg6[%c0_21, %c0_22] : memref<392x2xf32, #tpu.memory_space<vmem>>, vector<8x1xf32>
    %29 = vector.broadcast %28 : vector<8x1xf32> to vector<8x512xf32>
    %30 = arith.mulf %29, %17 : vector<8x512xf32>
    %31 = vector.broadcast %27 : vector<8x1xf32> to vector<8x512xf32>
    %32 = arith.addf %31, %30 : vector<8x512xf32>
    %c0_23 = arith.constant 0 : index
    %c1 = arith.constant 1 : index
    %33 = vector.load %arg6[%c0_23, %c1] : memref<392x2xf32, #tpu.memory_space<vmem>>, vector<8x1xf32>
    %34 = vector.broadcast %33 : vector<8x1xf32> to vector<8x512xf32>
    %35 = arith.mulf %34, %20 : vector<8x512xf32>
    %36 = arith.addf %32, %35 : vector<8x512xf32>
    %c0_24 = arith.constant 0 : index
    %c0_25 = arith.constant 0 : index
    %37 = vector.load %arg8[%c0_24, %c0_25] : memref<49x512xf32, #tpu.memory_space<vmem>>, vector<1x512xf32>
    %38 = vector.broadcast %37 : vector<1x512xf32> to vector<8x512xf32>
    %39 = arith.mulf %36, %38 : vector<8x512xf32>
    %c0_26 = arith.constant 0 : index
    %c77 = arith.constant 77 : index
    %40 = vector.load %arg12[%c0_26, %c77] : memref<8x768xf32, #tpu.memory_space<vmem>>, vector<8x512xf32>
    %41 = arith.mulf %40, %39 : vector<8x512xf32>
    %42 = arith.addf %26, %41 : vector<8x512xf32>
    %c8 = arith.constant 8 : index
    %c0_27 = arith.constant 0 : index
    %43 = vector.load %arg7[%c8, %c0_27] : memref<392x1xf32, #tpu.memory_space<vmem>>, vector<8x1xf32>
    %c8_28 = arith.constant 8 : index
    %c0_29 = arith.constant 0 : index
    %44 = vector.load %arg6[%c8_28, %c0_29] : memref<392x2xf32, #tpu.memory_space<vmem>>, vector<8x1xf32>
    %45 = vector.broadcast %44 : vector<8x1xf32> to vector<8x512xf32>
    %46 = arith.mulf %45, %17 : vector<8x512xf32>
    %47 = vector.broadcast %43 : vector<8x1xf32> to vector<8x512xf32>
    %48 = arith.addf %47, %46 : vector<8x512xf32>
    %c8_30 = arith.constant 8 : index
    %c1_31 = arith.constant 1 : index
    %49 = vector.load %arg6[%c8_30, %c1_31] : memref<392x2xf32, #tpu.memory_space<vmem>>, vector<8x1xf32>
    %50 = vector.broadcast %49 : vector<8x1xf32> to vector<8x512xf32>
    %51 = arith.mulf %50, %20 : vector<8x512xf32>
    %52 = arith.addf %48, %51 : vector<8x512xf32>
    %c1_32 = arith.constant 1 : index
    %c0_33 = arith.constant 0 : index
    %53 = vector.load %arg8[%c1_32, %c0_33] : memref<49x512xf32, #tpu.memory_space<vmem>>, vector<1x512xf32>
    %54 = vector.broadcast %53 : vector<1x512xf32> to vector<8x512xf32>
    %55 = arith.mulf %52, %54 : vector<8x512xf32>
    %c0_34 = arith.constant 0 : index
    %c78 = arith.constant 78 : index
    %56 = vector.load %arg12[%c0_34, %c78] : memref<8x768xf32, #tpu.memory_space<vmem>>, vector<8x512xf32>
    %57 = arith.mulf %56, %55 : vector<8x512xf32>
    %58 = arith.addf %42, %57 : vector<8x512xf32>
    %c16 = arith.constant 16 : index
    %c0_35 = arith.constant 0 : index
    %59 = vector.load %arg7[%c16, %c0_35] : memref<392x1xf32, #tpu.memory_space<vmem>>, vector<8x1xf32>
    %c16_36 = arith.constant 16 : index
    %c0_37 = arith.constant 0 : index
    %60 = vector.load %arg6[%c16_36, %c0_37] : memref<392x2xf32, #tpu.memory_space<vmem>>, vector<8x1xf32>
    %61 = vector.broadcast %60 : vector<8x1xf32> to vector<8x512xf32>
    %62 = arith.mulf %61, %17 : vector<8x512xf32>
    %63 = vector.broadcast %59 : vector<8x1xf32> to vector<8x512xf32>
    %64 = arith.addf %63, %62 : vector<8x512xf32>
    %c16_38 = arith.constant 16 : index
    %c1_39 = arith.constant 1 : index
    %65 = vector.load %arg6[%c16_38, %c1_39] : memref<392x2xf32, #tpu.memory_space<vmem>>, vector<8x1xf32>
    %66 = vector.broadcast %65 : vector<8x1xf32> to vector<8x512xf32>
    %67 = arith.mulf %66, %20 : vector<8x512xf32>
    %68 = arith.addf %64, %67 : vector<8x512xf32>
    %c2 = arith.constant 2 : index
    %c0_40 = arith.constant 0 : index
    %69 = vector.load %arg8[%c2, %c0_40] : memref<49x512xf32, #tpu.memory_space<vmem>>, vector<1x512xf32>
    %70 = vector.broadcast %69 : vector<1x512xf32> to vector<8x512xf32>
    %71 = arith.mulf %68, %70 : vector<8x512xf32>
    %c0_41 = arith.constant 0 : index
    %c79 = arith.constant 79 : index
    %72 = vector.load %arg12[%c0_41, %c79] : memref<8x768xf32, #tpu.memory_space<vmem>>, vector<8x512xf32>
    %73 = arith.mulf %72, %71 : vector<8x512xf32>
    %74 = arith.addf %58, %73 : vector<8x512xf32>
    %c24 = arith.constant 24 : index
    %c0_42 = arith.constant 0 : index
    %75 = vector.load %arg7[%c24, %c0_42] : memref<392x1xf32, #tpu.memory_space<vmem>>, vector<8x1xf32>
    %c24_43 = arith.constant 24 : index
    %c0_44 = arith.constant 0 : index
    %76 = vector.load %arg6[%c24_43, %c0_44] : memref<392x2xf32, #tpu.memory_space<vmem>>, vector<8x1xf32>
    %77 = vector.broadcast %76 : vector<8x1xf32> to vector<8x512xf32>
    %78 = arith.mulf %77, %17 : vector<8x512xf32>
    %79 = vector.broadcast %75 : vector<8x1xf32> to vector<8x512xf32>
    %80 = arith.addf %79, %78 : vector<8x512xf32>
    %c24_45 = arith.constant 24 : index
    %c1_46 = arith.constant 1 : index
    %81 = vector.load %arg6[%c24_45, %c1_46] : memref<392x2xf32, #tpu.memory_space<vmem>>, vector<8x1xf32>
    %82 = vector.broadcast %81 : vector<8x1xf32> to vector<8x512xf32>
    %83 = arith.mulf %82, %20 : vector<8x512xf32>
    %84 = arith.addf %80, %83 : vector<8x512xf32>
    %c3 = arith.constant 3 : index
    %c0_47 = arith.constant 0 : index
    %85 = vector.load %arg8[%c3, %c0_47] : memref<49x512xf32, #tpu.memory_space<vmem>>, vector<1x512xf32>
    %86 = vector.broadcast %85 : vector<1x512xf32> to vector<8x512xf32>
    %87 = arith.mulf %84, %86 : vector<8x512xf32>
    %c0_48 = arith.constant 0 : index
    %c80 = arith.constant 80 : index
    %88 = vector.load %arg12[%c0_48, %c80] : memref<8x768xf32, #tpu.memory_space<vmem>>, vector<8x512xf32>
    %89 = arith.mulf %88, %87 : vector<8x512xf32>
    %90 = arith.addf %74, %89 : vector<8x512xf32>
    %c32 = arith.constant 32 : index
    %c0_49 = arith.constant 0 : index
    %91 = vector.load %arg7[%c32, %c0_49] : memref<392x1xf32, #tpu.memory_space<vmem>>, vector<8x1xf32>
    %c32_50 = arith.constant 32 : index
    %c0_51 = arith.constant 0 : index
    %92 = vector.load %arg6[%c32_50, %c0_51] : memref<392x2xf32, #tpu.memory_space<vmem>>, vector<8x1xf32>
    %93 = vector.broadcast %92 : vector<8x1xf32> to vector<8x512xf32>
    %94 = arith.mulf %93, %17 : vector<8x512xf32>
    %95 = vector.broadcast %91 : vector<8x1xf32> to vector<8x512xf32>
    %96 = arith.addf %95, %94 : vector<8x512xf32>
    %c32_52 = arith.constant 32 : index
    %c1_53 = arith.constant 1 : index
    %97 = vector.load %arg6[%c32_52, %c1_53] : memref<392x2xf32, #tpu.memory_space<vmem>>, vector<8x1xf32>
    %98 = vector.broadcast %97 : vector<8x1xf32> to vector<8x512xf32>
    %99 = arith.mulf %98, %20 : vector<8x512xf32>
    %100 = arith.addf %96, %99 : vector<8x512xf32>
    %c4 = arith.constant 4 : index
    %c0_54 = arith.constant 0 : index
    %101 = vector.load %arg8[%c4, %c0_54] : memref<49x512xf32, #tpu.memory_space<vmem>>, vector<1x512xf32>
    %102 = vector.broadcast %101 : vector<1x512xf32> to vector<8x512xf32>
    %103 = arith.mulf %100, %102 : vector<8x512xf32>
    %c0_55 = arith.constant 0 : index
    %c81 = arith.constant 81 : index
    %104 = vector.load %arg12[%c0_55, %c81] : memref<8x768xf32, #tpu.memory_space<vmem>>, vector<8x512xf32>
    %105 = arith.mulf %104, %103 : vector<8x512xf32>
    %106 = arith.addf %90, %105 : vector<8x512xf32>
    %c40 = arith.constant 40 : index
    %c0_56 = arith.constant 0 : index
    %107 = vector.load %arg7[%c40, %c0_56] : memref<392x1xf32, #tpu.memory_space<vmem>>, vector<8x1xf32>
    %c40_57 = arith.constant 40 : index
    %c0_58 = arith.constant 0 : index
    %108 = vector.load %arg6[%c40_57, %c0_58] : memref<392x2xf32, #tpu.memory_space<vmem>>, vector<8x1xf32>
    %109 = vector.broadcast %108 : vector<8x1xf32> to vector<8x512xf32>
    %110 = arith.mulf %109, %17 : vector<8x512xf32>
    %111 = vector.broadcast %107 : vector<8x1xf32> to vector<8x512xf32>
    %112 = arith.addf %111, %110 : vector<8x512xf32>
    %c40_59 = arith.constant 40 : index
    %c1_60 = arith.constant 1 : index
    %113 = vector.load %arg6[%c40_59, %c1_60] : memref<392x2xf32, #tpu.memory_space<vmem>>, vector<8x1xf32>
    %114 = vector.broadcast %113 : vector<8x1xf32> to vector<8x512xf32>
    %115 = arith.mulf %114, %20 : vector<8x512xf32>
    %116 = arith.addf %112, %115 : vector<8x512xf32>
    %c5 = arith.constant 5 : index
    %c0_61 = arith.constant 0 : index
    %117 = vector.load %arg8[%c5, %c0_61] : memref<49x512xf32, #tpu.memory_space<vmem>>, vector<1x512xf32>
    %118 = vector.broadcast %117 : vector<1x512xf32> to vector<8x512xf32>
    %119 = arith.mulf %116, %118 : vector<8x512xf32>
    %c0_62 = arith.constant 0 : index
    %c82 = arith.constant 82 : index
    %120 = vector.load %arg12[%c0_62, %c82] : memref<8x768xf32, #tpu.memory_space<vmem>>, vector<8x512xf32>
    %121 = arith.mulf %120, %119 : vector<8x512xf32>
    %122 = arith.addf %106, %121 : vector<8x512xf32>
    %c48 = arith.constant 48 : index
    %c0_63 = arith.constant 0 : index
    %123 = vector.load %arg7[%c48, %c0_63] : memref<392x1xf32, #tpu.memory_space<vmem>>, vector<8x1xf32>
    %c48_64 = arith.constant 48 : index
    %c0_65 = arith.constant 0 : index
    %124 = vector.load %arg6[%c48_64, %c0_65] : memref<392x2xf32, #tpu.memory_space<vmem>>, vector<8x1xf32>
    %125 = vector.broadcast %124 : vector<8x1xf32> to vector<8x512xf32>
    %126 = arith.mulf %125, %17 : vector<8x512xf32>
    %127 = vector.broadcast %123 : vector<8x1xf32> to vector<8x512xf32>
    %128 = arith.addf %127, %126 : vector<8x512xf32>
    %c48_66 = arith.constant 48 : index
    %c1_67 = arith.constant 1 : index
    %129 = vector.load %arg6[%c48_66, %c1_67] : memref<392x2xf32, #tpu.memory_space<vmem>>, vector<8x1xf32>
    %130 = vector.broadcast %129 : vector<8x1xf32> to vector<8x512xf32>
    %131 = arith.mulf %130, %20 : vector<8x512xf32>
    %132 = arith.addf %128, %131 : vector<8x512xf32>
    %c6 = arith.constant 6 : index
    %c0_68 = arith.constant 0 : index
    %133 = vector.load %arg8[%c6, %c0_68] : memref<49x512xf32, #tpu.memory_space<vmem>>, vector<1x512xf32>
    %134 = vector.broadcast %133 : vector<1x512xf32> to vector<8x512xf32>
    %135 = arith.mulf %132, %134 : vector<8x512xf32>
    %c0_69 = arith.constant 0 : index
    %c83 = arith.constant 83 : index
    %136 = vector.load %arg12[%c0_69, %c83] : memref<8x768xf32, #tpu.memory_space<vmem>>, vector<8x512xf32>
    %137 = arith.mulf %136, %135 : vector<8x512xf32>
    %138 = arith.addf %122, %137 : vector<8x512xf32>
    %c56 = arith.constant 56 : index
    %c0_70 = arith.constant 0 : index
    %139 = vector.load %arg7[%c56, %c0_70] : memref<392x1xf32, #tpu.memory_space<vmem>>, vector<8x1xf32>
    %c56_71 = arith.constant 56 : index
    %c0_72 = arith.constant 0 : index
    %140 = vector.load %arg6[%c56_71, %c0_72] : memref<392x2xf32, #tpu.memory_space<vmem>>, vector<8x1xf32>
    %141 = vector.broadcast %140 : vector<8x1xf32> to vector<8x512xf32>
    %142 = arith.mulf %141, %17 : vector<8x512xf32>
    %143 = vector.broadcast %139 : vector<8x1xf32> to vector<8x512xf32>
    %144 = arith.addf %143, %142 : vector<8x512xf32>
    %c56_73 = arith.constant 56 : index
    %c1_74 = arith.constant 1 : index
    %145 = vector.load %arg6[%c56_73, %c1_74] : memref<392x2xf32, #tpu.memory_space<vmem>>, vector<8x1xf32>
    %146 = vector.broadcast %145 : vector<8x1xf32> to vector<8x512xf32>
    %147 = arith.mulf %146, %20 : vector<8x512xf32>
    %148 = arith.addf %144, %147 : vector<8x512xf32>
    %c7 = arith.constant 7 : index
    %c0_75 = arith.constant 0 : index
    %149 = vector.load %arg8[%c7, %c0_75] : memref<49x512xf32, #tpu.memory_space<vmem>>, vector<1x512xf32>
    %150 = vector.broadcast %149 : vector<1x512xf32> to vector<8x512xf32>
    %151 = arith.mulf %148, %150 : vector<8x512xf32>
    %c0_76 = arith.constant 0 : index
    %c93 = arith.constant 93 : index
    %152 = vector.load %arg12[%c0_76, %c93] : memref<8x768xf32, #tpu.memory_space<vmem>>, vector<8x512xf32>
    %153 = arith.mulf %152, %151 : vector<8x512xf32>
    %154 = arith.addf %138, %153 : vector<8x512xf32>
    %c64 = arith.constant 64 : index
    %c0_77 = arith.constant 0 : index
    %155 = vector.load %arg7[%c64, %c0_77] : memref<392x1xf32, #tpu.memory_space<vmem>>, vector<8x1xf32>
    %c64_78 = arith.constant 64 : index
    %c0_79 = arith.constant 0 : index
    %156 = vector.load %arg6[%c64_78, %c0_79] : memref<392x2xf32, #tpu.memory_space<vmem>>, vector<8x1xf32>
    %157 = vector.broadcast %156 : vector<8x1xf32> to vector<8x512xf32>
    %158 = arith.mulf %157, %17 : vector<8x512xf32>
    %159 = vector.broadcast %155 : vector<8x1xf32> to vector<8x512xf32>
    %160 = arith.addf %159, %158 : vector<8x512xf32>
    %c64_80 = arith.constant 64 : index
    %c1_81 = arith.constant 1 : index
    %161 = vector.load %arg6[%c64_80, %c1_81] : memref<392x2xf32, #tpu.memory_space<vmem>>, vector<8x1xf32>
    %162 = vector.broadcast %161 : vector<8x1xf32> to vector<8x512xf32>
    %163 = arith.mulf %162, %20 : vector<8x512xf32>
    %164 = arith.addf %160, %163 : vector<8x512xf32>
    %c8_82 = arith.constant 8 : index
    %c0_83 = arith.constant 0 : index
    %165 = vector.load %arg8[%c8_82, %c0_83] : memref<49x512xf32, #tpu.memory_space<vmem>>, vector<1x512xf32>
    %166 = vector.broadcast %165 : vector<1x512xf32> to vector<8x512xf32>
    %167 = arith.mulf %164, %166 : vector<8x512xf32>
    %c0_84 = arith.constant 0 : index
    %c94 = arith.constant 94 : index
    %168 = vector.load %arg12[%c0_84, %c94] : memref<8x768xf32, #tpu.memory_space<vmem>>, vector<8x512xf32>
    %169 = arith.mulf %168, %167 : vector<8x512xf32>
    %170 = arith.addf %154, %169 : vector<8x512xf32>
    %c72 = arith.constant 72 : index
    %c0_85 = arith.constant 0 : index
    %171 = vector.load %arg7[%c72, %c0_85] : memref<392x1xf32, #tpu.memory_space<vmem>>, vector<8x1xf32>
    %c72_86 = arith.constant 72 : index
    %c0_87 = arith.constant 0 : index
    %172 = vector.load %arg6[%c72_86, %c0_87] : memref<392x2xf32, #tpu.memory_space<vmem>>, vector<8x1xf32>
    %173 = vector.broadcast %172 : vector<8x1xf32> to vector<8x512xf32>
    %174 = arith.mulf %173, %17 : vector<8x512xf32>
    %175 = vector.broadcast %171 : vector<8x1xf32> to vector<8x512xf32>
    %176 = arith.addf %175, %174 : vector<8x512xf32>
    %c72_88 = arith.constant 72 : index
    %c1_89 = arith.constant 1 : index
    %177 = vector.load %arg6[%c72_88, %c1_89] : memref<392x2xf32, #tpu.memory_space<vmem>>, vector<8x1xf32>
    %178 = vector.broadcast %177 : vector<8x1xf32> to vector<8x512xf32>
    %179 = arith.mulf %178, %20 : vector<8x512xf32>
    %180 = arith.addf %176, %179 : vector<8x512xf32>
    %c9 = arith.constant 9 : index
    %c0_90 = arith.constant 0 : index
    %181 = vector.load %arg8[%c9, %c0_90] : memref<49x512xf32, #tpu.memory_space<vmem>>, vector<1x512xf32>
    %182 = vector.broadcast %181 : vector<1x512xf32> to vector<8x512xf32>
    %183 = arith.mulf %180, %182 : vector<8x512xf32>
    %c0_91 = arith.constant 0 : index
    %c95 = arith.constant 95 : index
    %184 = vector.load %arg12[%c0_91, %c95] : memref<8x768xf32, #tpu.memory_space<vmem>>, vector<8x512xf32>
    %185 = arith.mulf %184, %183 : vector<8x512xf32>
    %186 = arith.addf %170, %185 : vector<8x512xf32>
    %c80_92 = arith.constant 80 : index
    %c0_93 = arith.constant 0 : index
    %187 = vector.load %arg7[%c80_92, %c0_93] : memref<392x1xf32, #tpu.memory_space<vmem>>, vector<8x1xf32>
    %c80_94 = arith.constant 80 : index
    %c0_95 = arith.constant 0 : index
    %188 = vector.load %arg6[%c80_94, %c0_95] : memref<392x2xf32, #tpu.memory_space<vmem>>, vector<8x1xf32>
    %189 = vector.broadcast %188 : vector<8x1xf32> to vector<8x512xf32>
    %190 = arith.mulf %189, %17 : vector<8x512xf32>
    %191 = vector.broadcast %187 : vector<8x1xf32> to vector<8x512xf32>
    %192 = arith.addf %191, %190 : vector<8x512xf32>
    %c80_96 = arith.constant 80 : index
    %c1_97 = arith.constant 1 : index
    %193 = vector.load %arg6[%c80_96, %c1_97] : memref<392x2xf32, #tpu.memory_space<vmem>>, vector<8x1xf32>
    %194 = vector.broadcast %193 : vector<8x1xf32> to vector<8x512xf32>
    %195 = arith.mulf %194, %20 : vector<8x512xf32>
    %196 = arith.addf %192, %195 : vector<8x512xf32>
    %c10 = arith.constant 10 : index
    %c0_98 = arith.constant 0 : index
    %197 = vector.load %arg8[%c10, %c0_98] : memref<49x512xf32, #tpu.memory_space<vmem>>, vector<1x512xf32>
    %198 = vector.broadcast %197 : vector<1x512xf32> to vector<8x512xf32>
    %199 = arith.mulf %196, %198 : vector<8x512xf32>
    %c0_99 = arith.constant 0 : index
    %c96 = arith.constant 96 : index
    %200 = vector.load %arg12[%c0_99, %c96] : memref<8x768xf32, #tpu.memory_space<vmem>>, vector<8x512xf32>
    %201 = arith.mulf %200, %199 : vector<8x512xf32>
    %202 = arith.addf %186, %201 : vector<8x512xf32>
    %c88 = arith.constant 88 : index
    %c0_100 = arith.constant 0 : index
    %203 = vector.load %arg7[%c88, %c0_100] : memref<392x1xf32, #tpu.memory_space<vmem>>, vector<8x1xf32>
    %c88_101 = arith.constant 88 : index
    %c0_102 = arith.constant 0 : index
    %204 = vector.load %arg6[%c88_101, %c0_102] : memref<392x2xf32, #tpu.memory_space<vmem>>, vector<8x1xf32>
    %205 = vector.broadcast %204 : vector<8x1xf32> to vector<8x512xf32>
    %206 = arith.mulf %205, %17 : vector<8x512xf32>
    %207 = vector.broadcast %203 : vector<8x1xf32> to vector<8x512xf32>
    %208 = arith.addf %207, %206 : vector<8x512xf32>
    %c88_103 = arith.constant 88 : index
    %c1_104 = arith.constant 1 : index
    %209 = vector.load %arg6[%c88_103, %c1_104] : memref<392x2xf32, #tpu.memory_space<vmem>>, vector<8x1xf32>
    %210 = vector.broadcast %209 : vector<8x1xf32> to vector<8x512xf32>
    %211 = arith.mulf %210, %20 : vector<8x512xf32>
    %212 = arith.addf %208, %211 : vector<8x512xf32>
    %c11 = arith.constant 11 : index
    %c0_105 = arith.constant 0 : index
    %213 = vector.load %arg8[%c11, %c0_105] : memref<49x512xf32, #tpu.memory_space<vmem>>, vector<1x512xf32>
    %214 = vector.broadcast %213 : vector<1x512xf32> to vector<8x512xf32>
    %215 = arith.mulf %212, %214 : vector<8x512xf32>
    %c0_106 = arith.constant 0 : index
    %c97 = arith.constant 97 : index
    %216 = vector.load %arg12[%c0_106, %c97] : memref<8x768xf32, #tpu.memory_space<vmem>>, vector<8x512xf32>
    %217 = arith.mulf %216, %215 : vector<8x512xf32>
    %218 = arith.addf %202, %217 : vector<8x512xf32>
    %c96_107 = arith.constant 96 : index
    %c0_108 = arith.constant 0 : index
    %219 = vector.load %arg7[%c96_107, %c0_108] : memref<392x1xf32, #tpu.memory_space<vmem>>, vector<8x1xf32>
    %c96_109 = arith.constant 96 : index
    %c0_110 = arith.constant 0 : index
    %220 = vector.load %arg6[%c96_109, %c0_110] : memref<392x2xf32, #tpu.memory_space<vmem>>, vector<8x1xf32>
    %221 = vector.broadcast %220 : vector<8x1xf32> to vector<8x512xf32>
    %222 = arith.mulf %221, %17 : vector<8x512xf32>
    %223 = vector.broadcast %219 : vector<8x1xf32> to vector<8x512xf32>
    %224 = arith.addf %223, %222 : vector<8x512xf32>
    %c96_111 = arith.constant 96 : index
    %c1_112 = arith.constant 1 : index
    %225 = vector.load %arg6[%c96_111, %c1_112] : memref<392x2xf32, #tpu.memory_space<vmem>>, vector<8x1xf32>
    %226 = vector.broadcast %225 : vector<8x1xf32> to vector<8x512xf32>
    %227 = arith.mulf %226, %20 : vector<8x512xf32>
    %228 = arith.addf %224, %227 : vector<8x512xf32>
    %c12 = arith.constant 12 : index
    %c0_113 = arith.constant 0 : index
    %229 = vector.load %arg8[%c12, %c0_113] : memref<49x512xf32, #tpu.memory_space<vmem>>, vector<1x512xf32>
    %230 = vector.broadcast %229 : vector<1x512xf32> to vector<8x512xf32>
    %231 = arith.mulf %228, %230 : vector<8x512xf32>
    %c0_114 = arith.constant 0 : index
    %c98 = arith.constant 98 : index
    %232 = vector.load %arg12[%c0_114, %c98] : memref<8x768xf32, #tpu.memory_space<vmem>>, vector<8x512xf32>
    %233 = arith.mulf %232, %231 : vector<8x512xf32>
    %234 = arith.addf %218, %233 : vector<8x512xf32>
    %c104 = arith.constant 104 : index
    %c0_115 = arith.constant 0 : index
    %235 = vector.load %arg7[%c104, %c0_115] : memref<392x1xf32, #tpu.memory_space<vmem>>, vector<8x1xf32>
    %c104_116 = arith.constant 104 : index
    %c0_117 = arith.constant 0 : index
    %236 = vector.load %arg6[%c104_116, %c0_117] : memref<392x2xf32, #tpu.memory_space<vmem>>, vector<8x1xf32>
    %237 = vector.broadcast %236 : vector<8x1xf32> to vector<8x512xf32>
    %238 = arith.mulf %237, %17 : vector<8x512xf32>
    %239 = vector.broadcast %235 : vector<8x1xf32> to vector<8x512xf32>
    %240 = arith.addf %239, %238 : vector<8x512xf32>
    %c104_118 = arith.constant 104 : index
    %c1_119 = arith.constant 1 : index
    %241 = vector.load %arg6[%c104_118, %c1_119] : memref<392x2xf32, #tpu.memory_space<vmem>>, vector<8x1xf32>
    %242 = vector.broadcast %241 : vector<8x1xf32> to vector<8x512xf32>
    %243 = arith.mulf %242, %20 : vector<8x512xf32>
    %244 = arith.addf %240, %243 : vector<8x512xf32>
    %c13 = arith.constant 13 : index
    %c0_120 = arith.constant 0 : index
    %245 = vector.load %arg8[%c13, %c0_120] : memref<49x512xf32, #tpu.memory_space<vmem>>, vector<1x512xf32>
    %246 = vector.broadcast %245 : vector<1x512xf32> to vector<8x512xf32>
    %247 = arith.mulf %244, %246 : vector<8x512xf32>
    %c0_121 = arith.constant 0 : index
    %c99 = arith.constant 99 : index
    %248 = vector.load %arg12[%c0_121, %c99] : memref<8x768xf32, #tpu.memory_space<vmem>>, vector<8x512xf32>
    %249 = arith.mulf %248, %247 : vector<8x512xf32>
    %250 = arith.addf %234, %249 : vector<8x512xf32>
    %c112 = arith.constant 112 : index
    %c0_122 = arith.constant 0 : index
    %251 = vector.load %arg7[%c112, %c0_122] : memref<392x1xf32, #tpu.memory_space<vmem>>, vector<8x1xf32>
    %c112_123 = arith.constant 112 : index
    %c0_124 = arith.constant 0 : index
    %252 = vector.load %arg6[%c112_123, %c0_124] : memref<392x2xf32, #tpu.memory_space<vmem>>, vector<8x1xf32>
    %253 = vector.broadcast %252 : vector<8x1xf32> to vector<8x512xf32>
    %254 = arith.mulf %253, %17 : vector<8x512xf32>
    %255 = vector.broadcast %251 : vector<8x1xf32> to vector<8x512xf32>
    %256 = arith.addf %255, %254 : vector<8x512xf32>
    %c112_125 = arith.constant 112 : index
    %c1_126 = arith.constant 1 : index
    %257 = vector.load %arg6[%c112_125, %c1_126] : memref<392x2xf32, #tpu.memory_space<vmem>>, vector<8x1xf32>
    %258 = vector.broadcast %257 : vector<8x1xf32> to vector<8x512xf32>
    %259 = arith.mulf %258, %20 : vector<8x512xf32>
    %260 = arith.addf %256, %259 : vector<8x512xf32>
    %c14 = arith.constant 14 : index
    %c0_127 = arith.constant 0 : index
    %261 = vector.load %arg8[%c14, %c0_127] : memref<49x512xf32, #tpu.memory_space<vmem>>, vector<1x512xf32>
    %262 = vector.broadcast %261 : vector<1x512xf32> to vector<8x512xf32>
    %263 = arith.mulf %260, %262 : vector<8x512xf32>
    %c0_128 = arith.constant 0 : index
    %c109 = arith.constant 109 : index
    %264 = vector.load %arg12[%c0_128, %c109] : memref<8x768xf32, #tpu.memory_space<vmem>>, vector<8x512xf32>
    %265 = arith.mulf %264, %263 : vector<8x512xf32>
    %266 = arith.addf %250, %265 : vector<8x512xf32>
    %c120 = arith.constant 120 : index
    %c0_129 = arith.constant 0 : index
    %267 = vector.load %arg7[%c120, %c0_129] : memref<392x1xf32, #tpu.memory_space<vmem>>, vector<8x1xf32>
    %c120_130 = arith.constant 120 : index
    %c0_131 = arith.constant 0 : index
    %268 = vector.load %arg6[%c120_130, %c0_131] : memref<392x2xf32, #tpu.memory_space<vmem>>, vector<8x1xf32>
    %269 = vector.broadcast %268 : vector<8x1xf32> to vector<8x512xf32>
    %270 = arith.mulf %269, %17 : vector<8x512xf32>
    %271 = vector.broadcast %267 : vector<8x1xf32> to vector<8x512xf32>
    %272 = arith.addf %271, %270 : vector<8x512xf32>
    %c120_132 = arith.constant 120 : index
    %c1_133 = arith.constant 1 : index
    %273 = vector.load %arg6[%c120_132, %c1_133] : memref<392x2xf32, #tpu.memory_space<vmem>>, vector<8x1xf32>
    %274 = vector.broadcast %273 : vector<8x1xf32> to vector<8x512xf32>
    %275 = arith.mulf %274, %20 : vector<8x512xf32>
    %276 = arith.addf %272, %275 : vector<8x512xf32>
    %c15 = arith.constant 15 : index
    %c0_134 = arith.constant 0 : index
    %277 = vector.load %arg8[%c15, %c0_134] : memref<49x512xf32, #tpu.memory_space<vmem>>, vector<1x512xf32>
    %278 = vector.broadcast %277 : vector<1x512xf32> to vector<8x512xf32>
    %279 = arith.mulf %276, %278 : vector<8x512xf32>
    %c0_135 = arith.constant 0 : index
    %c110 = arith.constant 110 : index
    %280 = vector.load %arg12[%c0_135, %c110] : memref<8x768xf32, #tpu.memory_space<vmem>>, vector<8x512xf32>
    %281 = arith.mulf %280, %279 : vector<8x512xf32>
    %282 = arith.addf %266, %281 : vector<8x512xf32>
    %c128_136 = arith.constant 128 : index
    %c0_137 = arith.constant 0 : index
    %283 = vector.load %arg7[%c128_136, %c0_137] : memref<392x1xf32, #tpu.memory_space<vmem>>, vector<8x1xf32>
    %c128_138 = arith.constant 128 : index
    %c0_139 = arith.constant 0 : index
    %284 = vector.load %arg6[%c128_138, %c0_139] : memref<392x2xf32, #tpu.memory_space<vmem>>, vector<8x1xf32>
    %285 = vector.broadcast %284 : vector<8x1xf32> to vector<8x512xf32>
    %286 = arith.mulf %285, %17 : vector<8x512xf32>
    %287 = vector.broadcast %283 : vector<8x1xf32> to vector<8x512xf32>
    %288 = arith.addf %287, %286 : vector<8x512xf32>
    %c128_140 = arith.constant 128 : index
    %c1_141 = arith.constant 1 : index
    %289 = vector.load %arg6[%c128_140, %c1_141] : memref<392x2xf32, #tpu.memory_space<vmem>>, vector<8x1xf32>
    %290 = vector.broadcast %289 : vector<8x1xf32> to vector<8x512xf32>
    %291 = arith.mulf %290, %20 : vector<8x512xf32>
    %292 = arith.addf %288, %291 : vector<8x512xf32>
    %c16_142 = arith.constant 16 : index
    %c0_143 = arith.constant 0 : index
    %293 = vector.load %arg8[%c16_142, %c0_143] : memref<49x512xf32, #tpu.memory_space<vmem>>, vector<1x512xf32>
    %294 = vector.broadcast %293 : vector<1x512xf32> to vector<8x512xf32>
    %295 = arith.mulf %292, %294 : vector<8x512xf32>
    %c0_144 = arith.constant 0 : index
    %c111 = arith.constant 111 : index
    %296 = vector.load %arg12[%c0_144, %c111] : memref<8x768xf32, #tpu.memory_space<vmem>>, vector<8x512xf32>
    %297 = arith.mulf %296, %295 : vector<8x512xf32>
    %298 = arith.addf %282, %297 : vector<8x512xf32>
    %c136 = arith.constant 136 : index
    %c0_145 = arith.constant 0 : index
    %299 = vector.load %arg7[%c136, %c0_145] : memref<392x1xf32, #tpu.memory_space<vmem>>, vector<8x1xf32>
    %c136_146 = arith.constant 136 : index
    %c0_147 = arith.constant 0 : index
    %300 = vector.load %arg6[%c136_146, %c0_147] : memref<392x2xf32, #tpu.memory_space<vmem>>, vector<8x1xf32>
    %301 = vector.broadcast %300 : vector<8x1xf32> to vector<8x512xf32>
    %302 = arith.mulf %301, %17 : vector<8x512xf32>
    %303 = vector.broadcast %299 : vector<8x1xf32> to vector<8x512xf32>
    %304 = arith.addf %303, %302 : vector<8x512xf32>
    %c136_148 = arith.constant 136 : index
    %c1_149 = arith.constant 1 : index
    %305 = vector.load %arg6[%c136_148, %c1_149] : memref<392x2xf32, #tpu.memory_space<vmem>>, vector<8x1xf32>
    %306 = vector.broadcast %305 : vector<8x1xf32> to vector<8x512xf32>
    %307 = arith.mulf %306, %20 : vector<8x512xf32>
    %308 = arith.addf %304, %307 : vector<8x512xf32>
    %c17 = arith.constant 17 : index
    %c0_150 = arith.constant 0 : index
    %309 = vector.load %arg8[%c17, %c0_150] : memref<49x512xf32, #tpu.memory_space<vmem>>, vector<1x512xf32>
    %310 = vector.broadcast %309 : vector<1x512xf32> to vector<8x512xf32>
    %311 = arith.mulf %308, %310 : vector<8x512xf32>
    %c0_151 = arith.constant 0 : index
    %c112_152 = arith.constant 112 : index
    %312 = vector.load %arg12[%c0_151, %c112_152] : memref<8x768xf32, #tpu.memory_space<vmem>>, vector<8x512xf32>
    %313 = arith.mulf %312, %311 : vector<8x512xf32>
    %314 = arith.addf %298, %313 : vector<8x512xf32>
    %c144 = arith.constant 144 : index
    %c0_153 = arith.constant 0 : index
    %315 = vector.load %arg7[%c144, %c0_153] : memref<392x1xf32, #tpu.memory_space<vmem>>, vector<8x1xf32>
    %c144_154 = arith.constant 144 : index
    %c0_155 = arith.constant 0 : index
    %316 = vector.load %arg6[%c144_154, %c0_155] : memref<392x2xf32, #tpu.memory_space<vmem>>, vector<8x1xf32>
    %317 = vector.broadcast %316 : vector<8x1xf32> to vector<8x512xf32>
    %318 = arith.mulf %317, %17 : vector<8x512xf32>
    %319 = vector.broadcast %315 : vector<8x1xf32> to vector<8x512xf32>
    %320 = arith.addf %319, %318 : vector<8x512xf32>
    %c144_156 = arith.constant 144 : index
    %c1_157 = arith.constant 1 : index
    %321 = vector.load %arg6[%c144_156, %c1_157] : memref<392x2xf32, #tpu.memory_space<vmem>>, vector<8x1xf32>
    %322 = vector.broadcast %321 : vector<8x1xf32> to vector<8x512xf32>
    %323 = arith.mulf %322, %20 : vector<8x512xf32>
    %324 = arith.addf %320, %323 : vector<8x512xf32>
    %c18 = arith.constant 18 : index
    %c0_158 = arith.constant 0 : index
    %325 = vector.load %arg8[%c18, %c0_158] : memref<49x512xf32, #tpu.memory_space<vmem>>, vector<1x512xf32>
    %326 = vector.broadcast %325 : vector<1x512xf32> to vector<8x512xf32>
    %327 = arith.mulf %324, %326 : vector<8x512xf32>
    %c0_159 = arith.constant 0 : index
    %c113 = arith.constant 113 : index
    %328 = vector.load %arg12[%c0_159, %c113] : memref<8x768xf32, #tpu.memory_space<vmem>>, vector<8x512xf32>
    %329 = arith.mulf %328, %327 : vector<8x512xf32>
    %330 = arith.addf %314, %329 : vector<8x512xf32>
    %c152 = arith.constant 152 : index
    %c0_160 = arith.constant 0 : index
    %331 = vector.load %arg7[%c152, %c0_160] : memref<392x1xf32, #tpu.memory_space<vmem>>, vector<8x1xf32>
    %c152_161 = arith.constant 152 : index
    %c0_162 = arith.constant 0 : index
    %332 = vector.load %arg6[%c152_161, %c0_162] : memref<392x2xf32, #tpu.memory_space<vmem>>, vector<8x1xf32>
    %333 = vector.broadcast %332 : vector<8x1xf32> to vector<8x512xf32>
    %334 = arith.mulf %333, %17 : vector<8x512xf32>
    %335 = vector.broadcast %331 : vector<8x1xf32> to vector<8x512xf32>
    %336 = arith.addf %335, %334 : vector<8x512xf32>
    %c152_163 = arith.constant 152 : index
    %c1_164 = arith.constant 1 : index
    %337 = vector.load %arg6[%c152_163, %c1_164] : memref<392x2xf32, #tpu.memory_space<vmem>>, vector<8x1xf32>
    %338 = vector.broadcast %337 : vector<8x1xf32> to vector<8x512xf32>
    %339 = arith.mulf %338, %20 : vector<8x512xf32>
    %340 = arith.addf %336, %339 : vector<8x512xf32>
    %c19 = arith.constant 19 : index
    %c0_165 = arith.constant 0 : index
    %341 = vector.load %arg8[%c19, %c0_165] : memref<49x512xf32, #tpu.memory_space<vmem>>, vector<1x512xf32>
    %342 = vector.broadcast %341 : vector<1x512xf32> to vector<8x512xf32>
    %343 = arith.mulf %340, %342 : vector<8x512xf32>
    %c0_166 = arith.constant 0 : index
    %c114 = arith.constant 114 : index
    %344 = vector.load %arg12[%c0_166, %c114] : memref<8x768xf32, #tpu.memory_space<vmem>>, vector<8x512xf32>
    %345 = arith.mulf %344, %343 : vector<8x512xf32>
    %346 = arith.addf %330, %345 : vector<8x512xf32>
    %c160 = arith.constant 160 : index
    %c0_167 = arith.constant 0 : index
    %347 = vector.load %arg7[%c160, %c0_167] : memref<392x1xf32, #tpu.memory_space<vmem>>, vector<8x1xf32>
    %c160_168 = arith.constant 160 : index
    %c0_169 = arith.constant 0 : index
    %348 = vector.load %arg6[%c160_168, %c0_169] : memref<392x2xf32, #tpu.memory_space<vmem>>, vector<8x1xf32>
    %349 = vector.broadcast %348 : vector<8x1xf32> to vector<8x512xf32>
    %350 = arith.mulf %349, %17 : vector<8x512xf32>
    %351 = vector.broadcast %347 : vector<8x1xf32> to vector<8x512xf32>
    %352 = arith.addf %351, %350 : vector<8x512xf32>
    %c160_170 = arith.constant 160 : index
    %c1_171 = arith.constant 1 : index
    %353 = vector.load %arg6[%c160_170, %c1_171] : memref<392x2xf32, #tpu.memory_space<vmem>>, vector<8x1xf32>
    %354 = vector.broadcast %353 : vector<8x1xf32> to vector<8x512xf32>
    %355 = arith.mulf %354, %20 : vector<8x512xf32>
    %356 = arith.addf %352, %355 : vector<8x512xf32>
    %c20 = arith.constant 20 : index
    %c0_172 = arith.constant 0 : index
    %357 = vector.load %arg8[%c20, %c0_172] : memref<49x512xf32, #tpu.memory_space<vmem>>, vector<1x512xf32>
    %358 = vector.broadcast %357 : vector<1x512xf32> to vector<8x512xf32>
    %359 = arith.mulf %356, %358 : vector<8x512xf32>
    %c0_173 = arith.constant 0 : index
    %c115 = arith.constant 115 : index
    %360 = vector.load %arg12[%c0_173, %c115] : memref<8x768xf32, #tpu.memory_space<vmem>>, vector<8x512xf32>
    %361 = arith.mulf %360, %359 : vector<8x512xf32>
    %362 = arith.addf %346, %361 : vector<8x512xf32>
    %c168 = arith.constant 168 : index
    %c0_174 = arith.constant 0 : index
    %363 = vector.load %arg7[%c168, %c0_174] : memref<392x1xf32, #tpu.memory_space<vmem>>, vector<8x1xf32>
    %c168_175 = arith.constant 168 : index
    %c0_176 = arith.constant 0 : index
    %364 = vector.load %arg6[%c168_175, %c0_176] : memref<392x2xf32, #tpu.memory_space<vmem>>, vector<8x1xf32>
    %365 = vector.broadcast %364 : vector<8x1xf32> to vector<8x512xf32>
    %366 = arith.mulf %365, %17 : vector<8x512xf32>
    %367 = vector.broadcast %363 : vector<8x1xf32> to vector<8x512xf32>
    %368 = arith.addf %367, %366 : vector<8x512xf32>
    %c168_177 = arith.constant 168 : index
    %c1_178 = arith.constant 1 : index
    %369 = vector.load %arg6[%c168_177, %c1_178] : memref<392x2xf32, #tpu.memory_space<vmem>>, vector<8x1xf32>
    %370 = vector.broadcast %369 : vector<8x1xf32> to vector<8x512xf32>
    %371 = arith.mulf %370, %20 : vector<8x512xf32>
    %372 = arith.addf %368, %371 : vector<8x512xf32>
    %c21 = arith.constant 21 : index
    %c0_179 = arith.constant 0 : index
    %373 = vector.load %arg8[%c21, %c0_179] : memref<49x512xf32, #tpu.memory_space<vmem>>, vector<1x512xf32>
    %374 = vector.broadcast %373 : vector<1x512xf32> to vector<8x512xf32>
    %375 = arith.mulf %372, %374 : vector<8x512xf32>
    %c0_180 = arith.constant 0 : index
    %c125 = arith.constant 125 : index
    %376 = vector.load %arg12[%c0_180, %c125] : memref<8x768xf32, #tpu.memory_space<vmem>>, vector<8x512xf32>
    %377 = arith.mulf %376, %375 : vector<8x512xf32>
    %378 = arith.addf %362, %377 : vector<8x512xf32>
    %c176 = arith.constant 176 : index
    %c0_181 = arith.constant 0 : index
    %379 = vector.load %arg7[%c176, %c0_181] : memref<392x1xf32, #tpu.memory_space<vmem>>, vector<8x1xf32>
    %c176_182 = arith.constant 176 : index
    %c0_183 = arith.constant 0 : index
    %380 = vector.load %arg6[%c176_182, %c0_183] : memref<392x2xf32, #tpu.memory_space<vmem>>, vector<8x1xf32>
    %381 = vector.broadcast %380 : vector<8x1xf32> to vector<8x512xf32>
    %382 = arith.mulf %381, %17 : vector<8x512xf32>
    %383 = vector.broadcast %379 : vector<8x1xf32> to vector<8x512xf32>
    %384 = arith.addf %383, %382 : vector<8x512xf32>
    %c176_184 = arith.constant 176 : index
    %c1_185 = arith.constant 1 : index
    %385 = vector.load %arg6[%c176_184, %c1_185] : memref<392x2xf32, #tpu.memory_space<vmem>>, vector<8x1xf32>
    %386 = vector.broadcast %385 : vector<8x1xf32> to vector<8x512xf32>
    %387 = arith.mulf %386, %20 : vector<8x512xf32>
    %388 = arith.addf %384, %387 : vector<8x512xf32>
    %c22 = arith.constant 22 : index
    %c0_186 = arith.constant 0 : index
    %389 = vector.load %arg8[%c22, %c0_186] : memref<49x512xf32, #tpu.memory_space<vmem>>, vector<1x512xf32>
    %390 = vector.broadcast %389 : vector<1x512xf32> to vector<8x512xf32>
    %391 = arith.mulf %388, %390 : vector<8x512xf32>
    %c0_187 = arith.constant 0 : index
    %c126 = arith.constant 126 : index
    %392 = vector.load %arg12[%c0_187, %c126] : memref<8x768xf32, #tpu.memory_space<vmem>>, vector<8x512xf32>
    %393 = arith.mulf %392, %391 : vector<8x512xf32>
    %394 = arith.addf %378, %393 : vector<8x512xf32>
    %c184 = arith.constant 184 : index
    %c0_188 = arith.constant 0 : index
    %395 = vector.load %arg7[%c184, %c0_188] : memref<392x1xf32, #tpu.memory_space<vmem>>, vector<8x1xf32>
    %c184_189 = arith.constant 184 : index
    %c0_190 = arith.constant 0 : index
    %396 = vector.load %arg6[%c184_189, %c0_190] : memref<392x2xf32, #tpu.memory_space<vmem>>, vector<8x1xf32>
    %397 = vector.broadcast %396 : vector<8x1xf32> to vector<8x512xf32>
    %398 = arith.mulf %397, %17 : vector<8x512xf32>
    %399 = vector.broadcast %395 : vector<8x1xf32> to vector<8x512xf32>
    %400 = arith.addf %399, %398 : vector<8x512xf32>
    %c184_191 = arith.constant 184 : index
    %c1_192 = arith.constant 1 : index
    %401 = vector.load %arg6[%c184_191, %c1_192] : memref<392x2xf32, #tpu.memory_space<vmem>>, vector<8x1xf32>
    %402 = vector.broadcast %401 : vector<8x1xf32> to vector<8x512xf32>
    %403 = arith.mulf %402, %20 : vector<8x512xf32>
    %404 = arith.addf %400, %403 : vector<8x512xf32>
    %c23 = arith.constant 23 : index
    %c0_193 = arith.constant 0 : index
    %405 = vector.load %arg8[%c23, %c0_193] : memref<49x512xf32, #tpu.memory_space<vmem>>, vector<1x512xf32>
    %406 = vector.broadcast %405 : vector<1x512xf32> to vector<8x512xf32>
    %407 = arith.mulf %404, %406 : vector<8x512xf32>
    %c0_194 = arith.constant 0 : index
    %c127 = arith.constant 127 : index
    %408 = vector.load %arg12[%c0_194, %c127] : memref<8x768xf32, #tpu.memory_space<vmem>>, vector<8x512xf32>
    %409 = arith.mulf %408, %407 : vector<8x512xf32>
    %410 = arith.addf %394, %409 : vector<8x512xf32>
    %c192 = arith.constant 192 : index
    %c0_195 = arith.constant 0 : index
    %411 = vector.load %arg7[%c192, %c0_195] : memref<392x1xf32, #tpu.memory_space<vmem>>, vector<8x1xf32>
    %c192_196 = arith.constant 192 : index
    %c0_197 = arith.constant 0 : index
    %412 = vector.load %arg6[%c192_196, %c0_197] : memref<392x2xf32, #tpu.memory_space<vmem>>, vector<8x1xf32>
    %413 = vector.broadcast %412 : vector<8x1xf32> to vector<8x512xf32>
    %414 = arith.mulf %413, %17 : vector<8x512xf32>
    %415 = vector.broadcast %411 : vector<8x1xf32> to vector<8x512xf32>
    %416 = arith.addf %415, %414 : vector<8x512xf32>
    %c192_198 = arith.constant 192 : index
    %c1_199 = arith.constant 1 : index
    %417 = vector.load %arg6[%c192_198, %c1_199] : memref<392x2xf32, #tpu.memory_space<vmem>>, vector<8x1xf32>
    %418 = vector.broadcast %417 : vector<8x1xf32> to vector<8x512xf32>
    %419 = arith.mulf %418, %20 : vector<8x512xf32>
    %420 = arith.addf %416, %419 : vector<8x512xf32>
    %c24_200 = arith.constant 24 : index
    %c0_201 = arith.constant 0 : index
    %421 = vector.load %arg8[%c24_200, %c0_201] : memref<49x512xf32, #tpu.memory_space<vmem>>, vector<1x512xf32>
    %422 = vector.broadcast %421 : vector<1x512xf32> to vector<8x512xf32>
    %423 = arith.mulf %420, %422 : vector<8x512xf32>
    %c0_202 = arith.constant 0 : index
    %c128_203 = arith.constant 128 : index
    %424 = vector.load %arg12[%c0_202, %c128_203] : memref<8x768xf32, #tpu.memory_space<vmem>>, vector<8x512xf32>
    %425 = arith.mulf %424, %423 : vector<8x512xf32>
    %426 = arith.addf %410, %425 : vector<8x512xf32>
    %c200 = arith.constant 200 : index
    %c0_204 = arith.constant 0 : index
    %427 = vector.load %arg7[%c200, %c0_204] : memref<392x1xf32, #tpu.memory_space<vmem>>, vector<8x1xf32>
    %c200_205 = arith.constant 200 : index
    %c0_206 = arith.constant 0 : index
    %428 = vector.load %arg6[%c200_205, %c0_206] : memref<392x2xf32, #tpu.memory_space<vmem>>, vector<8x1xf32>
    %429 = vector.broadcast %428 : vector<8x1xf32> to vector<8x512xf32>
    %430 = arith.mulf %429, %17 : vector<8x512xf32>
    %431 = vector.broadcast %427 : vector<8x1xf32> to vector<8x512xf32>
    %432 = arith.addf %431, %430 : vector<8x512xf32>
    %c200_207 = arith.constant 200 : index
    %c1_208 = arith.constant 1 : index
    %433 = vector.load %arg6[%c200_207, %c1_208] : memref<392x2xf32, #tpu.memory_space<vmem>>, vector<8x1xf32>
    %434 = vector.broadcast %433 : vector<8x1xf32> to vector<8x512xf32>
    %435 = arith.mulf %434, %20 : vector<8x512xf32>
    %436 = arith.addf %432, %435 : vector<8x512xf32>
    %c25 = arith.constant 25 : index
    %c0_209 = arith.constant 0 : index
    %437 = vector.load %arg8[%c25, %c0_209] : memref<49x512xf32, #tpu.memory_space<vmem>>, vector<1x512xf32>
    %438 = vector.broadcast %437 : vector<1x512xf32> to vector<8x512xf32>
    %439 = arith.mulf %436, %438 : vector<8x512xf32>
    %c0_210 = arith.constant 0 : index
    %c129 = arith.constant 129 : index
    %440 = vector.load %arg12[%c0_210, %c129] : memref<8x768xf32, #tpu.memory_space<vmem>>, vector<8x512xf32>
    %441 = arith.mulf %440, %439 : vector<8x512xf32>
    %442 = arith.addf %426, %441 : vector<8x512xf32>
    %c208 = arith.constant 208 : index
    %c0_211 = arith.constant 0 : index
    %443 = vector.load %arg7[%c208, %c0_211] : memref<392x1xf32, #tpu.memory_space<vmem>>, vector<8x1xf32>
    %c208_212 = arith.constant 208 : index
    %c0_213 = arith.constant 0 : index
    %444 = vector.load %arg6[%c208_212, %c0_213] : memref<392x2xf32, #tpu.memory_space<vmem>>, vector<8x1xf32>
    %445 = vector.broadcast %444 : vector<8x1xf32> to vector<8x512xf32>
    %446 = arith.mulf %445, %17 : vector<8x512xf32>
    %447 = vector.broadcast %443 : vector<8x1xf32> to vector<8x512xf32>
    %448 = arith.addf %447, %446 : vector<8x512xf32>
    %c208_214 = arith.constant 208 : index
    %c1_215 = arith.constant 1 : index
    %449 = vector.load %arg6[%c208_214, %c1_215] : memref<392x2xf32, #tpu.memory_space<vmem>>, vector<8x1xf32>
    %450 = vector.broadcast %449 : vector<8x1xf32> to vector<8x512xf32>
    %451 = arith.mulf %450, %20 : vector<8x512xf32>
    %452 = arith.addf %448, %451 : vector<8x512xf32>
    %c26 = arith.constant 26 : index
    %c0_216 = arith.constant 0 : index
    %453 = vector.load %arg8[%c26, %c0_216] : memref<49x512xf32, #tpu.memory_space<vmem>>, vector<1x512xf32>
    %454 = vector.broadcast %453 : vector<1x512xf32> to vector<8x512xf32>
    %455 = arith.mulf %452, %454 : vector<8x512xf32>
    %c0_217 = arith.constant 0 : index
    %c130 = arith.constant 130 : index
    %456 = vector.load %arg12[%c0_217, %c130] : memref<8x768xf32, #tpu.memory_space<vmem>>, vector<8x512xf32>
    %457 = arith.mulf %456, %455 : vector<8x512xf32>
    %458 = arith.addf %442, %457 : vector<8x512xf32>
    %c216 = arith.constant 216 : index
    %c0_218 = arith.constant 0 : index
    %459 = vector.load %arg7[%c216, %c0_218] : memref<392x1xf32, #tpu.memory_space<vmem>>, vector<8x1xf32>
    %c216_219 = arith.constant 216 : index
    %c0_220 = arith.constant 0 : index
    %460 = vector.load %arg6[%c216_219, %c0_220] : memref<392x2xf32, #tpu.memory_space<vmem>>, vector<8x1xf32>
    %461 = vector.broadcast %460 : vector<8x1xf32> to vector<8x512xf32>
    %462 = arith.mulf %461, %17 : vector<8x512xf32>
    %463 = vector.broadcast %459 : vector<8x1xf32> to vector<8x512xf32>
    %464 = arith.addf %463, %462 : vector<8x512xf32>
    %c216_221 = arith.constant 216 : index
    %c1_222 = arith.constant 1 : index
    %465 = vector.load %arg6[%c216_221, %c1_222] : memref<392x2xf32, #tpu.memory_space<vmem>>, vector<8x1xf32>
    %466 = vector.broadcast %465 : vector<8x1xf32> to vector<8x512xf32>
    %467 = arith.mulf %466, %20 : vector<8x512xf32>
    %468 = arith.addf %464, %467 : vector<8x512xf32>
    %c27 = arith.constant 27 : index
    %c0_223 = arith.constant 0 : index
    %469 = vector.load %arg8[%c27, %c0_223] : memref<49x512xf32, #tpu.memory_space<vmem>>, vector<1x512xf32>
    %470 = vector.broadcast %469 : vector<1x512xf32> to vector<8x512xf32>
    %471 = arith.mulf %468, %470 : vector<8x512xf32>
    %c0_224 = arith.constant 0 : index
    %c131 = arith.constant 131 : index
    %472 = vector.load %arg12[%c0_224, %c131] : memref<8x768xf32, #tpu.memory_space<vmem>>, vector<8x512xf32>
    %473 = arith.mulf %472, %471 : vector<8x512xf32>
    %474 = arith.addf %458, %473 : vector<8x512xf32>
    %c224 = arith.constant 224 : index
    %c0_225 = arith.constant 0 : index
    %475 = vector.load %arg7[%c224, %c0_225] : memref<392x1xf32, #tpu.memory_space<vmem>>, vector<8x1xf32>
    %c224_226 = arith.constant 224 : index
    %c0_227 = arith.constant 0 : index
    %476 = vector.load %arg6[%c224_226, %c0_227] : memref<392x2xf32, #tpu.memory_space<vmem>>, vector<8x1xf32>
    %477 = vector.broadcast %476 : vector<8x1xf32> to vector<8x512xf32>
    %478 = arith.mulf %477, %17 : vector<8x512xf32>
    %479 = vector.broadcast %475 : vector<8x1xf32> to vector<8x512xf32>
    %480 = arith.addf %479, %478 : vector<8x512xf32>
    %c224_228 = arith.constant 224 : index
    %c1_229 = arith.constant 1 : index
    %481 = vector.load %arg6[%c224_228, %c1_229] : memref<392x2xf32, #tpu.memory_space<vmem>>, vector<8x1xf32>
    %482 = vector.broadcast %481 : vector<8x1xf32> to vector<8x512xf32>
    %483 = arith.mulf %482, %20 : vector<8x512xf32>
    %484 = arith.addf %480, %483 : vector<8x512xf32>
    %c28 = arith.constant 28 : index
    %c0_230 = arith.constant 0 : index
    %485 = vector.load %arg8[%c28, %c0_230] : memref<49x512xf32, #tpu.memory_space<vmem>>, vector<1x512xf32>
    %486 = vector.broadcast %485 : vector<1x512xf32> to vector<8x512xf32>
    %487 = arith.mulf %484, %486 : vector<8x512xf32>
    %c0_231 = arith.constant 0 : index
    %c141 = arith.constant 141 : index
    %488 = vector.load %arg12[%c0_231, %c141] : memref<8x768xf32, #tpu.memory_space<vmem>>, vector<8x512xf32>
    %489 = arith.mulf %488, %487 : vector<8x512xf32>
    %490 = arith.addf %474, %489 : vector<8x512xf32>
    %c232 = arith.constant 232 : index
    %c0_232 = arith.constant 0 : index
    %491 = vector.load %arg7[%c232, %c0_232] : memref<392x1xf32, #tpu.memory_space<vmem>>, vector<8x1xf32>
    %c232_233 = arith.constant 232 : index
    %c0_234 = arith.constant 0 : index
    %492 = vector.load %arg6[%c232_233, %c0_234] : memref<392x2xf32, #tpu.memory_space<vmem>>, vector<8x1xf32>
    %493 = vector.broadcast %492 : vector<8x1xf32> to vector<8x512xf32>
    %494 = arith.mulf %493, %17 : vector<8x512xf32>
    %495 = vector.broadcast %491 : vector<8x1xf32> to vector<8x512xf32>
    %496 = arith.addf %495, %494 : vector<8x512xf32>
    %c232_235 = arith.constant 232 : index
    %c1_236 = arith.constant 1 : index
    %497 = vector.load %arg6[%c232_235, %c1_236] : memref<392x2xf32, #tpu.memory_space<vmem>>, vector<8x1xf32>
    %498 = vector.broadcast %497 : vector<8x1xf32> to vector<8x512xf32>
    %499 = arith.mulf %498, %20 : vector<8x512xf32>
    %500 = arith.addf %496, %499 : vector<8x512xf32>
    %c29 = arith.constant 29 : index
    %c0_237 = arith.constant 0 : index
    %501 = vector.load %arg8[%c29, %c0_237] : memref<49x512xf32, #tpu.memory_space<vmem>>, vector<1x512xf32>
    %502 = vector.broadcast %501 : vector<1x512xf32> to vector<8x512xf32>
    %503 = arith.mulf %500, %502 : vector<8x512xf32>
    %c0_238 = arith.constant 0 : index
    %c142 = arith.constant 142 : index
    %504 = vector.load %arg12[%c0_238, %c142] : memref<8x768xf32, #tpu.memory_space<vmem>>, vector<8x512xf32>
    %505 = arith.mulf %504, %503 : vector<8x512xf32>
    %506 = arith.addf %490, %505 : vector<8x512xf32>
    %c240 = arith.constant 240 : index
    %c0_239 = arith.constant 0 : index
    %507 = vector.load %arg7[%c240, %c0_239] : memref<392x1xf32, #tpu.memory_space<vmem>>, vector<8x1xf32>
    %c240_240 = arith.constant 240 : index
    %c0_241 = arith.constant 0 : index
    %508 = vector.load %arg6[%c240_240, %c0_241] : memref<392x2xf32, #tpu.memory_space<vmem>>, vector<8x1xf32>
    %509 = vector.broadcast %508 : vector<8x1xf32> to vector<8x512xf32>
    %510 = arith.mulf %509, %17 : vector<8x512xf32>
    %511 = vector.broadcast %507 : vector<8x1xf32> to vector<8x512xf32>
    %512 = arith.addf %511, %510 : vector<8x512xf32>
    %c240_242 = arith.constant 240 : index
    %c1_243 = arith.constant 1 : index
    %513 = vector.load %arg6[%c240_242, %c1_243] : memref<392x2xf32, #tpu.memory_space<vmem>>, vector<8x1xf32>
    %514 = vector.broadcast %513 : vector<8x1xf32> to vector<8x512xf32>
    %515 = arith.mulf %514, %20 : vector<8x512xf32>
    %516 = arith.addf %512, %515 : vector<8x512xf32>
    %c30 = arith.constant 30 : index
    %c0_244 = arith.constant 0 : index
    %517 = vector.load %arg8[%c30, %c0_244] : memref<49x512xf32, #tpu.memory_space<vmem>>, vector<1x512xf32>
    %518 = vector.broadcast %517 : vector<1x512xf32> to vector<8x512xf32>
    %519 = arith.mulf %516, %518 : vector<8x512xf32>
    %c0_245 = arith.constant 0 : index
    %c143 = arith.constant 143 : index
    %520 = vector.load %arg12[%c0_245, %c143] : memref<8x768xf32, #tpu.memory_space<vmem>>, vector<8x512xf32>
    %521 = arith.mulf %520, %519 : vector<8x512xf32>
    %522 = arith.addf %506, %521 : vector<8x512xf32>
    %c248 = arith.constant 248 : index
    %c0_246 = arith.constant 0 : index
    %523 = vector.load %arg7[%c248, %c0_246] : memref<392x1xf32, #tpu.memory_space<vmem>>, vector<8x1xf32>
    %c248_247 = arith.constant 248 : index
    %c0_248 = arith.constant 0 : index
    %524 = vector.load %arg6[%c248_247, %c0_248] : memref<392x2xf32, #tpu.memory_space<vmem>>, vector<8x1xf32>
    %525 = vector.broadcast %524 : vector<8x1xf32> to vector<8x512xf32>
    %526 = arith.mulf %525, %17 : vector<8x512xf32>
    %527 = vector.broadcast %523 : vector<8x1xf32> to vector<8x512xf32>
    %528 = arith.addf %527, %526 : vector<8x512xf32>
    %c248_249 = arith.constant 248 : index
    %c1_250 = arith.constant 1 : index
    %529 = vector.load %arg6[%c248_249, %c1_250] : memref<392x2xf32, #tpu.memory_space<vmem>>, vector<8x1xf32>
    %530 = vector.broadcast %529 : vector<8x1xf32> to vector<8x512xf32>
    %531 = arith.mulf %530, %20 : vector<8x512xf32>
    %532 = arith.addf %528, %531 : vector<8x512xf32>
    %c31 = arith.constant 31 : index
    %c0_251 = arith.constant 0 : index
    %533 = vector.load %arg8[%c31, %c0_251] : memref<49x512xf32, #tpu.memory_space<vmem>>, vector<1x512xf32>
    %534 = vector.broadcast %533 : vector<1x512xf32> to vector<8x512xf32>
    %535 = arith.mulf %532, %534 : vector<8x512xf32>
    %c0_252 = arith.constant 0 : index
    %c144_253 = arith.constant 144 : index
    %536 = vector.load %arg12[%c0_252, %c144_253] : memref<8x768xf32, #tpu.memory_space<vmem>>, vector<8x512xf32>
    %537 = arith.mulf %536, %535 : vector<8x512xf32>
    %538 = arith.addf %522, %537 : vector<8x512xf32>
    %c256 = arith.constant 256 : index
    %c0_254 = arith.constant 0 : index
    %539 = vector.load %arg7[%c256, %c0_254] : memref<392x1xf32, #tpu.memory_space<vmem>>, vector<8x1xf32>
    %c256_255 = arith.constant 256 : index
    %c0_256 = arith.constant 0 : index
    %540 = vector.load %arg6[%c256_255, %c0_256] : memref<392x2xf32, #tpu.memory_space<vmem>>, vector<8x1xf32>
    %541 = vector.broadcast %540 : vector<8x1xf32> to vector<8x512xf32>
    %542 = arith.mulf %541, %17 : vector<8x512xf32>
    %543 = vector.broadcast %539 : vector<8x1xf32> to vector<8x512xf32>
    %544 = arith.addf %543, %542 : vector<8x512xf32>
    %c256_257 = arith.constant 256 : index
    %c1_258 = arith.constant 1 : index
    %545 = vector.load %arg6[%c256_257, %c1_258] : memref<392x2xf32, #tpu.memory_space<vmem>>, vector<8x1xf32>
    %546 = vector.broadcast %545 : vector<8x1xf32> to vector<8x512xf32>
    %547 = arith.mulf %546, %20 : vector<8x512xf32>
    %548 = arith.addf %544, %547 : vector<8x512xf32>
    %c32_259 = arith.constant 32 : index
    %c0_260 = arith.constant 0 : index
    %549 = vector.load %arg8[%c32_259, %c0_260] : memref<49x512xf32, #tpu.memory_space<vmem>>, vector<1x512xf32>
    %550 = vector.broadcast %549 : vector<1x512xf32> to vector<8x512xf32>
    %551 = arith.mulf %548, %550 : vector<8x512xf32>
    %c0_261 = arith.constant 0 : index
    %c145 = arith.constant 145 : index
    %552 = vector.load %arg12[%c0_261, %c145] : memref<8x768xf32, #tpu.memory_space<vmem>>, vector<8x512xf32>
    %553 = arith.mulf %552, %551 : vector<8x512xf32>
    %554 = arith.addf %538, %553 : vector<8x512xf32>
    %c264 = arith.constant 264 : index
    %c0_262 = arith.constant 0 : index
    %555 = vector.load %arg7[%c264, %c0_262] : memref<392x1xf32, #tpu.memory_space<vmem>>, vector<8x1xf32>
    %c264_263 = arith.constant 264 : index
    %c0_264 = arith.constant 0 : index
    %556 = vector.load %arg6[%c264_263, %c0_264] : memref<392x2xf32, #tpu.memory_space<vmem>>, vector<8x1xf32>
    %557 = vector.broadcast %556 : vector<8x1xf32> to vector<8x512xf32>
    %558 = arith.mulf %557, %17 : vector<8x512xf32>
    %559 = vector.broadcast %555 : vector<8x1xf32> to vector<8x512xf32>
    %560 = arith.addf %559, %558 : vector<8x512xf32>
    %c264_265 = arith.constant 264 : index
    %c1_266 = arith.constant 1 : index
    %561 = vector.load %arg6[%c264_265, %c1_266] : memref<392x2xf32, #tpu.memory_space<vmem>>, vector<8x1xf32>
    %562 = vector.broadcast %561 : vector<8x1xf32> to vector<8x512xf32>
    %563 = arith.mulf %562, %20 : vector<8x512xf32>
    %564 = arith.addf %560, %563 : vector<8x512xf32>
    %c33 = arith.constant 33 : index
    %c0_267 = arith.constant 0 : index
    %565 = vector.load %arg8[%c33, %c0_267] : memref<49x512xf32, #tpu.memory_space<vmem>>, vector<1x512xf32>
    %566 = vector.broadcast %565 : vector<1x512xf32> to vector<8x512xf32>
    %567 = arith.mulf %564, %566 : vector<8x512xf32>
    %c0_268 = arith.constant 0 : index
    %c146 = arith.constant 146 : index
    %568 = vector.load %arg12[%c0_268, %c146] : memref<8x768xf32, #tpu.memory_space<vmem>>, vector<8x512xf32>
    %569 = arith.mulf %568, %567 : vector<8x512xf32>
    %570 = arith.addf %554, %569 : vector<8x512xf32>
    %c272 = arith.constant 272 : index
    %c0_269 = arith.constant 0 : index
    %571 = vector.load %arg7[%c272, %c0_269] : memref<392x1xf32, #tpu.memory_space<vmem>>, vector<8x1xf32>
    %c272_270 = arith.constant 272 : index
    %c0_271 = arith.constant 0 : index
    %572 = vector.load %arg6[%c272_270, %c0_271] : memref<392x2xf32, #tpu.memory_space<vmem>>, vector<8x1xf32>
    %573 = vector.broadcast %572 : vector<8x1xf32> to vector<8x512xf32>
    %574 = arith.mulf %573, %17 : vector<8x512xf32>
    %575 = vector.broadcast %571 : vector<8x1xf32> to vector<8x512xf32>
    %576 = arith.addf %575, %574 : vector<8x512xf32>
    %c272_272 = arith.constant 272 : index
    %c1_273 = arith.constant 1 : index
    %577 = vector.load %arg6[%c272_272, %c1_273] : memref<392x2xf32, #tpu.memory_space<vmem>>, vector<8x1xf32>
    %578 = vector.broadcast %577 : vector<8x1xf32> to vector<8x512xf32>
    %579 = arith.mulf %578, %20 : vector<8x512xf32>
    %580 = arith.addf %576, %579 : vector<8x512xf32>
    %c34 = arith.constant 34 : index
    %c0_274 = arith.constant 0 : index
    %581 = vector.load %arg8[%c34, %c0_274] : memref<49x512xf32, #tpu.memory_space<vmem>>, vector<1x512xf32>
    %582 = vector.broadcast %581 : vector<1x512xf32> to vector<8x512xf32>
    %583 = arith.mulf %580, %582 : vector<8x512xf32>
    %c0_275 = arith.constant 0 : index
    %c147 = arith.constant 147 : index
    %584 = vector.load %arg12[%c0_275, %c147] : memref<8x768xf32, #tpu.memory_space<vmem>>, vector<8x512xf32>
    %585 = arith.mulf %584, %583 : vector<8x512xf32>
    %586 = arith.addf %570, %585 : vector<8x512xf32>
    %c280 = arith.constant 280 : index
    %c0_276 = arith.constant 0 : index
    %587 = vector.load %arg7[%c280, %c0_276] : memref<392x1xf32, #tpu.memory_space<vmem>>, vector<8x1xf32>
    %c280_277 = arith.constant 280 : index
    %c0_278 = arith.constant 0 : index
    %588 = vector.load %arg6[%c280_277, %c0_278] : memref<392x2xf32, #tpu.memory_space<vmem>>, vector<8x1xf32>
    %589 = vector.broadcast %588 : vector<8x1xf32> to vector<8x512xf32>
    %590 = arith.mulf %589, %17 : vector<8x512xf32>
    %591 = vector.broadcast %587 : vector<8x1xf32> to vector<8x512xf32>
    %592 = arith.addf %591, %590 : vector<8x512xf32>
    %c280_279 = arith.constant 280 : index
    %c1_280 = arith.constant 1 : index
    %593 = vector.load %arg6[%c280_279, %c1_280] : memref<392x2xf32, #tpu.memory_space<vmem>>, vector<8x1xf32>
    %594 = vector.broadcast %593 : vector<8x1xf32> to vector<8x512xf32>
    %595 = arith.mulf %594, %20 : vector<8x512xf32>
    %596 = arith.addf %592, %595 : vector<8x512xf32>
    %c35 = arith.constant 35 : index
    %c0_281 = arith.constant 0 : index
    %597 = vector.load %arg8[%c35, %c0_281] : memref<49x512xf32, #tpu.memory_space<vmem>>, vector<1x512xf32>
    %598 = vector.broadcast %597 : vector<1x512xf32> to vector<8x512xf32>
    %599 = arith.mulf %596, %598 : vector<8x512xf32>
    %c0_282 = arith.constant 0 : index
    %c157 = arith.constant 157 : index
    %600 = vector.load %arg12[%c0_282, %c157] : memref<8x768xf32, #tpu.memory_space<vmem>>, vector<8x512xf32>
    %601 = arith.mulf %600, %599 : vector<8x512xf32>
    %602 = arith.addf %586, %601 : vector<8x512xf32>
    %c288 = arith.constant 288 : index
    %c0_283 = arith.constant 0 : index
    %603 = vector.load %arg7[%c288, %c0_283] : memref<392x1xf32, #tpu.memory_space<vmem>>, vector<8x1xf32>
    %c288_284 = arith.constant 288 : index
    %c0_285 = arith.constant 0 : index
    %604 = vector.load %arg6[%c288_284, %c0_285] : memref<392x2xf32, #tpu.memory_space<vmem>>, vector<8x1xf32>
    %605 = vector.broadcast %604 : vector<8x1xf32> to vector<8x512xf32>
    %606 = arith.mulf %605, %17 : vector<8x512xf32>
    %607 = vector.broadcast %603 : vector<8x1xf32> to vector<8x512xf32>
    %608 = arith.addf %607, %606 : vector<8x512xf32>
    %c288_286 = arith.constant 288 : index
    %c1_287 = arith.constant 1 : index
    %609 = vector.load %arg6[%c288_286, %c1_287] : memref<392x2xf32, #tpu.memory_space<vmem>>, vector<8x1xf32>
    %610 = vector.broadcast %609 : vector<8x1xf32> to vector<8x512xf32>
    %611 = arith.mulf %610, %20 : vector<8x512xf32>
    %612 = arith.addf %608, %611 : vector<8x512xf32>
    %c36 = arith.constant 36 : index
    %c0_288 = arith.constant 0 : index
    %613 = vector.load %arg8[%c36, %c0_288] : memref<49x512xf32, #tpu.memory_space<vmem>>, vector<1x512xf32>
    %614 = vector.broadcast %613 : vector<1x512xf32> to vector<8x512xf32>
    %615 = arith.mulf %612, %614 : vector<8x512xf32>
    %c0_289 = arith.constant 0 : index
    %c158 = arith.constant 158 : index
    %616 = vector.load %arg12[%c0_289, %c158] : memref<8x768xf32, #tpu.memory_space<vmem>>, vector<8x512xf32>
    %617 = arith.mulf %616, %615 : vector<8x512xf32>
    %618 = arith.addf %602, %617 : vector<8x512xf32>
    %c296 = arith.constant 296 : index
    %c0_290 = arith.constant 0 : index
    %619 = vector.load %arg7[%c296, %c0_290] : memref<392x1xf32, #tpu.memory_space<vmem>>, vector<8x1xf32>
    %c296_291 = arith.constant 296 : index
    %c0_292 = arith.constant 0 : index
    %620 = vector.load %arg6[%c296_291, %c0_292] : memref<392x2xf32, #tpu.memory_space<vmem>>, vector<8x1xf32>
    %621 = vector.broadcast %620 : vector<8x1xf32> to vector<8x512xf32>
    %622 = arith.mulf %621, %17 : vector<8x512xf32>
    %623 = vector.broadcast %619 : vector<8x1xf32> to vector<8x512xf32>
    %624 = arith.addf %623, %622 : vector<8x512xf32>
    %c296_293 = arith.constant 296 : index
    %c1_294 = arith.constant 1 : index
    %625 = vector.load %arg6[%c296_293, %c1_294] : memref<392x2xf32, #tpu.memory_space<vmem>>, vector<8x1xf32>
    %626 = vector.broadcast %625 : vector<8x1xf32> to vector<8x512xf32>
    %627 = arith.mulf %626, %20 : vector<8x512xf32>
    %628 = arith.addf %624, %627 : vector<8x512xf32>
    %c37 = arith.constant 37 : index
    %c0_295 = arith.constant 0 : index
    %629 = vector.load %arg8[%c37, %c0_295] : memref<49x512xf32, #tpu.memory_space<vmem>>, vector<1x512xf32>
    %630 = vector.broadcast %629 : vector<1x512xf32> to vector<8x512xf32>
    %631 = arith.mulf %628, %630 : vector<8x512xf32>
    %c0_296 = arith.constant 0 : index
    %c159 = arith.constant 159 : index
    %632 = vector.load %arg12[%c0_296, %c159] : memref<8x768xf32, #tpu.memory_space<vmem>>, vector<8x512xf32>
    %633 = arith.mulf %632, %631 : vector<8x512xf32>
    %634 = arith.addf %618, %633 : vector<8x512xf32>
    %c304 = arith.constant 304 : index
    %c0_297 = arith.constant 0 : index
    %635 = vector.load %arg7[%c304, %c0_297] : memref<392x1xf32, #tpu.memory_space<vmem>>, vector<8x1xf32>
    %c304_298 = arith.constant 304 : index
    %c0_299 = arith.constant 0 : index
    %636 = vector.load %arg6[%c304_298, %c0_299] : memref<392x2xf32, #tpu.memory_space<vmem>>, vector<8x1xf32>
    %637 = vector.broadcast %636 : vector<8x1xf32> to vector<8x512xf32>
    %638 = arith.mulf %637, %17 : vector<8x512xf32>
    %639 = vector.broadcast %635 : vector<8x1xf32> to vector<8x512xf32>
    %640 = arith.addf %639, %638 : vector<8x512xf32>
    %c304_300 = arith.constant 304 : index
    %c1_301 = arith.constant 1 : index
    %641 = vector.load %arg6[%c304_300, %c1_301] : memref<392x2xf32, #tpu.memory_space<vmem>>, vector<8x1xf32>
    %642 = vector.broadcast %641 : vector<8x1xf32> to vector<8x512xf32>
    %643 = arith.mulf %642, %20 : vector<8x512xf32>
    %644 = arith.addf %640, %643 : vector<8x512xf32>
    %c38 = arith.constant 38 : index
    %c0_302 = arith.constant 0 : index
    %645 = vector.load %arg8[%c38, %c0_302] : memref<49x512xf32, #tpu.memory_space<vmem>>, vector<1x512xf32>
    %646 = vector.broadcast %645 : vector<1x512xf32> to vector<8x512xf32>
    %647 = arith.mulf %644, %646 : vector<8x512xf32>
    %c0_303 = arith.constant 0 : index
    %c160_304 = arith.constant 160 : index
    %648 = vector.load %arg12[%c0_303, %c160_304] : memref<8x768xf32, #tpu.memory_space<vmem>>, vector<8x512xf32>
    %649 = arith.mulf %648, %647 : vector<8x512xf32>
    %650 = arith.addf %634, %649 : vector<8x512xf32>
    %c312 = arith.constant 312 : index
    %c0_305 = arith.constant 0 : index
    %651 = vector.load %arg7[%c312, %c0_305] : memref<392x1xf32, #tpu.memory_space<vmem>>, vector<8x1xf32>
    %c312_306 = arith.constant 312 : index
    %c0_307 = arith.constant 0 : index
    %652 = vector.load %arg6[%c312_306, %c0_307] : memref<392x2xf32, #tpu.memory_space<vmem>>, vector<8x1xf32>
    %653 = vector.broadcast %652 : vector<8x1xf32> to vector<8x512xf32>
    %654 = arith.mulf %653, %17 : vector<8x512xf32>
    %655 = vector.broadcast %651 : vector<8x1xf32> to vector<8x512xf32>
    %656 = arith.addf %655, %654 : vector<8x512xf32>
    %c312_308 = arith.constant 312 : index
    %c1_309 = arith.constant 1 : index
    %657 = vector.load %arg6[%c312_308, %c1_309] : memref<392x2xf32, #tpu.memory_space<vmem>>, vector<8x1xf32>
    %658 = vector.broadcast %657 : vector<8x1xf32> to vector<8x512xf32>
    %659 = arith.mulf %658, %20 : vector<8x512xf32>
    %660 = arith.addf %656, %659 : vector<8x512xf32>
    %c39 = arith.constant 39 : index
    %c0_310 = arith.constant 0 : index
    %661 = vector.load %arg8[%c39, %c0_310] : memref<49x512xf32, #tpu.memory_space<vmem>>, vector<1x512xf32>
    %662 = vector.broadcast %661 : vector<1x512xf32> to vector<8x512xf32>
    %663 = arith.mulf %660, %662 : vector<8x512xf32>
    %c0_311 = arith.constant 0 : index
    %c161 = arith.constant 161 : index
    %664 = vector.load %arg12[%c0_311, %c161] : memref<8x768xf32, #tpu.memory_space<vmem>>, vector<8x512xf32>
    %665 = arith.mulf %664, %663 : vector<8x512xf32>
    %666 = arith.addf %650, %665 : vector<8x512xf32>
    %c320 = arith.constant 320 : index
    %c0_312 = arith.constant 0 : index
    %667 = vector.load %arg7[%c320, %c0_312] : memref<392x1xf32, #tpu.memory_space<vmem>>, vector<8x1xf32>
    %c320_313 = arith.constant 320 : index
    %c0_314 = arith.constant 0 : index
    %668 = vector.load %arg6[%c320_313, %c0_314] : memref<392x2xf32, #tpu.memory_space<vmem>>, vector<8x1xf32>
    %669 = vector.broadcast %668 : vector<8x1xf32> to vector<8x512xf32>
    %670 = arith.mulf %669, %17 : vector<8x512xf32>
    %671 = vector.broadcast %667 : vector<8x1xf32> to vector<8x512xf32>
    %672 = arith.addf %671, %670 : vector<8x512xf32>
    %c320_315 = arith.constant 320 : index
    %c1_316 = arith.constant 1 : index
    %673 = vector.load %arg6[%c320_315, %c1_316] : memref<392x2xf32, #tpu.memory_space<vmem>>, vector<8x1xf32>
    %674 = vector.broadcast %673 : vector<8x1xf32> to vector<8x512xf32>
    %675 = arith.mulf %674, %20 : vector<8x512xf32>
    %676 = arith.addf %672, %675 : vector<8x512xf32>
    %c40_317 = arith.constant 40 : index
    %c0_318 = arith.constant 0 : index
    %677 = vector.load %arg8[%c40_317, %c0_318] : memref<49x512xf32, #tpu.memory_space<vmem>>, vector<1x512xf32>
    %678 = vector.broadcast %677 : vector<1x512xf32> to vector<8x512xf32>
    %679 = arith.mulf %676, %678 : vector<8x512xf32>
    %c0_319 = arith.constant 0 : index
    %c162 = arith.constant 162 : index
    %680 = vector.load %arg12[%c0_319, %c162] : memref<8x768xf32, #tpu.memory_space<vmem>>, vector<8x512xf32>
    %681 = arith.mulf %680, %679 : vector<8x512xf32>
    %682 = arith.addf %666, %681 : vector<8x512xf32>
    %c328 = arith.constant 328 : index
    %c0_320 = arith.constant 0 : index
    %683 = vector.load %arg7[%c328, %c0_320] : memref<392x1xf32, #tpu.memory_space<vmem>>, vector<8x1xf32>
    %c328_321 = arith.constant 328 : index
    %c0_322 = arith.constant 0 : index
    %684 = vector.load %arg6[%c328_321, %c0_322] : memref<392x2xf32, #tpu.memory_space<vmem>>, vector<8x1xf32>
    %685 = vector.broadcast %684 : vector<8x1xf32> to vector<8x512xf32>
    %686 = arith.mulf %685, %17 : vector<8x512xf32>
    %687 = vector.broadcast %683 : vector<8x1xf32> to vector<8x512xf32>
    %688 = arith.addf %687, %686 : vector<8x512xf32>
    %c328_323 = arith.constant 328 : index
    %c1_324 = arith.constant 1 : index
    %689 = vector.load %arg6[%c328_323, %c1_324] : memref<392x2xf32, #tpu.memory_space<vmem>>, vector<8x1xf32>
    %690 = vector.broadcast %689 : vector<8x1xf32> to vector<8x512xf32>
    %691 = arith.mulf %690, %20 : vector<8x512xf32>
    %692 = arith.addf %688, %691 : vector<8x512xf32>
    %c41 = arith.constant 41 : index
    %c0_325 = arith.constant 0 : index
    %693 = vector.load %arg8[%c41, %c0_325] : memref<49x512xf32, #tpu.memory_space<vmem>>, vector<1x512xf32>
    %694 = vector.broadcast %693 : vector<1x512xf32> to vector<8x512xf32>
    %695 = arith.mulf %692, %694 : vector<8x512xf32>
    %c0_326 = arith.constant 0 : index
    %c163 = arith.constant 163 : index
    %696 = vector.load %arg12[%c0_326, %c163] : memref<8x768xf32, #tpu.memory_space<vmem>>, vector<8x512xf32>
    %697 = arith.mulf %696, %695 : vector<8x512xf32>
    %698 = arith.addf %682, %697 : vector<8x512xf32>
    %c336 = arith.constant 336 : index
    %c0_327 = arith.constant 0 : index
    %699 = vector.load %arg7[%c336, %c0_327] : memref<392x1xf32, #tpu.memory_space<vmem>>, vector<8x1xf32>
    %c336_328 = arith.constant 336 : index
    %c0_329 = arith.constant 0 : index
    %700 = vector.load %arg6[%c336_328, %c0_329] : memref<392x2xf32, #tpu.memory_space<vmem>>, vector<8x1xf32>
    %701 = vector.broadcast %700 : vector<8x1xf32> to vector<8x512xf32>
    %702 = arith.mulf %701, %17 : vector<8x512xf32>
    %703 = vector.broadcast %699 : vector<8x1xf32> to vector<8x512xf32>
    %704 = arith.addf %703, %702 : vector<8x512xf32>
    %c336_330 = arith.constant 336 : index
    %c1_331 = arith.constant 1 : index
    %705 = vector.load %arg6[%c336_330, %c1_331] : memref<392x2xf32, #tpu.memory_space<vmem>>, vector<8x1xf32>
    %706 = vector.broadcast %705 : vector<8x1xf32> to vector<8x512xf32>
    %707 = arith.mulf %706, %20 : vector<8x512xf32>
    %708 = arith.addf %704, %707 : vector<8x512xf32>
    %c42 = arith.constant 42 : index
    %c0_332 = arith.constant 0 : index
    %709 = vector.load %arg8[%c42, %c0_332] : memref<49x512xf32, #tpu.memory_space<vmem>>, vector<1x512xf32>
    %710 = vector.broadcast %709 : vector<1x512xf32> to vector<8x512xf32>
    %711 = arith.mulf %708, %710 : vector<8x512xf32>
    %c0_333 = arith.constant 0 : index
    %c173 = arith.constant 173 : index
    %712 = vector.load %arg12[%c0_333, %c173] : memref<8x768xf32, #tpu.memory_space<vmem>>, vector<8x512xf32>
    %713 = arith.mulf %712, %711 : vector<8x512xf32>
    %714 = arith.addf %698, %713 : vector<8x512xf32>
    %c344 = arith.constant 344 : index
    %c0_334 = arith.constant 0 : index
    %715 = vector.load %arg7[%c344, %c0_334] : memref<392x1xf32, #tpu.memory_space<vmem>>, vector<8x1xf32>
    %c344_335 = arith.constant 344 : index
    %c0_336 = arith.constant 0 : index
    %716 = vector.load %arg6[%c344_335, %c0_336] : memref<392x2xf32, #tpu.memory_space<vmem>>, vector<8x1xf32>
    %717 = vector.broadcast %716 : vector<8x1xf32> to vector<8x512xf32>
    %718 = arith.mulf %717, %17 : vector<8x512xf32>
    %719 = vector.broadcast %715 : vector<8x1xf32> to vector<8x512xf32>
    %720 = arith.addf %719, %718 : vector<8x512xf32>
    %c344_337 = arith.constant 344 : index
    %c1_338 = arith.constant 1 : index
    %721 = vector.load %arg6[%c344_337, %c1_338] : memref<392x2xf32, #tpu.memory_space<vmem>>, vector<8x1xf32>
    %722 = vector.broadcast %721 : vector<8x1xf32> to vector<8x512xf32>
    %723 = arith.mulf %722, %20 : vector<8x512xf32>
    %724 = arith.addf %720, %723 : vector<8x512xf32>
    %c43 = arith.constant 43 : index
    %c0_339 = arith.constant 0 : index
    %725 = vector.load %arg8[%c43, %c0_339] : memref<49x512xf32, #tpu.memory_space<vmem>>, vector<1x512xf32>
    %726 = vector.broadcast %725 : vector<1x512xf32> to vector<8x512xf32>
    %727 = arith.mulf %724, %726 : vector<8x512xf32>
    %c0_340 = arith.constant 0 : index
    %c174 = arith.constant 174 : index
    %728 = vector.load %arg12[%c0_340, %c174] : memref<8x768xf32, #tpu.memory_space<vmem>>, vector<8x512xf32>
    %729 = arith.mulf %728, %727 : vector<8x512xf32>
    %730 = arith.addf %714, %729 : vector<8x512xf32>
    %c352 = arith.constant 352 : index
    %c0_341 = arith.constant 0 : index
    %731 = vector.load %arg7[%c352, %c0_341] : memref<392x1xf32, #tpu.memory_space<vmem>>, vector<8x1xf32>
    %c352_342 = arith.constant 352 : index
    %c0_343 = arith.constant 0 : index
    %732 = vector.load %arg6[%c352_342, %c0_343] : memref<392x2xf32, #tpu.memory_space<vmem>>, vector<8x1xf32>
    %733 = vector.broadcast %732 : vector<8x1xf32> to vector<8x512xf32>
    %734 = arith.mulf %733, %17 : vector<8x512xf32>
    %735 = vector.broadcast %731 : vector<8x1xf32> to vector<8x512xf32>
    %736 = arith.addf %735, %734 : vector<8x512xf32>
    %c352_344 = arith.constant 352 : index
    %c1_345 = arith.constant 1 : index
    %737 = vector.load %arg6[%c352_344, %c1_345] : memref<392x2xf32, #tpu.memory_space<vmem>>, vector<8x1xf32>
    %738 = vector.broadcast %737 : vector<8x1xf32> to vector<8x512xf32>
    %739 = arith.mulf %738, %20 : vector<8x512xf32>
    %740 = arith.addf %736, %739 : vector<8x512xf32>
    %c44 = arith.constant 44 : index
    %c0_346 = arith.constant 0 : index
    %741 = vector.load %arg8[%c44, %c0_346] : memref<49x512xf32, #tpu.memory_space<vmem>>, vector<1x512xf32>
    %742 = vector.broadcast %741 : vector<1x512xf32> to vector<8x512xf32>
    %743 = arith.mulf %740, %742 : vector<8x512xf32>
    %c0_347 = arith.constant 0 : index
    %c175 = arith.constant 175 : index
    %744 = vector.load %arg12[%c0_347, %c175] : memref<8x768xf32, #tpu.memory_space<vmem>>, vector<8x512xf32>
    %745 = arith.mulf %744, %743 : vector<8x512xf32>
    %746 = arith.addf %730, %745 : vector<8x512xf32>
    %c360 = arith.constant 360 : index
    %c0_348 = arith.constant 0 : index
    %747 = vector.load %arg7[%c360, %c0_348] : memref<392x1xf32, #tpu.memory_space<vmem>>, vector<8x1xf32>
    %c360_349 = arith.constant 360 : index
    %c0_350 = arith.constant 0 : index
    %748 = vector.load %arg6[%c360_349, %c0_350] : memref<392x2xf32, #tpu.memory_space<vmem>>, vector<8x1xf32>
    %749 = vector.broadcast %748 : vector<8x1xf32> to vector<8x512xf32>
    %750 = arith.mulf %749, %17 : vector<8x512xf32>
    %751 = vector.broadcast %747 : vector<8x1xf32> to vector<8x512xf32>
    %752 = arith.addf %751, %750 : vector<8x512xf32>
    %c360_351 = arith.constant 360 : index
    %c1_352 = arith.constant 1 : index
    %753 = vector.load %arg6[%c360_351, %c1_352] : memref<392x2xf32, #tpu.memory_space<vmem>>, vector<8x1xf32>
    %754 = vector.broadcast %753 : vector<8x1xf32> to vector<8x512xf32>
    %755 = arith.mulf %754, %20 : vector<8x512xf32>
    %756 = arith.addf %752, %755 : vector<8x512xf32>
    %c45 = arith.constant 45 : index
    %c0_353 = arith.constant 0 : index
    %757 = vector.load %arg8[%c45, %c0_353] : memref<49x512xf32, #tpu.memory_space<vmem>>, vector<1x512xf32>
    %758 = vector.broadcast %757 : vector<1x512xf32> to vector<8x512xf32>
    %759 = arith.mulf %756, %758 : vector<8x512xf32>
    %c0_354 = arith.constant 0 : index
    %c176_355 = arith.constant 176 : index
    %760 = vector.load %arg12[%c0_354, %c176_355] : memref<8x768xf32, #tpu.memory_space<vmem>>, vector<8x512xf32>
    %761 = arith.mulf %760, %759 : vector<8x512xf32>
    %762 = arith.addf %746, %761 : vector<8x512xf32>
    %c368 = arith.constant 368 : index
    %c0_356 = arith.constant 0 : index
    %763 = vector.load %arg7[%c368, %c0_356] : memref<392x1xf32, #tpu.memory_space<vmem>>, vector<8x1xf32>
    %c368_357 = arith.constant 368 : index
    %c0_358 = arith.constant 0 : index
    %764 = vector.load %arg6[%c368_357, %c0_358] : memref<392x2xf32, #tpu.memory_space<vmem>>, vector<8x1xf32>
    %765 = vector.broadcast %764 : vector<8x1xf32> to vector<8x512xf32>
    %766 = arith.mulf %765, %17 : vector<8x512xf32>
    %767 = vector.broadcast %763 : vector<8x1xf32> to vector<8x512xf32>
    %768 = arith.addf %767, %766 : vector<8x512xf32>
    %c368_359 = arith.constant 368 : index
    %c1_360 = arith.constant 1 : index
    %769 = vector.load %arg6[%c368_359, %c1_360] : memref<392x2xf32, #tpu.memory_space<vmem>>, vector<8x1xf32>
    %770 = vector.broadcast %769 : vector<8x1xf32> to vector<8x512xf32>
    %771 = arith.mulf %770, %20 : vector<8x512xf32>
    %772 = arith.addf %768, %771 : vector<8x512xf32>
    %c46 = arith.constant 46 : index
    %c0_361 = arith.constant 0 : index
    %773 = vector.load %arg8[%c46, %c0_361] : memref<49x512xf32, #tpu.memory_space<vmem>>, vector<1x512xf32>
    %774 = vector.broadcast %773 : vector<1x512xf32> to vector<8x512xf32>
    %775 = arith.mulf %772, %774 : vector<8x512xf32>
    %c0_362 = arith.constant 0 : index
    %c177 = arith.constant 177 : index
    %776 = vector.load %arg12[%c0_362, %c177] : memref<8x768xf32, #tpu.memory_space<vmem>>, vector<8x512xf32>
    %777 = arith.mulf %776, %775 : vector<8x512xf32>
    %778 = arith.addf %762, %777 : vector<8x512xf32>
    %c376 = arith.constant 376 : index
    %c0_363 = arith.constant 0 : index
    %779 = vector.load %arg7[%c376, %c0_363] : memref<392x1xf32, #tpu.memory_space<vmem>>, vector<8x1xf32>
    %c376_364 = arith.constant 376 : index
    %c0_365 = arith.constant 0 : index
    %780 = vector.load %arg6[%c376_364, %c0_365] : memref<392x2xf32, #tpu.memory_space<vmem>>, vector<8x1xf32>
    %781 = vector.broadcast %780 : vector<8x1xf32> to vector<8x512xf32>
    %782 = arith.mulf %781, %17 : vector<8x512xf32>
    %783 = vector.broadcast %779 : vector<8x1xf32> to vector<8x512xf32>
    %784 = arith.addf %783, %782 : vector<8x512xf32>
    %c376_366 = arith.constant 376 : index
    %c1_367 = arith.constant 1 : index
    %785 = vector.load %arg6[%c376_366, %c1_367] : memref<392x2xf32, #tpu.memory_space<vmem>>, vector<8x1xf32>
    %786 = vector.broadcast %785 : vector<8x1xf32> to vector<8x512xf32>
    %787 = arith.mulf %786, %20 : vector<8x512xf32>
    %788 = arith.addf %784, %787 : vector<8x512xf32>
    %c47 = arith.constant 47 : index
    %c0_368 = arith.constant 0 : index
    %789 = vector.load %arg8[%c47, %c0_368] : memref<49x512xf32, #tpu.memory_space<vmem>>, vector<1x512xf32>
    %790 = vector.broadcast %789 : vector<1x512xf32> to vector<8x512xf32>
    %791 = arith.mulf %788, %790 : vector<8x512xf32>
    %c0_369 = arith.constant 0 : index
    %c178 = arith.constant 178 : index
    %792 = vector.load %arg12[%c0_369, %c178] : memref<8x768xf32, #tpu.memory_space<vmem>>, vector<8x512xf32>
    %793 = arith.mulf %792, %791 : vector<8x512xf32>
    %794 = arith.addf %778, %793 : vector<8x512xf32>
    %c384 = arith.constant 384 : index
    %c0_370 = arith.constant 0 : index
    %795 = vector.load %arg7[%c384, %c0_370] : memref<392x1xf32, #tpu.memory_space<vmem>>, vector<8x1xf32>
    %c384_371 = arith.constant 384 : index
    %c0_372 = arith.constant 0 : index
    %796 = vector.load %arg6[%c384_371, %c0_372] : memref<392x2xf32, #tpu.memory_space<vmem>>, vector<8x1xf32>
    %797 = vector.broadcast %796 : vector<8x1xf32> to vector<8x512xf32>
    %798 = arith.mulf %797, %17 : vector<8x512xf32>
    %799 = vector.broadcast %795 : vector<8x1xf32> to vector<8x512xf32>
    %800 = arith.addf %799, %798 : vector<8x512xf32>
    %c384_373 = arith.constant 384 : index
    %c1_374 = arith.constant 1 : index
    %801 = vector.load %arg6[%c384_373, %c1_374] : memref<392x2xf32, #tpu.memory_space<vmem>>, vector<8x1xf32>
    %802 = vector.broadcast %801 : vector<8x1xf32> to vector<8x512xf32>
    %803 = arith.mulf %802, %20 : vector<8x512xf32>
    %804 = arith.addf %800, %803 : vector<8x512xf32>
    %c48_375 = arith.constant 48 : index
    %c0_376 = arith.constant 0 : index
    %805 = vector.load %arg8[%c48_375, %c0_376] : memref<49x512xf32, #tpu.memory_space<vmem>>, vector<1x512xf32>
    %806 = vector.broadcast %805 : vector<1x512xf32> to vector<8x512xf32>
    %807 = arith.mulf %804, %806 : vector<8x512xf32>
    %c0_377 = arith.constant 0 : index
    %c179 = arith.constant 179 : index
    %808 = vector.load %arg12[%c0_377, %c179] : memref<8x768xf32, #tpu.memory_space<vmem>>, vector<8x512xf32>
    %809 = arith.mulf %808, %807 : vector<8x512xf32>
    %810 = arith.addf %794, %809 : vector<8x512xf32>
    %c0_378 = arith.constant 0 : index
    %c0_379 = arith.constant 0 : index
    %811 = vector.load %arg9[%c0_378, %c0_379] : memref<8x12xf32, #tpu.memory_space<vmem>>, vector<8x12xf32>
    %812 = tpu.concatenate %810, %0 in 0 : vector<8x512xf32>, vector<4x512xf32> -> vector<12x512xf32>
    %cst_380 = arith.constant dense<0.000000e+00> : vector<8x512xf32>
    %813 = tpu.matmul %811, %812, %cst_380 {dimension_numbers = #tpu.dot_dimension_numbers<[1], [0], [0], [1], [0, 0, 1, 1], [], []>} : vector<8x12xf32>, vector<12x512xf32>, vector<8x512xf32> -> vector<8x512xf32>
    %c0_381 = arith.constant 0 : index
    %c0_382 = arith.constant 0 : index
    %814 = vector.load %arg10[%c0_381, %c0_382] : memref<8x1xf32, #tpu.memory_space<vmem>>, vector<8x1xf32>
    %815 = vector.broadcast %814 : vector<8x1xf32> to vector<8x512xf32>
    %816 = arith.addf %813, %815 : vector<8x512xf32>
    %cst_383 = arith.constant 0.000000e+00 : f32
    %817 = vector.broadcast %cst_383 : f32 to vector<8x512xf32>
    %818 = arith.maximumf %816, %817 : vector<8x512xf32>
    %c0_384 = arith.constant 0 : index
    %c0_385 = arith.constant 0 : index
    %819 = vector.load %arg11[%c0_384, %c0_385] : memref<8x512xf32, #tpu.memory_space<vmem>>, vector<8x512xf32>
    tpu.vector_store %arg11[%c0_384, %c0_385], %818 {strides = array<i32>} : memref<8x512xf32, #tpu.memory_space<vmem>>, vector<8x512xf32>,
    return
  }
  func.func @transform_0(%arg0: i32) -> (i32, i32) {
    %c0_i32 = arith.constant 0 : i32
    %c0_i32_0 = arith.constant 0 : i32
    return %c0_i32, %arg0 : i32, i32
  }
  func.func @transform_1(%arg0: i32) -> (i32, i32) {
    %c0_i32 = arith.constant 0 : i32
    %c0_i32_0 = arith.constant 0 : i32
    %c0_i32_1 = arith.constant 0 : i32
    return %c0_i32, %c0_i32_0 : i32, i32
  }
  func.func @transform_2(%arg0: i32) -> (i32, i32) {
    %c0_i32 = arith.constant 0 : i32
    %c0_i32_0 = arith.constant 0 : i32
    %c0_i32_1 = arith.constant 0 : i32
    return %c0_i32, %c0_i32_0 : i32, i32
  }
  func.func @transform_3(%arg0: i32) -> (i32, i32) {
    %c0_i32 = arith.constant 0 : i32
    %c0_i32_0 = arith.constant 0 : i32
    %c0_i32_1 = arith.constant 0 : i32
    return %c0_i32, %c0_i32_0 : i32, i32
  }
  func.func @transform_4(%arg0: i32) -> (i32, i32) {
    %c0_i32 = arith.constant 0 : i32
    %c0_i32_0 = arith.constant 0 : i32
    %c0_i32_1 = arith.constant 0 : i32
    return %c0_i32, %c0_i32_0 : i32, i32
  }
  func.func @transform_5(%arg0: i32) -> (i32, i32) {
    %c0_i32 = arith.constant 0 : i32
    %c0_i32_0 = arith.constant 0 : i32
    %c0_i32_1 = arith.constant 0 : i32
    return %c0_i32, %c0_i32_0 : i32, i32
  }
  func.func @transform_6(%arg0: i32) -> (i32, i32) {
    %c0_i32 = arith.constant 0 : i32
    %c0_i32_0 = arith.constant 0 : i32
    %c0_i32_1 = arith.constant 0 : i32
    return %c0_i32, %c0_i32_0 : i32, i32
  }
  func.func @transform_7(%arg0: i32) -> (i32, i32) {
    %c0_i32 = arith.constant 0 : i32
    %c0_i32_0 = arith.constant 0 : i32
    %c0_i32_1 = arith.constant 0 : i32
    return %c0_i32, %c0_i32_0 : i32, i32
  }
  func.func @transform_8(%arg0: i32) -> (i32, i32) {
    %c0_i32 = arith.constant 0 : i32
    %c0_i32_0 = arith.constant 0 : i32
    %c0_i32_1 = arith.constant 0 : i32
    return %c0_i32, %c0_i32_0 : i32, i32
  }
  func.func @transform_9(%arg0: i32) -> (i32, i32) {
    %c0_i32 = arith.constant 0 : i32
    %c0_i32_0 = arith.constant 0 : i32
    %c0_i32_1 = arith.constant 0 : i32
    return %c0_i32, %c0_i32_0 : i32, i32
  }
  func.func @transform_10(%arg0: i32) -> (i32, i32) {
    %c0_i32 = arith.constant 0 : i32
    %c0_i32_0 = arith.constant 0 : i32
    return %c0_i32, %arg0 : i32, i32
  }
}

</mosaic_0001>

<bundles_post_ra>
// kernel: tpu_custom_call.1
= control target key start
LH: loop header
LB: loop body
LE: loop exit
PB: predicated region body
PF: predicated region fallthrough
CT: control target
= control target key end

     0   :  { %v8698_v3 = vmov 0   ;;  %s8687_s0 = inlined_call_operand.vmem [shape: f32[4,512], index: 0, kind: input, shape index: {}]   ;;  %s8688_s1 = inlined_call_operand.vmem [shape: f32[8,4], index: 1, kind: input, shape index: {}]   ;;  %s8689_s2 = inlined_call_operand.vmem [shape: f32[8,1], index: 2, kind: input, shape index: {}]   ;;  %s8690_s3 = inlined_call_operand.vmem [shape: f32[2,8], index: 3, kind: input, shape index: {}]   ;;  %s8691_s4 = inlined_call_operand.vmem [shape: f32[2,1], index: 4, kind: input, shape index: {}]   ;;  %s8692_s5 = inlined_call_operand.vmem [shape: f32[392,2], index: 5, kind: input, shape index: {}]   ;;  %s8693_s6 = inlined_call_operand.vmem [shape: f32[392,1], index: 6, kind: input, shape index: {}]   ;;  %s8694_s7 = inlined_call_operand.vmem [shape: f32[49,512], index: 7, kind: input, shape index: {}]   ;;  %s8695_s8 = inlined_call_operand.vmem [shape: f32[8,12], index: 8, kind: input, shape index: {}]   ;;  %s8696_s9 = inlined_call_operand.vmem [shape: f32[8,1], index: 9, kind: input, shape index: {}]   ;;  %s8697_s10 = inlined_call_operand.hbm [shape: f32[8,512], index: 10, kind: output, shape index: {}]  }
   0x1   :  { %v39_v0 = vld [vmem:[%s8689_s2] sm:$0xff]  ;;  %v37_v2 = vld [vmem:[%s8687_s0 + $0x8] sm:$0xff]  ;;  %5564 = vset.pattern.permute.xlu0 %v8698_v3  ;;  %5565 = vset.pattern.permute.xlu1 %v8698_v3 }
   0x2   :  { %v36_v1 = vld [vmem:[%s8687_s0] sm:$0xff]  ;;  %42 = vperm.xlu0 %5564, %v39_v0   ;;  %49 = vst [vmem:[#allocation1 + $0x10] ss:$2 sm:$0xff] %v37_v2 }
   0x3   :  { %47 = vst [vmem:[#allocation1] ss:$2 sm:$0xff] %v36_v1 }
   0x4   :  { %15 = vsyncpa [#allocation4], 0  ;;  %vm8839_vm0 = vcmask 1043456   ;;  %v152_v4 = vld [vmem:[%s8691_s4] sm:$0x3]  ;;  %vm54_vm1 = vcmask 31744  }
   0x5   :  { %v38_v5 = vld [vmem:[%s8688_s1] sm:$0xff]  ;;  %v343_v11 = vld [vmem:[%s8692_s5 + $0x8] sm:$0xff]  ;;  %v446_v13 = vld [vmem:[%s8692_s5 + $0x10] sm:$0xff]  ;;  %v8700_v21 = vmov 1   ;;  %vm158_vm2 = vcmask 64512   ;;  %s5611_s28 = smov 78  }
   0x6   :  { %v261_v10 = vld [vmem:[%s8692_s5] sm:$0xff]  ;;  %v342_v14 = vld [vmem:[%s8693_s6 + $0x8] sm:$0xff]  ;;  %v549_v15 = vld [vmem:[%s8692_s5 + $0x18] sm:$0xff]  ;;  %5566 = vset.pattern.permute.xlu2 %v8700_v21  ;;  %s5612_s11 = smov 77   ;;  %s5613_s14 = smov 79   ;;  %vm8866_vm3 = vcmask 637952  }
   0x7   :  { %264 = vperm.xlu1 %5565, %v261_v10   ;;  %v260_v12 = vld [vmem:[%s8693_s6] sm:$0xff]  ;;  %v445_v16 = vld [vmem:[%s8693_s6 + $0x10] sm:$0xff]  ;;  %v548_v18 = vld [vmem:[%s8693_s6 + $0x18] sm:$0xff]  ;;  %281 = vperm.xlu2 %5566, %v261_v10   ;;  %s5614_s17 = smov 80   ;;  %s5615_s2 = smov 81   ;;  %vm8867_vm4 = vcmask 646144  }
   0x8   :  { %v652_v17 = vld [vmem:[%s8692_s5 + $0x20] sm:$0xff]  ;;  %v755_v19 = vld [vmem:[%s8692_s5 + $0x28] sm:$0xff]  ;;  %v858_v22 = vld [vmem:[%s8692_s5 + $0x30] sm:$0xff]  ;;  %s5616_s0 = smov 82   ;;  %s5617_s4 = smov 83   ;;  %vm8865_vm5 = vcmask 654336  }
   0x9   :  { %v52_v8 = vld.sshfl [vmem:[#allocation1 + $0x10] sm:$0xff pattern:$0x75316420]  ;;  %v53_v9 = vld.sshfl [vmem:[#allocation1 + $0x18] sm:$0xff pattern:$0x75316420] }
   0xa   :  { %v50_v6 = vld.sshfl [vmem:[#allocation1] sm:$0xff pattern:$0x75316420]  ;;  %v51_v7 = vld.sshfl [vmem:[#allocation1 + $0x8] sm:$0xff pattern:$0x75316420]  ;;  %5424 = vmatpush.msk.msra.mxu2 %vm8839_vm0, %v52_v8  ;;  %155 = vperm.xlu0 %5564, %v152_v4  }
   0xb   :  { %5420 = vmatpush.msk.msra.mxu0 %vm8839_vm0, %v50_v6  ;;  %5422 = vmatpush.msk.msra.mxu1 %vm8839_vm0, %v51_v7  ;;  %5243 = vst [vmem:[#allocation1] ss:$2 sm:$0xff] %v36_v1  ;;  %v651_v20 = vld [vmem:[%s8693_s6 + $0x20] sm:$0xff]  ;;  %v754_v23 = vld [vmem:[%s8693_s6 + $0x28] sm:$0xff]  ;;  %v961_v24 = vld [vmem:[%s8692_s5 + $0x38] sm:$0xff]  ;;  %s5619_s27 = smov 94  }
   0xc   :  { %5426 = vmatpush.msk.msra.mxu3 %vm8839_vm0, %v53_v9  ;;  %5245 = vst [vmem:[#allocation1 + $0x10] ss:$2 sm:$0xff] %v37_v2  ;;  %5421 = vmatmul.msk.f32.vlgmr.msra.gmra.mxu0 %vm54_vm1, %v38_v5  ;;  %v857_v25 = vld [vmem:[%s8693_s6 + $0x30] sm:$0xff]  ;;  %v1064_v26 = vld [vmem:[%s8692_s5 + $0x40] sm:$0xff]  ;;  %v960_v27 = vld [vmem:[%s8693_s6 + $0x38] sm:$0xff]  ;;  %s5620_s12 = smov 95  }
   0xd   :  { %5423 = vmatmul.msk.f32.vlgmr.msra.gmra.mxu1 %vm54_vm1, %v38_v5  ;;  %5425 = vmatmul.msk.f32.vlgmr.msra.gmra.mxu2 %vm54_vm1, %v38_v5  ;;  %v1167_v28 = vld [vmem:[%s8692_s5 + $0x48] sm:$0xff]  ;;  %v1063_v29 = vld [vmem:[%s8693_s6 + $0x40] sm:$0xff]  ;;  %v1270_v30 = vld [vmem:[%s8692_s5 + $0x50] sm:$0xff]  ;;  %s5621_s16 = smov 96   ;;  %s5622_s18 = smov 97   ;;  %vm710_vm6 = vcmask 662528  }
   0xe   :  { %5427 = vmatmul.msk.f32.vlgmr.msra.gmra.mxu3 %vm54_vm1, %v38_v5  ;;  %v1166_v31 = vld [vmem:[%s8693_s6 + $0x48] sm:$0xff]  ;;  %v1373_v32 = vld [vmem:[%s8692_s5 + $0x58] sm:$0xff]  ;;  %v1476_v33 = vld [vmem:[%s8692_s5 + $0x60] sm:$0xff]  ;;  %s5623_s21 = smov 98   ;;  %s5627_s25 = smov 124   ;;  %vm813_vm7 = vcmask 670720  }
   0xf   :  { %273 = vperm.xlu1 %5565, %v260_v12   ;;  %363 = vperm.xlu2 %5566, %v343_v11   ;;  %v1269_v34 = vld [vmem:[%s8693_s6 + $0x50] sm:$0xff]  ;;  %v1372_v35 = vld [vmem:[%s8693_s6 + $0x58] sm:$0xff]  ;;  %v1475_v36 = vld [vmem:[%s8693_s6 + $0x60] sm:$0xff]  ;;  %s5628_s26 = smov 123   ;;  %vm916_vm8 = vcmask 678912   ;;  %s5629_s29 = smov 122  }
  0x10   :  { %v151_v43 = vld [vmem:[%s8690_s3] sm:$0x3]  ;;  %s5618_s3 = smov 93   ;;  %vm1019_vm9 = vcmask 760832   ;;  %s5630_s30 = smov 112   ;;  %vm8864_vm10 = vcmask 769024  }
  0x11   :  { %v5890_v7 = vld [vmem:[%s8694_s7 + $0x1] ss:$8 sm:$0xf]  ;;  %v5899_v10 = vld [vmem:[%s8694_s7] ss:$8 sm:$0xf] }
  0x12   :  { %346 = vperm.xlu0 %5564, %v343_v11   ;;  %s5631_s13 = smov 111   ;;  %vm8863_vm11 = vcmask 777216   ;;  %s5632_s15 = smov 110   ;;  %vm8862_vm12 = vcmask 785408   ;;  %vm1431_vm13 = vcmask 793600   ;;  %vm1534_vm14 = vcmask 801792  }
  0x13   :  { %s5634_s19 = smov 108   ;;  %s5635_s20 = smov 107   ;;  %vm1637_vm15 = vcmask 809984   ;;  %vm1357_vm1 = vcmask 891904   ;;  %vm8845_vm0 = vcmask 244736  }
  0x14   :  { %s5636_s1 = smov 99   ;;  %s5637_s23 = smov 106  }
  0x15   :  { %s5642_s24 = smov 115   ;;  %s5646_s22 = smov 2  }
  0x17   :  { %355 = vperm.xlu1 %5565, %v342_v14   ;;  %466 = vperm.xlu2 %5566, %v446_v13  }
  0x1a   :  { %449 = vperm.xlu0 %5564, %v446_v13  }
  0x1f   :  { %458 = vperm.xlu1 %5565, %v445_v16   ;;  %569 = vperm.xlu2 %5566, %v549_v15   ;;  %v378_v16 = vperm.slane %v5890_v7, 1 }
  0x22   :  { %552 = vperm.xlu0 %5564, %v549_v15  }
  0x27   :  { %561 = vperm.xlu1 %5565, %v548_v18   ;;  %672 = vperm.xlu2 %5566, %v652_v17  }
  0x2a   :  { %655 = vperm.xlu0 %5564, %v652_v17   ;;  %v295_v17 = vperm.slane %v5899_v10, 1 }
  0x2f   :  { %664 = vperm.xlu1 %5565, %v651_v20   ;;  %775 = vperm.xlu2 %5566, %v755_v19  }
  0x32   :  { %758 = vperm.xlu0 %5564, %v755_v19  }
  0x37   :  { %767 = vperm.xlu1 %5565, %v754_v23   ;;  %878 = vperm.xlu2 %5566, %v858_v22   ;;  %v294_v23 = vperm.slane %v5899_v10, 0 }
  0x3a   :  { %861 = vperm.xlu0 %5564, %v858_v22  }
  0x3f   :  { %870 = vperm.xlu1 %5565, %v857_v25   ;;  %981 = vperm.xlu2 %5566, %v961_v24  }
  0x42   :  { %964 = vperm.xlu0 %5564, %v961_v24  }
  0x47   :  { %973 = vperm.xlu1 %5565, %v960_v27   ;;  %1084 = vperm.xlu2 %5566, %v1064_v26  }
  0x4a   :  { %1067 = vperm.xlu0 %5564, %v1064_v26  }
  0x4f   :  { %1076 = vperm.xlu1 %5565, %v1063_v29   ;;  %1187 = vperm.xlu2 %5566, %v1167_v28  }
  0x52   :  { %1170 = vperm.xlu0 %5564, %v1167_v28  }
  0x57   :  { %1179 = vperm.xlu1 %5565, %v1166_v31   ;;  %1290 = vperm.xlu2 %5566, %v1270_v30  }
  0x5a   :  { %1273 = vperm.xlu0 %5564, %v1270_v30  }
  0x5f   :  { %1282 = vperm.xlu1 %5565, %v1269_v34   ;;  %1393 = vperm.xlu2 %5566, %v1373_v32  }
  0x61   :  { %v5867_v54 = vpop.permute.xlu2 %281 }
  0x62   :  { %1376 = vperm.xlu0 %5564, %v1373_v32  }
  0x67   :  { %1385 = vperm.xlu1 %5565, %v1372_v35   ;;  %1496 = vperm.xlu2 %5566, %v1476_v33  }
  0x69   :  { %v5873_v57 = vpop.permute.xlu2 %363 }
  0x6a   :  { %1479 = vperm.xlu0 %5564, %v1476_v33  }
  0x6f   :  { %1488 = vperm.xlu1 %5565, %v1475_v36  }
  0x71   :  { %v5879_v61 = vpop.permute.xlu2 %466 }
  0x74   :  { %v43_v37 = vpop.permute.xlu0 %42 }
  0x79   :  { %v5863_v51 = vpop.permute.xlu1 %264  ;;  %v5907_v14 = vpop.permute.xlu2 %569 }
  0x7c   :  { %v156_v52 = vpop.permute.xlu0 %155 }
  0x81   :  { %v5865_v53 = vpop.permute.xlu1 %273 }
  0x84   :  { %v5869_v55 = vpop.permute.xlu0 %346 }
  0x89   :  { %v84_v38 = vpop.f32.mrf.mxu0  ;;  %v5871_v56 = vpop.permute.xlu1 %355 }
  0x8a   :  { %v85_v39 = vadd.f32 %v84_v38, %v43_v37  ;;  %v104_v40 = vpop.f32.mrf.mxu1 }
  0x8b   :  { %v105_v41 = vadd.f32 %v104_v40, %v43_v37 }
  0x8c   :  { %v5844_v42 = vmax.f32 %v85_v39, 0.0  ;;  %v5875_v58 = vpop.permute.xlu0 %449 }
  0x8d   :  { %v5849_v44 = vmax.f32 %v105_v41, 0.0 }
  0x8e   :  { %8890 = vst [vmem:[#allocation6_spill] sm:$0xff] %v5844_v42  ;;  %177 = vmatpush.msrb.mxu0 %v5844_v42 }
  0x8f   :  { %8891 = vst [vmem:[#allocation7_spill] sm:$0xff] %v5849_v44  ;;  %197 = vmatpush.msrb.mxu1 %v5849_v44  ;;  %5428 = vmatmul.msk.f32.vlgmr.msrb.gmra.mxu0 %vm158_vm2, %v151_v43 }
  0x90   :  { %v124_v45 = vpop.f32.mrf.mxu2  ;;  %5429 = vmatmul.msk.f32.vlgmr.msrb.gmra.mxu1 %vm158_vm2, %v151_v43 }
  0x91   :  { %v125_v46 = vadd.f32 %v124_v45, %v43_v37  ;;  %v144_v47 = vpop.f32.mrf.mxu3  ;;  %v5877_v59 = vpop.permute.xlu1 %458 }
  0x92   :  { %v145_v48 = vadd.f32 %v144_v47, %v43_v37  ;;  %v5939_v47 = vld [vmem:[%s8694_s7 + $0x2] ss:$8 sm:$0xf] }
  0x93   :  { %v5855_v49 = vmax.f32 %v125_v46, 0.0 }
  0x94   :  { %v5857_v50 = vmax.f32 %v145_v48, 0.0  ;;  %v5881_v2 = vpop.permute.xlu0 %552 }
  0x95   :  { %8892 = vst [vmem:[#allocation8_spill] sm:$0xff] %v5855_v49  ;;  %217 = vmatpush.msrb.mxu2 %v5855_v49 }
  0x96   :  { %8893 = vst [vmem:[#allocation9_spill] sm:$0xff] %v5857_v50  ;;  %237 = vmatpush.msrb.mxu3 %v5857_v50  ;;  %5430 = vmatmul.msk.f32.vlgmr.msrb.gmra.mxu2 %vm158_vm2, %v151_v43 }
  0x97   :  { %5431 = vmatmul.msk.f32.vlgmr.msrb.gmra.mxu3 %vm158_vm2, %v151_v43  ;;  %vm8861_vm2 = vcmask 900096  }
  0x99   :  { %v5892_v8 = vpop.permute.xlu1 %561 }
  0x9c   :  { %v5919_v24 = vpop.permute.xlu0 %655 }
  0xa1   :  { %v5931_v41 = vpop.permute.xlu1 %664 }
 0x10c   :  { %v179_v60 = vpop.f32.mrf.mxu0 }
 0x10d   :  { %v180_v62 = vadd.f32 %v179_v60, %v156_v52  ;;  %v199_v63 = vpop.f32.mrf.mxu1  ;;  %v5946_v60 = vpop.permute.xlu2 %672 }
 0x10e   :  { %v200_v0 = vadd.f32 %v199_v63, %v156_v52  ;;  %v481_v63 = vperm.slane %v5939_v47, 1 }
 0x10f   :  { %v242_v1 = vmax.f32 %v180_v62, 0.0 }
 0x110   :  { %v243_v4 = vmax.f32 %v200_v0, 0.0 }
 0x111   :  { %v5883_v5 = vperm.slane %v242_v1, 0  ;;  %v5909_v15 = vperm.slane %v242_v1, 1  ;;  %v377_v1 = vperm.slane %v5890_v7, 0 }
 0x112   :  { %v5885_v6 = vperm.slane %v243_v4, 0  ;;  %v5894_v9 = vperm.slane %v243_v4, 1 }
 0x113   :  { %8894 = vst [vmem:[#allocation10_spill] sm:$0xff] %v5883_v5  ;;  %v267_v11 = vmul.f32 %v5863_v51, %v5883_v5  ;;  %v349_v18 = vmul.f32 %v5869_v55, %v5883_v5  ;;  %v284_v33 = vmul.f32 %v5867_v54, %v5909_v15 }
 0x114   :  { %8895 = vst [vmem:[#allocation11_spill] sm:$0xff] %v5885_v6  ;;  %v268_v12 = vmul.f32 %v5863_v51, %v5885_v6  ;;  %v350_v13 = vmul.f32 %v5869_v55, %v5885_v6  ;;  %v367_v22 = vmul.f32 %v5873_v57, %v5894_v9  ;;  %v453_v25 = vmul.f32 %v5875_v58, %v5885_v6 }
 0x115   :  { %8896 = vst [vmem:[#allocation12_spill] sm:$0xff] %v5894_v9  ;;  %v285_v28 = vmul.f32 %v5867_v54, %v5894_v9  ;;  %v276_v29 = vadd.f32 %v5865_v53, %v267_v11  ;;  %v358_v40 = vadd.f32 %v5871_v56, %v349_v18  ;;  %v470_v48 = vmul.f32 %v5879_v61, %v5894_v9 }
 0x116   :  { %8897 = vst [vmem:[#allocation13_spill] sm:$0xff] %v5909_v15  ;;  %v359_v20 = vadd.f32 %v5871_v56, %v350_v13  ;;  %v277_v27 = vadd.f32 %v5865_v53, %v268_v12  ;;  %v462_v39 = vadd.f32 %v5877_v59, %v453_v25  ;;  %v556_v4 = vmul.f32 %v5881_v2, %v5885_v6 }
 0x117   :  { %v288_v37 = vadd.f32 %v284_v33, %v276_v29 }
 0x118   :  { %v371_v32 = vadd.f32 %v367_v22, %v359_v20  ;;  %v289_v34 = vadd.f32 %v285_v28, %v277_v27  ;;  %v474_v62 = vadd.f32 %v470_v48, %v462_v39  ;;  %v297_v20 = vperm.slane %v5899_v10, 3  ;;  %v5967_v22 = vld [vmem:[%s8694_s7 + $0x3] ss:$8 sm:$0xf] }
 0x119   :  { %v219_v19 = vpop.f32.mrf.mxu2  ;;  %v302_v46 = vmul.f32 %v294_v23, %v288_v37  ;;  %v565_v27 = vadd.f32 %v5892_v8, %v556_v4  ;;  %v573_v28 = vmul.f32 %v5907_v14, %v5894_v9  ;;  %v659_v37 = vmul.f32 %v5919_v24, %v5885_v6 }
 0x11a   :  { %v239_v26 = vpop.f32.mrf.mxu3  ;;  %v220_v30 = vadd.f32 %v219_v19, %v156_v52  ;;  %v386_v36 = vmul.f32 %v378_v16, %v371_v32  ;;  %v303_v38 = vmul.f32 %v295_v17, %v289_v34  ;;  %v5959_v16 = vpop.permute.xlu0 %758  ;;  %v452_v17 = vmul.f32 %v5875_v58, %v5883_v5 }
 0x11b   :  { %v240_v31 = vadd.f32 %v239_v26, %v156_v52  ;;  %v366_v52 = vmul.f32 %v5873_v57, %v5909_v15  ;;  %315 = vrot.lane.b32.xlu2 %v302_v46, %s5612_s11  ;;  %v489_v18 = vmul.f32 %v481_v63, %v474_v62  ;;  %v584_v34 = vperm.slane %v5967_v22, 1 }
 0x11c   :  { %v244_v43 = vmax.f32 %v220_v30, 0.0  ;;  %395 = vrot.lane.b32.xlu1 %v386_v36, %s5611_s28  ;;  %317 = vrot.lane.b32.xlu0 %v303_v38, %s5612_s11  ;;  %v461_v29 = vadd.f32 %v5877_v59, %v452_v17  ;;  %v469_v30 = vmul.f32 %v5879_v61, %v5909_v15  ;;  %v555_v36 = vmul.f32 %v5881_v2, %v5883_v5 }
 0x11d   :  { %v245_v35 = vmax.f32 %v240_v31, 0.0  ;;  %v370_v0 = vadd.f32 %v366_v52, %v358_v40  ;;  %v5982_v31 = vpop.permute.xlu1 %767  ;;  %v577_v38 = vadd.f32 %v573_v28, %v565_v27  ;;  %v5992_v40 = vpop.permute.xlu2 %775  ;;  %v762_v27 = vmul.f32 %v5959_v16, %v5885_v6 }
 0x11e   :  { %v5953_v11 = vperm.slane %v244_v43, 0  ;;  %v5984_v32 = vperm.slane %v244_v43, 1  ;;  %v473_v39 = vadd.f32 %v469_v30, %v461_v29  ;;  %v564_v4 = vadd.f32 %v5892_v8, %v555_v36 }
 0x11f   :  { %v5933_v45 = vperm.slane %v245_v35, 0  ;;  %v5955_v12 = vperm.slane %v245_v35, 1  ;;  %v385_v19 = vmul.f32 %v377_v1, %v370_v0  ;;  %v480_v35 = vperm.slane %v5939_v47, 0  ;;  %v6004_v1 = vld [vmem:[%s8694_s7 + $0x4] ss:$8 sm:$0xf] }
 0x120   :  { %8898 = vst [vmem:[#allocation14_spill] sm:$0xff] %v5953_v11  ;;  %v351_v23 = vmul.f32 %v5869_v55, %v5953_v11  ;;  %v368_v43 = vmul.f32 %v5873_v57, %v5984_v32  ;;  %v592_v62 = vmul.f32 %v584_v34, %v577_v38  ;;  %v668_v0 = vadd.f32 %v5931_v41, %v659_v37 }
 0x121   :  { %v270_v13 = vmul.f32 %v5863_v51, %v5933_v45  ;;  %v287_v26 = vmul.f32 %v5867_v54, %v5955_v12  ;;  %8899 = vst [vmem:[#allocation15_spill] sm:$0xff] %v5984_v32  ;;  %v488_v63 = vmul.f32 %v480_v35, %v473_v39  ;;  %v471_v36 = vmul.f32 %v5879_v61, %v5984_v32 }
 0x122   :  { %v360_v48 = vadd.f32 %v5871_v56, %v351_v23  ;;  %v5998_v52 = vpop.permute.xlu0 %861  ;;  %v687_v23 = vperm.slane %v6004_v1, 1  ;;  %v771_v39 = vadd.f32 %v5982_v31, %v762_v27 }
 0x123   :  { %v279_v25 = vadd.f32 %v5865_v53, %v270_v13  ;;  %8900 = vst [vmem:[#allocation16_spill] sm:$0xff] %v5998_v52  ;;  %v454_v13 = vmul.f32 %v5875_v58, %v5953_v11 }
 0x124   :  { %498 = vrot.lane.b32.xlu1 %v489_v18, %s5613_s14  ;;  %393 = vrot.lane.b32.xlu0 %v385_v19, %s5611_s28  ;;  %v372_v17 = vadd.f32 %v368_v43, %v360_v48  ;;  %v379_v18 = vperm.slane %v5890_v7, 2  ;;  %v676_v19 = vmul.f32 %v5946_v60, %v5894_v9  ;;  %v557_v43 = vmul.f32 %v5881_v2, %v5953_v11 }
 0x125   :  { %v291_v33 = vadd.f32 %v287_v26, %v279_v25  ;;  %v583_v25 = vperm.slane %v5967_v22, 0  ;;  %v658_v26 = vmul.f32 %v5919_v24, %v5883_v5  ;;  %v6022_v30 = vpop.permute.xlu1 %870  ;;  %v463_v34 = vadd.f32 %v5877_v59, %v454_v13  ;;  %v6025_v35 = vpop.permute.xlu2 %878 }
 0x126   :  { %v680_v28 = vadd.f32 %v676_v19, %v668_v0  ;;  %8901 = vst [vmem:[#allocation17_spill] sm:$0xff] %v6025_v35  ;;  %v675_v13 = vmul.f32 %v5946_v60, %v5909_v15  ;;  %v761_v19 = vmul.f32 %v5959_v16, %v5883_v5  ;;  %v566_v27 = vadd.f32 %v5892_v8, %v557_v43 }
 0x127   :  { %v305_v46 = vmul.f32 %v297_v20, %v291_v33  ;;  %v572_v20 = vmul.f32 %v5907_v14, %v5909_v15  ;;  %v387_v33 = vmul.f32 %v379_v18, %v372_v17  ;;  %v667_v48 = vadd.f32 %v5931_v41, %v658_v26 }
 0x128   :  { %v695_v37 = vmul.f32 %v687_v23, %v680_v28  ;;  %v686_v18 = vperm.slane %v6004_v1, 0  ;;  %v585_v43 = vperm.slane %v5967_v22, 2 }
 0x129   :  { %321 = vrot.lane.b32.xlu2 %v305_v46, %s5612_s11  ;;  %v576_v29 = vadd.f32 %v572_v20, %v564_v4  ;;  %v6034_v46 = vld [vmem:[%s8694_s7 + $0x5] ss:$8 sm:$0xf]  ;;  %v779_v4 = vmul.f32 %v5992_v40, %v5894_v9  ;;  %v865_v20 = vmul.f32 %v5998_v52, %v5885_v6 }
 0x12a   :  { %8902 = vst [vmem:[#allocation18_spill] sm:$0xff] %v6034_v46  ;;  %v6040_v0 = vpop.permute.xlu0 %964  ;;  %v790_v17 = vperm.slane %v6034_v46, 1 }
 0x12b   :  { %v591_v38 = vmul.f32 %v583_v25, %v576_v29  ;;  %8903 = vst [vmem:[#allocation19_spill] sm:$0xff] %v6040_v0  ;;  %v783_v23 = vadd.f32 %v779_v4, %v771_v39  ;;  %v679_v25 = vadd.f32 %v675_v13, %v667_v48  ;;  %v574_v29 = vmul.f32 %v5907_v14, %v5984_v32 }
 0x12c   :  { %601 = vrot.lane.b32.xlu1 %v592_v62, %s5614_s17  ;;  %496 = vrot.lane.b32.xlu0 %v488_v63, %s5613_s14  ;;  %v475_v62 = vadd.f32 %v471_v36, %v463_v34  ;;  %v482_v63 = vperm.slane %v5939_v47, 2  ;;  %v874_v36 = vadd.f32 %v6022_v30, %v865_v20  ;;  %v660_v39 = vmul.f32 %v5919_v24, %v5953_v11 }
 0x12d   :  { %v6055_v28 = vpop.permute.xlu1 %973  ;;  %v694_v34 = vmul.f32 %v686_v18, %v679_v25  ;;  %v578_v48 = vadd.f32 %v574_v29, %v566_v27  ;;  %v778_v4 = vmul.f32 %v5992_v40, %v5909_v15  ;;  %v864_v13 = vmul.f32 %v5998_v52, %v5883_v5 }
 0x12e   :  { %v490_v26 = vmul.f32 %v482_v63, %v475_v62  ;;  %8904 = vst [vmem:[#allocation20_spill] sm:$0xff] %v6055_v28  ;;  %v6070_v62 = vld [vmem:[%s8694_s7 + $0x6] ss:$8 sm:$0xf]  ;;  %v882_v63 = vmul.f32 %v6025_v35, %v5894_v9  ;;  %v789_v25 = vperm.slane %v6034_v46, 0  ;;  %v669_v27 = vadd.f32 %v5931_v41, %v660_v39 }
 0x12f   :  { %8906 = vst [vmem:[#allocation22_spill] sm:$0xff] %v6070_v62  ;;  %v893_v20 = vperm.slane %v6070_v62, 1  ;;  %v677_v29 = vmul.f32 %v5946_v60, %v5984_v32  ;;  %v873_v21 = vadd.f32 %v6022_v30, %v864_v13  ;;  %v6100_v39 = vld [vmem:[%s8694_s7 + $0x7] ss:$8 sm:$0xf] }
 0x130   :  { %8908 = vst [vmem:[#allocation24_spill] sm:$0xff] %v6100_v39 }
 0x131   :  { %397 = vrot.lane.b32.xlu2 %v387_v33, %s5611_s28  ;;  %v798_v33 = vmul.f32 %v790_v17, %v783_v23  ;;  %v968_v17 = vmul.f32 %v6040_v0, %v5885_v6 }
 0x132   :  { %v6082_v18 = vpop.permute.xlu0 %1067 }
 0x133   :  { %8907 = vst [vmem:[#allocation23_spill] sm:$0xff] %v6082_v18  ;;  %v977_v3 = vadd.f32 %v6055_v28, %v968_v17  ;;  %v967_v17 = vmul.f32 %v6040_v0, %v5883_v5 }
 0x134   :  { %704 = vrot.lane.b32.xlu1 %v695_v37, %s5615_s2  ;;  %599 = vrot.lane.b32.xlu0 %v591_v38, %s5614_s17  ;;  %v770_v37 = vadd.f32 %v5982_v31, %v761_v19  ;;  %v6062_v38 = vpop.permute.xlu2 %981  ;;  %v886_v19 = vadd.f32 %v882_v63, %v874_v36  ;;  %v681_v63 = vadd.f32 %v677_v29, %v669_v27 }
 0x135   :  { %8905 = vst [vmem:[#allocation21_spill] sm:$0xff] %v6062_v38  ;;  %v6092_v36 = vpop.permute.xlu1 %1076 }
 0x136   :  { %v782_v23 = vadd.f32 %v778_v4, %v770_v37  ;;  %v763_v37 = vmul.f32 %v5959_v16, %v5953_v11  ;;  %v881_v4 = vmul.f32 %v6025_v35, %v5909_v15 }
 0x138   :  { %v772_v29 = vadd.f32 %v5982_v31, %v763_v37  ;;  %v6130_v37 = vld [vmem:[%s8694_s7 + $0x20] ss:$8 sm:$0xf] }
 0x139   :  { %500 = vrot.lane.b32.xlu2 %v490_v26, %s5613_s14  ;;  %v593_v26 = vmul.f32 %v585_v43, %v578_v48  ;;  %v688_v48 = vperm.slane %v6004_v1, 2  ;;  %v985_v43 = vmul.f32 %v6062_v38, %v5894_v9  ;;  %8909 = vst [vmem:[#allocation25_spill] sm:$0xff] %v6130_v37 }
 0x13b   :  { %v696_v27 = vmul.f32 %v688_v48, %v681_v63  ;;  %v791_v63 = vperm.slane %v6034_v46, 2 }
 0x13c   :  { %807 = vrot.lane.b32.xlu1 %v798_v33, %s5616_s0  ;;  %702 = vrot.lane.b32.xlu0 %v694_v34, %s5615_s2  ;;  %v901_v33 = vmul.f32 %v893_v20, %v886_v19  ;;  %v797_v34 = vmul.f32 %v789_v25, %v782_v23  ;;  %v6108_v13 = vpop.permute.xlu2 %1084  ;;  %v1071_v19 = vmul.f32 %v6082_v18, %v5885_v6  ;;  %v996_v23 = vperm.slane %v6100_v39, 1 }
 0x13d   :  { %v989_v20 = vadd.f32 %v985_v43, %v977_v3  ;;  %v885_v25 = vadd.f32 %v881_v4, %v873_v21  ;;  %v976_v3 = vadd.f32 %v6055_v28, %v967_v17  ;;  %v866_v21 = vmul.f32 %v5998_v52, %v5953_v11  ;;  %v6138_v17 = vpop.permute.xlu1 %1179 }
 0x13e   :  { %v1080_v44 = vadd.f32 %v6092_v36, %v1071_v19  ;;  %v1088_v48 = vmul.f32 %v6108_v13, %v5894_v9  ;;  %v984_v4 = vmul.f32 %v6062_v38, %v5909_v15  ;;  %v1070_v19 = vmul.f32 %v6082_v18, %v5883_v5 }
 0x13f   :  { %v1004_v50 = vmul.f32 %v996_v23, %v989_v20 }
 0x140   :  { %v1092_v23 = vadd.f32 %v1088_v48, %v1080_v44  ;;  %v969_v48 = vmul.f32 %v6040_v0, %v5953_v11 }
 0x141   :  { %603 = vrot.lane.b32.xlu2 %v593_v26, %s5614_s17  ;;  %v892_v26 = vperm.slane %v6070_v62, 0 }
 0x143   :  { %v900_v49 = vmul.f32 %v892_v26, %v885_v25  ;;  %v1099_v25 = vperm.slane %v6130_v37, 1 }
 0x144   :  { %910 = vrot.lane.b32.xlu1 %v901_v33, %s5617_s4  ;;  %805 = vrot.lane.b32.xlu0 %v797_v34, %s5616_s0  ;;  %v6117_v33 = vpop.permute.xlu0 %1170  ;;  %v780_v34 = vmul.f32 %v5992_v40, %v5984_v32  ;;  %v6146_v26 = vpop.permute.xlu2 %1187 }
 0x145   :  { %v1174_v20 = vmul.f32 %v6117_v33, %v5885_v6  ;;  %v1107_v46 = vmul.f32 %v1099_v25, %v1092_v23 }
 0x146   :  { %v784_v43 = vadd.f32 %v780_v34, %v772_v29  ;;  %v875_v29 = vadd.f32 %v6022_v30, %v866_v21  ;;  %v883_v34 = vmul.f32 %v6025_v35, %v5984_v32  ;;  %v6162_v21 = vld [vmem:[%s8694_s7 + $0x21] ss:$8 sm:$0xf] }
 0x147   :  { %v1183_v44 = vadd.f32 %v6138_v17, %v1174_v20  ;;  %v1173_v20 = vmul.f32 %v6117_v33, %v5883_v5 }
 0x149   :  { %706 = vrot.lane.b32.xlu2 %v696_v27, %s5615_s2  ;;  %v799_v27 = vmul.f32 %v791_v63, %v784_v43  ;;  %v894_v43 = vperm.slane %v6070_v62, 2  ;;  %v1191_v63 = vmul.f32 %v6146_v26, %v5894_v9  ;;  %v986_v62 = vmul.f32 %v6062_v38, %v5984_v32 }
 0x14b   :  { %v1195_v25 = vadd.f32 %v1191_v63, %v1183_v44  ;;  %v1072_v63 = vmul.f32 %v6082_v18, %v5953_v11 }
 0x14c   :  { %1013 = vrot.lane.b32.xlu1 %v1004_v50, %s5618_s3  ;;  %908 = vrot.lane.b32.xlu0 %v900_v49, %s5617_s4  ;;  %v988_v50 = vadd.f32 %v984_v4, %v976_v3  ;;  %v995_v49 = vperm.slane %v6100_v39, 0  ;;  %v6152_v42 = vpop.permute.xlu0 %1273  ;;  %v1079_v3 = vadd.f32 %v6092_v36, %v1070_v19  ;;  %v887_v4 = vadd.f32 %v883_v34, %v875_v29  ;;  %v6179_v34 = vpop.permute.xlu2 %1290 }
 0x14d   :  { %v1087_v19 = vmul.f32 %v6108_v13, %v5909_v15  ;;  %v1277_v23 = vmul.f32 %v6152_v42, %v5885_v6  ;;  %v978_v29 = vadd.f32 %v6055_v28, %v969_v48  ;;  %v6192_v48 = vld [vmem:[%s8694_s7 + $0x22] ss:$8 sm:$0xf] }
 0x14e   :  { %v1003_v52 = vmul.f32 %v995_v49, %v988_v50  ;;  %v1202_v50 = vperm.slane %v6162_v21, 1 }
 0x14f   :  { %v1091_v49 = vadd.f32 %v1087_v19, %v1079_v3  ;;  %v1182_v3 = vadd.f32 %v6138_v17, %v1173_v20  ;;  %v990_v19 = vadd.f32 %v986_v62, %v978_v29  ;;  %v1294_v20 = vmul.f32 %v6179_v34, %v5894_v9 }
 0x150   :  { %v1210_v0 = vmul.f32 %v1202_v50, %v1195_v25  ;;  %v1190_v62 = vmul.f32 %v6146_v26, %v5909_v15 }
 0x151   :  { %809 = vrot.lane.b32.xlu2 %v799_v27, %s5616_s0  ;;  %v6176_v27 = vpop.permute.xlu1 %1282 }
 0x152   :  { %v1286_v44 = vadd.f32 %v6176_v27, %v1277_v23  ;;  %v1276_v23 = vmul.f32 %v6152_v42, %v5883_v5 }
 0x154   :  { %1116 = vrot.lane.b32.xlu1 %v1107_v46, %s5619_s27  ;;  %1011 = vrot.lane.b32.xlu0 %v1003_v52, %s5618_s3  ;;  %v1098_v46 = vperm.slane %v6130_v37, 0  ;;  %v902_v52 = vmul.f32 %v894_v43, %v887_v4  ;;  %v997_v4 = vperm.slane %v6100_v39, 2  ;;  %v6194_v43 = vpop.permute.xlu0 %1376  ;;  %v1298_v50 = vadd.f32 %v1294_v20, %v1286_v44  ;;  %v6216_v20 = vpop.permute.xlu2 %1393 }
 0x155   :  { %v1380_v25 = vmul.f32 %v6194_v43, %v5885_v6  ;;  %v1089_v39 = vmul.f32 %v6108_v13, %v5984_v32  ;;  %v1285_v44 = vadd.f32 %v6176_v27, %v1276_v23  ;;  %v1293_v23 = vmul.f32 %v6179_v34, %v5909_v15 }
 0x156   :  { %v1106_v35 = vmul.f32 %v1098_v46, %v1091_v49  ;;  %v1305_v49 = vperm.slane %v6192_v48, 1  ;;  %v1194_v46 = vadd.f32 %v1190_v62, %v1182_v3  ;;  %v1175_v3 = vmul.f32 %v6117_v33, %v5953_v11 }
 0x157   :  { %v1397_v62 = vmul.f32 %v6216_v20, %v5894_v9 }
 0x158   :  { %v1313_v18 = vmul.f32 %v1305_v49, %v1298_v50 }
 0x159   :  { %912 = vrot.lane.b32.xlu2 %v902_v52, %s5617_s4  ;;  %v1005_v52 = vmul.f32 %v997_v4, %v990_v19  ;;  %v6209_v29 = vpop.permute.xlu1 %1385  ;;  %v6224_v4 = vld [vmem:[%s8694_s7 + $0x23] ss:$8 sm:$0xf] }
 0x15a   :  { %v1389_v28 = vadd.f32 %v6209_v29, %v1380_v25  ;;  %v269_v25 = vmul.f32 %v5863_v51, %v5953_v11  ;;  %v1408_v49 = vperm.slane %v6224_v4, 1 }
 0x15c   :  { %1219 = vrot.lane.b32.xlu1 %v1210_v0, %s5620_s12  ;;  %1114 = vrot.lane.b32.xlu0 %v1106_v35, %s5619_s27  ;;  %v1201_v0 = vperm.slane %v6162_v21, 0  ;;  %v1081_v35 = vadd.f32 %v6092_v36, %v1072_v63  ;;  %v1100_v63 = vperm.slane %v6130_v37, 2  ;;  %v1401_v50 = vadd.f32 %v1397_v62, %v1389_v28 }
 0x15d   :  { %v1278_v28 = vmul.f32 %v6152_v42, %v5953_v11  ;;  %v1203_v62 = vperm.slane %v6162_v21, 2 }
 0x15e   :  { %v1209_v38 = vmul.f32 %v1201_v0, %v1194_v46  ;;  %v1093_v19 = vadd.f32 %v1089_v39, %v1081_v35  ;;  %v1379_v39 = vmul.f32 %v6194_v43, %v5883_v5  ;;  %v1297_v46 = vadd.f32 %v1293_v23, %v1285_v44 }
 0x15f   :  { %v1416_v35 = vmul.f32 %v1408_v49, %v1401_v50  ;;  %v278_v5 = vadd.f32 %v5865_v53, %v269_v25  ;;  %v1396_v53 = vmul.f32 %v6216_v20, %v5909_v15  ;;  %v352_v23 = vmul.f32 %v5869_v55, %v5933_v45 }
 0x160   :  { %v1108_v0 = vmul.f32 %v1100_v63, %v1093_v19  ;;  %v1388_v51 = vadd.f32 %v6209_v29, %v1379_v39  ;;  %v6247_v19 = vpop.permute.xlu0 %1479  ;;  %v296_v25 = vperm.slane %v5899_v10, 2  ;;  %v1407_v49 = vperm.slane %v6224_v4, 0 }
 0x161   :  { %1015 = vrot.lane.b32.xlu2 %v1005_v52, %s5618_s3  ;;  %v1192_v52 = vmul.f32 %v6146_v26, %v5984_v32  ;;  %v1483_v63 = vmul.f32 %v6247_v19, %v5885_v6  ;;  %v361_v10 = vadd.f32 %v5871_v56, %v352_v23  ;;  %v369_v56 = vmul.f32 %v5873_v57, %v5955_v12 }
 0x162   :  { %v1400_v50 = vadd.f32 %v1396_v53, %v1388_v51  ;;  %v1306_v51 = vperm.slane %v6192_v48, 2  ;;  %v380_v23 = vperm.slane %v5890_v7, 3  ;;  %v472_v7 = vmul.f32 %v5879_v61, %v5955_v12 }
 0x164   :  { %1322 = vrot.lane.b32.xlu1 %v1313_v18, %s5621_s16  ;;  %1217 = vrot.lane.b32.xlu0 %v1209_v38, %s5620_s12  ;;  %v1304_v18 = vperm.slane %v6192_v48, 0  ;;  %v1184_v38 = vadd.f32 %v6138_v17, %v1175_v3  ;;  %v286_v3 = vmul.f32 %v5867_v54, %v5984_v32  ;;  %v6264_v54 = vpop.permute.xlu2 %1496  ;;  %v1415_v55 = vmul.f32 %v1407_v49, %v1400_v50 }
 0x165   :  { %v1398_v50 = vmul.f32 %v6216_v20, %v5984_v32 }
 0x166   :  { %v1312_v37 = vmul.f32 %v1304_v18, %v1297_v46  ;;  %v1196_v44 = vadd.f32 %v1192_v52, %v1184_v38  ;;  %v290_v39 = vadd.f32 %v286_v3, %v278_v5  ;;  %v6262_v18 = vpop.permute.xlu1 %1488  ;;  %v1381_v52 = vmul.f32 %v6194_v43, %v5953_v11 }
 0x167   :  { %v1492_v5 = vadd.f32 %v6262_v18, %v1483_v63  ;;  %v373_v63 = vadd.f32 %v369_v56, %v361_v10  ;;  %v661_v56 = vmul.f32 %v5919_v24, %v5933_v45 }
 0x168   :  { %v1211_v46 = vmul.f32 %v1203_v62, %v1196_v44  ;;  %v304_v38 = vmul.f32 %v296_v25, %v290_v39  ;;  %v1500_v44 = vmul.f32 %v6264_v54, %v5894_v9  ;;  %v455_v62 = vmul.f32 %v5875_v58, %v5933_v45 }
 0x169   :  { %1118 = vrot.lane.b32.xlu2 %v1108_v0, %s5619_s27  ;;  %v1295_v0 = vmul.f32 %v6179_v34, %v5984_v32  ;;  %v1390_v25 = vadd.f32 %v6209_v29, %v1381_v52  ;;  %v1484_v58 = vmul.f32 %v6247_v19, %v5953_v11  ;;  %v1578_v52 = vld [vmem:[%s8693_s6 + $0x68] sm:$0xff] }
 0x16a   :  { %v1504_v3 = vadd.f32 %v1500_v44, %v1492_v5  ;;  %v464_v57 = vadd.f32 %v5877_v59, %v455_v62  ;;  %v483_v59 = vperm.slane %v5939_v47, 3  ;;  %v575_v47 = vmul.f32 %v5907_v14, %v5955_v12 }
 0x16b   :  { %v1493_v10 = vadd.f32 %v6262_v18, %v1484_v58  ;;  %v764_v14 = vmul.f32 %v5959_v16, %v5933_v45  ;;  %v781_v16 = vmul.f32 %v5992_v40, %v5955_v12 }
 0x16c   :  { %1425 = vrot.lane.b32.xlu1 %v1416_v35, %s5622_s18  ;;  %1320 = vrot.lane.b32.xlu0 %v1312_v37, %s5621_s16  ;;  %v1287_v37 = vadd.f32 %v6176_v27, %v1278_v28  ;;  %v6277_v28 = vld [vmem:[%s8694_s7 + $0x24] ss:$8 sm:$0xf] }
 0x16d   :  { %v1511_v53 = vperm.slane %v6277_v28, 1 }
 0x16e   :  { %v1299_v35 = vadd.f32 %v1295_v0, %v1287_v37  ;;  %v1402_v37 = vadd.f32 %v1398_v50, %v1390_v25  ;;  %v1409_v0 = vperm.slane %v6224_v4, 2 }
 0x16f   :  { %v1519_v49 = vmul.f32 %v1511_v53, %v1504_v3  ;;  %v586_v3 = vperm.slane %v5967_v22, 3  ;;  %v6333_v22 = vld [vmem:[%s8692_s5 + $0x68] sm:$0xff] }
 0x170   :  { %v1314_v39 = vmul.f32 %v1306_v51, %v1299_v35  ;;  %v1417_v5 = vmul.f32 %v1409_v0, %v1402_v37  ;;  %v1501_v35 = vmul.f32 %v6264_v54, %v5984_v32  ;;  %v8912_v0 = vld [vmem:[#allocation18_spill] sm:$0xff] }
 0x171   :  { %1221 = vrot.lane.b32.xlu2 %v1211_v46, %s5620_s12  ;;  %v388_v46 = vmul.f32 %v380_v23, %v373_v63  ;;  %v678_v23 = vmul.f32 %v5946_v60, %v5955_v12  ;;  %v773_v60 = vadd.f32 %v5982_v31, %v764_v14  ;;  %v8913_v31 = vld [vmem:[#allocation6_spill] sm:$0xff] }
 0x172   :  { %v1505_v44 = vadd.f32 %v1501_v35, %v1493_v10 }
 0x173   :  { %v785_v37 = vadd.f32 %v781_v16, %v773_v60 }
 0x174   :  { %319 = vrot.lane.b32.xlu1 %v304_v38, %s5612_s11  ;;  %1423 = vrot.lane.b32.xlu0 %v1415_v55, %s5622_s18  ;;  %v558_v38 = vmul.f32 %v5881_v2, %v5933_v45  ;;  %v476_v55 = vadd.f32 %v472_v7, %v464_v57  ;;  %v1512_v2 = vperm.slane %v6277_v28, 2 }
 0x175   :  { %v6369_v14 = vpop.permute.xlu2 %315 }
 0x176   :  { %v491_v51 = vmul.f32 %v483_v59, %v476_v55  ;;  %v567_v61 = vadd.f32 %v5892_v8, %v558_v38  ;;  %v1520_v53 = vmul.f32 %v1512_v2, %v1505_v44  ;;  %v670_v8 = vadd.f32 %v5931_v41, %v661_v56  ;;  %v8916_v2 = vld [vmem:[#allocation22_spill] sm:$0xff] }
 0x177   :  { %v689_v41 = vperm.slane %v6004_v1, 3  ;;  %v792_v1 = vperm.slane %v8912_v0, 3 }
 0x178   :  { %v579_v62 = vadd.f32 %v575_v47, %v567_v61  ;;  %v682_v25 = vadd.f32 %v678_v23, %v670_v8  ;;  %v895_v47 = vperm.slane %v8916_v2, 3  ;;  %v8918_v8 = vld [vmem:[#allocation21_spill] sm:$0xff]  ;;  %v1193_v2 = vmul.f32 %v6146_v26, %v5955_v12 }
 0x179   :  { %1324 = vrot.lane.b32.xlu2 %v1314_v39, %s5621_s16  ;;  %v800_v40 = vmul.f32 %v792_v1, %v785_v37  ;;  %v987_v23 = vmul.f32 %v8918_v8, %v5955_v12 }
 0x17a   :  { %v594_v63 = vmul.f32 %v586_v3, %v579_v62  ;;  %v697_v50 = vmul.f32 %v689_v41, %v682_v25  ;;  %v8920_v25 = vld [vmem:[#allocation23_spill] sm:$0xff] }
 0x17b   :  { %v1073_v41 = vmul.f32 %v8920_v25, %v5933_v45 }
 0x17c   :  { %1528 = vrot.lane.b32.xlu1 %v1519_v49, %s5623_s21  ;;  %399 = vrot.lane.b32.xlu0 %v388_v46, %s5611_s28  ;;  %v8911_v49 = vld [vmem:[#allocation16_spill] sm:$0xff] }
 0x17d   :  { %v867_v46 = vmul.f32 %v8911_v49, %v5933_v45  ;;  %8919 = vst [vmem:[#allocation16_spill] sm:$0xff] %v6369_v14  ;;  %v8921_v49 = vld [vmem:[#allocation24_spill] sm:$0xff] }
 0x17f   :  { %v876_v59 = vadd.f32 %v6022_v30, %v867_v46  ;;  %v998_v46 = vperm.slane %v8921_v49, 3 }
 0x181   :  { %1427 = vrot.lane.b32.xlu2 %v1417_v5, %s5622_s18  ;;  %v8914_v5 = vld [vmem:[#allocation17_spill] sm:$0xff] }
 0x182   :  { %v884_v10 = vmul.f32 %v8914_v5, %v5955_v12 }
 0x184   :  { %1591 = vperm.xlu1 %5565, %v1578_v52   ;;  %502 = vrot.lane.b32.xlu0 %v491_v51, %s5613_s14  ;;  %v8915_v52 = vld [vmem:[#allocation19_spill] sm:$0xff]  ;;  %v888_v44 = vadd.f32 %v884_v10, %v876_v59 }
 0x185   :  { %v970_v35 = vmul.f32 %v8915_v52, %v5933_v45  ;;  %v8922_v52 = vld [vmem:[#allocation25_spill] sm:$0xff] }
 0x186   :  { %v903_v3 = vmul.f32 %v895_v47, %v888_v44  ;;  %v1279_v47 = vmul.f32 %v6152_v42, %v5933_v45 }
 0x188   :  { %v1288_v26 = vadd.f32 %v6176_v27, %v1279_v47 }
 0x189   :  { %1530 = vrot.lane.b32.xlu2 %v1520_v53, %s5623_s21  ;;  %v8917_v53 = vld [vmem:[#allocation20_spill] sm:$0xff] }
 0x18c   :  { %605 = vrot.lane.b32.xlu0 %v594_v63, %s5614_s17  ;;  %v979_v63 = vadd.f32 %v8917_v53, %v970_v35  ;;  %v1101_v35 = vperm.slane %v8922_v52, 3 }
 0x18e   :  { %v6324_v39 = vpop.permute.xlu1 %395  ;;  %v6328_v24 = vpop.permute.xlu0 %317  ;;  %v991_v16 = vadd.f32 %v987_v23, %v979_v63  ;;  %v1382_v23 = vmul.f32 %v6194_v43, %v5933_v45 }
 0x18f   :  { %8910 = vst [vmem:[#allocation26_spill] sm:$0xff] %v6328_v24 }
 0x190   :  { %v1006_v1 = vmul.f32 %v998_v46, %v991_v16  ;;  %v1307_v16 = vperm.slane %v6192_v48, 3  ;;  %v1399_v48 = vmul.f32 %v6216_v20, %v5955_v12 }
 0x191   :  { %1599 = vperm.xlu2 %5566, %v6333_v22  }
 0x194   :  { %708 = vrot.lane.b32.xlu0 %v697_v50, %s5615_s2  ;;  %s5624_s2 = smov 127  }
 0x196   :  { %v6343_v57 = vpop.permute.xlu1 %498  ;;  %v394_v58 = vpop.permute.xlu0 %393 }
 0x197   :  { %v402_v7 = vsel %vm8866_vm3, %v394_v58, %v6324_v39  ;;  %v410_v38 = vmul.f32 0.0, %v394_v58 }
 0x198   :  { %v411_v55 = vmul.f32 %v402_v7, %v8913_v31  ;;  %v1082_v7 = vadd.f32 %v6092_v36, %v1073_v41 }
 0x199   :  { %420 = vrot.lane.b32.xlu1 %v410_v38, %s5624_s2  ;;  %v1090_v38 = vmul.f32 %v6108_v13, %v5955_v12 }
 0x19a   :  { %422 = vrot.lane.b32.xlu2 %v411_v55, %s5624_s2  ;;  %v6385_v55 = vpop.permute.xlu2 %321 }
 0x19b   :  { %v1094_v10 = vadd.f32 %v1090_v38, %v1082_v7  ;;  %v1410_v38 = vperm.slane %v6224_v4, 3  ;;  %v1499_v4 = vmul.f32 %v6264_v54, %v5909_v15 }
 0x19c   :  { %811 = vrot.lane.b32.xlu0 %v800_v40, %s5616_s0  ;;  %s5625_s0 = smov 126   ;;  %v1176_v40 = vmul.f32 %v6117_v33, %v5933_v45 }
 0x19d   :  { %v1109_v13 = vmul.f32 %v1101_v35, %v1094_v10 }
 0x19e   :  { %v6357_v51 = vpop.permute.xlu1 %601  ;;  %v497_v61 = vpop.permute.xlu0 %496  ;;  %v1185_v33 = vadd.f32 %v6138_v17, %v1176_v40 }
 0x19f   :  { %v505_v56 = vsel %vm8867_vm4, %v497_v61, %v6343_v57  ;;  %v513_v62 = vmul.f32 0.0, %v497_v61 }
 0x1a0   :  { %v514_v30 = vmul.f32 %v505_v56, %v8913_v31 }
 0x1a1   :  { %523 = vrot.lane.b32.xlu1 %v513_v62, %s5625_s0 }
 0x1a2   :  { %525 = vrot.lane.b32.xlu2 %v514_v30, %s5625_s0  ;;  %v1197_v30 = vadd.f32 %v1193_v2, %v1185_v33  ;;  %v6408_v17 = vpop.permute.xlu2 %397 }
 0x1a4   :  { %914 = vrot.lane.b32.xlu0 %v903_v3, %s5617_s4  ;;  %s5626_s4 = smov 125   ;;  %v1204_v3 = vperm.slane %v6162_v21, 3  ;;  %v1296_v21 = vmul.f32 %v6179_v34, %v5955_v12 }
 0x1a6   :  { %v6373_v50 = vpop.permute.xlu1 %704  ;;  %v600_v60 = vpop.permute.xlu0 %599  ;;  %v1212_v42 = vmul.f32 %v1204_v3, %v1197_v30  ;;  %v1502_v3 = vmul.f32 %v6264_v54, %v5955_v12 }
 0x1a7   :  { %v608_v58 = vsel %vm8865_vm5, %v600_v60, %v6357_v51  ;;  %v616_v37 = vmul.f32 0.0, %v600_v60  ;;  %v1300_v60 = vadd.f32 %v1296_v21, %v1288_v26 }
 0x1a8   :  { %v617_v0 = vmul.f32 %v608_v58, %v8913_v31  ;;  %v1391_v58 = vadd.f32 %v6209_v29, %v1382_v23 }
 0x1a9   :  { %626 = vrot.lane.b32.xlu1 %v616_v37, %s5626_s4  ;;  %v1315_v43 = vmul.f32 %v1307_v16, %v1300_v60  ;;  %v8923_v37 = vld [vmem:[#allocation10_spill] sm:$0xff] }
 0x1aa   :  { %628 = vrot.lane.b32.xlu2 %v617_v0, %s5626_s4  ;;  %v6426_v34 = vpop.permute.xlu2 %500  ;;  %v1482_v0 = vmul.f32 %v6247_v19, %v8923_v37  ;;  %v1403_v7 = vadd.f32 %v1399_v48, %v1391_v58 }
 0x1ac   :  { %1017 = vrot.lane.b32.xlu0 %v1006_v1, %s5618_s3  ;;  %v1418_v20 = vmul.f32 %v1410_v38, %v1403_v7  ;;  %v1491_v52 = vadd.f32 %v6262_v18, %v1482_v0 }
 0x1ae   :  { %v6389_v59 = vpop.permute.xlu1 %807  ;;  %v703_v5 = vpop.permute.xlu0 %702 }
 0x1af   :  { %v711_v36 = vsel %vm710_vm6, %v703_v5, %v6373_v50  ;;  %v719_v61 = vmul.f32 0.0, %v703_v5 }
 0x1b0   :  { %v720_v44 = vmul.f32 %v711_v36, %v8913_v31  ;;  %v1485_v36 = vmul.f32 %v6247_v19, %v5933_v45 }
 0x1b1   :  { %729 = vrot.lane.b32.xlu1 %v719_v61, %s5627_s25 }
 0x1b2   :  { %731 = vrot.lane.b32.xlu2 %v720_v44, %s5627_s25  ;;  %v6444_v35 = vpop.permute.xlu2 %603  ;;  %v1503_v44 = vadd.f32 %v1499_v4, %v1491_v52  ;;  %v1494_v19 = vadd.f32 %v6262_v18, %v1485_v36 }
 0x1b4   :  { %1120 = vrot.lane.b32.xlu0 %v1109_v13, %s5619_s27  ;;  %v1510_v13 = vperm.slane %v6277_v28, 0 }
 0x1b6   :  { %v6403_v56 = vpop.permute.xlu1 %910  ;;  %v806_v62 = vpop.permute.xlu0 %805  ;;  %v1518_v30 = vmul.f32 %v1510_v13, %v1503_v44 }
 0x1b7   :  { %v814_v53 = vsel %vm813_vm7, %v806_v62, %v6389_v59  ;;  %v822_v63 = vmul.f32 0.0, %v806_v62 }
 0x1b8   :  { %v823_v8 = vmul.f32 %v814_v53, %v8913_v31 }
 0x1b9   :  { %832 = vrot.lane.b32.xlu1 %v822_v63, %s5628_s26 }
 0x1ba   :  { %834 = vrot.lane.b32.xlu2 %v823_v8, %s5628_s26  ;;  %v6463_v53 = vpop.permute.xlu2 %706  ;;  %v1506_v8 = vadd.f32 %v1502_v3, %v1494_v19 }
 0x1bc   :  { %1223 = vrot.lane.b32.xlu0 %v1212_v42, %s5620_s12  ;;  %v1513_v42 = vperm.slane %v6277_v28, 3 }
 0x1be   :  { %v6419_v25 = vpop.permute.xlu1 %1013  ;;  %v909_v41 = vpop.permute.xlu0 %908  ;;  %v1521_v18 = vmul.f32 %v1513_v42, %v1506_v8 }
 0x1bf   :  { %v917_v49 = vsel %vm916_vm8, %v909_v41, %v6403_v56  ;;  %v925_v46 = vmul.f32 0.0, %v909_v41 }
 0x1c0   :  { %v926_v27 = vmul.f32 %v917_v49, %v8913_v31 }
 0x1c1   :  { %935 = vrot.lane.b32.xlu1 %v925_v46, %s5629_s29 }
 0x1c2   :  { %937 = vrot.lane.b32.xlu2 %v926_v27, %s5629_s29  ;;  %v6476_v16 = vpop.permute.xlu2 %809 }
 0x1c4   :  { %1326 = vrot.lane.b32.xlu0 %v1315_v43, %s5621_s16  ;;  %v403_v43 = vsel %vm8866_vm3, %v6324_v39, %v6408_v17  ;;  %v506_v39 = vsel %vm8867_vm4, %v6343_v57, %v6426_v34  ;;  %v712_v57 = vsel %vm710_vm6, %v6373_v50, %v6463_v53 }
 0x1c6   :  { %v1012_v1 = vpop.permute.xlu0 %1011  ;;  %v6438_v10 = vpop.permute.xlu1 %1116 }
 0x1c7   :  { %v1020_v40 = vsel %vm1019_vm9, %v1012_v1, %v6419_v25  ;;  %v1028_v5 = vmul.f32 0.0, %v1012_v1 }
 0x1c8   :  { %v1029_v29 = vmul.f32 %v1020_v40, %v8913_v31 }
 0x1c9   :  { %1038 = vrot.lane.b32.xlu1 %v1028_v5, %s5630_s30 }
 0x1ca   :  { %1040 = vrot.lane.b32.xlu2 %v1029_v29, %s5630_s30  ;;  %v6488_v1 = vpop.permute.xlu2 %912 }
 0x1cb   :  { %v918_v50 = vsel %vm916_vm8, %v6403_v56, %v6488_v1 }
 0x1cc   :  { %1429 = vrot.lane.b32.xlu0 %v1418_v20, %s5622_s18  ;;  %s5633_s18 = smov 109   ;;  %v609_v20 = vsel %vm8865_vm5, %v6357_v51, %v6444_v35  ;;  %v815_v51 = vsel %vm813_vm7, %v6389_v59, %v6476_v16 }
 0x1ce   :  { %v1115_v61 = vpop.permute.xlu0 %1114  ;;  %v6456_v62 = vpop.permute.xlu1 %1219 }
 0x1cf   :  { %v1123_v33 = vsel %vm8864_vm10, %v1115_v61, %v6438_v10  ;;  %v1131_v2 = vmul.f32 0.0, %v1115_v61 }
 0x1d0   :  { %v1132_v47 = vmul.f32 %v1123_v33, %v8913_v31 }
 0x1d1   :  { %1141 = vrot.lane.b32.xlu1 %v1131_v2, %s5631_s13 }
 0x1d2   :  { %1143 = vrot.lane.b32.xlu2 %v1132_v47, %s5631_s13  ;;  %v6499_v5 = vpop.permute.xlu2 %1015 }
 0x1d3   :  { %v1021_v59 = vsel %vm1019_vm9, %v6419_v25, %v6499_v5 }
 0x1d4   :  { %1526 = vrot.lane.b32.xlu0 %v1518_v30, %s5623_s21 }
 0x1d6   :  { %v1218_v63 = vpop.permute.xlu0 %1217  ;;  %v6471_v54 = vpop.permute.xlu1 %1322 }
 0x1d7   :  { %v1226_v26 = vsel %vm8863_vm11, %v1218_v63, %v6456_v62  ;;  %v1234_v21 = vmul.f32 0.0, %v1218_v63 }
 0x1d8   :  { %v1235_v23 = vmul.f32 %v1226_v26, %v8913_v31 }
 0x1d9   :  { %1244 = vrot.lane.b32.xlu1 %v1234_v21, %s5632_s15 }
 0x1da   :  { %1246 = vrot.lane.b32.xlu2 %v1235_v23, %s5632_s15  ;;  %v6509_v4 = vpop.permute.xlu2 %1118 }
 0x1db   :  { %v1124_v56 = vsel %vm8864_vm10, %v6438_v10, %v6509_v4 }
 0x1dc   :  { %1532 = vrot.lane.b32.xlu0 %v1521_v18, %s5623_s21 }
 0x1de   :  { %v1321_v41 = vpop.permute.xlu0 %1320  ;;  %v1426_v46 = vpop.permute.xlu1 %1425 }
 0x1df   :  { %v1329_v28 = vsel %vm8862_vm12, %v1321_v41, %v6471_v54  ;;  %v1337_v60 = vmul.f32 0.0, %v1321_v41 }
 0x1e0   :  { %v1338_v49 = vmul.f32 %v1329_v28, %v8913_v31 }
 0x1e1   :  { %1347 = vrot.lane.b32.xlu1 %v1337_v60, %s5633_s18 }
 0x1e2   :  { %1349 = vrot.lane.b32.xlu2 %v1338_v49, %s5633_s18  ;;  %v6523_v13 = vpop.permute.xlu2 %1221 }
 0x1e3   :  { %v1227_v25 = vsel %vm8863_vm11, %v6456_v62, %v6523_v13 }
 0x1e4   :  { %1582 = vperm.xlu0 %5564, %v6333_v22   ;;  %v8924_v22 = vld [vmem:[#allocation7_spill] sm:$0xff] }
 0x1e5   :  { %v412_v7 = vmul.f32 %v403_v43, %v8924_v22  ;;  %v515_v40 = vmul.f32 %v506_v39, %v8924_v22  ;;  %v618_v52 = vmul.f32 %v609_v20, %v8924_v22  ;;  %v721_v61 = vmul.f32 %v712_v57, %v8924_v22 }
 0x1e6   :  { %v1424_v27 = vpop.permute.xlu0 %1423  ;;  %v824_v33 = vmul.f32 %v815_v51, %v8924_v22  ;;  %v927_v30 = vmul.f32 %v918_v50, %v8924_v22  ;;  %v1030_v3 = vmul.f32 %v1021_v59, %v8924_v22  ;;  %v1133_v42 = vmul.f32 %v1124_v56, %v8924_v22  ;;  %v6569_v60 = vpop.permute.xlu1 %319  ;;  %v8929_v50 = vld [vmem:[#allocation8_spill] sm:$0xff]  ;;  %v8930_v59 = vld [vmem:[#allocation9_spill] sm:$0xff] }
 0x1e7   :  { %v1432_v58 = vsel %vm1431_vm13, %v1424_v27, %v1426_v46  ;;  %v1440_v48 = vmul.f32 0.0, %v1424_v27  ;;  %v1236_v23 = vmul.f32 %v1227_v25, %v8924_v22  ;;  %v6618_v25 = vld [vmem:[%s8694_s7 + $0x25] ss:$8 sm:$0xf] }
 0x1e8   :  { %v1441_v0 = vmul.f32 %v1432_v58, %v8913_v31 }
 0x1e9   :  { %1450 = vrot.lane.b32.xlu1 %v1440_v48, %s5634_s19 }
 0x1ea   :  { %1452 = vrot.lane.b32.xlu2 %v1441_v0, %s5634_s19  ;;  %v6532_v47 = vpop.permute.xlu2 %1324 }
 0x1eb   :  { %v1330_v10 = vsel %vm8862_vm12, %v6471_v54, %v6532_v47 }
 0x1ec   :  { %424 = vrot.lane.b32.xlu0 %v412_v7, %s5624_s2  ;;  %v1339_v28 = vmul.f32 %v1330_v10, %v8924_v22 }
 0x1ee   :  { %v6493_v38 = vpop.permute.xlu0 %399  ;;  %v1529_v58 = vpop.permute.xlu1 %1528 }
 0x1ef   :  { %v404_v57 = vsel %vm8866_vm3, %v6408_v17, %v6493_v38 }
 0x1f2   :  { %v6542_v63 = vpop.permute.xlu2 %1427 }
 0x1f3   :  { %v1433_v62 = vsel %vm1431_vm13, %v1426_v46, %v6542_v63 }
 0x1f4   :  { %527 = vrot.lane.b32.xlu0 %v515_v40, %s5625_s0  ;;  %v1442_v43 = vmul.f32 %v1433_v62, %v8924_v22 }
 0x1f6   :  { %v6502_v29 = vpop.permute.xlu0 %502  ;;  %v6588_v39 = vpop.permute.xlu1 %1591 }
 0x1f7   :  { %v507_v56 = vsel %vm8867_vm4, %v6426_v34, %v6502_v29  ;;  %v517_v10 = vmul.f32 %v6502_v29, %v8930_v59 }
 0x1fa   :  { %v6552_v26 = vpop.permute.xlu2 %1530 }
 0x1fb   :  { %v1536_v48 = vsel %vm1534_vm14, %v1529_v58, %v6552_v26 }
 0x1fc   :  { %630 = vrot.lane.b32.xlu0 %v618_v52, %s5626_s4  ;;  %v1545_v0 = vmul.f32 %v1536_v48, %v8924_v22 }
 0x1fe   :  { %v6511_v36 = vpop.permute.xlu0 %605 }
 0x1ff   :  { %v610_v29 = vsel %vm8865_vm5, %v6444_v35, %v6511_v36 }
 0x202   :  { %v6566_v41 = vpop.permute.xlu2 %1599 }
 0x203   :  { %v1602_v34 = vmul.f32 %v6566_v41, %v5909_v15 }
 0x204   :  { %733 = vrot.lane.b32.xlu0 %v721_v61, %s5627_s25 }
 0x206   :  { %v6518_v44 = vpop.permute.xlu0 %708 }
 0x20a   :  { %v6576_v27 = vpop.permute.xlu2 %422 }
 0x20b   :  { %8925 = vst [vmem:[#allocation18_spill] sm:$0xff] %v6576_v27 }
 0x20c   :  { %836 = vrot.lane.b32.xlu0 %v824_v33, %s5628_s26  ;;  %v6601_v33 = vpop.permute.xlu1 %420 }
 0x20d   :  { %8928 = vst [vmem:[#allocation19_spill] sm:$0xff] %v6601_v33 }
 0x20e   :  { %v6527_v2 = vpop.permute.xlu0 %811 }
 0x212   :  { %v6585_v7 = vpop.permute.xlu2 %525 }
 0x213   :  { %8926 = vst [vmem:[#allocation6_spill] sm:$0xff] %v6585_v7 }
 0x214   :  { %939 = vrot.lane.b32.xlu0 %v927_v30, %s5629_s29  ;;  %v413_v30 = vmul.f32 %v404_v57, %v8929_v50  ;;  %v620_v57 = vmul.f32 %v6511_v36, %v8930_v59 }
 0x216   :  { %v6536_v19 = vpop.permute.xlu0 %914 }
 0x21a   :  { %v6597_v61 = vpop.permute.xlu2 %628 }
 0x21b   :  { %8927 = vst [vmem:[#allocation17_spill] sm:$0xff] %v6597_v61 }
 0x21c   :  { %1042 = vrot.lane.b32.xlu0 %v1030_v3, %s5630_s30  ;;  %v414_v3 = vmul.f32 %v6493_v38, %v8930_v59 }
 0x21e   :  { %v6545_v8 = vpop.permute.xlu0 %1017 }
 0x222   :  { %v6611_v17 = vpop.permute.xlu2 %731 }
 0x223   :  { %8931 = vst [vmem:[#allocation22_spill] sm:$0xff] %v6611_v17 }
 0x224   :  { %1145 = vrot.lane.b32.xlu0 %v1133_v42, %s5631_s13 }
 0x226   :  { %v6554_v21 = vpop.permute.xlu0 %1120 }
 0x22c   :  { %1248 = vrot.lane.b32.xlu0 %v1236_v23, %s5632_s15  ;;  %v516_v23 = vmul.f32 %v507_v56, %v8929_v50 }
 0x22e   :  { %v6561_v18 = vpop.permute.xlu0 %1223 }
 0x234   :  { %1351 = vrot.lane.b32.xlu0 %v1339_v28, %s5633_s18  ;;  %v6627_v28 = vpop.permute.xlu1 %523 }
 0x235   :  { %8932 = vst [vmem:[#allocation20_spill] sm:$0xff] %v6627_v28 }
 0x236   :  { %v6572_v49 = vpop.permute.xlu0 %1326 }
 0x23c   :  { %1454 = vrot.lane.b32.xlu0 %v1442_v43, %s5634_s19  ;;  %v6652_v56 = vpop.permute.xlu1 %626 }
 0x23d   :  { %8935 = vst [vmem:[#allocation24_spill] sm:$0xff] %v6652_v56 }
 0x23e   :  { %v6580_v54 = vpop.permute.xlu0 %1429 }
 0x244   :  { %1557 = vrot.lane.b32.xlu0 %v1545_v0, %s5635_s20 }
 0x246   :  { %v1527_v46 = vpop.permute.xlu0 %1526 }
 0x247   :  { %v1535_v40 = vsel %vm1534_vm14, %v1527_v46, %v1529_v58  ;;  %v1543_v20 = vmul.f32 0.0, %v1527_v46  ;;  %v1613_v58 = vperm.slane %v6618_v25, 0 }
 0x248   :  { %v1544_v52 = vmul.f32 %v1535_v40, %v8913_v31 }
 0x249   :  { %1553 = vrot.lane.b32.xlu1 %v1543_v20, %s5635_s20  ;;  %v1605_v20 = vmul.f32 %v6566_v41, %v5955_v12 }
 0x24a   :  { %1555 = vrot.lane.b32.xlu2 %v1544_v52, %s5635_s20  ;;  %v619_v52 = vmul.f32 %v610_v29, %v8929_v50  ;;  %v826_v29 = vmul.f32 %v6527_v2, %v8930_v59 }
 0x24e   :  { %v6599_v51 = vpop.permute.xlu0 %1532 }
 0x251   :  { %426 = vrot.lane.b32.xlu1 %v413_v30, %s5624_s2  ;;  %v6647_v30 = vpop.permute.xlu2 %834 }
 0x252   :  { %428 = vrot.lane.b32.xlu2 %v414_v3, %s5624_s2  ;;  %8934 = vst [vmem:[#allocation23_spill] sm:$0xff] %v6647_v30  ;;  %v1616_v3 = vperm.slane %v6618_v25, 3 }
 0x256   :  { %v6613_v42 = vpop.permute.xlu0 %1582 }
 0x257   :  { %v1585_v38 = vmul.f32 %v6613_v42, %v8923_v37  ;;  %v1588_v62 = vmul.f32 %v6613_v42, %v5933_v45 }
 0x259   :  { %v1594_v43 = vadd.f32 %v6588_v39, %v1585_v38  ;;  %529 = vrot.lane.b32.xlu1 %v516_v23, %s5625_s0  ;;  %v1597_v0 = vadd.f32 %v6588_v39, %v1588_v62  ;;  %v713_v38 = vsel %vm710_vm6, %v6463_v53, %v6518_v44  ;;  %v6664_v62 = vpop.permute.xlu2 %937  ;;  %v816_v53 = vsel %vm813_vm7, %v6476_v16, %v6527_v2 }
 0x25a   :  { %531 = vrot.lane.b32.xlu2 %v517_v10, %s5625_s0  ;;  %v722_v36 = vmul.f32 %v713_v38, %v8929_v50  ;;  %8937 = vst [vmem:[#allocation7_spill] sm:$0xff] %v6664_v62  ;;  %v1022_v2 = vsel %vm1019_vm9, %v6499_v5, %v6545_v8  ;;  %v1125_v38 = vsel %vm8864_vm10, %v6509_v4, %v6554_v21  ;;  %vm8860_vm6 = vcmask 908288  }
 0x25b   :  { %v1606_v48 = vadd.f32 %v1602_v34, %v1594_v43  ;;  %v1609_v35 = vadd.f32 %v1605_v20, %v1597_v0  ;;  %v723_v34 = vmul.f32 %v6518_v44, %v8930_v59  ;;  %v6670_v43 = vpop.permute.xlu1 %729  ;;  %v919_v44 = vsel %vm916_vm8, %v6488_v1, %v6536_v19 }
 0x25c   :  { %8938 = vst [vmem:[#allocation8_spill] sm:$0xff] %v6670_v43  ;;  %v929_v20 = vmul.f32 %v6536_v19, %v8930_v59  ;;  %v1134_v5 = vmul.f32 %v1125_v38, %v8929_v50  ;;  %vm8859_vm7 = vcmask 916480   ;;  %vm2144_vm8 = vcmask 924672  }
 0x25d   :  { %v1621_v46 = vmul.f32 %v1613_v58, %v1606_v48  ;;  %v1624_v23 = vmul.f32 %v1616_v3, %v1609_v35  ;;  %v825_v48 = vmul.f32 %v816_v53, %v8929_v50  ;;  %v1032_v35 = vmul.f32 %v6545_v8, %v8930_v59 }
 0x25e   :  { %v6639_v40 = vpop.permute.xlu0 %424 }
 0x25f   :  { %8933 = vst [vmem:[#allocation21_spill] sm:$0xff] %v6639_v40  ;;  %1629 = vrot.lane.b32.xlu0 %v1621_v46, %s5636_s1  ;;  %v928_v46 = vmul.f32 %v919_v44, %v8929_v50 }
 0x261   :  { %632 = vrot.lane.b32.xlu1 %v619_v52, %s5626_s4  ;;  %v6682_v0 = vpop.permute.xlu2 %1040 }
 0x262   :  { %634 = vrot.lane.b32.xlu2 %v620_v57, %s5626_s4  ;;  %8940 = vst [vmem:[#allocation27_spill] sm:$0xff] %v6682_v0  ;;  %v1031_v57 = vmul.f32 %v1022_v2, %v8929_v50 }
 0x263   :  { %v6684_v16 = vpop.permute.xlu1 %832 }
 0x264   :  { %8941 = vst [vmem:[#allocation28_spill] sm:$0xff] %v6684_v16 }
 0x266   :  { %v6657_v10 = vpop.permute.xlu0 %527 }
 0x267   :  { %8936 = vst [vmem:[#allocation25_spill] sm:$0xff] %v6657_v10  ;;  %1635 = vrot.lane.b32.xlu0 %v1624_v23, %s5636_s1  ;;  %v1135_v23 = vmul.f32 %v6554_v21, %v8930_v59 }
 0x269   :  { %735 = vrot.lane.b32.xlu1 %v722_v36, %s5627_s25  ;;  %v6696_v1 = vpop.permute.xlu2 %1143 }
 0x26a   :  { %737 = vrot.lane.b32.xlu2 %v723_v34, %s5627_s25  ;;  %8943 = vst [vmem:[#allocation30_spill] sm:$0xff] %v6696_v1  ;;  %v1228_v34 = vsel %vm8863_vm11, %v6523_v13, %v6561_v18  ;;  %s5672_s25 = smov 33  }
 0x26b   :  { %v6701_v3 = vpop.permute.xlu1 %935  ;;  %v1237_v4 = vmul.f32 %v1228_v34, %v8929_v50 }
 0x26c   :  { %8944 = vst [vmem:[#allocation31_spill] sm:$0xff] %v6701_v3 }
 0x26e   :  { %v6672_v58 = vpop.permute.xlu0 %630 }
 0x26f   :  { %8939 = vst [vmem:[#allocation9_spill] sm:$0xff] %v6672_v58 }
 0x271   :  { %838 = vrot.lane.b32.xlu1 %v825_v48, %s5628_s26  ;;  %v6713_v36 = vpop.permute.xlu2 %1246  ;;  %v1238_v48 = vmul.f32 %v6561_v18, %v8930_v59  ;;  %v1434_v18 = vsel %vm1431_vm13, %v6542_v63, %v6580_v54  ;;  %v1537_v63 = vsel %vm1534_vm14, %v6552_v26, %v6599_v51  ;;  %v1604_v26 = vmul.f32 %v6566_v41, %v5984_v32 }
 0x272   :  { %840 = vrot.lane.b32.xlu2 %v826_v29, %s5628_s26  ;;  %8946 = vst [vmem:[#allocation33_spill] sm:$0xff] %v6713_v36  ;;  %v1331_v29 = vsel %vm8862_vm12, %v6532_v47, %v6572_v49  ;;  %v1443_v47 = vmul.f32 %v1434_v18, %v8929_v50  ;;  %v1614_v18 = vperm.slane %v6618_v25, 1  ;;  %vm2247_vm13 = vcmask 932864   ;;  %s5673_s26 = smov 44  }
 0x273   :  { %v6717_v8 = vpop.permute.xlu1 %1038  ;;  %v1340_v13 = vmul.f32 %v1331_v29, %v8929_v50  ;;  %v1603_v29 = vmul.f32 %v6566_v41, %v5894_v9  ;;  %vm2350_vm14 = vcmask 941056  }
 0x274   :  { %8947 = vst [vmem:[#allocation34_spill] sm:$0xff] %v6717_v8  ;;  %v1681_v8 = vld [vmem:[%s8693_s6 + $0x70] sm:$0xff] }
 0x276   :  { %v6689_v52 = vpop.permute.xlu0 %733 }
 0x277   :  { %8942 = vst [vmem:[#allocation29_spill] sm:$0xff] %v6689_v52 }
 0x279   :  { %941 = vrot.lane.b32.xlu1 %v928_v46, %s5629_s29  ;;  %v6728_v21 = vpop.permute.xlu2 %1349 }
 0x27a   :  { %943 = vrot.lane.b32.xlu2 %v929_v20, %s5629_s29  ;;  %8949 = vst [vmem:[#allocation36_spill] sm:$0xff] %v6728_v21  ;;  %v1341_v20 = vmul.f32 %v6572_v49, %v8930_v59  ;;  %v1586_v49 = vmul.f32 %v6613_v42, %v5885_v6 }
 0x27b   :  { %v6734_v44 = vpop.permute.xlu1 %1141 }
 0x27c   :  { %8950 = vst [vmem:[#allocation37_spill] sm:$0xff] %v6734_v44  ;;  %v1595_v34 = vadd.f32 %v6588_v39, %v1586_v49 }
 0x27e   :  { %v6705_v19 = vpop.permute.xlu0 %836 }
 0x27f   :  { %8945 = vst [vmem:[#allocation32_spill] sm:$0xff] %v6705_v19 }
 0x281   :  { %1044 = vrot.lane.b32.xlu1 %v1031_v57, %s5630_s30  ;;  %v6746_v2 = vpop.permute.xlu2 %1452 }
 0x282   :  { %1046 = vrot.lane.b32.xlu2 %v1032_v35, %s5630_s30  ;;  %8952 = vst [vmem:[#allocation39_spill] sm:$0xff] %v6746_v2  ;;  %v1444_v35 = vmul.f32 %v6580_v54, %v8930_v59  ;;  %v1546_v54 = vmul.f32 %v1537_v63, %v8929_v50 }
 0x283   :  { %v6749_v57 = vpop.permute.xlu1 %1244 }
 0x284   :  { %8953 = vst [vmem:[#allocation40_spill] sm:$0xff] %v6749_v57 }
 0x286   :  { %v6722_v53 = vpop.permute.xlu0 %939 }
 0x287   :  { %8948 = vst [vmem:[#allocation35_spill] sm:$0xff] %v6722_v53 }
 0x289   :  { %1147 = vrot.lane.b32.xlu1 %v1134_v5, %s5631_s13  ;;  %v1587_v5 = vmul.f32 %v6613_v42, %v5953_v11 }
 0x28a   :  { %1149 = vrot.lane.b32.xlu2 %v1135_v23, %s5631_s13 }
 0x28e   :  { %v6737_v46 = vpop.permute.xlu0 %1042 }
 0x28f   :  { %8951 = vst [vmem:[#allocation38_spill] sm:$0xff] %v6737_v46 }
 0x291   :  { %1250 = vrot.lane.b32.xlu1 %v1237_v4, %s5632_s15  ;;  %v1547_v4 = vmul.f32 %v6599_v51, %v8930_v59 }
 0x292   :  { %1252 = vrot.lane.b32.xlu2 %v1238_v48, %s5632_s15  ;;  %v1596_v48 = vadd.f32 %v6588_v39, %v1587_v5 }
 0x294   :  { %v1608_v39 = vadd.f32 %v1604_v26, %v1596_v48 }
 0x296   :  { %v6753_v38 = vpop.permute.xlu0 %1145 }
 0x297   :  { %8954 = vst [vmem:[#allocation41_spill] sm:$0xff] %v6753_v38 }
 0x299   :  { %1353 = vrot.lane.b32.xlu1 %v1340_v13, %s5633_s18  ;;  %v6773_v13 = vpop.permute.xlu1 %1347 }
 0x29a   :  { %1355 = vrot.lane.b32.xlu2 %v1341_v20, %s5633_s18  ;;  %8956 = vst [vmem:[#allocation43_spill] sm:$0xff] %v6773_v13  ;;  %v1607_v20 = vadd.f32 %v1603_v29, %v1595_v34 }
 0x29e   :  { %v6779_v42 = vpop.permute.xlu0 %1248 }
 0x29f   :  { %8957 = vst [vmem:[#allocation44_spill] sm:$0xff] %v6779_v42 }
 0x2a1   :  { %1456 = vrot.lane.b32.xlu1 %v1443_v47, %s5634_s19  ;;  %v1615_v47 = vperm.slane %v6618_v25, 2  ;;  %v6787_v63 = vpop.permute.xlu1 %1450 }
 0x2a2   :  { %1458 = vrot.lane.b32.xlu2 %v1444_v35, %s5634_s19  ;;  %v1622_v35 = vmul.f32 %v1614_v18, %v1607_v20  ;;  %8958 = vst [vmem:[#allocation45_spill] sm:$0xff] %v6787_v63 }
 0x2a3   :  { %v1623_v49 = vmul.f32 %v1615_v47, %v1608_v39 }
 0x2a4   :  { %v6764_v23 = vpop.permute.xlu2 %1555 }
 0x2a5   :  { %8955 = vst [vmem:[#allocation42_spill] sm:$0xff] %v6764_v23 }
 0x2a6   :  { %v6791_v5 = vpop.permute.xlu0 %1351 }
 0x2a7   :  { %8959 = vst [vmem:[#allocation46_spill] sm:$0xff] %v6791_v5 }
 0x2a9   :  { %1559 = vrot.lane.b32.xlu1 %v1546_v54, %s5635_s20 }
 0x2aa   :  { %1561 = vrot.lane.b32.xlu2 %v1547_v4, %s5635_s20  ;;  %s5640_s20 = smov 114  }
 0x2ac   :  { %v6782_v51 = vpop.permute.xlu2 %428 }
 0x2ae   :  { %v6797_v4 = vpop.permute.xlu0 %1454 }
 0x2af   :  { %8961 = vst [vmem:[#allocation48_spill] sm:$0xff] %v6797_v4 }
 0x2b1   :  { %1631 = vrot.lane.b32.xlu1 %v1622_v35, %s5636_s1 }
 0x2b2   :  { %1633 = vrot.lane.b32.xlu2 %v1623_v49, %s5636_s1  ;;  %s5671_s1 = smov 45  }
 0x2b4   :  { %v6789_v41 = vpop.permute.xlu2 %531 }
 0x2b6   :  { %v6803_v29 = vpop.permute.xlu0 %1557 }
 0x2b7   :  { %8962 = vst [vmem:[#allocation49_spill] sm:$0xff] %v6803_v29 }
 0x2bb   :  { %v6793_v54 = vpop.permute.xlu1 %1553 }
 0x2bc   :  { %8960 = vst [vmem:[#allocation47_spill] sm:$0xff] %v6793_v54  ;;  %v6795_v34 = vpop.permute.xlu2 %634 }
 0x2c3   :  { %v6799_v48 = vpop.permute.xlu1 %426 }
 0x2c4   :  { %v6801_v25 = vpop.permute.xlu2 %737 }
 0x2cb   :  { %v6805_v26 = vpop.permute.xlu1 %529 }
 0x2cc   :  { %v6807_v20 = vpop.permute.xlu2 %840 }
 0x2d1   :  { %v1630_v18 = vpop.permute.xlu0 %1629 }
 0x2d2   :  { %v1646_v39 = vmul.f32 0.0, %v1630_v18 }
 0x2d3   :  { %v6809_v47 = vpop.permute.xlu1 %632 }
 0x2d4   :  { %1656 = vrot.lane.b32.xlu1 %v1646_v39, %s5637_s23  ;;  %v6812_v35 = vpop.permute.xlu2 %943 }
 0x2d9   :  { %v1636_v36 = vpop.permute.xlu0 %1635 }
 0x2db   :  { %v6814_v49 = vpop.permute.xlu1 %735 }
 0x2dc   :  { %v6816_v54 = vpop.permute.xlu2 %1046 }
 0x2e3   :  { %v6818_v23 = vpop.permute.xlu1 %838 }
 0x2e4   :  { %v6820_v29 = vpop.permute.xlu2 %1149 }
 0x2eb   :  { %v6822_v4 = vpop.permute.xlu1 %941 }
 0x2ec   :  { %v6824_v63 = vpop.permute.xlu2 %1252 }
 0x2f3   :  { %v6826_v2 = vpop.permute.xlu1 %1044 }
 0x2f4   :  { %v6828_v5 = vpop.permute.xlu2 %1355 }
 0x2fb   :  { %v6830_v13 = vpop.permute.xlu1 %1147 }
 0x2fc   :  { %v6832_v39 = vpop.permute.xlu2 %1458 }
 0x303   :  { %v6834_v21 = vpop.permute.xlu1 %1250 }
 0x304   :  { %v6836_v42 = vpop.permute.xlu2 %1561 }
 0x305   :  { %8963 = vst [vmem:[#allocation50_spill] sm:$0xff] %v6836_v42 }
 0x30b   :  { %v6838_v57 = vpop.permute.xlu1 %1353 }
 0x30c   :  { %v1634_v38 = vpop.permute.xlu2 %1633 }
 0x30d   :  { %v1640_v44 = vsel %vm1637_vm15, %v1634_v38, %v1636_v36 }
 0x30e   :  { %v1649_v1 = vmul.f32 %v1640_v44, %v8929_v50  ;;  %v1650_v44 = vmul.f32 %v1636_v36, %v8930_v59 }
 0x310   :  { %1662 = vrot.lane.b32.xlu1 %v1649_v1, %s5637_s23  ;;  %v1682_v1 = vld [vmem:[%s8692_s5 + $0x70] sm:$0xff] }
 0x313   :  { %v6842_v46 = vpop.permute.xlu1 %1456 }
 0x314   :  { %8964 = vst [vmem:[#allocation51_spill] sm:$0xff] %v6842_v46 }
 0x318   :  { %1694 = vperm.xlu1 %5565, %v1681_v8  }
 0x31b   :  { %v6847_v0 = vpop.permute.xlu1 %1559 }
 0x31c   :  { %8965 = vst [vmem:[#allocation52_spill] sm:$0xff] %v6847_v0 }
 0x323   :  { %v1632_v53 = vpop.permute.xlu1 %1631 }
 0x324   :  { %v1638_v3 = vsel %vm1637_vm15, %v1630_v18, %v1632_v53  ;;  %v1639_v62 = vsel %vm1637_vm15, %v1632_v53, %v1634_v38  ;;  %vm636_vm15 = vcmask 1022976  }
 0x325   :  { %v1647_v19 = vmul.f32 %v1638_v3, %v8913_v31  ;;  %v1648_v16 = vmul.f32 %v1639_v62, %v8924_v22 }
 0x327   :  { %1658 = vrot.lane.b32.xlu2 %v1647_v19, %s5637_s23  ;;  %1660 = vrot.lane.b32.xlu0 %v1648_v16, %s5637_s23  ;;  %v5445_v16 = vld [vmem:[%s8694_s7 + $0x26] ss:$8 sm:$0xf] }
 0x328   :  { %v1717_v43 = vperm.slane %v5445_v16, 1 }
 0x32f   :  { %1664 = vrot.lane.b32.xlu2 %v1650_v44, %s5637_s23  ;;  %1685 = vperm.xlu0 %5564, %v1682_v1  }
 0x337   :  { %1702 = vperm.xlu2 %5566, %v1682_v1  }
 0x346   :  { %v6860_v53 = vpop.permute.xlu1 %1656 }
 0x347   :  { %8967 = vst [vmem:[#allocation54_spill] sm:$0xff] %v6860_v53 }
 0x381   :  { %v6858_v8 = vpop.permute.xlu2 %1658 }
 0x382   :  { %8966 = vst [vmem:[#allocation53_spill] sm:$0xff] %v6858_v8  ;;  %v6864_v62 = vpop.permute.xlu1 %1662  ;;  %v1718_v8 = vperm.slane %v5445_v16, 2 }
 0x383   :  { %8969 = vst [vmem:[#allocation56_spill] sm:$0xff] %v6864_v62 }
 0x389   :  { %v6862_v3 = vpop.permute.xlu2 %1664 }
 0x38a   :  { %8968 = vst [vmem:[#allocation55_spill] sm:$0xff] %v6862_v3  ;;  %v1695_v53 = vpop.permute.xlu1 %1694 }
 0x391   :  { %v1703_v38 = vpop.permute.xlu2 %1702 }
 0x392   :  { %v1705_v30 = vmul.f32 %v1703_v38, %v5909_v15  ;;  %v1706_v52 = vmul.f32 %v1703_v38, %v5894_v9  ;;  %v1707_v17 = vmul.f32 %v1703_v38, %v5984_v32  ;;  %v1708_v62 = vmul.f32 %v1703_v38, %v5955_v12  ;;  %v5446_v38 = vld [vmem:[%s8694_s7 + $0x27] ss:$8 sm:$0xf] }
 0x399   :  { %v6866_v19 = vpop.permute.xlu0 %1660 }
 0x39a   :  { %8970 = vst [vmem:[#allocation57_spill] sm:$0xff] %v6866_v19  ;;  %v1716_v19 = vperm.slane %v5445_v16, 0 }
 0x3a1   :  { %v1686_v36 = vpop.permute.xlu0 %1685 }
 0x3a2   :  { %v1688_v18 = vmul.f32 %v1686_v36, %v8923_v37  ;;  %v1689_v1 = vmul.f32 %v1686_v36, %v5885_v6  ;;  %v1690_v44 = vmul.f32 %v1686_v36, %v5953_v11  ;;  %v1691_v10 = vmul.f32 %v1686_v36, %v5933_v45 }
 0x3a4   :  { %v1697_v58 = vadd.f32 %v1695_v53, %v1688_v18  ;;  %v1698_v56 = vadd.f32 %v1695_v53, %v1689_v1  ;;  %v1699_v61 = vadd.f32 %v1695_v53, %v1690_v44  ;;  %v1700_v24 = vadd.f32 %v1695_v53, %v1691_v10 }
 0x3a5   :  { %v1719_v1 = vperm.slane %v5445_v16, 3 }
 0x3a6   :  { %v1711_v28 = vadd.f32 %v1707_v17, %v1699_v61  ;;  %v1710_v7 = vadd.f32 %v1706_v52, %v1698_v56  ;;  %v1709_v40 = vadd.f32 %v1705_v30, %v1697_v58  ;;  %v1712_v18 = vadd.f32 %v1708_v62, %v1700_v24  ;;  %v1782_v58 = vld [vmem:[%s8693_s6 + $0x78] sm:$0xff] }
 0x3a8   :  { %v1726_v33 = vmul.f32 %v1718_v8, %v1711_v28  ;;  %v1725_v27 = vmul.f32 %v1717_v43, %v1710_v7  ;;  %v1724_v14 = vmul.f32 %v1716_v19, %v1709_v40  ;;  %v1727_v44 = vmul.f32 %v1719_v1, %v1712_v18 }
 0x3aa   :  { %1736 = vrot.lane.b32.xlu2 %v1726_v33, %s5633_s18  ;;  %1734 = vrot.lane.b32.xlu1 %v1725_v27, %s5633_s18 }
 0x3ab   :  { %1732 = vrot.lane.b32.xlu0 %v1724_v14, %s5633_s18  ;;  %v1783_v14 = vld [vmem:[%s8692_s5 + $0x78] sm:$0xff] }
 0x3b3   :  { %1738 = vrot.lane.b32.xlu0 %v1727_v44, %s5633_s18  ;;  %s5641_s18 = smov 91  }
 0x404   :  { %v1737_v61 = vpop.permute.xlu2 %1736 }
 0x41c   :  { %v1735_v17 = vpop.permute.xlu1 %1734 }
 0x41d   :  { %v1741_v7 = vsel %vm1357_vm1, %v1735_v17, %v1737_v61  ;;  %v1733_v28 = vpop.permute.xlu0 %1732 }
 0x41e   :  { %v1750_v40 = vmul.f32 %v1741_v7, %v8924_v22  ;;  %v1740_v33 = vsel %vm1357_vm1, %v1733_v28, %v1735_v17  ;;  %v1748_v27 = vmul.f32 0.0, %v1733_v28 }
 0x41f   :  { %v1749_v30 = vmul.f32 %v1740_v33, %v8913_v31  ;;  %v1817_v33 = vperm.slane %v5446_v38, 0 }
 0x420   :  { %1758 = vrot.lane.b32.xlu1 %v1748_v27, %s5621_s16  ;;  %1762 = vrot.lane.b32.xlu0 %v1750_v40, %s5621_s16  ;;  %v1818_v40 = vperm.slane %v5446_v38, 1 }
 0x421   :  { %1760 = vrot.lane.b32.xlu2 %v1749_v30, %s5621_s16 }
 0x425   :  { %v1739_v24 = vpop.permute.xlu0 %1738 }
 0x426   :  { %v1742_v56 = vsel %vm1357_vm1, %v1737_v61, %v1739_v24  ;;  %v1752_v10 = vmul.f32 %v1739_v24, %v8930_v59  ;;  %v1819_v61 = vperm.slane %v5446_v38, 2 }
 0x427   :  { %v1751_v43 = vmul.f32 %v1742_v56, %v8929_v50 }
 0x428   :  { %1786 = vperm.xlu0 %5564, %v1783_v14  }
 0x429   :  { %1766 = vrot.lane.b32.xlu2 %v1752_v10, %s5621_s16  ;;  %1764 = vrot.lane.b32.xlu1 %v1751_v43, %s5621_s16  ;;  %s5643_s16 = smov 90  }
 0x431   :  { %1803 = vperm.xlu2 %5566, %v1783_v14   ;;  %1795 = vperm.xlu1 %5565, %v1782_v58  }
 0x47b   :  { %v6901_v52 = vpop.permute.xlu2 %1760 }
 0x47c   :  { %8971 = vst [vmem:[#allocation58_spill] sm:$0xff] %v6901_v52 }
 0x483   :  { %v6907_v62 = vpop.permute.xlu2 %1766 }
 0x484   :  { %8974 = vst [vmem:[#allocation61_spill] sm:$0xff] %v6907_v62 }
 0x48b   :  { %v1804_v36 = vpop.permute.xlu2 %1803 }
 0x48c   :  { %v1806_v17 = vmul.f32 %v1804_v36, %v5909_v15  ;;  %v1807_v7 = vmul.f32 %v1804_v36, %v5894_v9  ;;  %v1808_v27 = vmul.f32 %v1804_v36, %v5984_v32  ;;  %v1809_v62 = vmul.f32 %v1804_v36, %v5955_v12 }
 0x492   :  { %v6903_v8 = vpop.permute.xlu1 %1758  ;;  %v6905_v53 = vpop.permute.xlu0 %1762 }
 0x493   :  { %8972 = vst [vmem:[#allocation59_spill] sm:$0xff] %v6903_v8 }
 0x494   :  { %8973 = vst [vmem:[#allocation60_spill] sm:$0xff] %v6905_v53 }
 0x49a   :  { %v1787_v16 = vpop.permute.xlu0 %1786 }
 0x49b   :  { %v6909_v19 = vpop.permute.xlu1 %1764  ;;  %v1789_v18 = vmul.f32 %v1787_v16, %v8923_v37  ;;  %v1790_v1 = vmul.f32 %v1787_v16, %v5885_v6  ;;  %v1791_v44 = vmul.f32 %v1787_v16, %v5953_v11  ;;  %v1792_v58 = vmul.f32 %v1787_v16, %v5933_v45 }
 0x49c   :  { %8975 = vst [vmem:[#allocation62_spill] sm:$0xff] %v6909_v19 }
 0x4a3   :  { %v1796_v28 = vpop.permute.xlu1 %1795 }
 0x4a4   :  { %v1798_v30 = vadd.f32 %v1796_v28, %v1789_v18  ;;  %v1799_v24 = vadd.f32 %v1796_v28, %v1790_v1  ;;  %v1800_v14 = vadd.f32 %v1796_v28, %v1791_v44  ;;  %v1801_v19 = vadd.f32 %v1796_v28, %v1792_v58 }
 0x4a5   :  { %v1820_v1 = vperm.slane %v5446_v38, 3 }
 0x4a6   :  { %v1812_v56 = vadd.f32 %v1808_v27, %v1800_v14  ;;  %v1811_v10 = vadd.f32 %v1807_v7, %v1799_v24  ;;  %v1810_v43 = vadd.f32 %v1806_v17, %v1798_v30  ;;  %v1813_v18 = vadd.f32 %v1809_v62, %v1801_v19  ;;  %v1884_v62 = vld [vmem:[%s8692_s5 + $0x80] sm:$0xff] }
 0x4a8   :  { %v1827_v53 = vmul.f32 %v1819_v61, %v1812_v56  ;;  %v1826_v8 = vmul.f32 %v1818_v40, %v1811_v10  ;;  %v1825_v52 = vmul.f32 %v1817_v33, %v1810_v43  ;;  %v1828_v44 = vmul.f32 %v1820_v1, %v1813_v18  ;;  %v1883_v33 = vld [vmem:[%s8693_s6 + $0x80] sm:$0xff] }
 0x4a9   :  { %v5447_v43 = vld [vmem:[%s8694_s7 + $0x40] ss:$8 sm:$0xf] }
 0x4aa   :  { %1837 = vrot.lane.b32.xlu2 %v1827_v53, %s5632_s15  ;;  %1835 = vrot.lane.b32.xlu1 %v1826_v8, %s5632_s15 }
 0x4ab   :  { %1833 = vrot.lane.b32.xlu0 %v1825_v52, %s5632_s15 }
 0x4b3   :  { %1839 = vrot.lane.b32.xlu0 %v1828_v44, %s5632_s15  ;;  %s5639_s15 = smov 92  }
 0x504   :  { %v1838_v17 = vpop.permute.xlu2 %1837 }
 0x51c   :  { %v1836_v16 = vpop.permute.xlu1 %1835 }
 0x51d   :  { %v1842_v61 = vsel %vm8861_vm2, %v1836_v16, %v1838_v17  ;;  %v1834_v7 = vpop.permute.xlu0 %1833 }
 0x51e   :  { %v1851_v28 = vmul.f32 %v1842_v61, %v8924_v22  ;;  %v1841_v53 = vsel %vm8861_vm2, %v1834_v7, %v1836_v16  ;;  %v1849_v8 = vmul.f32 0.0, %v1834_v7 }
 0x51f   :  { %v1850_v36 = vmul.f32 %v1841_v53, %v8913_v31  ;;  %v1918_v53 = vperm.slane %v5447_v43, 0 }
 0x520   :  { %1859 = vrot.lane.b32.xlu1 %v1849_v8, %s5620_s12  ;;  %1863 = vrot.lane.b32.xlu0 %v1851_v28, %s5620_s12  ;;  %v1919_v28 = vperm.slane %v5447_v43, 1 }
 0x521   :  { %1861 = vrot.lane.b32.xlu2 %v1850_v36, %s5620_s12 }
 0x525   :  { %v1840_v52 = vpop.permute.xlu0 %1839 }
 0x526   :  { %v1843_v19 = vsel %vm8861_vm2, %v1838_v17, %v1840_v52  ;;  %v1853_v38 = vmul.f32 %v1840_v52, %v8930_v59  ;;  %v1920_v17 = vperm.slane %v5447_v43, 2 }
 0x527   :  { %v1852_v40 = vmul.f32 %v1843_v19, %v8929_v50 }
 0x528   :  { %1887 = vperm.xlu0 %5564, %v1884_v62  }
 0x529   :  { %1867 = vrot.lane.b32.xlu2 %v1853_v38, %s5620_s12  ;;  %1865 = vrot.lane.b32.xlu1 %v1852_v40, %s5620_s12  ;;  %s5645_s12 = smov 76  }
 0x531   :  { %1904 = vperm.xlu2 %5566, %v1884_v62   ;;  %1896 = vperm.xlu1 %5565, %v1883_v33  }
 0x57b   :  { %v6944_v27 = vpop.permute.xlu2 %1861 }
 0x57c   :  { %8976 = vst [vmem:[#allocation63_spill] sm:$0xff] %v6944_v27 }
 0x583   :  { %v6950_v14 = vpop.permute.xlu2 %1867 }
 0x584   :  { %8979 = vst [vmem:[#allocation66_spill] sm:$0xff] %v6950_v14 }
 0x58b   :  { %v1905_v58 = vpop.permute.xlu2 %1904 }
 0x58c   :  { %v1907_v16 = vmul.f32 %v1905_v58, %v5909_v15  ;;  %v1908_v61 = vmul.f32 %v1905_v58, %v5894_v9  ;;  %v1909_v8 = vmul.f32 %v1905_v58, %v5984_v32  ;;  %v1910_v14 = vmul.f32 %v1905_v58, %v5955_v12 }
 0x592   :  { %v6946_v30 = vpop.permute.xlu1 %1859  ;;  %v6948_v24 = vpop.permute.xlu0 %1863 }
 0x593   :  { %8977 = vst [vmem:[#allocation64_spill] sm:$0xff] %v6946_v30 }
 0x594   :  { %8978 = vst [vmem:[#allocation65_spill] sm:$0xff] %v6948_v24 }
 0x59a   :  { %v1888_v10 = vpop.permute.xlu0 %1887 }
 0x59b   :  { %v6952_v56 = vpop.permute.xlu1 %1865  ;;  %v1890_v18 = vmul.f32 %v1888_v10, %v8923_v37  ;;  %v1891_v1 = vmul.f32 %v1888_v10, %v5885_v6  ;;  %v1892_v44 = vmul.f32 %v1888_v10, %v5953_v11  ;;  %v1893_v33 = vmul.f32 %v1888_v10, %v5933_v45 }
 0x59c   :  { %8980 = vst [vmem:[#allocation67_spill] sm:$0xff] %v6952_v56 }
 0x5a3   :  { %v1897_v7 = vpop.permute.xlu1 %1896 }
 0x5a4   :  { %v1899_v36 = vadd.f32 %v1897_v7, %v1890_v18  ;;  %v1900_v52 = vadd.f32 %v1897_v7, %v1891_v1  ;;  %v1901_v62 = vadd.f32 %v1897_v7, %v1892_v44  ;;  %v1902_v56 = vadd.f32 %v1897_v7, %v1893_v33 }
 0x5a5   :  { %v1921_v1 = vperm.slane %v5447_v43, 3 }
 0x5a6   :  { %v1913_v19 = vadd.f32 %v1909_v8, %v1901_v62  ;;  %v1912_v38 = vadd.f32 %v1908_v61, %v1900_v52  ;;  %v1911_v40 = vadd.f32 %v1907_v16, %v1899_v36  ;;  %v1914_v18 = vadd.f32 %v1910_v14, %v1902_v56  ;;  %v1985_v14 = vld [vmem:[%s8692_s5 + $0x88] sm:$0xff] }
 0x5a8   :  { %v1928_v24 = vmul.f32 %v1920_v17, %v1913_v19  ;;  %v1927_v30 = vmul.f32 %v1919_v28, %v1912_v38  ;;  %v1926_v27 = vmul.f32 %v1918_v53, %v1911_v40  ;;  %v1929_v44 = vmul.f32 %v1921_v1, %v1914_v18  ;;  %v1984_v53 = vld [vmem:[%s8693_s6 + $0x88] sm:$0xff] }
 0x5a9   :  { %v5448_v40 = vld [vmem:[%s8694_s7 + $0x41] ss:$8 sm:$0xf] }
 0x5aa   :  { %1938 = vrot.lane.b32.xlu2 %v1928_v24, %s5631_s13  ;;  %1936 = vrot.lane.b32.xlu1 %v1927_v30, %s5631_s13 }
 0x5ab   :  { %1934 = vrot.lane.b32.xlu0 %v1926_v27, %s5631_s13 }
 0x5b3   :  { %1940 = vrot.lane.b32.xlu0 %v1929_v44, %s5631_s13  ;;  %s5679_s13 = smov 50  }
 0x604   :  { %v1939_v16 = vpop.permute.xlu2 %1938 }
 0x61c   :  { %v1937_v10 = vpop.permute.xlu1 %1936 }
 0x61d   :  { %v1943_v17 = vsel %vm8860_vm6, %v1937_v10, %v1939_v16  ;;  %v1935_v61 = vpop.permute.xlu0 %1934 }
 0x61e   :  { %v1952_v7 = vmul.f32 %v1943_v17, %v8924_v22  ;;  %v1942_v24 = vsel %vm8860_vm6, %v1935_v61, %v1937_v10  ;;  %v1950_v30 = vmul.f32 0.0, %v1935_v61 }
 0x61f   :  { %v1951_v58 = vmul.f32 %v1942_v24, %v8913_v31  ;;  %v2019_v24 = vperm.slane %v5448_v40, 0 }
 0x620   :  { %1960 = vrot.lane.b32.xlu1 %v1950_v30, %s5619_s27  ;;  %1964 = vrot.lane.b32.xlu0 %v1952_v7, %s5619_s27  ;;  %v2020_v7 = vperm.slane %v5448_v40, 1 }
 0x621   :  { %1962 = vrot.lane.b32.xlu2 %v1951_v58, %s5619_s27 }
 0x625   :  { %v1941_v27 = vpop.permute.xlu0 %1940 }
 0x626   :  { %v1944_v56 = vsel %vm8860_vm6, %v1939_v16, %v1941_v27  ;;  %v1954_v43 = vmul.f32 %v1941_v27, %v8930_v59  ;;  %v2021_v16 = vperm.slane %v5448_v40, 2 }
 0x627   :  { %v1953_v28 = vmul.f32 %v1944_v56, %v8929_v50 }
 0x628   :  { %1988 = vperm.xlu0 %5564, %v1985_v14  }
 0x629   :  { %1968 = vrot.lane.b32.xlu2 %v1954_v43, %s5619_s27  ;;  %1966 = vrot.lane.b32.xlu1 %v1953_v28, %s5619_s27  ;;  %s5647_s27 = smov 75  }
 0x631   :  { %2005 = vperm.xlu2 %5566, %v1985_v14   ;;  %1997 = vperm.xlu1 %5565, %v1984_v53  }
 0x67b   :  { %v6987_v8 = vpop.permute.xlu2 %1962 }
 0x67c   :  { %8981 = vst [vmem:[#allocation68_spill] sm:$0xff] %v6987_v8 }
 0x683   :  { %v6993_v62 = vpop.permute.xlu2 %1968 }
 0x684   :  { %8984 = vst [vmem:[#allocation71_spill] sm:$0xff] %v6993_v62 }
 0x68b   :  { %v2006_v33 = vpop.permute.xlu2 %2005 }
 0x68c   :  { %v2008_v10 = vmul.f32 %v2006_v33, %v5909_v15  ;;  %v2009_v17 = vmul.f32 %v2006_v33, %v5894_v9  ;;  %v2010_v30 = vmul.f32 %v2006_v33, %v5984_v32  ;;  %v2011_v62 = vmul.f32 %v2006_v33, %v5955_v12 }
 0x692   :  { %v6989_v36 = vpop.permute.xlu1 %1960  ;;  %v6991_v52 = vpop.permute.xlu0 %1964 }
 0x693   :  { %8982 = vst [vmem:[#allocation69_spill] sm:$0xff] %v6989_v36 }
 0x694   :  { %8983 = vst [vmem:[#allocation70_spill] sm:$0xff] %v6991_v52 }
 0x69a   :  { %v1989_v38 = vpop.permute.xlu0 %1988 }
 0x69b   :  { %v6995_v19 = vpop.permute.xlu1 %1966  ;;  %v1991_v18 = vmul.f32 %v1989_v38, %v8923_v37  ;;  %v1992_v1 = vmul.f32 %v1989_v38, %v5885_v6  ;;  %v1993_v44 = vmul.f32 %v1989_v38, %v5953_v11  ;;  %v1994_v53 = vmul.f32 %v1989_v38, %v5933_v45 }
 0x69c   :  { %8985 = vst [vmem:[#allocation72_spill] sm:$0xff] %v6995_v19 }
 0x6a3   :  { %v1998_v61 = vpop.permute.xlu1 %1997 }
 0x6a4   :  { %v2000_v58 = vadd.f32 %v1998_v61, %v1991_v18  ;;  %v2001_v27 = vadd.f32 %v1998_v61, %v1992_v1  ;;  %v2002_v14 = vadd.f32 %v1998_v61, %v1993_v44  ;;  %v2003_v19 = vadd.f32 %v1998_v61, %v1994_v53 }
 0x6a5   :  { %v2022_v1 = vperm.slane %v5448_v40, 3 }
 0x6a6   :  { %v2014_v56 = vadd.f32 %v2010_v30, %v2002_v14  ;;  %v2013_v43 = vadd.f32 %v2009_v17, %v2001_v27  ;;  %v2012_v28 = vadd.f32 %v2008_v10, %v2000_v58  ;;  %v2015_v18 = vadd.f32 %v2011_v62, %v2003_v19  ;;  %v2086_v62 = vld [vmem:[%s8692_s5 + $0x90] sm:$0xff] }
 0x6a8   :  { %v2029_v52 = vmul.f32 %v2021_v16, %v2014_v56  ;;  %v2028_v36 = vmul.f32 %v2020_v7, %v2013_v43  ;;  %v2027_v8 = vmul.f32 %v2019_v24, %v2012_v28  ;;  %v2030_v44 = vmul.f32 %v2022_v1, %v2015_v18  ;;  %v2085_v24 = vld [vmem:[%s8693_s6 + $0x90] sm:$0xff] }
 0x6a9   :  { %v5449_v28 = vld [vmem:[%s8694_s7 + $0x42] ss:$8 sm:$0xf] }
 0x6aa   :  { %2039 = vrot.lane.b32.xlu2 %v2029_v52, %s5630_s30  ;;  %2037 = vrot.lane.b32.xlu1 %v2028_v36, %s5630_s30  ;;  %v2123_v0 = vperm.slane %v5449_v28, 3 }
 0x6ab   :  { %2035 = vrot.lane.b32.xlu0 %v2027_v8, %s5630_s30 }
 0x6b3   :  { %2041 = vrot.lane.b32.xlu0 %v2030_v44, %s5630_s30  ;;  %s5670_s30 = smov 32  }
 0x704   :  { %v2040_v10 = vpop.permute.xlu2 %2039 }
 0x71c   :  { %v2038_v38 = vpop.permute.xlu1 %2037 }
 0x71d   :  { %v2044_v16 = vsel %vm8859_vm7, %v2038_v38, %v2040_v10  ;;  %v2036_v17 = vpop.permute.xlu0 %2035 }
 0x71e   :  { %v2053_v61 = vmul.f32 %v2044_v16, %v8924_v22  ;;  %v2043_v52 = vsel %vm8859_vm7, %v2036_v17, %v2038_v38  ;;  %v2051_v36 = vmul.f32 0.0, %v2036_v17 }
 0x71f   :  { %v2052_v33 = vmul.f32 %v2043_v52, %v8913_v31  ;;  %v2120_v52 = vperm.slane %v5449_v28, 0 }
 0x720   :  { %2061 = vrot.lane.b32.xlu1 %v2051_v36, %s5618_s3  ;;  %2065 = vrot.lane.b32.xlu0 %v2053_v61, %s5618_s3  ;;  %v2121_v61 = vperm.slane %v5449_v28, 1 }
 0x721   :  { %2063 = vrot.lane.b32.xlu2 %v2052_v33, %s5618_s3 }
 0x725   :  { %v2042_v8 = vpop.permute.xlu0 %2041 }
 0x726   :  { %v2045_v19 = vsel %vm8859_vm7, %v2040_v10, %v2042_v8  ;;  %v2055_v40 = vmul.f32 %v2042_v8, %v8930_v59  ;;  %v2122_v10 = vperm.slane %v5449_v28, 2 }
 0x727   :  { %v2054_v7 = vmul.f32 %v2045_v19, %v8929_v50 }
 0x728   :  { %2089 = vperm.xlu0 %5564, %v2086_v62  }
 0x729   :  { %2069 = vrot.lane.b32.xlu2 %v2055_v40, %s5618_s3  ;;  %2067 = vrot.lane.b32.xlu1 %v2054_v7, %s5618_s3  ;;  %s5638_s3 = smov 113  }
 0x731   :  { %2106 = vperm.xlu2 %5566, %v2086_v62   ;;  %2098 = vperm.xlu1 %5565, %v2085_v24  }
 0x77b   :  { %v7030_v30 = vpop.permute.xlu2 %2063 }
 0x77c   :  { %8986 = vst [vmem:[#allocation73_spill] sm:$0xff] %v7030_v30 }
 0x783   :  { %v7036_v14 = vpop.permute.xlu2 %2069 }
 0x784   :  { %8989 = vst [vmem:[#allocation76_spill] sm:$0xff] %v7036_v14 }
 0x78b   :  { %v2107_v53 = vpop.permute.xlu2 %2106 }
 0x78c   :  { %v2109_v38 = vmul.f32 %v2107_v53, %v5909_v15  ;;  %v2110_v16 = vmul.f32 %v2107_v53, %v5894_v9  ;;  %v2111_v36 = vmul.f32 %v2107_v53, %v5984_v32  ;;  %v2112_v14 = vmul.f32 %v2107_v53, %v5955_v12 }
 0x792   :  { %v7032_v58 = vpop.permute.xlu1 %2061  ;;  %v7034_v27 = vpop.permute.xlu0 %2065 }
 0x793   :  { %8987 = vst [vmem:[#allocation74_spill] sm:$0xff] %v7032_v58 }
 0x794   :  { %8988 = vst [vmem:[#allocation75_spill] sm:$0xff] %v7034_v27 }
 0x79a   :  { %v2090_v43 = vpop.permute.xlu0 %2089 }
 0x79b   :  { %v7038_v56 = vpop.permute.xlu1 %2067  ;;  %v2092_v18 = vmul.f32 %v2090_v43, %v8923_v37  ;;  %v2093_v1 = vmul.f32 %v2090_v43, %v5885_v6  ;;  %v2094_v44 = vmul.f32 %v2090_v43, %v5953_v11  ;;  %v2095_v24 = vmul.f32 %v2090_v43, %v5933_v45 }
 0x79c   :  { %8990 = vst [vmem:[#allocation77_spill] sm:$0xff] %v7038_v56 }
 0x7a3   :  { %v2099_v17 = vpop.permute.xlu1 %2098 }
 0x7a4   :  { %v2101_v33 = vadd.f32 %v2099_v17, %v2092_v18  ;;  %v2102_v8 = vadd.f32 %v2099_v17, %v2093_v1  ;;  %v2103_v62 = vadd.f32 %v2099_v17, %v2094_v44  ;;  %v2104_v56 = vadd.f32 %v2099_v17, %v2095_v24 }
 0x7a6   :  { %v2115_v19 = vadd.f32 %v2111_v36, %v2103_v62  ;;  %v2114_v40 = vadd.f32 %v2110_v16, %v2102_v8  ;;  %v2113_v7 = vadd.f32 %v2109_v38, %v2101_v33  ;;  %v2116_v3 = vadd.f32 %v2112_v14, %v2104_v56  ;;  %v2188_v14 = vld [vmem:[%s8693_s6 + $0x98] sm:$0xff] }
 0x7a7   :  { %v5450_v8 = vld [vmem:[%s8694_s7 + $0x43] ss:$8 sm:$0xf] }
 0x7a8   :  { %v2130_v27 = vmul.f32 %v2122_v10, %v2115_v19  ;;  %v2129_v58 = vmul.f32 %v2121_v61, %v2114_v40  ;;  %v2128_v30 = vmul.f32 %v2120_v52, %v2113_v7  ;;  %v2131_v18 = vmul.f32 %v2123_v0, %v2116_v3  ;;  %v2189_v0 = vld [vmem:[%s8692_s5 + $0x98] sm:$0xff] }
 0x7a9   :  { %v2225_v24 = vperm.slane %v5450_v8, 2 }
 0x7aa   :  { %2140 = vrot.lane.b32.xlu2 %v2130_v27, %s5638_s3  ;;  %2138 = vrot.lane.b32.xlu1 %v2129_v58, %s5638_s3 }
 0x7ab   :  { %2136 = vrot.lane.b32.xlu0 %v2128_v30, %s5638_s3 }
 0x7b3   :  { %2142 = vrot.lane.b32.xlu0 %v2131_v18, %s5638_s3 }
 0x804   :  { %v2141_v1 = vpop.permute.xlu2 %2140 }
 0x81c   :  { %v2139_v44 = vpop.permute.xlu1 %2138 }
 0x81d   :  { %v2146_v38 = vsel %vm2144_vm8, %v2139_v44, %v2141_v1  ;;  %v2137_v16 = vpop.permute.xlu0 %2136 }
 0x81e   :  { %v2155_v43 = vmul.f32 %v2146_v38, %v8924_v22  ;;  %v2145_v10 = vsel %vm2144_vm8, %v2137_v16, %v2139_v44  ;;  %v2153_v61 = vmul.f32 0.0, %v2137_v16  ;;  %v2224_v38 = vperm.slane %v5450_v8, 1 }
 0x81f   :  { %v2154_v17 = vmul.f32 %v2145_v10, %v8913_v31  ;;  %v2223_v16 = vperm.slane %v5450_v8, 0 }
 0x820   :  { %2163 = vrot.lane.b32.xlu1 %v2153_v61, %s5639_s15  ;;  %2167 = vrot.lane.b32.xlu0 %v2155_v43, %s5639_s15 }
 0x821   :  { %2165 = vrot.lane.b32.xlu2 %v2154_v17, %s5639_s15 }
 0x825   :  { %v2143_v30 = vpop.permute.xlu0 %2142 }
 0x826   :  { %v2147_v3 = vsel %vm2144_vm8, %v2141_v1, %v2143_v30  ;;  %v2157_v58 = vmul.f32 %v2143_v30, %v8930_v59  ;;  %vm8858_vm8 = vcmask 1031168  }
 0x827   :  { %v2156_v27 = vmul.f32 %v2147_v3, %v8929_v50 }
 0x828   :  { %2192 = vperm.xlu0 %5564, %v2189_v0  }
 0x829   :  { %2171 = vrot.lane.b32.xlu2 %v2157_v58, %s5639_s15  ;;  %2169 = vrot.lane.b32.xlu1 %v2156_v27, %s5639_s15 }
 0x831   :  { %2209 = vperm.xlu2 %5566, %v2189_v0   ;;  %2201 = vperm.xlu1 %5565, %v2188_v14  }
 0x87b   :  { %v7061_v56 = vpop.permute.xlu2 %2165 }
 0x87c   :  { %8991 = vst [vmem:[#allocation78_spill] sm:$0xff] %v7061_v56 }
 0x883   :  { %v7067_v52 = vpop.permute.xlu2 %2171 }
 0x884   :  { %8994 = vst [vmem:[#allocation81_spill] sm:$0xff] %v7067_v52  ;;  %v2226_v52 = vperm.slane %v5450_v8, 3  ;;  %v2291_v8 = vld [vmem:[%s8693_s6 + $0xa0] sm:$0xff] }
 0x88b   :  { %v2210_v62 = vpop.permute.xlu2 %2209 }
 0x88c   :  { %v2212_v18 = vmul.f32 %v2210_v62, %v5909_v15  ;;  %v2213_v1 = vmul.f32 %v2210_v62, %v5894_v9  ;;  %v2214_v43 = vmul.f32 %v2210_v62, %v5984_v32  ;;  %v2215_v56 = vmul.f32 %v2210_v62, %v5955_v12 }
 0x892   :  { %v7063_v28 = vpop.permute.xlu1 %2163  ;;  %v7065_v53 = vpop.permute.xlu0 %2167 }
 0x893   :  { %8992 = vst [vmem:[#allocation79_spill] sm:$0xff] %v7063_v28 }
 0x894   :  { %8993 = vst [vmem:[#allocation80_spill] sm:$0xff] %v7065_v53 }
 0x89a   :  { %v2193_v33 = vpop.permute.xlu0 %2192 }
 0x89b   :  { %v7069_v36 = vpop.permute.xlu1 %2169  ;;  %v2195_v19 = vmul.f32 %v2193_v33, %v8923_v37  ;;  %v2196_v40 = vmul.f32 %v2193_v33, %v5885_v6  ;;  %v2197_v7 = vmul.f32 %v2193_v33, %v5953_v11  ;;  %v2198_v58 = vmul.f32 %v2193_v33, %v5933_v45 }
 0x89c   :  { %8995 = vst [vmem:[#allocation82_spill] sm:$0xff] %v7069_v36 }
 0x8a3   :  { %v2202_v44 = vpop.permute.xlu1 %2201 }
 0x8a4   :  { %v2204_v10 = vadd.f32 %v2202_v44, %v2195_v19  ;;  %v2205_v61 = vadd.f32 %v2202_v44, %v2196_v40  ;;  %v2206_v17 = vadd.f32 %v2202_v44, %v2197_v7  ;;  %v2207_v28 = vadd.f32 %v2202_v44, %v2198_v58 }
 0x8a6   :  { %v2218_v30 = vadd.f32 %v2214_v43, %v2206_v17  ;;  %v2217_v0 = vadd.f32 %v2213_v1, %v2205_v61  ;;  %v2216_v3 = vadd.f32 %v2212_v18, %v2204_v10  ;;  %v2219_v36 = vadd.f32 %v2215_v56, %v2207_v28  ;;  %v2292_v56 = vld [vmem:[%s8692_s5 + $0xa0] sm:$0xff] }
 0x8a8   :  { %v2233_v27 = vmul.f32 %v2225_v24, %v2218_v30  ;;  %v2232_v14 = vmul.f32 %v2224_v38, %v2217_v0  ;;  %v2231_v53 = vmul.f32 %v2223_v16, %v2216_v3  ;;  %v2234_v19 = vmul.f32 %v2226_v52, %v2219_v36  ;;  %v5451_v30 = vld [vmem:[%s8694_s7 + $0x44] ss:$8 sm:$0xf] }
 0x8aa   :  { %2243 = vrot.lane.b32.xlu2 %v2233_v27, %s5640_s20  ;;  %2241 = vrot.lane.b32.xlu1 %v2232_v14, %s5640_s20  ;;  %v2328_v14 = vperm.slane %v5451_v30, 2 }
 0x8ab   :  { %2239 = vrot.lane.b32.xlu0 %v2231_v53, %s5640_s20 }
 0x8b3   :  { %2245 = vrot.lane.b32.xlu0 %v2234_v19, %s5640_s20  ;;  %s5681_s20 = smov 28  }
 0x904   :  { %v2244_v40 = vpop.permute.xlu2 %2243 }
 0x91c   :  { %v2242_v7 = vpop.permute.xlu1 %2241 }
 0x91d   :  { %v2249_v18 = vsel %vm2247_vm13, %v2242_v7, %v2244_v40  ;;  %v2240_v1 = vpop.permute.xlu0 %2239 }
 0x91e   :  { %v2258_v33 = vmul.f32 %v2249_v18, %v8924_v22  ;;  %v2248_v24 = vsel %vm2247_vm13, %v2240_v1, %v2242_v7  ;;  %v2256_v38 = vmul.f32 0.0, %v2240_v1  ;;  %v2327_v18 = vperm.slane %v5451_v30, 1 }
 0x91f   :  { %v2257_v44 = vmul.f32 %v2248_v24, %v8913_v31  ;;  %v2326_v1 = vperm.slane %v5451_v30, 0 }
 0x920   :  { %2266 = vrot.lane.b32.xlu1 %v2256_v38, %s5641_s18  ;;  %2270 = vrot.lane.b32.xlu0 %v2258_v33, %s5641_s18 }
 0x921   :  { %2268 = vrot.lane.b32.xlu2 %v2257_v44, %s5641_s18 }
 0x925   :  { %v2246_v53 = vpop.permute.xlu0 %2245 }
 0x926   :  { %v2250_v28 = vsel %vm2247_vm13, %v2244_v40, %v2246_v53  ;;  %v2260_v52 = vmul.f32 %v2246_v53, %v8930_v59  ;;  %vm8857_vm13 = vcmask 1039360  }
 0x927   :  { %v2259_v36 = vmul.f32 %v2250_v28, %v8929_v50 }
 0x928   :  { %2295 = vperm.xlu0 %5564, %v2292_v56  }
 0x929   :  { %2274 = vrot.lane.b32.xlu2 %v2260_v52, %s5641_s18  ;;  %2272 = vrot.lane.b32.xlu1 %v2259_v36, %s5641_s18 }
 0x931   :  { %2312 = vperm.xlu2 %5566, %v2292_v56   ;;  %2304 = vperm.xlu1 %5565, %v2291_v8  }
 0x97b   :  { %v7092_v62 = vpop.permute.xlu2 %2268 }
 0x97c   :  { %8996 = vst [vmem:[#allocation83_spill] sm:$0xff] %v7092_v62 }
 0x983   :  { %v7098_v10 = vpop.permute.xlu2 %2274 }
 0x984   :  { %8999 = vst [vmem:[#allocation86_spill] sm:$0xff] %v7098_v10  ;;  %v2329_v10 = vperm.slane %v5451_v30, 3  ;;  %v2394_v30 = vld [vmem:[%s8693_s6 + $0xa8] sm:$0xff] }
 0x98b   :  { %v2313_v0 = vpop.permute.xlu2 %2312 }
 0x98c   :  { %v2315_v19 = vmul.f32 %v2313_v0, %v5909_v15  ;;  %v2316_v40 = vmul.f32 %v2313_v0, %v5894_v9  ;;  %v2317_v33 = vmul.f32 %v2313_v0, %v5984_v32  ;;  %v2318_v62 = vmul.f32 %v2313_v0, %v5955_v12 }
 0x992   :  { %v7094_v16 = vpop.permute.xlu1 %2266  ;;  %v7096_v43 = vpop.permute.xlu0 %2270 }
 0x993   :  { %8997 = vst [vmem:[#allocation84_spill] sm:$0xff] %v7094_v16 }
 0x994   :  { %8998 = vst [vmem:[#allocation85_spill] sm:$0xff] %v7096_v43 }
 0x99a   :  { %v2296_v17 = vpop.permute.xlu0 %2295 }
 0x99b   :  { %v7100_v61 = vpop.permute.xlu1 %2272  ;;  %v2298_v3 = vmul.f32 %v2296_v17, %v8923_v37  ;;  %v2299_v58 = vmul.f32 %v2296_v17, %v5885_v6  ;;  %v2300_v27 = vmul.f32 %v2296_v17, %v5953_v11  ;;  %v2301_v52 = vmul.f32 %v2296_v17, %v5933_v45 }
 0x99c   :  { %9000 = vst [vmem:[#allocation87_spill] sm:$0xff] %v7100_v61 }
 0x9a3   :  { %v2305_v7 = vpop.permute.xlu1 %2304 }
 0x9a4   :  { %v2307_v24 = vadd.f32 %v2305_v7, %v2298_v3  ;;  %v2308_v38 = vadd.f32 %v2305_v7, %v2299_v58  ;;  %v2309_v44 = vadd.f32 %v2305_v7, %v2300_v27  ;;  %v2310_v16 = vadd.f32 %v2305_v7, %v2301_v52 }
 0x9a6   :  { %v2321_v53 = vadd.f32 %v2317_v33, %v2309_v44  ;;  %v2320_v56 = vadd.f32 %v2316_v40, %v2308_v38  ;;  %v2319_v28 = vadd.f32 %v2315_v19, %v2307_v24  ;;  %v2322_v61 = vadd.f32 %v2318_v62, %v2310_v16  ;;  %v2395_v62 = vld [vmem:[%s8692_s5 + $0xa8] sm:$0xff] }
 0x9a8   :  { %v2336_v36 = vmul.f32 %v2328_v14, %v2321_v53  ;;  %v2335_v8 = vmul.f32 %v2327_v18, %v2320_v56  ;;  %v2334_v43 = vmul.f32 %v2326_v1, %v2319_v28  ;;  %v2337_v3 = vmul.f32 %v2329_v10, %v2322_v61  ;;  %v5452_v53 = vld [vmem:[%s8694_s7 + $0x45] ss:$8 sm:$0xf] }
 0x9aa   :  { %2346 = vrot.lane.b32.xlu2 %v2336_v36, %s5642_s24  ;;  %2344 = vrot.lane.b32.xlu1 %v2335_v8, %s5642_s24  ;;  %v2431_v8 = vperm.slane %v5452_v53, 2 }
 0x9ab   :  { %2342 = vrot.lane.b32.xlu0 %v2334_v43, %s5642_s24 }
 0x9b3   :  { %2348 = vrot.lane.b32.xlu0 %v2337_v3, %s5642_s24 }
 0xa04   :  { %v2347_v58 = vpop.permute.xlu2 %2346 }
 0xa1c   :  { %v2345_v27 = vpop.permute.xlu1 %2344 }
 0xa1d   :  { %v2352_v19 = vsel %vm2350_vm14, %v2345_v27, %v2347_v58  ;;  %v2343_v40 = vpop.permute.xlu0 %2342 }
 0xa1e   :  { %v2361_v17 = vmul.f32 %v2352_v19, %v8924_v22  ;;  %v2351_v14 = vsel %vm2350_vm14, %v2343_v40, %v2345_v27  ;;  %v2359_v18 = vmul.f32 0.0, %v2343_v40  ;;  %v2430_v19 = vperm.slane %v5452_v53, 1 }
 0xa1f   :  { %v2360_v7 = vmul.f32 %v2351_v14, %v8913_v31  ;;  %v2429_v40 = vperm.slane %v5452_v53, 0 }
 0xa20   :  { %2369 = vrot.lane.b32.xlu1 %v2359_v18, %s5643_s16  ;;  %2373 = vrot.lane.b32.xlu0 %v2361_v17, %s5643_s16 }
 0xa21   :  { %2371 = vrot.lane.b32.xlu2 %v2360_v7, %s5643_s16 }
 0xa25   :  { %v2349_v43 = vpop.permute.xlu0 %2348 }
 0xa26   :  { %v2353_v16 = vsel %vm2350_vm14, %v2347_v58, %v2349_v43  ;;  %v2363_v10 = vmul.f32 %v2349_v43, %v8930_v59  ;;  %vm2837_vm14 = vcmask 7168  }
 0xa27   :  { %v2362_v61 = vmul.f32 %v2353_v16, %v8929_v50 }
 0xa28   :  { %2398 = vperm.xlu0 %5564, %v2395_v62  }
 0xa29   :  { %2377 = vrot.lane.b32.xlu2 %v2363_v10, %s5643_s16  ;;  %2375 = vrot.lane.b32.xlu1 %v2362_v61, %s5643_s16  ;;  %s5649_s16 = smov 74  }
 0xa31   :  { %2415 = vperm.xlu2 %5566, %v2395_v62   ;;  %2407 = vperm.xlu1 %5565, %v2394_v30  }
 0xa7b   :  { %v7123_v0 = vpop.permute.xlu2 %2371 }
 0xa7c   :  { %9001 = vst [vmem:[#allocation88_spill] sm:$0xff] %v7123_v0 }
 0xa83   :  { %v7129_v24 = vpop.permute.xlu2 %2377 }
 0xa84   :  { %9004 = vst [vmem:[#allocation91_spill] sm:$0xff] %v7129_v24 }
 0xa8b   :  { %v2416_v56 = vpop.permute.xlu2 %2415 }
 0xa8c   :  { %v2418_v3 = vmul.f32 %v2416_v56, %v5909_v15  ;;  %v2419_v58 = vmul.f32 %v2416_v56, %v5894_v9  ;;  %v2420_v17 = vmul.f32 %v2416_v56, %v5984_v32  ;;  %v2421_v0 = vmul.f32 %v2416_v56, %v5955_v12 }
 0xa92   :  { %v7125_v1 = vpop.permute.xlu1 %2369  ;;  %v7127_v33 = vpop.permute.xlu0 %2373 }
 0xa93   :  { %9002 = vst [vmem:[#allocation89_spill] sm:$0xff] %v7125_v1 }
 0xa94   :  { %9003 = vst [vmem:[#allocation90_spill] sm:$0xff] %v7127_v33 }
 0xa9a   :  { %v2399_v44 = vpop.permute.xlu0 %2398 }
 0xa9b   :  { %v7131_v38 = vpop.permute.xlu1 %2375  ;;  %v2401_v28 = vmul.f32 %v2399_v44, %v8923_v37  ;;  %v2402_v52 = vmul.f32 %v2399_v44, %v5885_v6  ;;  %v2403_v36 = vmul.f32 %v2399_v44, %v5953_v11  ;;  %v2404_v10 = vmul.f32 %v2399_v44, %v5933_v45 }
 0xa9c   :  { %9005 = vst [vmem:[#allocation92_spill] sm:$0xff] %v7131_v38 }
 0xaa3   :  { %v2408_v27 = vpop.permute.xlu1 %2407 }
 0xaa4   :  { %v2410_v14 = vadd.f32 %v2408_v27, %v2401_v28  ;;  %v2411_v18 = vadd.f32 %v2408_v27, %v2402_v52  ;;  %v2412_v7 = vadd.f32 %v2408_v27, %v2403_v36  ;;  %v2413_v1 = vadd.f32 %v2408_v27, %v2404_v10 }
 0xaa5   :  { %v2432_v52 = vperm.slane %v5452_v53, 3 }
 0xaa6   :  { %v2424_v43 = vadd.f32 %v2420_v17, %v2412_v7  ;;  %v2423_v62 = vadd.f32 %v2419_v58, %v2411_v18  ;;  %v2422_v16 = vadd.f32 %v2418_v3, %v2410_v14  ;;  %v2425_v28 = vadd.f32 %v2421_v0, %v2413_v1  ;;  %v2496_v1 = vld [vmem:[%s8692_s5 + $0xb0] sm:$0xff] }
 0xaa7   :  { %v2495_v14 = vld [vmem:[%s8693_s6 + $0xb0] sm:$0xff] }
 0xaa8   :  { %v2439_v61 = vmul.f32 %v2431_v8, %v2424_v43  ;;  %v2438_v30 = vmul.f32 %v2430_v19, %v2423_v62  ;;  %v2437_v33 = vmul.f32 %v2429_v40, %v2422_v16  ;;  %v2440_v36 = vmul.f32 %v2432_v52, %v2425_v28 }
 0xaaa   :  { %2449 = vrot.lane.b32.xlu2 %v2439_v61, %s5626_s4  ;;  %2447 = vrot.lane.b32.xlu1 %v2438_v30, %s5626_s4  ;;  %v5453_v61 = vld [vmem:[%s8694_s7 + $0x46] ss:$8 sm:$0xf] }
 0xaab   :  { %2445 = vrot.lane.b32.xlu0 %v2437_v33, %s5626_s4 }
 0xab3   :  { %2451 = vrot.lane.b32.xlu0 %v2440_v36, %s5626_s4  ;;  %s5644_s4 = smov 1  }
 0xb04   :  { %v2450_v3 = vpop.permute.xlu2 %2449 }
 0xb1c   :  { %v2448_v44 = vpop.permute.xlu1 %2447 }
 0xb1d   :  { %v2454_v8 = vsel %vm636_vm15, %v2448_v44, %v2450_v3  ;;  %v2446_v58 = vpop.permute.xlu0 %2445 }
 0xb1e   :  { %v2463_v27 = vmul.f32 %v2454_v8, %v8924_v22  ;;  %v2453_v19 = vsel %vm636_vm15, %v2446_v58, %v2448_v44  ;;  %v2461_v40 = vmul.f32 0.0, %v2446_v58 }
 0xb1f   :  { %v2462_v56 = vmul.f32 %v2453_v19, %v8913_v31  ;;  %v2530_v19 = vperm.slane %v5453_v61, 0 }
 0xb20   :  { %2471 = vrot.lane.b32.xlu1 %v2461_v40, %s5614_s17  ;;  %2475 = vrot.lane.b32.xlu0 %v2463_v27, %s5614_s17  ;;  %v2531_v27 = vperm.slane %v5453_v61, 1 }
 0xb21   :  { %2473 = vrot.lane.b32.xlu2 %v2462_v56, %s5614_s17 }
 0xb25   :  { %v2452_v0 = vpop.permute.xlu0 %2451 }
 0xb26   :  { %v2455_v33 = vsel %vm636_vm15, %v2450_v3, %v2452_v0  ;;  %v2465_v53 = vmul.f32 %v2452_v0, %v8930_v59  ;;  %v2532_v3 = vperm.slane %v5453_v61, 2 }
 0xb27   :  { %v2464_v17 = vmul.f32 %v2455_v33, %v8929_v50 }
 0xb28   :  { %2499 = vperm.xlu0 %5564, %v2496_v1  }
 0xb29   :  { %2479 = vrot.lane.b32.xlu2 %v2465_v53, %s5614_s17  ;;  %2477 = vrot.lane.b32.xlu1 %v2464_v17, %s5614_s17  ;;  %s5674_s17 = smov 34  }
 0xb31   :  { %2516 = vperm.xlu2 %5566, %v2496_v1   ;;  %2508 = vperm.xlu1 %5565, %v2495_v14  }
 0xb7b   :  { %v7166_v18 = vpop.permute.xlu2 %2473 }
 0xb7c   :  { %9006 = vst [vmem:[#allocation93_spill] sm:$0xff] %v7166_v18 }
 0xb83   :  { %v7172_v62 = vpop.permute.xlu2 %2479 }
 0xb84   :  { %9009 = vst [vmem:[#allocation96_spill] sm:$0xff] %v7172_v62 }
 0xb8b   :  { %v2517_v30 = vpop.permute.xlu2 %2516 }
 0xb8c   :  { %v2519_v44 = vmul.f32 %v2517_v30, %v5909_v15  ;;  %v2520_v8 = vmul.f32 %v2517_v30, %v5894_v9  ;;  %v2521_v40 = vmul.f32 %v2517_v30, %v5984_v32  ;;  %v2522_v62 = vmul.f32 %v2517_v30, %v5955_v12 }
 0xb92   :  { %v7168_v7 = vpop.permute.xlu1 %2471  ;;  %v7170_v43 = vpop.permute.xlu0 %2475 }
 0xb93   :  { %9007 = vst [vmem:[#allocation94_spill] sm:$0xff] %v7168_v7 }
 0xb94   :  { %9008 = vst [vmem:[#allocation95_spill] sm:$0xff] %v7170_v43 }
 0xb9a   :  { %v2500_v10 = vpop.permute.xlu0 %2499 }
 0xb9b   :  { %v7174_v16 = vpop.permute.xlu1 %2477  ;;  %v2502_v28 = vmul.f32 %v2500_v10, %v8923_v37  ;;  %v2503_v52 = vmul.f32 %v2500_v10, %v5885_v6  ;;  %v2504_v36 = vmul.f32 %v2500_v10, %v5953_v11  ;;  %v2505_v14 = vmul.f32 %v2500_v10, %v5933_v45 }
 0xb9c   :  { %9010 = vst [vmem:[#allocation97_spill] sm:$0xff] %v7174_v16 }
 0xba3   :  { %v2509_v58 = vpop.permute.xlu1 %2508 }
 0xba4   :  { %v2511_v56 = vadd.f32 %v2509_v58, %v2502_v28  ;;  %v2512_v0 = vadd.f32 %v2509_v58, %v2503_v52  ;;  %v2513_v1 = vadd.f32 %v2509_v58, %v2504_v36  ;;  %v2514_v16 = vadd.f32 %v2509_v58, %v2505_v14 }
 0xba5   :  { %v2533_v52 = vperm.slane %v5453_v61, 3 }
 0xba6   :  { %v2525_v33 = vadd.f32 %v2521_v40, %v2513_v1  ;;  %v2524_v53 = vadd.f32 %v2520_v8, %v2512_v0  ;;  %v2523_v17 = vadd.f32 %v2519_v44, %v2511_v56  ;;  %v2526_v28 = vadd.f32 %v2522_v62, %v2514_v16  ;;  %v2597_v62 = vld [vmem:[%s8692_s5 + $0xb8] sm:$0xff] }
 0xba8   :  { %v2540_v43 = vmul.f32 %v2532_v3, %v2525_v33  ;;  %v2539_v7 = vmul.f32 %v2531_v27, %v2524_v53  ;;  %v2538_v18 = vmul.f32 %v2530_v19, %v2523_v17  ;;  %v2541_v36 = vmul.f32 %v2533_v52, %v2526_v28  ;;  %v2596_v19 = vld [vmem:[%s8693_s6 + $0xb8] sm:$0xff] }
 0xba9   :  { %v5454_v17 = vld [vmem:[%s8694_s7 + $0x47] ss:$8 sm:$0xf] }
 0xbaa   :  { %2550 = vrot.lane.b32.xlu2 %v2540_v43, %s5625_s0  ;;  %2548 = vrot.lane.b32.xlu1 %v2539_v7, %s5625_s0 }
 0xbab   :  { %2546 = vrot.lane.b32.xlu0 %v2538_v18, %s5625_s0 }
 0xbb3   :  { %2552 = vrot.lane.b32.xlu0 %v2541_v36, %s5625_s0  ;;  %s5675_s0 = smov 43  }
 0xc04   :  { %v2551_v44 = vpop.permute.xlu2 %2550 }
 0xc1c   :  { %v2549_v10 = vpop.permute.xlu1 %2548 }
 0xc1d   :  { %v2555_v3 = vsel %vm8858_vm8, %v2549_v10, %v2551_v44  ;;  %v2547_v8 = vpop.permute.xlu0 %2546 }
 0xc1e   :  { %v2564_v58 = vmul.f32 %v2555_v3, %v8924_v22  ;;  %v2554_v43 = vsel %vm8858_vm8, %v2547_v8, %v2549_v10  ;;  %v2562_v7 = vmul.f32 0.0, %v2547_v8 }
 0xc1f   :  { %v2563_v30 = vmul.f32 %v2554_v43, %v8913_v31  ;;  %v2631_v43 = vperm.slane %v5454_v17, 0 }
 0xc20   :  { %2572 = vrot.lane.b32.xlu1 %v2562_v7, %s5613_s14  ;;  %2576 = vrot.lane.b32.xlu0 %v2564_v58, %s5613_s14  ;;  %v2632_v58 = vperm.slane %v5454_v17, 1 }
 0xc21   :  { %2574 = vrot.lane.b32.xlu2 %v2563_v30, %s5613_s14 }
 0xc25   :  { %v2553_v18 = vpop.permute.xlu0 %2552 }
 0xc26   :  { %v2556_v16 = vsel %vm8858_vm8, %v2551_v44, %v2553_v18  ;;  %v2566_v61 = vmul.f32 %v2553_v18, %v8930_v59  ;;  %v2633_v44 = vperm.slane %v5454_v17, 2 }
 0xc27   :  { %v2565_v27 = vmul.f32 %v2556_v16, %v8929_v50 }
 0xc28   :  { %2600 = vperm.xlu0 %5564, %v2597_v62  }
 0xc29   :  { %2580 = vrot.lane.b32.xlu2 %v2566_v61, %s5613_s14  ;;  %2578 = vrot.lane.b32.xlu1 %v2565_v27, %s5613_s14 }
 0xc31   :  { %2617 = vperm.xlu2 %5566, %v2597_v62   ;;  %2609 = vperm.xlu1 %5565, %v2596_v19  }
 0xc7b   :  { %v7209_v40 = vpop.permute.xlu2 %2574 }
 0xc7c   :  { %9011 = vst [vmem:[#allocation98_spill] sm:$0xff] %v7209_v40 }
 0xc83   :  { %v7215_v1 = vpop.permute.xlu2 %2580 }
 0xc84   :  { %9014 = vst [vmem:[#allocation101_spill] sm:$0xff] %v7215_v1 }
 0xc8b   :  { %v2618_v14 = vpop.permute.xlu2 %2617 }
 0xc8c   :  { %v2620_v10 = vmul.f32 %v2618_v14, %v5909_v15  ;;  %v2621_v3 = vmul.f32 %v2618_v14, %v5894_v9  ;;  %v2622_v7 = vmul.f32 %v2618_v14, %v5984_v32  ;;  %v2623_v1 = vmul.f32 %v2618_v14, %v5955_v12 }
 0xc92   :  { %v7211_v56 = vpop.permute.xlu1 %2572  ;;  %v7213_v0 = vpop.permute.xlu0 %2576 }
 0xc93   :  { %9012 = vst [vmem:[#allocation99_spill] sm:$0xff] %v7211_v56 }
 0xc94   :  { %9013 = vst [vmem:[#allocation100_spill] sm:$0xff] %v7213_v0 }
 0xc9a   :  { %v2601_v53 = vpop.permute.xlu0 %2600 }
 0xc9b   :  { %v7217_v33 = vpop.permute.xlu1 %2578  ;;  %v2603_v28 = vmul.f32 %v2601_v53, %v8923_v37  ;;  %v2604_v52 = vmul.f32 %v2601_v53, %v5885_v6  ;;  %v2605_v36 = vmul.f32 %v2601_v53, %v5953_v11  ;;  %v2606_v19 = vmul.f32 %v2601_v53, %v5933_v45 }
 0xc9c   :  { %9015 = vst [vmem:[#allocation102_spill] sm:$0xff] %v7217_v33 }
 0xca3   :  { %v2610_v8 = vpop.permute.xlu1 %2609 }
 0xca4   :  { %v2612_v30 = vadd.f32 %v2610_v8, %v2603_v28  ;;  %v2613_v18 = vadd.f32 %v2610_v8, %v2604_v52  ;;  %v2614_v62 = vadd.f32 %v2610_v8, %v2605_v36  ;;  %v2615_v33 = vadd.f32 %v2610_v8, %v2606_v19 }
 0xca5   :  { %v2634_v52 = vperm.slane %v5454_v17, 3 }
 0xca6   :  { %v2626_v16 = vadd.f32 %v2622_v7, %v2614_v62  ;;  %v2625_v61 = vadd.f32 %v2621_v3, %v2613_v18  ;;  %v2624_v27 = vadd.f32 %v2620_v10, %v2612_v30  ;;  %v2627_v28 = vadd.f32 %v2623_v1, %v2615_v33  ;;  %v2698_v1 = vld [vmem:[%s8692_s5 + $0xc0] sm:$0xff] }
 0xca7   :  { %v9016_v7 = vmov 1   ;;  %v9017_v30 = vmov 0  }
 0xca8   :  { %v2641_v0 = vmul.f32 %v2633_v44, %v2626_v16  ;;  %v2640_v56 = vmul.f32 %v2632_v58, %v2625_v61  ;;  %v2639_v40 = vmul.f32 %v2631_v43, %v2624_v27  ;;  %v2642_v36 = vmul.f32 %v2634_v52, %v2627_v28  ;;  %v2697_v43 = vld [vmem:[%s8693_s6 + $0xc0] sm:$0xff] }
 0xca9   :  { %v5455_v28 = vld [vmem:[%s8694_s7 + $0x60] ss:$8 sm:$0xf] }
 0xcaa   :  { %2651 = vrot.lane.b32.xlu2 %v2641_v0, %s5624_s2  ;;  %2649 = vrot.lane.b32.xlu1 %v2640_v56, %s5624_s2 }
 0xcab   :  { %2647 = vrot.lane.b32.xlu0 %v2639_v40, %s5624_s2 }
 0xcb3   :  { %2653 = vrot.lane.b32.xlu0 %v2642_v36, %s5624_s2 }
 0xd04   :  { %v2652_v10 = vpop.permute.xlu2 %2651 }
 0xd1c   :  { %v2650_v53 = vpop.permute.xlu1 %2649 }
 0xd1d   :  { %v2656_v44 = vsel %vm8857_vm13, %v2650_v53, %v2652_v10  ;;  %v2648_v3 = vpop.permute.xlu0 %2647 }
 0xd1e   :  { %v2665_v8 = vmul.f32 %v2656_v44, %v8924_v22  ;;  %v2655_v0 = vsel %vm8857_vm13, %v2648_v3, %v2650_v53  ;;  %v2663_v56 = vmul.f32 0.0, %v2648_v3  ;;  %v2734_v44 = vperm.slane %v5455_v28, 2 }
 0xd1f   :  { %v2664_v14 = vmul.f32 %v2655_v0, %v8913_v31 }
 0xd20   :  { %2673 = vrot.lane.b32.xlu1 %v2663_v56, %s5611_s28  ;;  %2677 = vrot.lane.b32.xlu0 %v2665_v8, %s5611_s28 }
 0xd21   :  { %2675 = vrot.lane.b32.xlu2 %v2664_v14, %s5611_s28  ;;  %v2733_v14 = vperm.slane %v5455_v28, 1 }
 0xd25   :  { %v2654_v40 = vpop.permute.xlu0 %2653 }
 0xd26   :  { %v2657_v33 = vsel %vm8857_vm13, %v2652_v10, %v2654_v40  ;;  %v2667_v17 = vmul.f32 %v2654_v40, %v8930_v59 }
 0xd27   :  { %v2666_v58 = vmul.f32 %v2657_v33, %v8929_v50 }
 0xd28   :  { %2701 = vperm.xlu0 %5564, %v2698_v1  }
 0xd29   :  { %2681 = vrot.lane.b32.xlu2 %v2667_v17, %s5611_s28  ;;  %2679 = vrot.lane.b32.xlu1 %v2666_v58, %s5611_s28  ;;  %v2732_v17 = vperm.slane %v5455_v28, 0  ;;  %s5648_s28 = smov 3  }
 0xd30   :  { %5568 = vset.pattern.permute.xlu0 %v9016_v7 }
 0xd31   :  { %2718 = vperm.xlu2 %5566, %v2698_v1   ;;  %2710 = vperm.xlu1 %5565, %v2697_v43  }
 0xd39   :  { %5567 = vset.pattern.permute.xlu2 %v9017_v30 }
 0xd7b   :  { %v7254_v18 = vpop.permute.xlu2 %2675 }
 0xd7c   :  { %9018 = vst [vmem:[#allocation103_spill] sm:$0xff] %v7254_v18 }
 0xd83   :  { %v7260_v61 = vpop.permute.xlu2 %2681 }
 0xd84   :  { %9021 = vst [vmem:[#allocation106_spill] sm:$0xff] %v7260_v61 }
 0xd8b   :  { %v2719_v52 = vpop.permute.xlu2 %2718 }
 0xd8c   :  { %v2721_v3 = vmul.f32 %v2719_v52, %v5909_v15  ;;  %v2722_v8 = vmul.f32 %v2719_v52, %v5894_v9  ;;  %v2723_v0 = vmul.f32 %v2719_v52, %v5984_v32  ;;  %v2724_v24 = vmul.f32 %v2719_v52, %v5955_v12  ;;  %v5456_v52 = vld [vmem:[%s8694_s7 + $0x61] ss:$8 sm:$0xf] }
 0xd92   :  { %v7256_v62 = vpop.permute.xlu1 %2673  ;;  %v7258_v16 = vpop.permute.xlu0 %2677 }
 0xd93   :  { %9019 = vst [vmem:[#allocation104_spill] sm:$0xff] %v7256_v62 }
 0xd94   :  { %9020 = vst [vmem:[#allocation105_spill] sm:$0xff] %v7258_v16 }
 0xd9a   :  { %v2702_v19 = vpop.permute.xlu0 %2701 }
 0xd9b   :  { %v7262_v27 = vpop.permute.xlu1 %2679  ;;  %v2704_v36 = vmul.f32 %v2702_v19, %v8923_v37  ;;  %v2705_v10 = vmul.f32 %v2702_v19, %v5885_v6  ;;  %v2706_v53 = vmul.f32 %v2702_v19, %v5953_v11  ;;  %v2707_v58 = vmul.f32 %v2702_v19, %v5933_v45 }
 0xd9c   :  { %9022 = vst [vmem:[#allocation107_spill] sm:$0xff] %v7262_v27 }
 0xda3   :  { %v2711_v56 = vpop.permute.xlu1 %2710 }
 0xda4   :  { %v2713_v40 = vadd.f32 %v2711_v56, %v2704_v36  ;;  %v2714_v1 = vadd.f32 %v2711_v56, %v2705_v10  ;;  %v2715_v33 = vadd.f32 %v2711_v56, %v2706_v53  ;;  %v2716_v18 = vadd.f32 %v2711_v56, %v2707_v58 }
 0xda5   :  { %v2735_v53 = vperm.slane %v5455_v28, 3 }
 0xda6   :  { %v2725_v43 = vadd.f32 %v2721_v3, %v2713_v40  ;;  %v2726_v16 = vadd.f32 %v2722_v8, %v2714_v1  ;;  %v2727_v62 = vadd.f32 %v2723_v0, %v2715_v33  ;;  %v2728_v10 = vadd.f32 %v2724_v24, %v2716_v18 }
 0xda7   :  { %v2809_v8 = vperm.slane %v5456_v52, 1  ;;  %v2808_v0 = vperm.slane %v5456_v52, 0 }
 0xda8   :  { %v2742_v27 = vmul.f32 %v2734_v44, %v2727_v62  ;;  %v2741_v61 = vmul.f32 %v2733_v14, %v2726_v16  ;;  %v2740_v38 = vmul.f32 %v2732_v17, %v2725_v43  ;;  %v2743_v19 = vmul.f32 %v2735_v53, %v2728_v10  ;;  %v2774_v62 = vld [vmem:[%s8692_s5 + $0xc8] sm:$0xff] }
 0xda9   :  { %v2773_v16 = vld [vmem:[%s8693_s6 + $0xc8] sm:$0xff] }
 0xdaa   :  { %v2746_v42 = vmul.f32 %v2742_v27, %v8929_v50  ;;  %v2745_v46 = vmul.f32 %v2741_v61, %v8924_v22  ;;  %v2744_v36 = vmul.f32 %v2740_v38, %v8913_v31  ;;  %v2747_v61 = vmul.f32 %v2743_v19, %v8930_v59 }
 0xdac   :  { %2756 = vrot.lane.b32.xlu2 %v2746_v42, %s5612_s11  ;;  %2754 = vrot.lane.b32.xlu1 %v2745_v46, %s5612_s11 }
 0xdad   :  { %2752 = vrot.lane.b32.xlu0 %v2744_v36, %s5612_s11 }
 0xdb4   :  { %2777 = vperm.xlu1 %5565, %v2774_v62   ;;  %2786 = vperm.xlu2 %5567, %v2773_v16  }
 0xdb5   :  { %2758 = vrot.lane.b32.xlu0 %v2747_v61, %s5612_s11 }
 0xdbc   :  { %5570 = vset.pattern.permute.xlu1 %v9016_v7 }
 0xdbd   :  { %2794 = vperm.xlu0 %5568, %v2774_v62  }
 0xdc5   :  { %5569 = vset.pattern.permute.xlu0 %v9017_v30 }
 0xe06   :  { %v7295_v24 = vpop.permute.xlu2 %2756 }
 0xe07   :  { %9025 = vst [vmem:[#allocation110_spill] sm:$0xff] %v7295_v24 }
 0xe0e   :  { %v2787_v44 = vpop.permute.xlu2 %2786 }
 0xe1e   :  { %v7291_v46 = vpop.permute.xlu1 %2754 }
 0xe1f   :  { %9023 = vst [vmem:[#allocation108_spill] sm:$0xff] %v7291_v46  ;;  %v7293_v42 = vpop.permute.xlu0 %2752 }
 0xe20   :  { %9024 = vst [vmem:[#allocation109_spill] sm:$0xff] %v7293_v42  ;;  %v2810_v42 = vperm.slane %v5456_v52, 2 }
 0xe26   :  { %v2778_v18 = vpop.permute.xlu1 %2777 }
 0xe27   :  { %v7297_v38 = vpop.permute.xlu0 %2758  ;;  %v2780_v27 = vmul.f32 %v2778_v18, %v8923_v37  ;;  %v2781_v28 = vmul.f32 %v2778_v18, %v5885_v6  ;;  %v2782_v33 = vmul.f32 %v2778_v18, %v5953_v11  ;;  %v2783_v17 = vmul.f32 %v2778_v18, %v5933_v45 }
 0xe29   :  { %v2789_v56 = vadd.f32 %v2787_v44, %v2780_v27  ;;  %v2790_v14 = vadd.f32 %v2787_v44, %v2781_v28  ;;  %v2791_v62 = vadd.f32 %v2787_v44, %v2782_v33  ;;  %v2792_v16 = vadd.f32 %v2787_v44, %v2783_v17  ;;  %v2881_v33 = vld [vmem:[%s8693_s6 + $0xd0] sm:$0xff] }
 0xe2a   :  { %v2811_v27 = vperm.slane %v5456_v52, 3 }
 0xe2f   :  { %v2795_v3 = vpop.permute.xlu0 %2794 }
 0xe30   :  { %v2797_v40 = vmul.f32 %v2795_v3, %v5909_v15  ;;  %v2798_v1 = vmul.f32 %v2795_v3, %v5894_v9  ;;  %v2799_v36 = vmul.f32 %v2795_v3, %v5984_v32  ;;  %v2800_v10 = vmul.f32 %v2795_v3, %v5955_v12 }
 0xe32   :  { %v2802_v58 = vadd.f32 %v2798_v1, %v2790_v14  ;;  %v2801_v43 = vadd.f32 %v2797_v40, %v2789_v56  ;;  %v2804_v61 = vadd.f32 %v2800_v10, %v2792_v16  ;;  %v2803_v28 = vadd.f32 %v2799_v36, %v2791_v62 }
 0xe34   :  { %v2817_v53 = vmul.f32 %v2809_v8, %v2802_v58  ;;  %v2816_v19 = vmul.f32 %v2808_v0, %v2801_v43  ;;  %v2819_v46 = vmul.f32 %v2811_v27, %v2804_v61  ;;  %v2818_v24 = vmul.f32 %v2810_v42, %v2803_v28 }
 0xe36   :  { %2831 = vrot.lane.b32.xlu2 %v2817_v53, %s5644_s4  ;;  %2829 = vrot.lane.b32.xlu1 %v2816_v19, %s5644_s4  ;;  %v5457_v19 = vld [vmem:[%s8694_s7 + $0x62] ss:$8 sm:$0xf] }
 0xe37   :  { %v2919_v27 = vperm.slane %v5457_v19, 3 }
 0xe3e   :  { %2835 = vrot.lane.b32.xlu2 %v2819_v46, %s5644_s4  ;;  %2833 = vrot.lane.b32.xlu1 %v2818_v24, %s5644_s4  ;;  %v2882_v24 = vld [vmem:[%s8692_s5 + $0xd0] sm:$0xff]  ;;  %s5650_s4 = smov 13  }
 0xe90   :  { %v2832_v18 = vpop.permute.xlu2 %2831 }
 0xe98   :  { %v2836_v44 = vpop.permute.xlu2 %2835 }
 0xe99   :  { %v2850_v52 = vmul.f32 0.0, %v2836_v44 }
 0xea8   :  { %v2830_v56 = vpop.permute.xlu1 %2829 }
 0xea9   :  { %v2838_v14 = vsel %vm2837_vm14, %v2830_v56, %v2832_v18  ;;  %v2846_v3 = vmul.f32 %v2830_v56, %v8913_v31 }
 0xeaa   :  { %v2847_v8 = vmul.f32 %v2838_v14, %v8924_v22  ;;  %v2917_v14 = vperm.slane %v5457_v19, 1 }
 0xeab   :  { %2856 = vrot.lane.b32.xlu0 %v2846_v3, %s5645_s12 }
 0xeac   :  { %2858 = vrot.lane.b32.xlu1 %v2847_v8, %s5645_s12 }
 0xeb0   :  { %v2834_v0 = vpop.permute.xlu1 %2833 }
 0xeb1   :  { %v2839_v40 = vsel %vm2837_vm14, %v2832_v18, %v2834_v0  ;;  %v2840_v1 = vsel %vm2837_vm14, %v2834_v0, %v2836_v44  ;;  %v2916_v0 = vperm.slane %v5457_v19, 0  ;;  %vm2940_vm14 = vcmask 15360  }
 0xeb2   :  { %v2848_v42 = vmul.f32 %v2839_v40, %v8929_v50  ;;  %v2849_v46 = vmul.f32 %v2840_v1, %v8930_v59 }
 0xeb4   :  { %2864 = vrot.lane.b32.xlu1 %v2850_v52, %s5645_s12  ;;  %2862 = vrot.lane.b32.xlu0 %v2849_v46, %s5645_s12 }
 0xeb5   :  { %2860 = vrot.lane.b32.xlu2 %v2848_v42, %s5645_s12  ;;  %s5651_s12 = smov 64  }
 0xebc   :  { %2902 = vperm.xlu1 %5570, %v2882_v24   ;;  %2894 = vperm.xlu0 %5569, %v2881_v33  }
 0xebd   :  { %2885 = vperm.xlu2 %5567, %v2882_v24  }
 0xec4   :  { %5571 = vset.pattern.permute.xlu1 %v9017_v30 }
 0xec5   :  { %5572 = vset.pattern.permute.xlu2 %v9016_v7 }
 0xf0f   :  { %v7326_v43 = vpop.permute.xlu2 %2860 }
 0xf10   :  { %9028 = vst [vmem:[#allocation113_spill] sm:$0xff] %v7326_v43 }
 0xf17   :  { %v2886_v53 = vpop.permute.xlu2 %2885 }
 0xf18   :  { %v2888_v62 = vmul.f32 %v2886_v53, %v8923_v37  ;;  %v2889_v30 = vmul.f32 %v2886_v53, %v5885_v6  ;;  %v2891_v7 = vmul.f32 %v2886_v53, %v5933_v45  ;;  %v2890_v42 = vmul.f32 %v2886_v53, %v5953_v11 }
 0xf1d   :  { %v7322_v17 = vpop.permute.xlu0 %2856 }
 0xf1e   :  { %9026 = vst [vmem:[#allocation111_spill] sm:$0xff] %v7322_v17  ;;  %v7324_v58 = vpop.permute.xlu1 %2858 }
 0xf1f   :  { %9027 = vst [vmem:[#allocation112_spill] sm:$0xff] %v7324_v58 }
 0xf26   :  { %v7328_v36 = vpop.permute.xlu0 %2862  ;;  %v7330_v10 = vpop.permute.xlu1 %2864 }
 0xf27   :  { %9029 = vst [vmem:[#allocation114_spill] sm:$0xff] %v7330_v10 }
 0xf2e   :  { %v2895_v16 = vpop.permute.xlu0 %2894  ;;  %v2903_v61 = vpop.permute.xlu1 %2902 }
 0xf2f   :  { %v2897_v28 = vadd.f32 %v2895_v16, %v2888_v62  ;;  %v2898_v18 = vadd.f32 %v2895_v16, %v2889_v30  ;;  %v2900_v56 = vadd.f32 %v2895_v16, %v2891_v7  ;;  %v2905_v3 = vmul.f32 %v2903_v61, %v5909_v15 }
 0xf30   :  { %v2906_v8 = vmul.f32 %v2903_v61, %v5894_v9  ;;  %v2908_v44 = vmul.f32 %v2903_v61, %v5955_v12  ;;  %v2899_v17 = vadd.f32 %v2895_v16, %v2890_v42  ;;  %v2907_v62 = vmul.f32 %v2903_v61, %v5984_v32 }
 0xf31   :  { %v2909_v52 = vadd.f32 %v2905_v3, %v2897_v28  ;;  %v2918_v7 = vperm.slane %v5457_v19, 2 }
 0xf32   :  { %v2912_v40 = vadd.f32 %v2908_v44, %v2900_v56  ;;  %v2910_v1 = vadd.f32 %v2906_v8, %v2898_v18  ;;  %v2911_v30 = vadd.f32 %v2907_v62, %v2899_v17  ;;  %v2985_v8 = vld [vmem:[%s8692_s5 + $0xd8] sm:$0xff] }
 0xf33   :  { %v2924_v33 = vmul.f32 %v2916_v0, %v2909_v52  ;;  %v5458_v52 = vld [vmem:[%s8694_s7 + $0x63] ss:$8 sm:$0xf] }
 0xf34   :  { %v2927_v46 = vmul.f32 %v2919_v27, %v2912_v40  ;;  %v2925_v24 = vmul.f32 %v2917_v14, %v2910_v1  ;;  %v2926_v58 = vmul.f32 %v2918_v7, %v2911_v30  ;;  %v3021_v7 = vperm.slane %v5458_v52, 2 }
 0xf35   :  { %2932 = vrot.lane.b32.xlu2 %v2924_v33, %s5646_s22  ;;  %v3022_v43 = vperm.slane %v5458_v52, 3 }
 0xf36   :  { %2938 = vrot.lane.b32.xlu0 %v2927_v46, %s5646_s22  ;;  %2934 = vrot.lane.b32.xlu1 %v2925_v24, %s5646_s22 }
 0xf3d   :  { %2936 = vrot.lane.b32.xlu2 %v2926_v58, %s5646_s22  ;;  %v2984_v58 = vld [vmem:[%s8693_s6 + $0xd8] sm:$0xff]  ;;  %s5652_s22 = smov 14  }
 0xf8f   :  { %v2933_v10 = vpop.permute.xlu2 %2932 }
 0xf90   :  { %v2949_v18 = vmul.f32 %v2933_v10, %v8913_v31 }
 0xf92   :  { %2959 = vrot.lane.b32.xlu1 %v2949_v18, %s5647_s27 }
 0xf97   :  { %v2937_v53 = vpop.permute.xlu2 %2936 }
 0xfa8   :  { %v2939_v27 = vpop.permute.xlu0 %2938  ;;  %v2935_v28 = vpop.permute.xlu1 %2934 }
 0xfa9   :  { %v2943_v16 = vsel %vm2940_vm14, %v2937_v53, %v2939_v27  ;;  %v2941_v56 = vsel %vm2940_vm14, %v2933_v10, %v2935_v28  ;;  %v2942_v61 = vsel %vm2940_vm14, %v2935_v28, %v2937_v53  ;;  %v2953_v19 = vmul.f32 0.0, %v2939_v27 }
 0xfaa   :  { %v2952_v14 = vmul.f32 %v2943_v16, %v8930_v59  ;;  %v2950_v3 = vmul.f32 %v2941_v56, %v8924_v22  ;;  %v2951_v17 = vmul.f32 %v2942_v61, %v8929_v50  ;;  %v3020_v27 = vperm.slane %v5458_v52, 1 }
 0xfab   :  { %v3019_v28 = vperm.slane %v5458_v52, 0  ;;  %vm3043_vm14 = vcmask 23552  }
 0xfac   :  { %2961 = vrot.lane.b32.xlu2 %v2950_v3, %s5647_s27  ;;  %2965 = vrot.lane.b32.xlu1 %v2952_v14, %s5647_s27 }
 0xfad   :  { %2963 = vrot.lane.b32.xlu0 %v2951_v17, %s5647_s27 }
 0xfb4   :  { %2967 = vrot.lane.b32.xlu2 %v2953_v19, %s5647_s27  ;;  %2997 = vperm.xlu1 %5571, %v2984_v58   ;;  %s5653_s27 = smov 63  }
 0xfb5   :  { %2988 = vperm.xlu0 %5569, %v2985_v8  }
 0xfbc   :  { %3005 = vperm.xlu2 %5572, %v2985_v8  }
0x1004   :  { %v7355_v44 = vpop.permute.xlu1 %2959 }
0x1005   :  { %9031 = vst [vmem:[#allocation116_spill] sm:$0xff] %v7355_v44 }
0x1006   :  { %v7353_v10 = vpop.permute.xlu2 %2961 }
0x1007   :  { %9030 = vst [vmem:[#allocation115_spill] sm:$0xff] %v7353_v10 }
0x100e   :  { %v7357_v0 = vpop.permute.xlu2 %2967 }
0x100f   :  { %9032 = vst [vmem:[#allocation117_spill] sm:$0xff] %v7357_v0 }
0x1016   :  { %v3006_v42 = vpop.permute.xlu2 %3005 }
0x1017   :  { %v3008_v18 = vmul.f32 %v3006_v42, %v5909_v15  ;;  %v3009_v53 = vmul.f32 %v3006_v42, %v5894_v9  ;;  %v3010_v16 = vmul.f32 %v3006_v42, %v5984_v32 }
0x101e   :  { %v7359_v40 = vpop.permute.xlu1 %2965 }
0x101f   :  { %9033 = vst [vmem:[#allocation118_spill] sm:$0xff] %v7359_v40  ;;  %v7361_v1 = vpop.permute.xlu0 %2963 }
0x1020   :  { %9034 = vst [vmem:[#allocation119_spill] sm:$0xff] %v7361_v1  ;;  %v3011_v1 = vmul.f32 %v3006_v42, %v5955_v12 }
0x1026   :  { %v2998_v24 = vpop.permute.xlu1 %2997 }
0x1027   :  { %v2989_v46 = vpop.permute.xlu0 %2988 }
0x1028   :  { %v2991_v33 = vmul.f32 %v2989_v46, %v8923_v37  ;;  %v2992_v62 = vmul.f32 %v2989_v46, %v5885_v6  ;;  %v2993_v30 = vmul.f32 %v2989_v46, %v5953_v11  ;;  %v2994_v3 = vmul.f32 %v2989_v46, %v5933_v45 }
0x102a   :  { %v3000_v56 = vadd.f32 %v2998_v24, %v2991_v33  ;;  %v3001_v61 = vadd.f32 %v2998_v24, %v2992_v62  ;;  %v3002_v14 = vadd.f32 %v2998_v24, %v2993_v30  ;;  %v3003_v0 = vadd.f32 %v2998_v24, %v2994_v3 }
0x102c   :  { %v3014_v17 = vadd.f32 %v3010_v16, %v3002_v14  ;;  %v3013_v58 = vadd.f32 %v3009_v53, %v3001_v61  ;;  %v3012_v19 = vadd.f32 %v3008_v18, %v3000_v56  ;;  %v3015_v40 = vadd.f32 %v3011_v1, %v3003_v0  ;;  %v3087_v1 = vld [vmem:[%s8693_s6 + $0xe0] sm:$0xff] }
0x102d   :  { %v5459_v14 = vld [vmem:[%s8694_s7 + $0x64] ss:$8 sm:$0xf] }
0x102e   :  { %v3029_v8 = vmul.f32 %v3021_v7, %v3014_v17  ;;  %v3028_v44 = vmul.f32 %v3020_v27, %v3013_v58  ;;  %v3027_v10 = vmul.f32 %v3019_v28, %v3012_v19  ;;  %v3030_v33 = vmul.f32 %v3022_v43, %v3015_v40  ;;  %v3088_v43 = vld [vmem:[%s8692_s5 + $0xe0] sm:$0xff] }
0x1030   :  { %3039 = vrot.lane.b32.xlu2 %v3029_v8, %s5648_s28  ;;  %3037 = vrot.lane.b32.xlu1 %v3028_v44, %s5648_s28  ;;  %v3124_v8 = vperm.slane %v5459_v14, 2 }
0x1031   :  { %3035 = vrot.lane.b32.xlu0 %v3027_v10, %s5648_s28 }
0x1039   :  { %3041 = vrot.lane.b32.xlu0 %v3030_v33, %s5648_s28  ;;  %s5654_s28 = smov 15  }
0x108a   :  { %v3040_v62 = vpop.permute.xlu2 %3039 }
0x10a2   :  { %v3038_v46 = vpop.permute.xlu1 %3037 }
0x10a3   :  { %v3045_v30 = vsel %vm3043_vm14, %v3038_v46, %v3040_v62  ;;  %v3036_v53 = vpop.permute.xlu0 %3035 }
0x10a4   :  { %v3054_v7 = vmul.f32 %v3045_v30, %v8929_v50  ;;  %v3044_v18 = vsel %vm3043_vm14, %v3036_v53, %v3038_v46  ;;  %v3052_v24 = vmul.f32 %v3036_v53, %v8913_v31  ;;  %v3123_v30 = vperm.slane %v5459_v14, 1 }
0x10a5   :  { %v3053_v27 = vmul.f32 %v3044_v18, %v8924_v22  ;;  %v3122_v53 = vperm.slane %v5459_v14, 0 }
0x10a6   :  { %3062 = vrot.lane.b32.xlu1 %v3052_v24, %s5649_s16  ;;  %3066 = vrot.lane.b32.xlu0 %v3054_v7, %s5649_s16 }
0x10a7   :  { %3064 = vrot.lane.b32.xlu2 %v3053_v27, %s5649_s16 }
0x10ab   :  { %v3042_v10 = vpop.permute.xlu0 %3041 }
0x10ac   :  { %v3046_v44 = vsel %vm3043_vm14, %v3040_v62, %v3042_v10  ;;  %v3056_v0 = vmul.f32 0.0, %v3042_v10  ;;  %vm3146_vm14 = vcmask 105472  }
0x10ad   :  { %v3055_v40 = vmul.f32 %v3046_v44, %v8930_v59 }
0x10ae   :  { %3091 = vperm.xlu0 %5569, %v3088_v43  }
0x10af   :  { %3070 = vrot.lane.b32.xlu2 %v3056_v0, %s5649_s16  ;;  %3068 = vrot.lane.b32.xlu1 %v3055_v40, %s5649_s16  ;;  %s5655_s16 = smov 62  }
0x10b7   :  { %3108 = vperm.xlu2 %5572, %v3088_v43   ;;  %3100 = vperm.xlu1 %5571, %v3087_v1  }
0x1101   :  { %v7384_v52 = vpop.permute.xlu2 %3064 }
0x1102   :  { %9035 = vst [vmem:[#allocation120_spill] sm:$0xff] %v7384_v52 }
0x1109   :  { %v7390_v16 = vpop.permute.xlu2 %3070 }
0x110a   :  { %9038 = vst [vmem:[#allocation123_spill] sm:$0xff] %v7390_v16 }
0x1111   :  { %v3109_v3 = vpop.permute.xlu2 %3108 }
0x1112   :  { %v3111_v33 = vmul.f32 %v3109_v3, %v5909_v15  ;;  %v3112_v62 = vmul.f32 %v3109_v3, %v5894_v9  ;;  %v3113_v7 = vmul.f32 %v3109_v3, %v5984_v32  ;;  %v3114_v16 = vmul.f32 %v3109_v3, %v5955_v12 }
0x1118   :  { %v7386_v42 = vpop.permute.xlu1 %3062  ;;  %v7388_v28 = vpop.permute.xlu0 %3066 }
0x1119   :  { %9036 = vst [vmem:[#allocation121_spill] sm:$0xff] %v7386_v42 }
0x111a   :  { %9037 = vst [vmem:[#allocation122_spill] sm:$0xff] %v7388_v28 }
0x1120   :  { %v3092_v61 = vpop.permute.xlu0 %3091 }
0x1121   :  { %v7392_v56 = vpop.permute.xlu1 %3068  ;;  %v3094_v17 = vmul.f32 %v3092_v61, %v8923_v37  ;;  %v3095_v58 = vmul.f32 %v3092_v61, %v5885_v6  ;;  %v3096_v19 = vmul.f32 %v3092_v61, %v5953_v11  ;;  %v3097_v0 = vmul.f32 %v3092_v61, %v5933_v45 }
0x1122   :  { %9039 = vst [vmem:[#allocation124_spill] sm:$0xff] %v7392_v56  ;;  %v3125_v56 = vperm.slane %v5459_v14, 3  ;;  %v3190_v14 = vld [vmem:[%s8693_s6 + $0xe8] sm:$0xff] }
0x1129   :  { %v3101_v46 = vpop.permute.xlu1 %3100 }
0x112a   :  { %v3103_v18 = vadd.f32 %v3101_v46, %v3094_v17  ;;  %v3104_v24 = vadd.f32 %v3101_v46, %v3095_v58  ;;  %v3105_v27 = vadd.f32 %v3101_v46, %v3096_v19  ;;  %v3106_v52 = vadd.f32 %v3101_v46, %v3097_v0 }
0x112c   :  { %v3117_v10 = vadd.f32 %v3113_v7, %v3105_v27  ;;  %v3116_v43 = vadd.f32 %v3112_v62, %v3104_v24  ;;  %v3115_v44 = vadd.f32 %v3111_v33, %v3103_v18  ;;  %v3118_v28 = vadd.f32 %v3114_v16, %v3106_v52 }
0x112e   :  { %v3132_v40 = vmul.f32 %v3124_v8, %v3117_v10  ;;  %v3131_v1 = vmul.f32 %v3123_v30, %v3116_v43  ;;  %v3130_v42 = vmul.f32 %v3122_v53, %v3115_v44  ;;  %v3133_v17 = vmul.f32 %v3125_v56, %v3118_v28  ;;  %v5460_v10 = vld [vmem:[%s8694_s7 + $0x65] ss:$8 sm:$0xf] }
0x1130   :  { %3142 = vrot.lane.b32.xlu2 %v3132_v40, %s5650_s4  ;;  %3140 = vrot.lane.b32.xlu1 %v3131_v1, %s5650_s4  ;;  %v3227_v1 = vperm.slane %v5460_v10, 2 }
0x1131   :  { %3138 = vrot.lane.b32.xlu0 %v3130_v42, %s5650_s4  ;;  %v3191_v42 = vld [vmem:[%s8692_s5 + $0xe8] sm:$0xff] }
0x1139   :  { %3144 = vrot.lane.b32.xlu0 %v3133_v17, %s5650_s4  ;;  %s5656_s4 = smov 16  }
0x118a   :  { %v3143_v58 = vpop.permute.xlu2 %3142 }
0x11a2   :  { %v3141_v19 = vpop.permute.xlu1 %3140 }
0x11a3   :  { %v3148_v33 = vsel %vm3146_vm14, %v3141_v19, %v3143_v58  ;;  %v3139_v62 = vpop.permute.xlu0 %3138 }
0x11a4   :  { %v3157_v61 = vmul.f32 %v3148_v33, %v8929_v50  ;;  %v3147_v8 = vsel %vm3146_vm14, %v3139_v62, %v3141_v19  ;;  %v3155_v46 = vmul.f32 %v3139_v62, %v8913_v31  ;;  %v3226_v33 = vperm.slane %v5460_v10, 1 }
0x11a5   :  { %v3156_v30 = vmul.f32 %v3147_v8, %v8924_v22  ;;  %v3225_v62 = vperm.slane %v5460_v10, 0 }
0x11a6   :  { %3165 = vrot.lane.b32.xlu1 %v3155_v46, %s5651_s12  ;;  %3169 = vrot.lane.b32.xlu0 %v3157_v61, %s5651_s12 }
0x11a7   :  { %3167 = vrot.lane.b32.xlu2 %v3156_v30, %s5651_s12 }
0x11ab   :  { %v3145_v52 = vpop.permute.xlu0 %3144 }
0x11ac   :  { %v3149_v28 = vsel %vm3146_vm14, %v3143_v58, %v3145_v52  ;;  %v3159_v16 = vmul.f32 0.0, %v3145_v52  ;;  %vm3249_vm14 = vcmask 113664  }
0x11ad   :  { %v3158_v56 = vmul.f32 %v3149_v28, %v8930_v59 }
0x11ae   :  { %3194 = vperm.xlu0 %5569, %v3191_v42  }
0x11af   :  { %3173 = vrot.lane.b32.xlu2 %v3159_v16, %s5651_s12  ;;  %3171 = vrot.lane.b32.xlu1 %v3158_v56, %s5651_s12  ;;  %s5657_s12 = smov 61  }
0x11b7   :  { %3211 = vperm.xlu2 %5572, %v3191_v42   ;;  %3203 = vperm.xlu1 %5571, %v3190_v14  }
0x1201   :  { %v7415_v3 = vpop.permute.xlu2 %3167 }
0x1202   :  { %9040 = vst [vmem:[#allocation125_spill] sm:$0xff] %v7415_v3 }
0x1209   :  { %v7421_v18 = vpop.permute.xlu2 %3173 }
0x120a   :  { %9043 = vst [vmem:[#allocation128_spill] sm:$0xff] %v7421_v18 }
0x1211   :  { %v3212_v43 = vpop.permute.xlu2 %3211 }
0x1212   :  { %v3214_v17 = vmul.f32 %v3212_v43, %v5909_v15  ;;  %v3215_v58 = vmul.f32 %v3212_v43, %v5894_v9  ;;  %v3216_v61 = vmul.f32 %v3212_v43, %v5984_v32  ;;  %v3217_v18 = vmul.f32 %v3212_v43, %v5955_v12 }
0x1218   :  { %v7417_v53 = vpop.permute.xlu1 %3165  ;;  %v7419_v7 = vpop.permute.xlu0 %3169 }
0x1219   :  { %9041 = vst [vmem:[#allocation126_spill] sm:$0xff] %v7417_v53 }
0x121a   :  { %9042 = vst [vmem:[#allocation127_spill] sm:$0xff] %v7419_v7 }
0x1220   :  { %v3195_v27 = vpop.permute.xlu0 %3194 }
0x1221   :  { %v7423_v24 = vpop.permute.xlu1 %3171  ;;  %v3197_v44 = vmul.f32 %v3195_v27, %v8923_v37  ;;  %v3198_v0 = vmul.f32 %v3195_v27, %v5885_v6  ;;  %v3199_v40 = vmul.f32 %v3195_v27, %v5953_v11  ;;  %v3200_v16 = vmul.f32 %v3195_v27, %v5933_v45 }
0x1222   :  { %9044 = vst [vmem:[#allocation129_spill] sm:$0xff] %v7423_v24  ;;  %v3228_v24 = vperm.slane %v5460_v10, 3  ;;  %v3293_v10 = vld [vmem:[%s8693_s6 + $0xf0] sm:$0xff] }
0x1229   :  { %v3204_v19 = vpop.permute.xlu1 %3203 }
0x122a   :  { %v3206_v8 = vadd.f32 %v3204_v19, %v3197_v44  ;;  %v3207_v46 = vadd.f32 %v3204_v19, %v3198_v0  ;;  %v3208_v30 = vadd.f32 %v3204_v19, %v3199_v40  ;;  %v3209_v3 = vadd.f32 %v3204_v19, %v3200_v16 }
0x122c   :  { %v3220_v52 = vadd.f32 %v3216_v61, %v3208_v30  ;;  %v3219_v42 = vadd.f32 %v3215_v58, %v3207_v46  ;;  %v3218_v28 = vadd.f32 %v3214_v17, %v3206_v8  ;;  %v3221_v7 = vadd.f32 %v3217_v18, %v3209_v3 }
0x122e   :  { %v3235_v56 = vmul.f32 %v3227_v1, %v3220_v52  ;;  %v3234_v14 = vmul.f32 %v3226_v33, %v3219_v42  ;;  %v3233_v53 = vmul.f32 %v3225_v62, %v3218_v28  ;;  %v3236_v44 = vmul.f32 %v3228_v24, %v3221_v7  ;;  %v5461_v52 = vld [vmem:[%s8694_s7 + $0x66] ss:$8 sm:$0xf] }
0x1230   :  { %3245 = vrot.lane.b32.xlu2 %v3235_v56, %s5652_s22  ;;  %3243 = vrot.lane.b32.xlu1 %v3234_v14, %s5652_s22  ;;  %v3330_v14 = vperm.slane %v5461_v52, 2 }
0x1231   :  { %3241 = vrot.lane.b32.xlu0 %v3233_v53, %s5652_s22  ;;  %v3294_v53 = vld [vmem:[%s8692_s5 + $0xf0] sm:$0xff] }
0x1239   :  { %3247 = vrot.lane.b32.xlu0 %v3236_v44, %s5652_s22  ;;  %s5658_s22 = smov 17  }
0x128a   :  { %v3246_v0 = vpop.permute.xlu2 %3245 }
0x12a2   :  { %v3244_v40 = vpop.permute.xlu1 %3243 }
0x12a3   :  { %v3251_v17 = vsel %vm3249_vm14, %v3244_v40, %v3246_v0  ;;  %v3242_v58 = vpop.permute.xlu0 %3241 }
0x12a4   :  { %v3260_v27 = vmul.f32 %v3251_v17, %v8929_v50  ;;  %v3250_v1 = vsel %vm3249_vm14, %v3242_v58, %v3244_v40  ;;  %v3258_v19 = vmul.f32 %v3242_v58, %v8913_v31  ;;  %v3329_v17 = vperm.slane %v5461_v52, 1 }
0x12a5   :  { %v3259_v33 = vmul.f32 %v3250_v1, %v8924_v22  ;;  %v3328_v58 = vperm.slane %v5461_v52, 0 }
0x12a6   :  { %3268 = vrot.lane.b32.xlu1 %v3258_v19, %s5653_s27  ;;  %3272 = vrot.lane.b32.xlu0 %v3260_v27, %s5653_s27 }
0x12a7   :  { %3270 = vrot.lane.b32.xlu2 %v3259_v33, %s5653_s27 }
0x12ab   :  { %v3248_v3 = vpop.permute.xlu0 %3247 }
0x12ac   :  { %v3252_v7 = vsel %vm3249_vm14, %v3246_v0, %v3248_v3  ;;  %v3262_v18 = vmul.f32 0.0, %v3248_v3  ;;  %vm3352_vm14 = vcmask 121856  }
0x12ad   :  { %v3261_v24 = vmul.f32 %v3252_v7, %v8930_v59 }
0x12ae   :  { %3297 = vperm.xlu0 %5569, %v3294_v53  }
0x12af   :  { %3276 = vrot.lane.b32.xlu2 %v3262_v18, %s5653_s27  ;;  %3274 = vrot.lane.b32.xlu1 %v3261_v24, %s5653_s27  ;;  %s5659_s27 = smov 60  }
0x12b7   :  { %3314 = vperm.xlu2 %5572, %v3294_v53   ;;  %3306 = vperm.xlu1 %5571, %v3293_v10  }
0x1301   :  { %v7446_v43 = vpop.permute.xlu2 %3270 }
0x1302   :  { %9045 = vst [vmem:[#allocation130_spill] sm:$0xff] %v7446_v43 }
0x1309   :  { %v7452_v8 = vpop.permute.xlu2 %3276 }
0x130a   :  { %9048 = vst [vmem:[#allocation133_spill] sm:$0xff] %v7452_v8 }
0x1311   :  { %v3315_v42 = vpop.permute.xlu2 %3314 }
0x1312   :  { %v3317_v44 = vmul.f32 %v3315_v42, %v5909_v15  ;;  %v3318_v0 = vmul.f32 %v3315_v42, %v5894_v9  ;;  %v3319_v27 = vmul.f32 %v3315_v42, %v5984_v32  ;;  %v3320_v8 = vmul.f32 %v3315_v42, %v5955_v12 }
0x1318   :  { %v7448_v62 = vpop.permute.xlu1 %3268  ;;  %v7450_v61 = vpop.permute.xlu0 %3272 }
0x1319   :  { %9046 = vst [vmem:[#allocation131_spill] sm:$0xff] %v7448_v62 }
0x131a   :  { %9047 = vst [vmem:[#allocation132_spill] sm:$0xff] %v7450_v61 }
0x1320   :  { %v3298_v30 = vpop.permute.xlu0 %3297 }
0x1321   :  { %v7454_v46 = vpop.permute.xlu1 %3274  ;;  %v3300_v28 = vmul.f32 %v3298_v30, %v8923_v37  ;;  %v3301_v16 = vmul.f32 %v3298_v30, %v5885_v6  ;;  %v3302_v56 = vmul.f32 %v3298_v30, %v5953_v11  ;;  %v3303_v18 = vmul.f32 %v3298_v30, %v5933_v45 }
0x1322   :  { %9049 = vst [vmem:[#allocation134_spill] sm:$0xff] %v7454_v46  ;;  %v3331_v46 = vperm.slane %v5461_v52, 3  ;;  %v3396_v52 = vld [vmem:[%s8693_s6 + $0xf8] sm:$0xff] }
0x1329   :  { %v3307_v40 = vpop.permute.xlu1 %3306 }
0x132a   :  { %v3309_v1 = vadd.f32 %v3307_v40, %v3300_v28  ;;  %v3310_v19 = vadd.f32 %v3307_v40, %v3301_v16  ;;  %v3311_v33 = vadd.f32 %v3307_v40, %v3302_v56  ;;  %v3312_v43 = vadd.f32 %v3307_v40, %v3303_v18 }
0x132c   :  { %v3323_v3 = vadd.f32 %v3319_v27, %v3311_v33  ;;  %v3322_v53 = vadd.f32 %v3318_v0, %v3310_v19  ;;  %v3321_v7 = vadd.f32 %v3317_v44, %v3309_v1  ;;  %v3324_v61 = vadd.f32 %v3320_v8, %v3312_v43 }
0x132e   :  { %v3338_v24 = vmul.f32 %v3330_v14, %v3323_v3  ;;  %v3337_v10 = vmul.f32 %v3329_v17, %v3322_v53  ;;  %v3336_v62 = vmul.f32 %v3328_v58, %v3321_v7  ;;  %v3339_v28 = vmul.f32 %v3331_v46, %v3324_v61  ;;  %v5462_v3 = vld [vmem:[%s8694_s7 + $0x67] ss:$8 sm:$0xf] }
0x1330   :  { %3348 = vrot.lane.b32.xlu2 %v3338_v24, %s5654_s28  ;;  %3346 = vrot.lane.b32.xlu1 %v3337_v10, %s5654_s28  ;;  %v3433_v10 = vperm.slane %v5462_v3, 2 }
0x1331   :  { %3344 = vrot.lane.b32.xlu0 %v3336_v62, %s5654_s28  ;;  %v3397_v62 = vld [vmem:[%s8692_s5 + $0xf8] sm:$0xff] }
0x1339   :  { %3350 = vrot.lane.b32.xlu0 %v3339_v28, %s5654_s28  ;;  %s5660_s28 = smov 18  }
0x138a   :  { %v3349_v16 = vpop.permute.xlu2 %3348 }
0x13a2   :  { %v3347_v56 = vpop.permute.xlu1 %3346 }
0x13a3   :  { %v3354_v44 = vsel %vm3352_vm14, %v3347_v56, %v3349_v16  ;;  %v3345_v0 = vpop.permute.xlu0 %3344 }
0x13a4   :  { %v3363_v30 = vmul.f32 %v3354_v44, %v8929_v50  ;;  %v3353_v14 = vsel %vm3352_vm14, %v3345_v0, %v3347_v56  ;;  %v3361_v40 = vmul.f32 %v3345_v0, %v8913_v31  ;;  %v3432_v44 = vperm.slane %v5462_v3, 1 }
0x13a5   :  { %v3362_v17 = vmul.f32 %v3353_v14, %v8924_v22  ;;  %v3431_v0 = vperm.slane %v5462_v3, 0 }
0x13a6   :  { %3371 = vrot.lane.b32.xlu1 %v3361_v40, %s5655_s16  ;;  %3375 = vrot.lane.b32.xlu0 %v3363_v30, %s5655_s16 }
0x13a7   :  { %3373 = vrot.lane.b32.xlu2 %v3362_v17, %s5655_s16 }
0x13ab   :  { %v3351_v43 = vpop.permute.xlu0 %3350 }
0x13ac   :  { %v3355_v61 = vsel %vm3352_vm14, %v3349_v16, %v3351_v43  ;;  %v3365_v8 = vmul.f32 0.0, %v3351_v43  ;;  %vm3455_vm14 = vcmask 130048  }
0x13ad   :  { %v3364_v46 = vmul.f32 %v3355_v61, %v8930_v59 }
0x13ae   :  { %3400 = vperm.xlu0 %5569, %v3397_v62  }
0x13af   :  { %3379 = vrot.lane.b32.xlu2 %v3365_v8, %s5655_s16  ;;  %3377 = vrot.lane.b32.xlu1 %v3364_v46, %s5655_s16  ;;  %s5661_s16 = smov 59  }
0x13b7   :  { %3417 = vperm.xlu2 %5572, %v3397_v62   ;;  %3409 = vperm.xlu1 %5571, %v3396_v52  }
0x1401   :  { %v7477_v42 = vpop.permute.xlu2 %3373 }
0x1402   :  { %9050 = vst [vmem:[#allocation135_spill] sm:$0xff] %v7477_v42 }
0x1409   :  { %v7483_v1 = vpop.permute.xlu2 %3379 }
0x140a   :  { %9053 = vst [vmem:[#allocation138_spill] sm:$0xff] %v7483_v1 }
0x1411   :  { %v3418_v53 = vpop.permute.xlu2 %3417 }
0x1412   :  { %v3420_v28 = vmul.f32 %v3418_v53, %v5909_v15  ;;  %v3421_v16 = vmul.f32 %v3418_v53, %v5894_v9  ;;  %v3422_v30 = vmul.f32 %v3418_v53, %v5984_v32  ;;  %v3423_v1 = vmul.f32 %v3418_v53, %v5955_v12 }
0x1418   :  { %v7479_v58 = vpop.permute.xlu1 %3371  ;;  %v7481_v27 = vpop.permute.xlu0 %3375 }
0x1419   :  { %9051 = vst [vmem:[#allocation136_spill] sm:$0xff] %v7479_v58 }
0x141a   :  { %9052 = vst [vmem:[#allocation137_spill] sm:$0xff] %v7481_v27 }
0x1420   :  { %v3401_v33 = vpop.permute.xlu0 %3400 }
0x1421   :  { %v7485_v19 = vpop.permute.xlu1 %3377  ;;  %v3403_v7 = vmul.f32 %v3401_v33, %v8923_v37  ;;  %v3404_v18 = vmul.f32 %v3401_v33, %v5885_v6  ;;  %v3405_v24 = vmul.f32 %v3401_v33, %v5953_v11  ;;  %v3406_v8 = vmul.f32 %v3401_v33, %v5933_v45 }
0x1422   :  { %9054 = vst [vmem:[#allocation139_spill] sm:$0xff] %v7485_v19  ;;  %v3434_v19 = vperm.slane %v5462_v3, 3  ;;  %v3499_v3 = vld [vmem:[%s8693_s6 + $0x100] sm:$0xff] }
0x1429   :  { %v3410_v56 = vpop.permute.xlu1 %3409 }
0x142a   :  { %v3412_v14 = vadd.f32 %v3410_v56, %v3403_v7  ;;  %v3413_v40 = vadd.f32 %v3410_v56, %v3404_v18  ;;  %v3414_v17 = vadd.f32 %v3410_v56, %v3405_v24  ;;  %v3415_v42 = vadd.f32 %v3410_v56, %v3406_v8 }
0x142c   :  { %v3426_v43 = vadd.f32 %v3422_v30, %v3414_v17  ;;  %v3425_v62 = vadd.f32 %v3421_v16, %v3413_v40  ;;  %v3424_v61 = vadd.f32 %v3420_v28, %v3412_v14  ;;  %v3427_v27 = vadd.f32 %v3423_v1, %v3415_v42 }
0x142e   :  { %v3441_v46 = vmul.f32 %v3433_v10, %v3426_v43  ;;  %v3440_v52 = vmul.f32 %v3432_v44, %v3425_v62  ;;  %v3439_v58 = vmul.f32 %v3431_v0, %v3424_v61  ;;  %v3442_v7 = vmul.f32 %v3434_v19, %v3427_v27  ;;  %v5463_v43 = vld [vmem:[%s8694_s7 + $0x80] ss:$8 sm:$0xf] }
0x1430   :  { %3451 = vrot.lane.b32.xlu2 %v3441_v46, %s5656_s4  ;;  %3449 = vrot.lane.b32.xlu1 %v3440_v52, %s5656_s4  ;;  %v3536_v52 = vperm.slane %v5463_v43, 2 }
0x1431   :  { %3447 = vrot.lane.b32.xlu0 %v3439_v58, %s5656_s4  ;;  %v3500_v58 = vld [vmem:[%s8692_s5 + $0x100] sm:$0xff] }
0x1439   :  { %3453 = vrot.lane.b32.xlu0 %v3442_v7, %s5656_s4  ;;  %s5662_s4 = smov 19  }
0x148a   :  { %v3452_v18 = vpop.permute.xlu2 %3451 }
0x14a2   :  { %v3450_v24 = vpop.permute.xlu1 %3449 }
0x14a3   :  { %v3457_v28 = vsel %vm3455_vm14, %v3450_v24, %v3452_v18  ;;  %v3448_v16 = vpop.permute.xlu0 %3447 }
0x14a4   :  { %v3466_v33 = vmul.f32 %v3457_v28, %v8929_v50  ;;  %v3456_v10 = vsel %vm3455_vm14, %v3448_v16, %v3450_v24  ;;  %v3464_v56 = vmul.f32 %v3448_v16, %v8913_v31  ;;  %v3535_v28 = vperm.slane %v5463_v43, 1 }
0x14a5   :  { %v3465_v44 = vmul.f32 %v3456_v10, %v8924_v22  ;;  %v3534_v16 = vperm.slane %v5463_v43, 0 }
0x14a6   :  { %3474 = vrot.lane.b32.xlu1 %v3464_v56, %s5657_s12  ;;  %3478 = vrot.lane.b32.xlu0 %v3466_v33, %s5657_s12 }
0x14a7   :  { %3476 = vrot.lane.b32.xlu2 %v3465_v44, %s5657_s12 }
0x14ab   :  { %v3454_v42 = vpop.permute.xlu0 %3453 }
0x14ac   :  { %v3458_v27 = vsel %vm3455_vm14, %v3452_v18, %v3454_v42  ;;  %v3468_v1 = vmul.f32 0.0, %v3454_v42  ;;  %vm3558_vm14 = vcmask 138240  }
0x14ad   :  { %v3467_v19 = vmul.f32 %v3458_v27, %v8930_v59 }
0x14ae   :  { %3503 = vperm.xlu0 %5569, %v3500_v58  }
0x14af   :  { %3482 = vrot.lane.b32.xlu2 %v3468_v1, %s5657_s12  ;;  %3480 = vrot.lane.b32.xlu1 %v3467_v19, %s5657_s12  ;;  %s5663_s12 = smov 58  }
0x14b7   :  { %3520 = vperm.xlu2 %5572, %v3500_v58   ;;  %3512 = vperm.xlu1 %5571, %v3499_v3  }
0x1501   :  { %v7508_v53 = vpop.permute.xlu2 %3476 }
0x1502   :  { %9055 = vst [vmem:[#allocation140_spill] sm:$0xff] %v7508_v53 }
0x1509   :  { %v7514_v14 = vpop.permute.xlu2 %3482 }
0x150a   :  { %9058 = vst [vmem:[#allocation143_spill] sm:$0xff] %v7514_v14 }
0x1511   :  { %v3521_v62 = vpop.permute.xlu2 %3520 }
0x1512   :  { %v3523_v7 = vmul.f32 %v3521_v62, %v5909_v15  ;;  %v3524_v18 = vmul.f32 %v3521_v62, %v5894_v9  ;;  %v3525_v33 = vmul.f32 %v3521_v62, %v5984_v32  ;;  %v3526_v14 = vmul.f32 %v3521_v62, %v5955_v12 }
0x1518   :  { %v7510_v0 = vpop.permute.xlu1 %3474  ;;  %v7512_v30 = vpop.permute.xlu0 %3478 }
0x1519   :  { %9056 = vst [vmem:[#allocation141_spill] sm:$0xff] %v7510_v0 }
0x151a   :  { %9057 = vst [vmem:[#allocation142_spill] sm:$0xff] %v7512_v30 }
0x1520   :  { %v3504_v17 = vpop.permute.xlu0 %3503 }
0x1521   :  { %v7516_v40 = vpop.permute.xlu1 %3480  ;;  %v3506_v61 = vmul.f32 %v3504_v17, %v8923_v37  ;;  %v3507_v8 = vmul.f32 %v3504_v17, %v5885_v6  ;;  %v3508_v46 = vmul.f32 %v3504_v17, %v5953_v11  ;;  %v3509_v1 = vmul.f32 %v3504_v17, %v5933_v45 }
0x1522   :  { %9059 = vst [vmem:[#allocation144_spill] sm:$0xff] %v7516_v40  ;;  %v3537_v40 = vperm.slane %v5463_v43, 3  ;;  %v3602_v43 = vld [vmem:[%s8693_s6 + $0x108] sm:$0xff] }
0x1529   :  { %v3513_v24 = vpop.permute.xlu1 %3512 }
0x152a   :  { %v3515_v10 = vadd.f32 %v3513_v24, %v3506_v61  ;;  %v3516_v56 = vadd.f32 %v3513_v24, %v3507_v8  ;;  %v3517_v44 = vadd.f32 %v3513_v24, %v3508_v46  ;;  %v3518_v53 = vadd.f32 %v3513_v24, %v3509_v1 }
0x152c   :  { %v3529_v42 = vadd.f32 %v3525_v33, %v3517_v44  ;;  %v3528_v58 = vadd.f32 %v3524_v18, %v3516_v56  ;;  %v3527_v27 = vadd.f32 %v3523_v7, %v3515_v10  ;;  %v3530_v30 = vadd.f32 %v3526_v14, %v3518_v53 }
0x152e   :  { %v3544_v19 = vmul.f32 %v3536_v52, %v3529_v42  ;;  %v3543_v3 = vmul.f32 %v3535_v28, %v3528_v58  ;;  %v3542_v0 = vmul.f32 %v3534_v16, %v3527_v27  ;;  %v3545_v61 = vmul.f32 %v3537_v40, %v3530_v30  ;;  %v5464_v42 = vld [vmem:[%s8694_s7 + $0x81] ss:$8 sm:$0xf] }
0x1530   :  { %3554 = vrot.lane.b32.xlu2 %v3544_v19, %s5658_s22  ;;  %3552 = vrot.lane.b32.xlu1 %v3543_v3, %s5658_s22  ;;  %v3639_v3 = vperm.slane %v5464_v42, 2 }
0x1531   :  { %3550 = vrot.lane.b32.xlu0 %v3542_v0, %s5658_s22  ;;  %v3603_v0 = vld [vmem:[%s8692_s5 + $0x108] sm:$0xff] }
0x1539   :  { %3556 = vrot.lane.b32.xlu0 %v3545_v61, %s5658_s22  ;;  %s5664_s22 = smov 29  }
0x158a   :  { %v3555_v8 = vpop.permute.xlu2 %3554 }
0x15a2   :  { %v3553_v46 = vpop.permute.xlu1 %3552 }
0x15a3   :  { %v3560_v7 = vsel %vm3558_vm14, %v3553_v46, %v3555_v8  ;;  %v3551_v18 = vpop.permute.xlu0 %3550 }
0x15a4   :  { %v3569_v17 = vmul.f32 %v3560_v7, %v8929_v50  ;;  %v3559_v52 = vsel %vm3558_vm14, %v3551_v18, %v3553_v46  ;;  %v3567_v24 = vmul.f32 %v3551_v18, %v8913_v31  ;;  %v3638_v7 = vperm.slane %v5464_v42, 1 }
0x15a5   :  { %v3568_v28 = vmul.f32 %v3559_v52, %v8924_v22  ;;  %v3637_v18 = vperm.slane %v5464_v42, 0 }
0x15a6   :  { %3577 = vrot.lane.b32.xlu1 %v3567_v24, %s5659_s27  ;;  %3581 = vrot.lane.b32.xlu0 %v3569_v17, %s5659_s27 }
0x15a7   :  { %3579 = vrot.lane.b32.xlu2 %v3568_v28, %s5659_s27 }
0x15ab   :  { %v3557_v53 = vpop.permute.xlu0 %3556 }
0x15ac   :  { %v3561_v30 = vsel %vm3558_vm14, %v3555_v8, %v3557_v53  ;;  %v3571_v14 = vmul.f32 0.0, %v3557_v53  ;;  %vm3661_vm14 = vcmask 146432  }
0x15ad   :  { %v3570_v40 = vmul.f32 %v3561_v30, %v8930_v59 }
0x15ae   :  { %3606 = vperm.xlu0 %5569, %v3603_v0  }
0x15af   :  { %3585 = vrot.lane.b32.xlu2 %v3571_v14, %s5659_s27  ;;  %3583 = vrot.lane.b32.xlu1 %v3570_v40, %s5659_s27  ;;  %s5665_s27 = smov 48  }
0x15b7   :  { %3623 = vperm.xlu2 %5572, %v3603_v0   ;;  %3615 = vperm.xlu1 %5571, %v3602_v43  }
0x1601   :  { %v7539_v62 = vpop.permute.xlu2 %3579 }
0x1602   :  { %9060 = vst [vmem:[#allocation145_spill] sm:$0xff] %v7539_v62 }
0x1609   :  { %v7545_v10 = vpop.permute.xlu2 %3585 }
0x160a   :  { %9063 = vst [vmem:[#allocation148_spill] sm:$0xff] %v7545_v10 }
0x1611   :  { %v3624_v58 = vpop.permute.xlu2 %3623 }
0x1612   :  { %v3626_v61 = vmul.f32 %v3624_v58, %v5909_v15  ;;  %v3627_v8 = vmul.f32 %v3624_v58, %v5894_v9  ;;  %v3628_v17 = vmul.f32 %v3624_v58, %v5984_v32  ;;  %v3629_v10 = vmul.f32 %v3624_v58, %v5955_v12 }
0x1618   :  { %v7541_v16 = vpop.permute.xlu1 %3577  ;;  %v7543_v33 = vpop.permute.xlu0 %3581 }
0x1619   :  { %9061 = vst [vmem:[#allocation146_spill] sm:$0xff] %v7541_v16 }
0x161a   :  { %9062 = vst [vmem:[#allocation147_spill] sm:$0xff] %v7543_v33 }
0x1620   :  { %v3607_v44 = vpop.permute.xlu0 %3606 }
0x1621   :  { %v7547_v56 = vpop.permute.xlu1 %3583  ;;  %v3609_v27 = vmul.f32 %v3607_v44, %v8923_v37  ;;  %v3610_v1 = vmul.f32 %v3607_v44, %v5885_v6  ;;  %v3611_v19 = vmul.f32 %v3607_v44, %v5953_v11  ;;  %v3612_v14 = vmul.f32 %v3607_v44, %v5933_v45 }
0x1622   :  { %9064 = vst [vmem:[#allocation149_spill] sm:$0xff] %v7547_v56  ;;  %v3640_v56 = vperm.slane %v5464_v42, 3  ;;  %v3705_v42 = vld [vmem:[%s8693_s6 + $0x110] sm:$0xff] }
0x1629   :  { %v3616_v46 = vpop.permute.xlu1 %3615 }
0x162a   :  { %v3618_v52 = vadd.f32 %v3616_v46, %v3609_v27  ;;  %v3619_v24 = vadd.f32 %v3616_v46, %v3610_v1  ;;  %v3620_v28 = vadd.f32 %v3616_v46, %v3611_v19  ;;  %v3621_v62 = vadd.f32 %v3616_v46, %v3612_v14 }
0x162c   :  { %v3632_v53 = vadd.f32 %v3628_v17, %v3620_v28  ;;  %v3631_v0 = vadd.f32 %v3627_v8, %v3619_v24  ;;  %v3630_v30 = vadd.f32 %v3626_v61, %v3618_v52  ;;  %v3633_v33 = vadd.f32 %v3629_v10, %v3621_v62 }
0x162e   :  { %v3647_v40 = vmul.f32 %v3639_v3, %v3632_v53  ;;  %v3646_v43 = vmul.f32 %v3638_v7, %v3631_v0  ;;  %v3645_v16 = vmul.f32 %v3637_v18, %v3630_v30  ;;  %v3648_v27 = vmul.f32 %v3640_v56, %v3633_v33  ;;  %v5465_v53 = vld [vmem:[%s8694_s7 + $0x82] ss:$8 sm:$0xf] }
0x1630   :  { %3657 = vrot.lane.b32.xlu2 %v3647_v40, %s5660_s28  ;;  %3655 = vrot.lane.b32.xlu1 %v3646_v43, %s5660_s28  ;;  %v3742_v43 = vperm.slane %v5465_v53, 2 }
0x1631   :  { %3653 = vrot.lane.b32.xlu0 %v3645_v16, %s5660_s28  ;;  %v3706_v16 = vld [vmem:[%s8692_s5 + $0x110] sm:$0xff] }
0x1639   :  { %3659 = vrot.lane.b32.xlu0 %v3648_v27, %s5660_s28  ;;  %s5666_s28 = smov 30  }
0x168a   :  { %v3658_v1 = vpop.permute.xlu2 %3657 }
0x16a2   :  { %v3656_v19 = vpop.permute.xlu1 %3655 }
0x16a3   :  { %v3663_v61 = vsel %vm3661_vm14, %v3656_v19, %v3658_v1  ;;  %v3654_v8 = vpop.permute.xlu0 %3653 }
0x16a4   :  { %v3672_v44 = vmul.f32 %v3663_v61, %v8929_v50  ;;  %v3662_v3 = vsel %vm3661_vm14, %v3654_v8, %v3656_v19  ;;  %v3670_v46 = vmul.f32 %v3654_v8, %v8913_v31  ;;  %v3741_v61 = vperm.slane %v5465_v53, 1 }
0x16a5   :  { %v3671_v7 = vmul.f32 %v3662_v3, %v8924_v22  ;;  %v3740_v8 = vperm.slane %v5465_v53, 0 }
0x16a6   :  { %3680 = vrot.lane.b32.xlu1 %v3670_v46, %s5661_s16  ;;  %3684 = vrot.lane.b32.xlu0 %v3672_v44, %s5661_s16 }
0x16a7   :  { %3682 = vrot.lane.b32.xlu2 %v3671_v7, %s5661_s16 }
0x16ab   :  { %v3660_v62 = vpop.permute.xlu0 %3659 }
0x16ac   :  { %v3664_v33 = vsel %vm3661_vm14, %v3658_v1, %v3660_v62  ;;  %v3674_v10 = vmul.f32 0.0, %v3660_v62  ;;  %vm3764_vm14 = vcmask 154624  }
0x16ad   :  { %v3673_v56 = vmul.f32 %v3664_v33, %v8930_v59 }
0x16ae   :  { %3709 = vperm.xlu0 %5569, %v3706_v16  }
0x16af   :  { %3688 = vrot.lane.b32.xlu2 %v3674_v10, %s5661_s16  ;;  %3686 = vrot.lane.b32.xlu1 %v3673_v56, %s5661_s16  ;;  %s5667_s16 = smov 47  }
0x16b7   :  { %3726 = vperm.xlu2 %5572, %v3706_v16   ;;  %3718 = vperm.xlu1 %5571, %v3705_v42  }
0x1701   :  { %v7570_v58 = vpop.permute.xlu2 %3682 }
0x1702   :  { %9065 = vst [vmem:[#allocation150_spill] sm:$0xff] %v7570_v58 }
0x1709   :  { %v7576_v52 = vpop.permute.xlu2 %3688 }
0x170a   :  { %9068 = vst [vmem:[#allocation153_spill] sm:$0xff] %v7576_v52 }
0x1711   :  { %v3727_v0 = vpop.permute.xlu2 %3726 }
0x1712   :  { %v3729_v27 = vmul.f32 %v3727_v0, %v5909_v15  ;;  %v3730_v1 = vmul.f32 %v3727_v0, %v5894_v9  ;;  %v3731_v44 = vmul.f32 %v3727_v0, %v5984_v32  ;;  %v3732_v52 = vmul.f32 %v3727_v0, %v5955_v12 }
0x1718   :  { %v7572_v18 = vpop.permute.xlu1 %3680  ;;  %v7574_v17 = vpop.permute.xlu0 %3684 }
0x1719   :  { %9066 = vst [vmem:[#allocation151_spill] sm:$0xff] %v7572_v18 }
0x171a   :  { %9067 = vst [vmem:[#allocation152_spill] sm:$0xff] %v7574_v17 }
0x1720   :  { %v3710_v28 = vpop.permute.xlu0 %3709 }
0x1721   :  { %v7578_v24 = vpop.permute.xlu1 %3686  ;;  %v3712_v30 = vmul.f32 %v3710_v28, %v8923_v37  ;;  %v3713_v14 = vmul.f32 %v3710_v28, %v5885_v6  ;;  %v3714_v40 = vmul.f32 %v3710_v28, %v5953_v11  ;;  %v3715_v10 = vmul.f32 %v3710_v28, %v5933_v45 }
0x1722   :  { %9069 = vst [vmem:[#allocation154_spill] sm:$0xff] %v7578_v24  ;;  %v3743_v24 = vperm.slane %v5465_v53, 3  ;;  %v3808_v53 = vld [vmem:[%s8693_s6 + $0x118] sm:$0xff] }
0x1729   :  { %v3719_v19 = vpop.permute.xlu1 %3718 }
0x172a   :  { %v3721_v3 = vadd.f32 %v3719_v19, %v3712_v30  ;;  %v3722_v46 = vadd.f32 %v3719_v19, %v3713_v14  ;;  %v3723_v7 = vadd.f32 %v3719_v19, %v3714_v40  ;;  %v3724_v58 = vadd.f32 %v3719_v19, %v3715_v10 }
0x172c   :  { %v3735_v62 = vadd.f32 %v3731_v44, %v3723_v7  ;;  %v3734_v16 = vadd.f32 %v3730_v1, %v3722_v46  ;;  %v3733_v33 = vadd.f32 %v3729_v27, %v3721_v3  ;;  %v3736_v17 = vadd.f32 %v3732_v52, %v3724_v58 }
0x172e   :  { %v3750_v56 = vmul.f32 %v3742_v43, %v3735_v62  ;;  %v3749_v42 = vmul.f32 %v3741_v61, %v3734_v16  ;;  %v3748_v18 = vmul.f32 %v3740_v8, %v3733_v33  ;;  %v3751_v30 = vmul.f32 %v3743_v24, %v3736_v17  ;;  %v5466_v62 = vld [vmem:[%s8694_s7 + $0x83] ss:$8 sm:$0xf] }
0x1730   :  { %3760 = vrot.lane.b32.xlu2 %v3750_v56, %s5662_s4  ;;  %3758 = vrot.lane.b32.xlu1 %v3749_v42, %s5662_s4  ;;  %v3845_v42 = vperm.slane %v5466_v62, 2 }
0x1731   :  { %3756 = vrot.lane.b32.xlu0 %v3748_v18, %s5662_s4  ;;  %v3809_v18 = vld [vmem:[%s8692_s5 + $0x118] sm:$0xff] }
0x1739   :  { %3762 = vrot.lane.b32.xlu0 %v3751_v30, %s5662_s4  ;;  %s5668_s4 = smov 31  }
0x178a   :  { %v3761_v14 = vpop.permute.xlu2 %3760 }
0x17a2   :  { %v3759_v40 = vpop.permute.xlu1 %3758 }
0x17a3   :  { %v3766_v27 = vsel %vm3764_vm14, %v3759_v40, %v3761_v14  ;;  %v3757_v1 = vpop.permute.xlu0 %3756 }
0x17a4   :  { %v3775_v28 = vmul.f32 %v3766_v27, %v8929_v50  ;;  %v3765_v43 = vsel %vm3764_vm14, %v3757_v1, %v3759_v40  ;;  %v3773_v19 = vmul.f32 %v3757_v1, %v8913_v31  ;;  %v3844_v27 = vperm.slane %v5466_v62, 1 }
0x17a5   :  { %v3774_v61 = vmul.f32 %v3765_v43, %v8924_v22  ;;  %v3843_v1 = vperm.slane %v5466_v62, 0 }
0x17a6   :  { %3783 = vrot.lane.b32.xlu1 %v3773_v19, %s5663_s12  ;;  %3787 = vrot.lane.b32.xlu0 %v3775_v28, %s5663_s12 }
0x17a7   :  { %3785 = vrot.lane.b32.xlu2 %v3774_v61, %s5663_s12 }
0x17ab   :  { %v3763_v58 = vpop.permute.xlu0 %3762 }
0x17ac   :  { %v3767_v17 = vsel %vm3764_vm14, %v3761_v14, %v3763_v58  ;;  %v3777_v52 = vmul.f32 0.0, %v3763_v58  ;;  %vm8844_vm14 = vcmask 236544  }
0x17ad   :  { %v3776_v24 = vmul.f32 %v3767_v17, %v8930_v59 }
0x17ae   :  { %3812 = vperm.xlu0 %5569, %v3809_v18  }
0x17af   :  { %3791 = vrot.lane.b32.xlu2 %v3777_v52, %s5663_s12  ;;  %3789 = vrot.lane.b32.xlu1 %v3776_v24, %s5663_s12  ;;  %s5669_s12 = smov 46  }
0x17b7   :  { %3829 = vperm.xlu2 %5572, %v3809_v18   ;;  %3821 = vperm.xlu1 %5571, %v3808_v53  }
0x1801   :  { %v7601_v0 = vpop.permute.xlu2 %3785 }
0x1802   :  { %9070 = vst [vmem:[#allocation155_spill] sm:$0xff] %v7601_v0 }
0x1809   :  { %v7607_v3 = vpop.permute.xlu2 %3791 }
0x180a   :  { %9073 = vst [vmem:[#allocation158_spill] sm:$0xff] %v7607_v3 }
0x1811   :  { %v3830_v16 = vpop.permute.xlu2 %3829 }
0x1812   :  { %v3832_v30 = vmul.f32 %v3830_v16, %v5909_v15  ;;  %v3833_v14 = vmul.f32 %v3830_v16, %v5894_v9  ;;  %v3834_v28 = vmul.f32 %v3830_v16, %v5984_v32  ;;  %v3835_v3 = vmul.f32 %v3830_v16, %v5955_v12 }
0x1818   :  { %v7603_v8 = vpop.permute.xlu1 %3783  ;;  %v7605_v44 = vpop.permute.xlu0 %3787 }
0x1819   :  { %9071 = vst [vmem:[#allocation156_spill] sm:$0xff] %v7603_v8 }
0x181a   :  { %9072 = vst [vmem:[#allocation157_spill] sm:$0xff] %v7605_v44 }
0x1820   :  { %v3813_v7 = vpop.permute.xlu0 %3812 }
0x1821   :  { %v7609_v46 = vpop.permute.xlu1 %3789  ;;  %v3815_v33 = vmul.f32 %v3813_v7, %v8923_v37  ;;  %v3816_v10 = vmul.f32 %v3813_v7, %v5885_v6  ;;  %v3817_v56 = vmul.f32 %v3813_v7, %v5953_v11  ;;  %v3818_v52 = vmul.f32 %v3813_v7, %v5933_v45 }
0x1829   :  { %v3822_v40 = vpop.permute.xlu1 %3821 }
0x182a   :  { %v3824_v43 = vadd.f32 %v3822_v40, %v3815_v33  ;;  %v3825_v19 = vadd.f32 %v3822_v40, %v3816_v10  ;;  %v3826_v61 = vadd.f32 %v3822_v40, %v3817_v56  ;;  %v3827_v0 = vadd.f32 %v3822_v40, %v3818_v52 }
0x182b   :  { %v3846_v10 = vperm.slane %v5466_v62, 3 }
0x182c   :  { %v3838_v58 = vadd.f32 %v3834_v28, %v3826_v61  ;;  %v3837_v18 = vadd.f32 %v3833_v14, %v3825_v19  ;;  %v3836_v17 = vadd.f32 %v3832_v30, %v3824_v43  ;;  %v3839_v33 = vadd.f32 %v3835_v3, %v3827_v0  ;;  %v3911_v43 = vld [vmem:[%s8693_s6 + $0x120] sm:$0xff] }
0x182e   :  { %v3853_v24 = vmul.f32 %v3845_v42, %v3838_v58  ;;  %v3852_v53 = vmul.f32 %v3844_v27, %v3837_v18  ;;  %v3851_v8 = vmul.f32 %v3843_v1, %v3836_v17  ;;  %v3854_v56 = vmul.f32 %v3846_v10, %v3839_v33 }
0x1830   :  { %3863 = vrot.lane.b32.xlu2 %v3853_v24, %s5664_s22  ;;  %3861 = vrot.lane.b32.xlu1 %v3852_v53, %s5664_s22  ;;  %v5467_v24 = vld [vmem:[%s8694_s7 + $0x84] ss:$8 sm:$0xf] }
0x1831   :  { %3859 = vrot.lane.b32.xlu0 %v3851_v8, %s5664_s22  ;;  %v3912_v8 = vld [vmem:[%s8692_s5 + $0x120] sm:$0xff] }
0x1839   :  { %3865 = vrot.lane.b32.xlu0 %v3854_v56, %s5664_s22 }
0x188a   :  { %v3864_v7 = vpop.permute.xlu2 %3863 }
0x18a2   :  { %v3862_v42 = vpop.permute.xlu1 %3861 }
0x18a3   :  { %v3869_v30 = vsel %vm8844_vm14, %v3862_v42, %v3864_v7  ;;  %v3860_v14 = vpop.permute.xlu0 %3859 }
0x18a4   :  { %v3878_v40 = vmul.f32 %v3869_v30, %v8929_v50  ;;  %v3868_v27 = vsel %vm8844_vm14, %v3860_v14, %v3862_v42  ;;  %v3876_v1 = vmul.f32 %v3860_v14, %v8913_v31 }
0x18a5   :  { %v3877_v16 = vmul.f32 %v3868_v27, %v8924_v22  ;;  %v3946_v27 = vperm.slane %v5467_v24, 0 }
0x18a6   :  { %3886 = vrot.lane.b32.xlu1 %v3876_v1, %s5665_s27  ;;  %3890 = vrot.lane.b32.xlu0 %v3878_v40, %s5665_s27  ;;  %v3947_v40 = vperm.slane %v5467_v24, 1 }
0x18a7   :  { %3888 = vrot.lane.b32.xlu2 %v3877_v16, %s5665_s27 }
0x18ab   :  { %v3866_v0 = vpop.permute.xlu0 %3865 }
0x18ac   :  { %v3870_v3 = vsel %vm8844_vm14, %v3864_v7, %v3866_v0  ;;  %v3880_v62 = vmul.f32 0.0, %v3866_v0  ;;  %v3948_v7 = vperm.slane %v5467_v24, 2  ;;  %vm8854_vm14 = vcmask 252928  }
0x18ad   :  { %v3879_v28 = vmul.f32 %v3870_v3, %v8930_v59 }
0x18ae   :  { %3915 = vperm.xlu0 %5569, %v3912_v8  }
0x18af   :  { %3894 = vrot.lane.b32.xlu2 %v3880_v62, %s5665_s27  ;;  %3892 = vrot.lane.b32.xlu1 %v3879_v28, %s5665_s27 }
0x18b7   :  { %3932 = vperm.xlu2 %5572, %v3912_v8   ;;  %3924 = vperm.xlu1 %5571, %v3911_v43  }
0x1901   :  { %v7644_v19 = vpop.permute.xlu2 %3888 }
0x1902   :  { %9074 = vst [vmem:[#allocation159_spill] sm:$0xff] %v7644_v19 }
0x1909   :  { %v7650_v18 = vpop.permute.xlu2 %3894 }
0x190a   :  { %9077 = vst [vmem:[#allocation162_spill] sm:$0xff] %v7650_v18 }
0x1911   :  { %v3933_v53 = vpop.permute.xlu2 %3932 }
0x1912   :  { %v3935_v42 = vmul.f32 %v3933_v53, %v5909_v15  ;;  %v3936_v30 = vmul.f32 %v3933_v53, %v5894_v9  ;;  %v3937_v1 = vmul.f32 %v3933_v53, %v5984_v32 }
0x1918   :  { %v7646_v61 = vpop.permute.xlu1 %3886  ;;  %v7648_v58 = vpop.permute.xlu0 %3890 }
0x1919   :  { %9075 = vst [vmem:[#allocation160_spill] sm:$0xff] %v7646_v61 }
0x191a   :  { %9076 = vst [vmem:[#allocation161_spill] sm:$0xff] %v7648_v58 }
0x1920   :  { %v3916_v52 = vpop.permute.xlu0 %3915 }
0x1921   :  { %v7652_v17 = vpop.permute.xlu1 %3892  ;;  %v3918_v33 = vmul.f32 %v3916_v52, %v8923_v37  ;;  %v3919_v10 = vmul.f32 %v3916_v52, %v5885_v6  ;;  %v3920_v56 = vmul.f32 %v3916_v52, %v5953_v11  ;;  %v3921_v43 = vmul.f32 %v3916_v52, %v5933_v45 }
0x1922   :  { %9078 = vst [vmem:[#allocation163_spill] sm:$0xff] %v7652_v17  ;;  %v3938_v17 = vmul.f32 %v3933_v53, %v5955_v12 }
0x1929   :  { %v3925_v14 = vpop.permute.xlu1 %3924 }
0x192a   :  { %v3927_v16 = vadd.f32 %v3925_v14, %v3918_v33  ;;  %v3928_v0 = vadd.f32 %v3925_v14, %v3919_v10  ;;  %v3929_v8 = vadd.f32 %v3925_v14, %v3920_v56  ;;  %v3930_v58 = vadd.f32 %v3925_v14, %v3921_v43 }
0x192b   :  { %v3949_v10 = vperm.slane %v5467_v24, 3 }
0x192c   :  { %v3941_v3 = vadd.f32 %v3937_v1, %v3929_v8  ;;  %v3940_v62 = vadd.f32 %v3936_v30, %v3928_v0  ;;  %v3939_v28 = vadd.f32 %v3935_v42, %v3927_v16  ;;  %v3942_v33 = vadd.f32 %v3938_v17, %v3930_v58 }
0x192e   :  { %v3956_v61 = vmul.f32 %v3948_v7, %v3941_v3  ;;  %v3955_v19 = vmul.f32 %v3947_v40, %v3940_v62  ;;  %v3954_v18 = vmul.f32 %v3946_v27, %v3939_v28  ;;  %v3957_v56 = vmul.f32 %v3949_v10, %v3942_v33  ;;  %v4014_v27 = vld [vmem:[%s8693_s6 + $0x128] sm:$0xff] }
0x192f   :  { %v5468_v28 = vld [vmem:[%s8694_s7 + $0x85] ss:$8 sm:$0xf] }
0x1930   :  { %3966 = vrot.lane.b32.xlu2 %v3956_v61, %s5666_s28  ;;  %3964 = vrot.lane.b32.xlu1 %v3955_v19, %s5666_s28 }
0x1931   :  { %3962 = vrot.lane.b32.xlu0 %v3954_v18, %s5666_s28  ;;  %v4015_v18 = vld [vmem:[%s8692_s5 + $0x128] sm:$0xff] }
0x1939   :  { %3968 = vrot.lane.b32.xlu0 %v3957_v56, %s5666_s28 }
0x198a   :  { %v3967_v52 = vpop.permute.xlu2 %3966 }
0x19a2   :  { %v3965_v7 = vpop.permute.xlu1 %3964 }
0x19a3   :  { %v3972_v42 = vsel %vm8845_vm0, %v3965_v7, %v3967_v52  ;;  %v3963_v30 = vpop.permute.xlu0 %3962 }
0x19a4   :  { %v3981_v14 = vmul.f32 %v3972_v42, %v8929_v50  ;;  %v3971_v61 = vsel %vm8845_vm0, %v3963_v30, %v3965_v7  ;;  %v3979_v19 = vmul.f32 %v3963_v30, %v8913_v31 }
0x19a5   :  { %v3980_v53 = vmul.f32 %v3971_v61, %v8924_v22  ;;  %v4049_v61 = vperm.slane %v5468_v28, 0 }
0x19a6   :  { %3989 = vrot.lane.b32.xlu1 %v3979_v19, %s5667_s16  ;;  %3993 = vrot.lane.b32.xlu0 %v3981_v14, %s5667_s16  ;;  %v4050_v14 = vperm.slane %v5468_v28, 1 }
0x19a7   :  { %3991 = vrot.lane.b32.xlu2 %v3980_v53, %s5667_s16 }
0x19ab   :  { %v3969_v58 = vpop.permute.xlu0 %3968 }
0x19ac   :  { %v3973_v17 = vsel %vm8845_vm0, %v3967_v52, %v3969_v58  ;;  %v3983_v24 = vmul.f32 0.0, %v3969_v58  ;;  %v4051_v52 = vperm.slane %v5468_v28, 2  ;;  %vm8855_vm0 = vcmask 375808  }
0x19ad   :  { %v3982_v40 = vmul.f32 %v3973_v17, %v8930_v59 }
0x19ae   :  { %4018 = vperm.xlu0 %5569, %v4015_v18  }
0x19af   :  { %3997 = vrot.lane.b32.xlu2 %v3983_v24, %s5667_s16  ;;  %3995 = vrot.lane.b32.xlu1 %v3982_v40, %s5667_s16 }
0x19b7   :  { %4035 = vperm.xlu2 %5572, %v4015_v18   ;;  %4027 = vperm.xlu1 %5571, %v4014_v27  }
0x1a01   :  { %v7687_v1 = vpop.permute.xlu2 %3991 }
0x1a02   :  { %9079 = vst [vmem:[#allocation164_spill] sm:$0xff] %v7687_v1 }
0x1a09   :  { %v7693_v8 = vpop.permute.xlu2 %3997 }
0x1a0a   :  { %9082 = vst [vmem:[#allocation167_spill] sm:$0xff] %v7693_v8 }
0x1a11   :  { %v4036_v43 = vpop.permute.xlu2 %4035 }
0x1a12   :  { %v4038_v7 = vmul.f32 %v4036_v43, %v5909_v15  ;;  %v4039_v42 = vmul.f32 %v4036_v43, %v5894_v9  ;;  %v4040_v19 = vmul.f32 %v4036_v43, %v5984_v32 }
0x1a18   :  { %v7689_v16 = vpop.permute.xlu1 %3989  ;;  %v7691_v0 = vpop.permute.xlu0 %3993 }
0x1a19   :  { %9080 = vst [vmem:[#allocation165_spill] sm:$0xff] %v7689_v16 }
0x1a1a   :  { %9081 = vst [vmem:[#allocation166_spill] sm:$0xff] %v7691_v0 }
0x1a20   :  { %v4019_v62 = vpop.permute.xlu0 %4018 }
0x1a21   :  { %v7695_v3 = vpop.permute.xlu1 %3995  ;;  %v4021_v33 = vmul.f32 %v4019_v62, %v8923_v37  ;;  %v4022_v10 = vmul.f32 %v4019_v62, %v5885_v6  ;;  %v4023_v56 = vmul.f32 %v4019_v62, %v5953_v11  ;;  %v4024_v27 = vmul.f32 %v4019_v62, %v5933_v45 }
0x1a22   :  { %9083 = vst [vmem:[#allocation168_spill] sm:$0xff] %v7695_v3  ;;  %v4041_v3 = vmul.f32 %v4036_v43, %v5955_v12 }
0x1a29   :  { %v4028_v30 = vpop.permute.xlu1 %4027 }
0x1a2a   :  { %v4030_v53 = vadd.f32 %v4028_v30, %v4021_v33  ;;  %v4031_v58 = vadd.f32 %v4028_v30, %v4022_v10  ;;  %v4032_v18 = vadd.f32 %v4028_v30, %v4023_v56  ;;  %v4033_v0 = vadd.f32 %v4028_v30, %v4024_v27  ;;  %v5469_v27 = vld [vmem:[%s8694_s7 + $0x86] ss:$8 sm:$0xf] }
0x1a2b   :  { %v4052_v10 = vperm.slane %v5468_v28, 3 }
0x1a2c   :  { %v4044_v17 = vadd.f32 %v4040_v19, %v4032_v18  ;;  %v4043_v24 = vadd.f32 %v4039_v42, %v4031_v58  ;;  %v4042_v40 = vadd.f32 %v4038_v7, %v4030_v53  ;;  %v4045_v33 = vadd.f32 %v4041_v3, %v4033_v0 }
0x1a2e   :  { %v4059_v16 = vmul.f32 %v4051_v52, %v4044_v17  ;;  %v4058_v1 = vmul.f32 %v4050_v14, %v4043_v24  ;;  %v4057_v8 = vmul.f32 %v4049_v61, %v4042_v40  ;;  %v4060_v56 = vmul.f32 %v4052_v10, %v4045_v33  ;;  %v4117_v61 = vld [vmem:[%s8693_s6 + $0x130] sm:$0xff] }
0x1a30   :  { %4069 = vrot.lane.b32.xlu2 %v4059_v16, %s5668_s4  ;;  %4067 = vrot.lane.b32.xlu1 %v4058_v1, %s5668_s4 }
0x1a31   :  { %4065 = vrot.lane.b32.xlu0 %v4057_v8, %s5668_s4  ;;  %v4118_v8 = vld [vmem:[%s8692_s5 + $0x130] sm:$0xff] }
0x1a39   :  { %4071 = vrot.lane.b32.xlu0 %v4060_v56, %s5668_s4 }
0x1a8a   :  { %v4070_v62 = vpop.permute.xlu2 %4069 }
0x1aa2   :  { %v4068_v52 = vpop.permute.xlu1 %4067 }
0x1aa3   :  { %v4075_v7 = vsel %vm8854_vm14, %v4068_v52, %v4070_v62  ;;  %v4066_v42 = vpop.permute.xlu0 %4065 }
0x1aa4   :  { %v4084_v30 = vmul.f32 %v4075_v7, %v8929_v50  ;;  %v4074_v16 = vsel %vm8854_vm14, %v4066_v42, %v4068_v52  ;;  %v4082_v1 = vmul.f32 %v4066_v42, %v8913_v31  ;;  %v4154_v52 = vperm.slane %v5469_v27, 2 }
0x1aa5   :  { %v4083_v43 = vmul.f32 %v4074_v16, %v8924_v22  ;;  %v4153_v16 = vperm.slane %v5469_v27, 1 }
0x1aa6   :  { %4092 = vrot.lane.b32.xlu1 %v4082_v1, %s5669_s12  ;;  %4096 = vrot.lane.b32.xlu0 %v4084_v30, %s5669_s12  ;;  %v4152_v1 = vperm.slane %v5469_v27, 0 }
0x1aa7   :  { %4094 = vrot.lane.b32.xlu2 %v4083_v43, %s5669_s12 }
0x1aab   :  { %v4072_v0 = vpop.permute.xlu0 %4071 }
0x1aac   :  { %v4076_v3 = vsel %vm8854_vm14, %v4070_v62, %v4072_v0  ;;  %v4086_v28 = vmul.f32 0.0, %v4072_v0  ;;  %vm8856_vm14 = vcmask 261120  }
0x1aad   :  { %v4085_v14 = vmul.f32 %v4076_v3, %v8930_v59 }
0x1aae   :  { %4121 = vperm.xlu0 %5569, %v4118_v8  }
0x1aaf   :  { %4100 = vrot.lane.b32.xlu2 %v4086_v28, %s5669_s12  ;;  %4098 = vrot.lane.b32.xlu1 %v4085_v14, %s5669_s12 }
0x1ab7   :  { %4138 = vperm.xlu2 %5572, %v4118_v8   ;;  %4130 = vperm.xlu1 %5571, %v4117_v61  }
0x1b01   :  { %v7730_v19 = vpop.permute.xlu2 %4094 }
0x1b02   :  { %9084 = vst [vmem:[#allocation169_spill] sm:$0xff] %v7730_v19 }
0x1b09   :  { %v4101_v18 = vpop.permute.xlu2 %4100 }
0x1b11   :  { %v4139_v33 = vpop.permute.xlu2 %4138 }
0x1b12   :  { %v4141_v7 = vmul.f32 %v4139_v33, %v5909_v15  ;;  %v4142_v42 = vmul.f32 %v4139_v33, %v5894_v9  ;;  %v4143_v43 = vmul.f32 %v4139_v33, %v5984_v32  ;;  %v4144_v9 = vmul.f32 %v4139_v33, %v5955_v12 }
0x1b18   :  { %v7732_v53 = vpop.permute.xlu1 %4092  ;;  %v7734_v58 = vpop.permute.xlu0 %4096 }
0x1b19   :  { %9085 = vst [vmem:[#allocation170_spill] sm:$0xff] %v7732_v53 }
0x1b1a   :  { %9086 = vst [vmem:[#allocation171_spill] sm:$0xff] %v7734_v58 }
0x1b20   :  { %v4122_v40 = vpop.permute.xlu0 %4121 }
0x1b21   :  { %v7736_v17 = vpop.permute.xlu1 %4098  ;;  %v4124_v10 = vmul.f32 %v4122_v40, %v8923_v37  ;;  %v4125_v56 = vmul.f32 %v4122_v40, %v5885_v6  ;;  %v4126_v62 = vmul.f32 %v4122_v40, %v5953_v11 }
0x1b22   :  { %v7740_v24 = vsel %vm8855_vm0, %v7736_v17, %v4101_v18  ;;  %v4127_v18 = vmul.f32 %v4122_v40, %v5933_v45  ;;  %vm323_vm0 = vcmask 629760  }
0x1b29   :  { %v4131_v30 = vpop.permute.xlu1 %4130 }
0x1b2a   :  { %v4133_v0 = vadd.f32 %v4131_v30, %v4124_v10  ;;  %v4134_v8 = vadd.f32 %v4131_v30, %v4125_v56  ;;  %v4135_v3 = vadd.f32 %v4131_v30, %v4126_v62  ;;  %v4136_v6 = vadd.f32 %v4131_v30, %v4127_v18 }
0x1b2b   :  { %v4155_v56 = vperm.slane %v5469_v27, 3  ;;  %v640_v18 = vsel %vm636_vm15, %v6809_v47, %v6795_v34 }
0x1b2c   :  { %v4145_v28 = vadd.f32 %v4141_v7, %v4133_v0  ;;  %v4146_v14 = vadd.f32 %v4142_v42, %v4134_v8  ;;  %v4147_v61 = vadd.f32 %v4143_v43, %v4135_v3  ;;  %v4148_v10 = vadd.f32 %v4144_v9, %v4136_v6  ;;  %v4221_v9 = vld [vmem:[%s8692_s5 + $0x138] sm:$0xff] }
0x1b2d   :  { %v326_v43 = vsel %vm323_vm0, %v6569_v60, %v6385_v55  ;;  %v434_v0 = vsel %vm8857_vm13, %v6799_v48, %v6782_v51  ;;  %v336_v3 = vmul.f32 %v6385_v55, %v8930_v59  ;;  %vm842_vm13 = vcmask 1006592  }
0x1b2e   :  { %v4162_v53 = vmul.f32 %v4154_v52, %v4147_v61  ;;  %v4161_v19 = vmul.f32 %v4153_v16, %v4146_v14  ;;  %v4160_v11 = vmul.f32 %v4152_v1, %v4145_v28  ;;  %v4163_v62 = vmul.f32 %v4155_v56, %v4148_v10  ;;  %v4220_v1 = vld [vmem:[%s8693_s6 + $0x138] sm:$0xff] }
0x1b2f   :  { %v335_v8 = vmul.f32 %v326_v43, %v8929_v50  ;;  %v537_v28 = vsel %vm8858_vm8, %v6805_v26, %v6789_v41  ;;  %v444_v61 = vadd.f32 %v6782_v51, %v336_v3  ;;  %v846_v51 = vsel %vm842_vm13, %v6818_v23, %v6807_v20  ;;  %v9089_v3 = vld [vmem:[#allocation52_spill] sm:$0xff] }
0x1b30   :  { %4172 = vrot.lane.b32.xlu2 %v4162_v53, %s5670_s30  ;;  %4170 = vrot.lane.b32.xlu1 %v4161_v19, %s5670_s30  ;;  %vm945_vm8 = vcmask 998400  }
0x1b31   :  { %4168 = vrot.lane.b32.xlu0 %v4160_v11, %s5670_s30  ;;  %v443_v14 = vadd.f32 %v434_v0, %v335_v8  ;;  %v547_v56 = vadd.f32 %v6789_v41, %v444_v61  ;;  %v949_v41 = vsel %vm945_vm8, %v6822_v4, %v6812_v35  ;;  %v9088_v8 = vld [vmem:[#allocation50_spill] sm:$0xff]  ;;  %v9090_v61 = vld [vmem:[#allocation55_spill] sm:$0xff] }
0x1b33   :  { %v546_v10 = vadd.f32 %v537_v28, %v443_v14 }
0x1b35   :  { %v649_v55 = vadd.f32 %v640_v18, %v546_v10  ;;  %v9091_v18 = vld [vmem:[#allocation56_spill] sm:$0xff] }
0x1b39   :  { %4174 = vrot.lane.b32.xlu0 %v4163_v62, %s5670_s30 }
0x1b8a   :  { %v4173_v40 = vpop.permute.xlu2 %4172 }
0x1ba2   :  { %v4171_v52 = vpop.permute.xlu1 %4170 }
0x1ba3   :  { %v4178_v7 = vsel %vm8856_vm14, %v4171_v52, %v4173_v40  ;;  %v4169_v42 = vpop.permute.xlu0 %4168 }
0x1ba4   :  { %v4187_v30 = vmul.f32 %v4178_v7, %v8929_v50  ;;  %v4177_v53 = vsel %vm8856_vm14, %v4169_v42, %v4171_v52  ;;  %v4185_v19 = vmul.f32 %v4169_v42, %v8913_v31 }
0x1ba5   :  { %v4186_v33 = vmul.f32 %v4177_v53, %v8924_v22  ;;  %v1052_v53 = vsel %vm8859_vm7, %v6826_v2, %v6816_v54  ;;  %vm1460_vm7 = vcmask 883712  }
0x1ba6   :  { %4195 = vrot.lane.b32.xlu1 %v4185_v19, %s5671_s1  ;;  %4199 = vrot.lane.b32.xlu0 %v4187_v30, %s5671_s1 }
0x1ba7   :  { %4197 = vrot.lane.b32.xlu2 %v4186_v33, %s5671_s1  ;;  %v1155_v33 = vsel %vm8860_vm6, %v6830_v13, %v6820_v29  ;;  %vm1563_vm6 = vcmask 875520  }
0x1bab   :  { %v4175_v6 = vpop.permute.xlu0 %4174 }
0x1bac   :  { %v4179_v11 = vsel %vm8856_vm14, %v4173_v40, %v4175_v6  ;;  %v4189_v27 = vmul.f32 0.0, %v4175_v6  ;;  %vm739_vm14 = vcmask 1014784   ;;  %v650_v40 = vadd.f32 %v6795_v34, %v547_v56 }
0x1bad   :  { %v4188_v16 = vmul.f32 %v4179_v11, %v8930_v59  ;;  %v743_v62 = vsel %vm739_vm14, %v6814_v49, %v6801_v25 }
0x1bae   :  { %4224 = vperm.xlu0 %5569, %v4221_v9   ;;  %v752_v52 = vadd.f32 %v743_v62, %v649_v55  ;;  %v753_v7 = vadd.f32 %v6801_v25, %v650_v40  ;;  %v9092_v62 = vld [vmem:[#allocation61_spill] sm:$0xff]  ;;  %v9093_v55 = vld [vmem:[#allocation62_spill] sm:$0xff] }
0x1baf   :  { %4203 = vrot.lane.b32.xlu2 %v4189_v27, %s5671_s1  ;;  %4201 = vrot.lane.b32.xlu1 %v4188_v16, %s5671_s1  ;;  %v1361_v27 = vsel %vm1357_vm1, %v6838_v57, %v6828_v5  ;;  %v1771_v40 = vsel %vm8862_vm12, %v9093_v55, %v9092_v62  ;;  %vm2173_vm12 = vcmask 752640  }
0x1bb0   :  { %v855_v42 = vadd.f32 %v846_v51, %v752_v52  ;;  %v856_v30 = vadd.f32 %v6807_v20, %v753_v7  ;;  %v9094_v52 = vld [vmem:[#allocation66_spill] sm:$0xff]  ;;  %v9095_v7 = vld [vmem:[#allocation67_spill] sm:$0xff] }
0x1bb2   :  { %v958_v34 = vadd.f32 %v949_v41, %v855_v42  ;;  %v959_v19 = vadd.f32 %v6812_v35, %v856_v30  ;;  %v1872_v41 = vsel %vm8863_vm11, %v9095_v7, %v9094_v52  ;;  %v9096_v30 = vld [vmem:[#allocation71_spill] sm:$0xff]  ;;  %vm2276_vm11 = vcmask 744448  }
0x1bb4   :  { %v1061_v6 = vadd.f32 %v1052_v53, %v958_v34  ;;  %v1062_v25 = vadd.f32 %v6816_v54, %v959_v19  ;;  %v9097_v53 = vld [vmem:[#allocation72_spill] sm:$0xff] }
0x1bb5   :  { %v1973_v34 = vsel %vm8864_vm10, %v9097_v53, %v9096_v30  ;;  %vm8875_vm10 = vcmask 736256  }
0x1bb6   :  { %v1164_v11 = vadd.f32 %v1155_v33, %v1061_v6  ;;  %v1165_v20 = vadd.f32 %v6820_v29, %v1062_v25  ;;  %v1567_v29 = vsel %vm1563_vm6, %v9089_v3, %v9088_v8  ;;  %v9098_v6 = vld [vmem:[#allocation76_spill] sm:$0xff]  ;;  %v9099_v25 = vld [vmem:[#allocation77_spill] sm:$0xff] }
0x1bb7   :  { %4241 = vperm.xlu2 %5572, %v4221_v9   ;;  %4233 = vperm.xlu1 %5571, %v4220_v1   ;;  %v1258_v9 = vsel %vm8861_vm2, %v6834_v21, %v6824_v63  ;;  %v9087_v1 = vld [vmem:[#allocation51_spill] sm:$0xff]  ;;  %vm1666_vm2 = vcmask 867328  }
0x1bb8   :  { %v1267_v35 = vadd.f32 %v1258_v9, %v1164_v11  ;;  %v1268_v16 = vadd.f32 %v6824_v63, %v1165_v20  ;;  %v1464_v43 = vsel %vm1460_vm7, %v9087_v1, %v6832_v39  ;;  %v1670_v63 = vsel %vm1666_vm2, %v9091_v18, %v9090_v61 }
0x1bb9   :  { %v2074_v9 = vsel %vm1019_vm9, %v9099_v25, %v9098_v6 }
0x1bba   :  { %v1370_v54 = vadd.f32 %v1361_v27, %v1267_v35  ;;  %v1371_v0 = vadd.f32 %v6828_v5, %v1268_v16  ;;  %v9100_v27 = vld [vmem:[#allocation81_spill] sm:$0xff]  ;;  %v9101_v35 = vld [vmem:[#allocation82_spill] sm:$0xff] }
0x1bbb   :  { %v2177_v16 = vsel %vm2173_vm12, %v9101_v35, %v9100_v27 }
0x1bbc   :  { %v1473_v28 = vadd.f32 %v1464_v43, %v1370_v54  ;;  %v1474_v14 = vadd.f32 %v6832_v39, %v1371_v0  ;;  %v9102_v0 = vld [vmem:[#allocation86_spill] sm:$0xff] }
0x1bbe   :  { %v1576_v10 = vadd.f32 %v1567_v29, %v1473_v28  ;;  %v1577_v56 = vadd.f32 %v9088_v8, %v1474_v14  ;;  %v9103_v8 = vld [vmem:[#allocation87_spill] sm:$0xff] }
0x1bbf   :  { %v2280_v29 = vsel %vm2276_vm11, %v9103_v8, %v9102_v0 }
0x1bc0   :  { %v1679_v5 = vadd.f32 %v1670_v63, %v1576_v10  ;;  %v1680_v51 = vadd.f32 %v9090_v61, %v1577_v56  ;;  %v9104_v61 = vld [vmem:[#allocation91_spill] sm:$0xff]  ;;  %v9105_v63 = vld [vmem:[#allocation92_spill] sm:$0xff] }
0x1bc1   :  { %v2383_v10 = vsel %vm8875_vm10, %v9105_v63, %v9104_v61  ;;  %vm8877_vm10 = vcmask 474112  }
0x1bc2   :  { %v1780_v42 = vadd.f32 %v1771_v40, %v1679_v5  ;;  %v1781_v39 = vadd.f32 %v9092_v62, %v1680_v51  ;;  %v9106_v40 = vld [vmem:[#allocation96_spill] sm:$0xff]  ;;  %v9107_v5 = vld [vmem:[#allocation97_spill] sm:$0xff] }
0x1bc3   :  { %v2484_v51 = vsel %vm8865_vm5, %v9107_v5, %v9106_v40  ;;  %vm8868_vm5 = vcmask 621568  }
0x1bc4   :  { %v1881_v19 = vadd.f32 %v1872_v41, %v1780_v42  ;;  %v1882_v33 = vadd.f32 %v9094_v52, %v1781_v39  ;;  %v9108_v42 = vld [vmem:[#allocation101_spill] sm:$0xff]  ;;  %v9109_v39 = vld [vmem:[#allocation102_spill] sm:$0xff] }
0x1bc6   :  { %v1982_v11 = vadd.f32 %v1973_v34, %v1881_v19  ;;  %v1983_v20 = vadd.f32 %v9096_v30, %v1882_v33  ;;  %v2585_v30 = vsel %vm8867_vm4, %v9109_v39, %v9108_v42  ;;  %v9110_v33 = vld [vmem:[#allocation106_spill] sm:$0xff]  ;;  %vm8870_vm4 = vcmask 605184  }
0x1bc8   :  { %v2083_v43 = vadd.f32 %v2074_v9, %v1982_v11  ;;  %v2084_v54 = vadd.f32 %v9098_v6, %v1983_v20  ;;  %v9111_v6 = vld [vmem:[#allocation107_spill] sm:$0xff] }
0x1bc9   :  { %v2686_v9 = vsel %vm8866_vm3, %v9111_v6, %v9110_v33  ;;  %vm8869_vm3 = vcmask 613376  }
0x1bca   :  { %v2186_v28 = vadd.f32 %v2177_v16, %v2083_v43  ;;  %v2187_v14 = vadd.f32 %v9100_v27, %v2084_v54  ;;  %v9112_v27 = vld [vmem:[#allocation110_spill] sm:$0xff] }
0x1bcb   :  { %v2762_v16 = vsel %vm323_vm0, %v9112_v27, %v7297_v38 }
0x1bcc   :  { %v2289_v56 = vadd.f32 %v2280_v29, %v2186_v28  ;;  %v2290_v62 = vadd.f32 %v9102_v0, %v2187_v14  ;;  %v9113_v0 = vld [vmem:[#allocation113_spill] sm:$0xff]  ;;  %v9114_v14 = vld [vmem:[#allocation114_spill] sm:$0xff] }
0x1bcd   :  { %v2869_v29 = vsel %vm8868_vm5, %v9113_v0, %v7328_v36 }
0x1bce   :  { %v2392_v52 = vadd.f32 %v2383_v10, %v2289_v56  ;;  %v2393_v41 = vadd.f32 %v9104_v61, %v2290_v62  ;;  %v2870_v61 = vsel %vm8868_vm5, %v7328_v36, %v9114_v14  ;;  %v9115_v56 = vld [vmem:[#allocation118_spill] sm:$0xff]  ;;  %v9116_v62 = vld [vmem:[#allocation119_spill] sm:$0xff]  ;;  %vm8871_vm5 = vcmask 523264  }
0x1bcf   :  { %v9120_v36 = vld [vmem:[#allocation123_spill] sm:$0xff]  ;;  %v9124_v14 = vld [vmem:[#allocation134_spill] sm:$0xff] }
0x1bd0   :  { %v2493_v34 = vadd.f32 %v2484_v51, %v2392_v52  ;;  %v2494_v19 = vadd.f32 %v9106_v40, %v2393_v41  ;;  %v2972_v40 = vsel %vm8869_vm3, %v9116_v62, %v9115_v56  ;;  %v9117_v52 = vld [vmem:[#allocation117_spill] sm:$0xff] }
0x1bd1   :  { %v2973_v41 = vsel %vm8869_vm3, %v9115_v56, %v9117_v52  ;;  %vm8872_vm3 = vcmask 515072  }
0x1bd2   :  { %v2594_v11 = vadd.f32 %v2585_v30, %v2493_v34  ;;  %v2595_v20 = vadd.f32 %v9108_v42, %v2494_v19  ;;  %v9118_v30 = vld [vmem:[#allocation124_spill] sm:$0xff]  ;;  %v9119_v34 = vld [vmem:[#allocation122_spill] sm:$0xff] }
0x1bd3   :  { %v3075_v19 = vsel %vm8870_vm4, %v9119_v34, %v9118_v30 }
0x1bd4   :  { %v2695_v43 = vadd.f32 %v2686_v9, %v2594_v11  ;;  %v2696_v54 = vadd.f32 %v9110_v33, %v2595_v20  ;;  %v9121_v11 = vld [vmem:[#allocation129_spill] sm:$0xff]  ;;  %v9122_v20 = vld [vmem:[#allocation127_spill] sm:$0xff] }
0x1bd6   :  { %v2771_v28 = vadd.f32 %v2762_v16, %v2695_v43  ;;  %v2772_v10 = vadd.f32 %v7297_v38, %v2696_v54  ;;  %v3076_v38 = vsel %vm8870_vm4, %v9118_v30, %v9120_v36  ;;  %v3178_v16 = vsel %vm8871_vm5, %v9122_v20, %v9121_v11  ;;  %v9123_v54 = vld [vmem:[#allocation128_spill] sm:$0xff] }
0x1bd7   :  { %vm8873_vm4 = vcmask 506880  }
0x1bd8   :  { %v2879_v51 = vadd.f32 %v2869_v29, %v2771_v28  ;;  %v2880_v42 = vadd.f32 %v2870_v61, %v2772_v10  ;;  %v3179_v29 = vsel %vm8871_vm5, %v9121_v11, %v9123_v54  ;;  %v9125_v61 = vld [vmem:[#allocation132_spill] sm:$0xff]  ;;  %vm8874_vm5 = vcmask 498688   ;;  %v9131_v11 = vld [vmem:[#allocation142_spill] sm:$0xff]  ;;  %v9132_v54 = vld [vmem:[#allocation143_spill] sm:$0xff] }
0x1bd9   :  { %v3281_v10 = vsel %vm8872_vm3, %v9125_v61, %v9124_v14 }
0x1bda   :  { %v2982_v33 = vadd.f32 %v2972_v40, %v2879_v51  ;;  %v2983_v9 = vadd.f32 %v2973_v41, %v2880_v42  ;;  %v9126_v40 = vld [vmem:[#allocation133_spill] sm:$0xff]  ;;  %v9127_v41 = vld [vmem:[#allocation139_spill] sm:$0xff] }
0x1bdb   :  { %v3282_v51 = vsel %vm8872_vm3, %v9124_v14, %v9126_v40  ;;  %v9128_v42 = vld [vmem:[#allocation137_spill] sm:$0xff]  ;;  %vm8876_vm3 = vcmask 490496  }
0x1bdc   :  { %v3085_v43 = vadd.f32 %v3075_v19, %v2982_v33  ;;  %v3086_v28 = vadd.f32 %v3076_v38, %v2983_v9  ;;  %v3384_v30 = vsel %vm8873_vm4, %v9128_v42, %v9127_v41  ;;  %v9129_v33 = vld [vmem:[#allocation138_spill] sm:$0xff]  ;;  %v9130_v9 = vld [vmem:[#allocation144_spill] sm:$0xff]  ;;  %v9133_v40 = vld [vmem:[#allocation149_spill] sm:$0xff] }
0x1bdd   :  { %v3385_v36 = vsel %vm8873_vm4, %v9127_v41, %v9129_v33  ;;  %v9135_v41 = vld [vmem:[#allocation148_spill] sm:$0xff]  ;;  %vm8880_vm4 = vcmask 482304   ;;  %v9136_v33 = vld [vmem:[#allocation154_spill] sm:$0xff] }
0x1bde   :  { %v3188_v56 = vadd.f32 %v3178_v16, %v3085_v43  ;;  %v3189_v52 = vadd.f32 %v3179_v29, %v3086_v28  ;;  %v3487_v16 = vsel %vm8874_vm5, %v9131_v11, %v9130_v9  ;;  %v3488_v29 = vsel %vm8874_vm5, %v9130_v9, %v9132_v54  ;;  %v9138_v9 = vld [vmem:[#allocation153_spill] sm:$0xff] }
0x1bdf   :  { %vm8887_vm5 = vcmask 367616  }
0x1be0   :  { %v3291_v19 = vadd.f32 %v3281_v10, %v3188_v56  ;;  %v3292_v38 = vadd.f32 %v3282_v51, %v3189_v52  ;;  %v9134_v10 = vld [vmem:[#allocation147_spill] sm:$0xff]  ;;  %v3591_v51 = vsel %vm8876_vm3, %v9133_v40, %v9135_v41 }
0x1be1   :  { %v3590_v56 = vsel %vm8876_vm3, %v9134_v10, %v9133_v40  ;;  %vm8889_vm3 = vcmask 392192  }
0x1be2   :  { %v3394_v43 = vadd.f32 %v3384_v30, %v3291_v19  ;;  %v3395_v14 = vadd.f32 %v3385_v36, %v3292_v38  ;;  %v9137_v30 = vld [vmem:[#allocation152_spill] sm:$0xff]  ;;  %v3694_v36 = vsel %vm8880_vm4, %v9136_v33, %v9138_v9 }
0x1be3   :  { %v3693_v19 = vsel %vm8880_vm4, %v9137_v30, %v9136_v33  ;;  %v9145_v33 = vld [vmem:[#allocation162_spill] sm:$0xff]  ;;  %vm9149_vm4 = vcmask 375808  }
0x1be4   :  { %v3497_v42 = vadd.f32 %v3487_v16, %v3394_v43  ;;  %v3498_v52 = vadd.f32 %v3488_v29, %v3395_v14  ;;  %v3796_v16 = vsel %vm8877_vm10, %v7605_v44, %v7609_v46  ;;  %v9139_v43 = vld [vmem:[#allocation158_spill] sm:$0xff] }
0x1be5   :  { %v3797_v29 = vsel %vm8877_vm10, %v7609_v46, %v9139_v43  ;;  %vm8888_vm10 = vcmask 384000  }
0x1be6   :  { %v3600_v11 = vadd.f32 %v3590_v56, %v3497_v42  ;;  %v3601_v38 = vadd.f32 %v3591_v51, %v3498_v52  ;;  %v9144_v51 = vld [vmem:[#allocation161_spill] sm:$0xff] }
0x1be8   :  { %v3703_v54 = vadd.f32 %v3693_v19, %v3600_v11  ;;  %v3704_v42 = vadd.f32 %v3694_v36, %v3601_v38  ;;  %v9143_v11 = vld [vmem:[#allocation163_spill] sm:$0xff]  ;;  %v9146_v36 = vld [vmem:[#allocation168_spill] sm:$0xff]  ;;  %v9147_v38 = vld [vmem:[#allocation166_spill] sm:$0xff] }
0x1be9   :  { %v3899_v52 = vsel %vm8889_vm3, %v9144_v51, %v9143_v11  ;;  %v3900_v46 = vsel %vm8889_vm3, %v9143_v11, %v9145_v33  ;;  %v4002_v43 = vsel %vm8888_vm10, %v9147_v38, %v9146_v36  ;;  %v4105_v51 = vsel %vm9149_vm4, %v7734_v58, %v7736_v17 }
0x1bea   :  { %v3806_v19 = vadd.f32 %v3796_v16, %v3703_v54  ;;  %v3807_v9 = vadd.f32 %v3797_v29, %v3704_v42  ;;  %vm4279_vm4 = vcmask 269312   ;;  %vm9165_vm3 = vcmask 1031168  }
0x1bec   :  { %v3910_v44 = vadd.f32 %v3900_v46, %v3807_v9  ;;  %v5470_v46 = vld [vmem:[%s8694_s7 + $0x87] ss:$8 sm:$0xf] }
0x1c01   :  { %v4198_v28 = vpop.permute.xlu2 %4197 }
0x1c18   :  { %v7937_v14 = vpop.permute.xlu1 %4195  ;;  %v4200_v40 = vpop.permute.xlu0 %4199 }
0x1c19   :  { %9140 = vst [vmem:[#allocation51_spill] sm:$0xff] %v7937_v14  ;;  %v7941_v56 = vsel %vm8887_vm5, %v7937_v14, %v4198_v28  ;;  %v7944_v41 = vsel %vm8887_vm5, %v4198_v28, %v4200_v40  ;;  %v9148_v14 = vld [vmem:[#allocation167_spill] sm:$0xff] }
0x1c1a   :  { %9141 = vst [vmem:[#allocation50_spill] sm:$0xff] %v7941_v56  ;;  %v4003_v28 = vsel %vm8888_vm10, %v9146_v36, %v9148_v14  ;;  %v3909_v56 = vadd.f32 %v3899_v52, %v3806_v19  ;;  %v4257_v19 = vperm.slane %v5470_v46, 2 }
0x1c1b   :  { %9142 = vst [vmem:[#allocation52_spill] sm:$0xff] %v7944_v41  ;;  %v4204_v41 = vpop.permute.xlu2 %4203  ;;  %v4013_v11 = vadd.f32 %v4003_v28, %v3910_v44  ;;  %v4255_v28 = vperm.slane %v5470_v46, 0 }
0x1c1c   :  { %v4012_v30 = vadd.f32 %v4002_v43, %v3909_v56  ;;  %v4256_v43 = vperm.slane %v5470_v46, 1 }
0x1c1d   :  { %v4116_v16 = vadd.f32 %v7740_v24, %v4013_v11  ;;  %v9153_v24 = vld [vmem:[#allocation14_spill] sm:$0xff] }
0x1c1e   :  { %v4115_v54 = vadd.f32 %v4105_v51, %v4012_v30  ;;  %v9152_v30 = vld [vmem:[#allocation11_spill] sm:$0xff] }
0x1c20   :  { %v4225_v52 = vpop.permute.xlu0 %4224 }
0x1c21   :  { %v4202_v29 = vpop.permute.xlu1 %4201  ;;  %v4227_v44 = vmul.f32 %v4225_v52, %v8923_v37  ;;  %v4228_v56 = vmul.f32 %v4225_v52, %v9152_v30  ;;  %v4229_v51 = vmul.f32 %v4225_v52, %v9153_v24  ;;  %v4230_v30 = vmul.f32 %v4225_v52, %v5933_v45 }
0x1c22   :  { %v4208_v42 = vsel %vm8887_vm5, %v4200_v40, %v4202_v29  ;;  %v4209_v33 = vsel %vm8887_vm5, %v4202_v29, %v4204_v41  ;;  %v9154_v41 = vld [vmem:[#allocation12_spill] sm:$0xff] }
0x1c23   :  { %v7964_v38 = vadd.f32 %v4208_v42, %v4115_v54  ;;  %v7966_v14 = vadd.f32 %v4209_v33, %v4116_v16  ;;  %v4242_v17 = vpop.permute.xlu2 %4241 }
0x1c24   :  { %v4244_v40 = vmul.f32 %v4242_v17, %v5909_v15  ;;  %v4245_v9 = vmul.f32 %v4242_v17, %v9154_v41  ;;  %v4246_v11 = vmul.f32 %v4242_v17, %v5984_v32  ;;  %v4247_v41 = vmul.f32 %v4242_v17, %v5955_v12  ;;  %v4323_v17 = vld [vmem:[%s8693_s6 + $0x140] sm:$0xff] }
0x1c25   :  { %9150 = vst [vmem:[#allocation55_spill] sm:$0xff] %v7964_v38  ;;  %v4258_v32 = vperm.slane %v5470_v46, 3 }
0x1c26   :  { %9151 = vst [vmem:[#allocation56_spill] sm:$0xff] %v7966_v14 }
0x1c29   :  { %v4234_v36 = vpop.permute.xlu1 %4233 }
0x1c2a   :  { %v4236_v54 = vadd.f32 %v4234_v36, %v4227_v44  ;;  %v4237_v16 = vadd.f32 %v4234_v36, %v4228_v56  ;;  %v4238_v29 = vadd.f32 %v4234_v36, %v4229_v51  ;;  %v4239_v58 = vadd.f32 %v4234_v36, %v4230_v30 }
0x1c2c   :  { %v4248_v42 = vadd.f32 %v4244_v40, %v4236_v54  ;;  %v4249_v33 = vadd.f32 %v4245_v9, %v4237_v16  ;;  %v4250_v37 = vadd.f32 %v4246_v11, %v4238_v29  ;;  %v4251_v15 = vadd.f32 %v4247_v41, %v4239_v58  ;;  %v9160_v16 = vld [vmem:[#allocation21_spill] sm:$0xff] }
0x1c2e   :  { %v4265_v14 = vmul.f32 %v4257_v19, %v4250_v37  ;;  %v4264_v24 = vmul.f32 %v4256_v43, %v4249_v33  ;;  %v4263_v38 = vmul.f32 %v4255_v28, %v4248_v42  ;;  %v4266_v44 = vmul.f32 %v4258_v32, %v4251_v15  ;;  %v4324_v15 = vld [vmem:[%s8692_s5 + $0x140] sm:$0xff]  ;;  %v9156_v19 = vld [vmem:[#allocation16_spill] sm:$0xff]  ;;  %v9157_v43 = vld [vmem:[#allocation18_spill] sm:$0xff] }
0x1c2f   :  { %v9158_v28 = vld [vmem:[#allocation19_spill] sm:$0xff]  ;;  %v332_v54 = vmul.f32 0.0, %v9156_v19 }
0x1c30   :  { %4275 = vrot.lane.b32.xlu2 %v4265_v14, %s5672_s25  ;;  %4273 = vrot.lane.b32.xlu1 %v4264_v24, %s5672_s25  ;;  %v9155_v24 = vld [vmem:[#allocation26_spill] sm:$0xff] }
0x1c31   :  { %4271 = vrot.lane.b32.xlu0 %v4263_v38, %s5672_s25  ;;  %v324_v41 = vsel %vm323_vm0, %v9156_v19, %v9155_v24  ;;  %v325_v36 = vsel %vm323_vm0, %v9155_v24, %v6569_v60  ;;  %v9164_v60 = vld [vmem:[#allocation20_spill] sm:$0xff]  ;;  %v9172_v24 = vld [vmem:[#allocation22_spill] sm:$0xff] }
0x1c32   :  { %v333_v33 = vmul.f32 %v324_v41, %v8913_v31  ;;  %v9173_v19 = vld [vmem:[#allocation8_spill] sm:$0xff] }
0x1c33   :  { %v740_v41 = vsel %vm739_vm14, %v9173_v19, %v9172_v24 }
0x1c39   :  { %4277 = vrot.lane.b32.xlu0 %v4266_v44, %s5672_s25  ;;  %v334_v44 = vmul.f32 %v325_v36, %v8924_v22  ;;  %s5676_s25 = smov 35  }
0x1c8a   :  { %v4276_v56 = vpop.permute.xlu2 %4275 }
0x1ca2   :  { %v4274_v51 = vpop.permute.xlu1 %4273 }
0x1ca3   :  { %v4281_v40 = vsel %vm4279_vm4, %v4274_v51, %v4276_v56  ;;  %v4272_v9 = vpop.permute.xlu0 %4271 }
0x1ca4   :  { %v4290_v37 = vmul.f32 %v4281_v40, %v8929_v50  ;;  %v4280_v52 = vsel %vm4279_vm4, %v4272_v9, %v4274_v51  ;;  %v4288_v30 = vmul.f32 %v4272_v9, %v8913_v31  ;;  %v9166_v9 = vld [vmem:[#allocation25_spill] sm:$0xff] }
0x1ca5   :  { %v4289_v14 = vmul.f32 %v4280_v52, %v8924_v22 }
0x1ca6   :  { %4298 = vrot.lane.b32.xlu1 %v4288_v30, %s5673_s26  ;;  %4302 = vrot.lane.b32.xlu0 %v4290_v37, %s5673_s26  ;;  %v9169_v30 = vld [vmem:[#allocation17_spill] sm:$0xff] }
0x1ca7   :  { %4300 = vrot.lane.b32.xlu2 %v4289_v14, %s5673_s26  ;;  %v9170_v14 = vld [vmem:[#allocation24_spill] sm:$0xff] }
0x1cab   :  { %v4278_v58 = vpop.permute.xlu0 %4277 }
0x1cac   :  { %v4282_v32 = vsel %vm4279_vm4, %v4276_v56, %v4278_v58  ;;  %v4292_v38 = vmul.f32 0.0, %v4278_v58  ;;  %vm9159_vm4 = vcmask 1039360   ;;  %v9163_v56 = vld [vmem:[#allocation6_spill] sm:$0xff] }
0x1cad   :  { %v4291_v46 = vmul.f32 %v4282_v32, %v8930_v59  ;;  %v431_v11 = vsel %vm9159_vm4, %v9158_v28, %v9157_v43  ;;  %vm9161_vm5 = vmmov %vm9159_vm4  ;;  %v534_v51 = vsel %vm9165_vm3, %v9164_v60, %v9163_v56  ;;  %v9174_v28 = vld [vmem:[#allocation29_spill] sm:$0xff] }
0x1cae   :  { %4327 = vperm.xlu0 %5569, %v4324_v15   ;;  %v432_v29 = vsel %vm9161_vm5, %v9157_v43, %v9160_v16  ;;  %vm9162_vm10 = vmmov %vm9159_vm4  ;;  %v440_v40 = vadd.f32 %v431_v11, %v332_v54  ;;  %v741_v11 = vsel %vm739_vm14, %v9172_v24, %v9174_v28  ;;  %v742_v54 = vsel %vm739_vm14, %v9174_v28, %v6814_v49  ;;  %v9184_v24 = vld [vmem:[#allocation38_spill] sm:$0xff] }
0x1caf   :  { %4306 = vrot.lane.b32.xlu2 %v4292_v38, %s5673_s26  ;;  %4304 = vrot.lane.b32.xlu1 %v4291_v46, %s5673_s26  ;;  %v433_v42 = vsel %vm9162_vm10, %v9160_v16, %v6799_v48  ;;  %vm9167_vm4 = vmmov %vm9165_vm3  ;;  %v637_v48 = vsel %vm636_vm15, %v9170_v14, %v9169_v30  ;;  %v441_v58 = vadd.f32 %v432_v29, %v333_v33  ;;  %v9171_v38 = vld [vmem:[#allocation9_spill] sm:$0xff]  ;;  %v9175_v16 = vld [vmem:[#allocation23_spill] sm:$0xff]  ;;  %s5677_s26 = smov 42  }
0x1cb0   :  { %v535_v37 = vsel %vm9167_vm4, %v9163_v56, %v9166_v9  ;;  %vm9168_vm5 = vmmov %vm9165_vm3  ;;  %v543_v32 = vadd.f32 %v534_v51, %v440_v40  ;;  %v638_v46 = vsel %vm636_vm15, %v9169_v30, %v9171_v38  ;;  %v9176_v29 = vld [vmem:[#allocation28_spill] sm:$0xff]  ;;  %v9178_v40 = vld [vmem:[#allocation7_spill] sm:$0xff]  ;;  %vm9183_vm3 = vcmask 916480  }
0x1cb1   :  { %v536_v52 = vsel %vm9168_vm5, %v9166_v9, %v6805_v26  ;;  %v544_v26 = vadd.f32 %v535_v37, %v441_v58  ;;  %v9177_v56 = vld [vmem:[#allocation32_spill] sm:$0xff]  ;;  %v9179_v9 = vld [vmem:[#allocation31_spill] sm:$0xff]  ;;  %vm9185_vm10 = vmmov %vm9183_vm3  ;;  %vm9195_vm4 = vcmask 900096  }
0x1cb2   :  { %v646_v43 = vadd.f32 %v637_v48, %v543_v32  ;;  %v844_v60 = vsel %vm842_vm13, %v9175_v16, %v9177_v56  ;;  %v845_v51 = vsel %vm842_vm13, %v9177_v56, %v6818_v23  ;;  %v946_v37 = vsel %vm945_vm8, %v9179_v9, %v9178_v40  ;;  %v9180_v14 = vld [vmem:[#allocation35_spill] sm:$0xff]  ;;  %v9182_v32 = vld [vmem:[#allocation34_spill] sm:$0xff]  ;;  %vm9197_vm5 = vmmov %vm9195_vm4 }
0x1cb3   :  { %v947_v48 = vsel %vm945_vm8, %v9178_v40, %v9180_v14  ;;  %v948_v58 = vsel %vm945_vm8, %v9180_v14, %v6822_v4  ;;  %v9199_v9 = vld [vmem:[#allocation36_spill] sm:$0xff]  ;;  %v9201_v14 = vld [vmem:[#allocation46_spill] sm:$0xff] }
0x1cb7   :  { %4344 = vperm.xlu2 %5572, %v4324_v15   ;;  %4336 = vperm.xlu1 %5571, %v4323_v17   ;;  %v442_v15 = vadd.f32 %v433_v42, %v334_v44  ;;  %v639_v17 = vsel %vm636_vm15, %v9171_v38, %v6809_v47  ;;  %v843_v42 = vsel %vm842_vm13, %v9176_v29, %v9175_v16  ;;  %vm9186_vm15 = vmmov %vm9183_vm3  ;;  %vm9189_vm13 = vcmask 908288  }
0x1cb8   :  { %v647_v47 = vadd.f32 %v638_v46, %v544_v26  ;;  %v749_v44 = vadd.f32 %v740_v41, %v646_v43  ;;  %v1051_v41 = vsel %vm9186_vm15, %v9184_v24, %v6826_v2  ;;  %v9187_v26 = vld [vmem:[#allocation30_spill] sm:$0xff]  ;;  %vm9191_vm8 = vmmov %vm9189_vm13 }
0x1cb9   :  { %v545_v36 = vadd.f32 %v536_v52, %v442_v15  ;;  %v9181_v15 = vld [vmem:[#allocation27_spill] sm:$0xff]  ;;  %vm9192_vm14 = vmmov %vm9191_vm8 }
0x1cba   :  { %v750_v49 = vadd.f32 %v741_v11, %v647_v47  ;;  %v852_v30 = vadd.f32 %v843_v42, %v749_v44  ;;  %v1049_v38 = vsel %vm9183_vm3, %v9182_v32, %v9181_v15  ;;  %v1050_v19 = vsel %vm9185_vm10, %v9181_v15, %v9184_v24  ;;  %v9193_v42 = vld [vmem:[#allocation33_spill] sm:$0xff]  ;;  %v9194_v47 = vld [vmem:[#allocation40_spill] sm:$0xff]  ;;  %vm9198_vm3 = vmmov %vm9195_vm4 }
0x1cbb   :  { %v648_v33 = vadd.f32 %v639_v17, %v545_v36  ;;  %v9188_v36 = vld [vmem:[#allocation37_spill] sm:$0xff]  ;;  %v9202_v15 = vld [vmem:[#allocation39_spill] sm:$0xff] }
0x1cbc   :  { %v853_v23 = vadd.f32 %v844_v60, %v750_v49  ;;  %v955_v17 = vadd.f32 %v946_v37, %v852_v30  ;;  %v1152_v43 = vsel %vm9189_vm13, %v9188_v36, %v9187_v26  ;;  %v9196_v60 = vld [vmem:[#allocation44_spill] sm:$0xff]  ;;  %v9200_v37 = vld [vmem:[#allocation43_spill] sm:$0xff]  ;;  %v9203_v32 = vld [vmem:[#allocation45_spill] sm:$0xff]  ;;  %vm9225_vm13 = vcmask 769024  }
0x1cbd   :  { %v751_v52 = vadd.f32 %v742_v54, %v648_v33  ;;  %v9190_v54 = vld [vmem:[#allocation41_spill] sm:$0xff]  ;;  %v1255_v33 = vsel %vm9195_vm4, %v9194_v47, %v9193_v42  ;;  %v1257_v40 = vsel %vm9198_vm3, %v9196_v60, %v6834_v21  ;;  %v1358_v49 = vsel %vm1357_vm1, %v9200_v37, %v9199_v9  ;;  %v9206_v36 = vld [vmem:[#allocation47_spill] sm:$0xff]  ;;  %v9209_v47 = vld [vmem:[#allocation54_spill] sm:$0xff] }
0x1cbe   :  { %v956_v4 = vadd.f32 %v947_v48, %v853_v23  ;;  %v1058_v11 = vadd.f32 %v1049_v38, %v955_v17  ;;  %v1153_v16 = vsel %vm9191_vm8, %v9187_v26, %v9190_v54  ;;  %v1154_v29 = vsel %vm9192_vm14, %v9190_v54, %v6830_v13  ;;  %v9204_v17 = vld [vmem:[#allocation48_spill] sm:$0xff]  ;;  %v9205_v26 = vld [vmem:[#allocation42_spill] sm:$0xff]  ;;  %vm9227_vm8 = vmmov %vm9225_vm13 }
0x1cbf   :  { %v854_v46 = vadd.f32 %v845_v51, %v751_v52  ;;  %v1256_v51 = vsel %vm9197_vm5, %v9193_v42, %v9196_v60  ;;  %v1359_v48 = vsel %vm1357_vm1, %v9199_v9, %v9201_v14  ;;  %v1461_v38 = vsel %vm1460_vm7, %v9203_v32, %v9202_v15  ;;  %v9208_v42 = vld [vmem:[#allocation53_spill] sm:$0xff]  ;;  %v9212_v9 = vld [vmem:[#allocation59_spill] sm:$0xff]  ;;  %vm9228_vm14 = vmmov %vm9227_vm8 }
0x1cc0   :  { %v1059_v2 = vadd.f32 %v1050_v19, %v956_v4  ;;  %v1161_v56 = vadd.f32 %v1152_v43, %v1058_v11  ;;  %v1462_v24 = vsel %vm1460_vm7, %v9202_v15, %v9204_v17  ;;  %v1463_v19 = vsel %vm1460_vm7, %v9204_v17, %v9087_v1  ;;  %v9220_v32 = vld [vmem:[#allocation65_spill] sm:$0xff]  ;;  %v9223_v17 = vld [vmem:[#allocation68_spill] sm:$0xff] }
0x1cc1   :  { %v957_v28 = vadd.f32 %v948_v58, %v854_v46  ;;  %v1360_v58 = vsel %vm1357_vm1, %v9201_v14, %v6838_v57  ;;  %v1564_v57 = vsel %vm1563_vm6, %v9206_v36, %v9205_v26  ;;  %v1667_v1 = vsel %vm1666_vm2, %v9209_v47, %v9208_v42 }
0x1cc2   :  { %v1162_v13 = vadd.f32 %v1153_v16, %v1059_v2  ;;  %v1264_v30 = vadd.f32 %v1255_v33, %v1161_v56  ;;  %v9210_v2 = vld [vmem:[#allocation57_spill] sm:$0xff]  ;;  %vm9213_vm1 = vcmask 785408  }
0x1cc3   :  { %v1060_v44 = vadd.f32 %v1051_v41, %v957_v28  ;;  %v9207_v28 = vld [vmem:[#allocation49_spill] sm:$0xff]  ;;  %v1669_v56 = vsel %vm1666_vm2, %v9210_v2, %v9091_v18  ;;  %vm9216_vm7 = vmmov %vm9213_vm1 }
0x1cc4   :  { %v1265_v21 = vadd.f32 %v1256_v51, %v1162_v13  ;;  %v1367_v46 = vadd.f32 %v1358_v49, %v1264_v30  ;;  %v1565_v11 = vsel %vm1563_vm6, %v9205_v26, %v9207_v28  ;;  %v1566_v54 = vsel %vm1563_vm6, %v9207_v28, %v9089_v3  ;;  %v9214_v49 = vld [vmem:[#allocation60_spill] sm:$0xff]  ;;  %vm9215_vm6 = vmmov %vm9213_vm1  ;;  %v9230_v28 = vld [vmem:[#allocation74_spill] sm:$0xff] }
0x1cc5   :  { %v1163_v52 = vadd.f32 %v1154_v29, %v1060_v44  ;;  %v1668_v44 = vsel %vm1666_vm2, %v9208_v42, %v9210_v2  ;;  %vm9219_vm2 = vcmask 777216  }
0x1cc6   :  { %v1368_v41 = vadd.f32 %v1359_v48, %v1265_v21  ;;  %v1470_v4 = vadd.f32 %v1461_v38, %v1367_v46  ;;  %v9217_v48 = vld [vmem:[#allocation63_spill] sm:$0xff]  ;;  %vm9221_vm10 = vmmov %vm9219_vm2 }
0x1cc7   :  { %v1266_v23 = vadd.f32 %v1257_v40, %v1163_v52  ;;  %v9211_v40 = vld [vmem:[#allocation58_spill] sm:$0xff]  ;;  %v1770_v52 = vsel %vm9216_vm7, %v9214_v49, %v9093_v55  ;;  %v1870_v38 = vsel %vm9221_vm10, %v9217_v48, %v9220_v32  ;;  %vm9222_vm15 = vmmov %vm9219_vm2 }
0x1cc8   :  { %v1471_v16 = vadd.f32 %v1462_v24, %v1368_v41  ;;  %v1573_v33 = vadd.f32 %v1564_v57, %v1470_v4  ;;  %v1768_v3 = vsel %vm9213_vm1, %v9212_v9, %v9211_v40  ;;  %v1769_v13 = vsel %vm9215_vm6, %v9211_v40, %v9214_v49  ;;  %v9224_v24 = vld [vmem:[#allocation69_spill] sm:$0xff]  ;;  %v9226_v41 = vld [vmem:[#allocation70_spill] sm:$0xff]  ;;  %v9235_v9 = vld [vmem:[#allocation83_spill] sm:$0xff] }
0x1cc9   :  { %v1369_v43 = vadd.f32 %v1360_v58, %v1266_v23  ;;  %v9218_v58 = vld [vmem:[#allocation64_spill] sm:$0xff]  ;;  %v1871_v21 = vsel %vm9222_vm15, %v9220_v32, %v9095_v7  ;;  %v1970_v55 = vsel %vm9225_vm13, %v9224_v24, %v9223_v17  ;;  %v1971_v26 = vsel %vm9227_vm8, %v9223_v17, %v9226_v41  ;;  %v9229_v4 = vld [vmem:[#allocation73_spill] sm:$0xff]  ;;  %v9245_v17 = vld [vmem:[#allocation94_spill] sm:$0xff] }
0x1cca   :  { %v1574_v60 = vadd.f32 %v1565_v11, %v1471_v16  ;;  %v1676_v37 = vadd.f32 %v1667_v1, %v1573_v33  ;;  %v1869_v18 = vsel %vm9219_vm2, %v9218_v58, %v9217_v48  ;;  %v1972_v36 = vsel %vm9228_vm14, %v9226_v41, %v9097_v53  ;;  %v9232_v1 = vld [vmem:[#allocation78_spill] sm:$0xff]  ;;  %v9233_v33 = vld [vmem:[#allocation79_spill] sm:$0xff]  ;;  %v9237_v49 = vld [vmem:[#allocation85_spill] sm:$0xff] }
0x1ccb   :  { %v1472_v29 = vadd.f32 %v1463_v19, %v1369_v43  ;;  %v2071_v7 = vsel %vm1019_vm9, %v9230_v28, %v9229_v4  ;;  %v2174_v53 = vsel %vm2173_vm12, %v9233_v33, %v9232_v1  ;;  %v9238_v48 = vld [vmem:[#allocation88_spill] sm:$0xff]  ;;  %v9239_v58 = vld [vmem:[#allocation89_spill] sm:$0xff]  ;;  %vm9252_vm1 = vcmask 646144  }
0x1ccc   :  { %v1677_v30 = vadd.f32 %v1668_v44, %v1574_v60  ;;  %v1777_v15 = vadd.f32 %v1768_v3, %v1676_v37  ;;  %v9234_v44 = vld [vmem:[#allocation80_spill] sm:$0xff]  ;;  %vm9254_vm6 = vmmov %vm9252_vm1  ;;  %vm9258_vm2 = vcmask 637952   ;;  %vm9266_vm13 = vcmask 621568  }
0x1ccd   :  { %v1575_v51 = vadd.f32 %v1566_v54, %v1472_v29  ;;  %v9231_v54 = vld [vmem:[#allocation75_spill] sm:$0xff]  ;;  %v2176_v60 = vsel %vm2173_vm12, %v9234_v44, %v9101_v35  ;;  %v9236_v3 = vld [vmem:[#allocation84_spill] sm:$0xff]  ;;  %vm9255_vm7 = vmmov %vm9252_vm1  ;;  %vm9270_vm14 = vcmask 613376  }
0x1cce   :  { %v1778_v23 = vadd.f32 %v1769_v13, %v1677_v30  ;;  %v1878_v19 = vadd.f32 %v1869_v18, %v1777_v15  ;;  %v2072_v16 = vsel %vm1019_vm9, %v9229_v4, %v9231_v54  ;;  %v2073_v29 = vsel %vm1019_vm9, %v9231_v54, %v9099_v25  ;;  %v9241_v15 = vld [vmem:[#allocation90_spill] sm:$0xff]  ;;  %v9253_v28 = vld [vmem:[#allocation100_spill] sm:$0xff]  ;;  %vm9260_vm10 = vmmov %vm9258_vm2 }
0x1ccf   :  { %v1678_v14 = vadd.f32 %v1669_v56, %v1575_v51  ;;  %v2175_v56 = vsel %vm2173_vm12, %v9232_v1, %v9234_v44  ;;  %v2277_v25 = vsel %vm2276_vm11, %v9236_v3, %v9235_v9  ;;  %v2278_v13 = vsel %vm2276_vm11, %v9235_v9, %v9237_v49  ;;  %v9259_v1 = vld [vmem:[#allocation105_spill] sm:$0xff]  ;;  %vm9261_vm15 = vmmov %vm9258_vm2 }
0x1cd0   :  { %v1879_v57 = vadd.f32 %v1870_v38, %v1778_v23  ;;  %v1979_v11 = vadd.f32 %v1970_v55, %v1878_v19  ;;  %vm9240_vm9 = vcmask 736256   ;;  %v9247_v55 = vld [vmem:[#allocation95_spill] sm:$0xff]  ;;  %vm9267_vm8 = vmmov %vm9266_vm13 }
0x1cd1   :  { %v1779_v46 = vadd.f32 %v1770_v52, %v1678_v14  ;;  %v2279_v52 = vsel %vm2276_vm11, %v9237_v49, %v9103_v8  ;;  %v2380_v35 = vsel %vm9240_vm9, %v9239_v58, %v9238_v48  ;;  %vm9242_vm12 = vmmov %vm9240_vm9  ;;  %vm9246_vm11 = vcmask 654336   ;;  %v9265_v49 = vld [vmem:[#allocation111_spill] sm:$0xff] }
0x1cd2   :  { %v1980_v42 = vadd.f32 %v1971_v26, %v1879_v57  ;;  %v2080_v2 = vadd.f32 %v2071_v7, %v1979_v11  ;;  %v2381_v32 = vsel %vm9242_vm12, %v9238_v48, %v9241_v15  ;;  %vm9243_vm4 = vmmov %vm9240_vm9  ;;  %v9250_v57 = vld [vmem:[#allocation98_spill] sm:$0xff]  ;;  %v2584_v11 = vsel %vm9255_vm7, %v9253_v28, %v9109_v39  ;;  %v9262_v39 = vld [vmem:[#allocation108_spill] sm:$0xff] }
0x1cd3   :  { %v1880_v43 = vadd.f32 %v1871_v21, %v1779_v46  ;;  %v2382_v38 = vsel %vm9243_vm4, %v9241_v15, %v9105_v63  ;;  %v9244_v46 = vld [vmem:[#allocation93_spill] sm:$0xff]  ;;  %vm9248_vm5 = vmmov %vm9246_vm11  ;;  %v2583_v7 = vsel %vm9254_vm6, %v9250_v57, %v9253_v28  ;;  %v9269_v48 = vld [vmem:[#allocation116_spill] sm:$0xff]  ;;  %vm9274_vm12 = vcmask 605184  }
0x1cd4   :  { %v2081_v51 = vadd.f32 %v2072_v16, %v1980_v42  ;;  %v2183_v37 = vadd.f32 %v2174_v53, %v2080_v2  ;;  %v2481_v8 = vsel %vm9246_vm11, %v9245_v17, %v9244_v46  ;;  %v2482_v19 = vsel %vm9248_vm5, %v9244_v46, %v9247_v55  ;;  %vm9249_vm3 = vmmov %vm9248_vm5  ;;  %v9257_v42 = vld [vmem:[#allocation104_spill] sm:$0xff] }
0x1cd5   :  { %v1981_v47 = vadd.f32 %v1972_v36, %v1880_v43  ;;  %v2483_v41 = vsel %vm9249_vm3, %v9247_v55, %v9107_v5  ;;  %v9251_v43 = vld [vmem:[#allocation99_spill] sm:$0xff]  ;;  %v2685_v53 = vsel %vm9261_vm15, %v9259_v1, %v9111_v6  ;;  %vm9271_vm9 = vmmov %vm9270_vm14  ;;  %v9277_v55 = vld [vmem:[#allocation126_spill] sm:$0xff]  ;;  %vm9278_vm11 = vcmask 523264  }
0x1cd6   :  { %v2184_v30 = vadd.f32 %v2175_v56, %v2081_v51  ;;  %v2286_v18 = vadd.f32 %v2277_v25, %v2183_v37  ;;  %v2582_v63 = vsel %vm9252_vm1, %v9251_v43, %v9250_v57  ;;  %v9263_v51 = vld [vmem:[#allocation109_spill] sm:$0xff]  ;;  %v9264_v37 = vld [vmem:[#allocation112_spill] sm:$0xff]  ;;  %vm9275_vm4 = vmmov %vm9274_vm12  ;;  %vm9282_vm3 = vcmask 515072  }
0x1cd7   :  { %v2082_v40 = vadd.f32 %v2073_v29, %v1981_v47  ;;  %v9256_v29 = vld [vmem:[#allocation103_spill] sm:$0xff]  ;;  %v2868_v6 = vsel %vm9267_vm8, %v9264_v37, %v9113_v0  ;;  %vm9279_vm5 = vmmov %vm9278_vm11  ;;  %v9280_v57 = vld [vmem:[#allocation130_spill] sm:$0xff]  ;;  %vm9286_vm6 = vcmask 506880   ;;  %vm9296_vm15 = vcmask 490496  }
0x1cd8   :  { %v2287_v21 = vadd.f32 %v2278_v13, %v2184_v30  ;;  %v2389_v24 = vadd.f32 %v2380_v35, %v2286_v18  ;;  %v2683_v5 = vsel %vm9258_vm2, %v9257_v42, %v9256_v29  ;;  %v2684_v33 = vsel %vm9260_vm10, %v9256_v29, %v9259_v1  ;;  %v9281_v43 = vld [vmem:[#allocation131_spill] sm:$0xff]  ;;  %vm9283_vm1 = vmmov %vm9282_vm3  ;;  %v9289_v1 = vld [vmem:[#allocation140_spill] sm:$0xff] }
0x1cd9   :  { %v2185_v14 = vadd.f32 %v2176_v60, %v2082_v40  ;;  %v2761_v60 = vsel %vm323_vm0, %v9262_v39, %v9112_v27  ;;  %v2760_v40 = vsel %vm323_vm0, %v9263_v51, %v9262_v39  ;;  %v2867_v13 = vsel %vm9266_vm13, %v9265_v49, %v9264_v37  ;;  %vm9288_vm7 = vmmov %vm9286_vm6 }
0x1cda   :  { %v2390_v26 = vadd.f32 %v2381_v32, %v2287_v21  ;;  %v2490_v4 = vadd.f32 %v2481_v8, %v2389_v24  ;;  %v9273_v21 = vld [vmem:[#allocation121_spill] sm:$0xff]  ;;  %vm9291_vm2 = vcmask 498688   ;;  %vm9297_vm13 = vmmov %vm9296_vm15  ;;  %vm9300_vm8 = vcmask 482304  }
0x1cdb   :  { %v2288_v23 = vadd.f32 %v2279_v52, %v2185_v14  ;;  %v9268_v14 = vld [vmem:[#allocation115_spill] sm:$0xff]  ;;  %v9276_v24 = vld [vmem:[#allocation125_spill] sm:$0xff]  ;;  %vm9293_vm10 = vmmov %vm9291_vm2 }
0x1cdc   :  { %v2491_v54 = vadd.f32 %v2482_v19, %v2390_v26  ;;  %v2591_v47 = vadd.f32 %v2582_v63, %v2490_v4  ;;  %v2970_v58 = vsel %vm9270_vm14, %v9269_v48, %v9268_v14  ;;  %v2971_v35 = vsel %vm9271_vm9, %v9268_v14, %v9116_v62  ;;  %vm9302_vm14 = vmmov %vm9300_vm8 }
0x1cdd   :  { %v2391_v36 = vadd.f32 %v2382_v38, %v2288_v23  ;;  %v9272_v38 = vld [vmem:[#allocation120_spill] sm:$0xff]  ;;  %v3176_v62 = vsel %vm9278_vm11, %v9277_v55, %v9276_v24  ;;  %v3177_v19 = vsel %vm9279_vm5, %v9276_v24, %v9122_v20  ;;  %v3280_v63 = vsel %vm9283_vm1, %v9280_v57, %v9125_v61 }
0x1cde   :  { %v2592_v2 = vadd.f32 %v2583_v7, %v2491_v54  ;;  %v2692_v56 = vadd.f32 %v2683_v5, %v2591_v47  ;;  %v3073_v0 = vsel %vm9274_vm12, %v9273_v21, %v9272_v38  ;;  %v3074_v23 = vsel %vm9275_vm4, %v9272_v38, %v9119_v34  ;;  %v9285_v54 = vld [vmem:[#allocation136_spill] sm:$0xff] }
0x1cdf   :  { %v2492_v16 = vadd.f32 %v2483_v41, %v2391_v36  ;;  %v3279_v34 = vsel %vm9282_vm3, %v9281_v43, %v9280_v57  ;;  %vm9305_vm9 = vcmask 474112   ;;  %vm9310_vm4 = vcmask 392192  }
0x1ce0   :  { %v2693_v9 = vadd.f32 %v2684_v33, %v2592_v2  ;;  %v2768_v25 = vadd.f32 %v9263_v51, %v2692_v56  ;;  %v9290_v33 = vld [vmem:[#allocation141_spill] sm:$0xff]  ;;  %v9295_v51 = vld [vmem:[#allocation146_spill] sm:$0xff]  ;;  %vm9307_vm12 = vmmov %vm9305_vm9  ;;  %vm9315_vm5 = vcmask 384000   ;;  %vm9320_vm1 = vcmask 375808  }
0x1ce1   :  { %v2593_v44 = vadd.f32 %v2584_v11, %v2492_v16  ;;  %v9284_v11 = vld [vmem:[#allocation135_spill] sm:$0xff]  ;;  %v9287_v16 = vld [vmem:[#allocation137_spill] sm:$0xff]  ;;  %v3485_v61 = vsel %vm9291_vm2, %v9290_v33, %v9289_v1  ;;  %vm9312_vm11 = vmmov %vm9310_vm4  ;;  %vm4382_vm2 = vcmask 277504  }
0x1ce2   :  { %v2769_v30 = vadd.f32 %v2760_v40, %v2693_v9  ;;  %v2876_v27 = vadd.f32 %v9265_v49, %v2768_v25  ;;  %v3382_v20 = vsel %vm9286_vm6, %v9285_v54, %v9284_v11  ;;  %v3383_v29 = vsel %vm9288_vm7, %v9284_v11, %v9287_v16  ;;  %v9298_v49 = vld [vmem:[#allocation150_spill] sm:$0xff]  ;;  %vm9317_vm3 = vmmov %vm9315_vm5 }
0x1ce3   :  { %v2694_v3 = vadd.f32 %v2685_v53, %v2593_v44  ;;  %v9292_v53 = vld [vmem:[#allocation142_spill] sm:$0xff]  ;;  %vm9322_vm6 = vmmov %vm9320_vm1  ;;  %vm4308_vm7 = vcmask 359424  }
0x1ce4   :  { %v2877_v18 = vadd.f32 %v2867_v13, %v2769_v30  ;;  %v2979_v32 = vadd.f32 %v9269_v48, %v2876_v27  ;;  %v3486_v2 = vsel %vm9293_vm10, %v9289_v1, %v9292_v53  ;;  %v9299_v13 = vld [vmem:[#allocation151_spill] sm:$0xff]  ;;  %vm4411_vm10 = vcmask 351232  }
0x1ce5   :  { %v2770_v52 = vadd.f32 %v2761_v60, %v2694_v3  ;;  %v9294_v60 = vld [vmem:[#allocation145_spill] sm:$0xff]  ;;  %v9323_v1 = vld [vmem:[#allocation51_spill] sm:$0xff] }
0x1ce6   :  { %v2980_v46 = vadd.f32 %v2970_v58, %v2877_v18  ;;  %v3082_v8 = vadd.f32 %v9273_v21, %v2979_v32  ;;  %v3588_v40 = vsel %vm9296_vm15, %v9295_v51, %v9294_v60  ;;  %v3589_v9 = vsel %vm9297_vm13, %v9294_v60, %v9134_v10  ;;  %v9303_v58 = vld [vmem:[#allocation155_spill] sm:$0xff]  ;;  %v9306_v18 = vld [vmem:[#allocation157_spill] sm:$0xff] }
0x1ce7   :  { %v2878_v15 = vadd.f32 %v2868_v6, %v2770_v52  ;;  %v3691_v6 = vsel %vm9300_vm8, %v9299_v13, %v9298_v49  ;;  %v9301_v52 = vld [vmem:[#allocation152_spill] sm:$0xff]  ;;  %vm4485_vm15 = vcmask 285696   ;;  %vm4514_vm13 = vcmask 343040  }
0x1ce8   :  { %v3083_v41 = vadd.f32 %v3073_v0, %v2980_v46  ;;  %v3185_v36 = vadd.f32 %v9277_v55, %v3082_v8  ;;  %v3692_v30 = vsel %vm9302_vm14, %v9298_v49, %v9301_v52  ;;  %v9308_v0 = vld [vmem:[#allocation159_spill] sm:$0xff]  ;;  %vm9334_vm8 = vcmask 367616  }
0x1ce9   :  { %v2981_v17 = vadd.f32 %v2971_v35, %v2878_v15  ;;  %v9304_v35 = vld [vmem:[#allocation156_spill] sm:$0xff]  ;;  %v3795_v15 = vsel %vm9307_vm12, %v9303_v58, %v9306_v18  ;;  %v9329_v18 = vld [vmem:[#allocation11_spill] sm:$0xff]  ;;  %vm9335_vm14 = vmmov %vm9334_vm8  ;;  %vm9337_vm12 = vcmask 261120  }
0x1cea   :  { %v3186_v4 = vadd.f32 %v3176_v62, %v3083_v41  ;;  %v3288_v7 = vadd.f32 %v9281_v43, %v3185_v36  ;;  %v3794_v10 = vsel %vm9305_vm9, %v9304_v35, %v9303_v58  ;;  %v9314_v41 = vld [vmem:[#allocation165_spill] sm:$0xff]  ;;  %v9316_v36 = vld [vmem:[#allocation166_spill] sm:$0xff]  ;;  %vm9336_vm9 = vmmov %vm9334_vm8 }
0x1ceb   :  { %v3084_v26 = vadd.f32 %v3074_v23, %v2981_v17  ;;  %v9309_v23 = vld [vmem:[#allocation160_spill] sm:$0xff]  ;;  %v9311_v17 = vld [vmem:[#allocation161_spill] sm:$0xff] }
0x1cec   :  { %v3289_v42 = vadd.f32 %v3279_v34, %v3186_v4  ;;  %v3391_v47 = vadd.f32 %v9285_v54, %v3288_v7  ;;  %v3897_v46 = vsel %vm9310_vm4, %v9309_v23, %v9308_v0  ;;  %v3898_v8 = vsel %vm9312_vm11, %v9308_v0, %v9311_v17  ;;  %v9319_v7 = vld [vmem:[#allocation170_spill] sm:$0xff]  ;;  %v9321_v54 = vld [vmem:[#allocation171_spill] sm:$0xff]  ;;  %v9331_v0 = vld [vmem:[#allocation13_spill] sm:$0xff] }
0x1ced   :  { %v3187_v28 = vadd.f32 %v3177_v19, %v3084_v26  ;;  %v9313_v19 = vld [vmem:[#allocation164_spill] sm:$0xff]  ;;  %vm9338_vm4 = vmmov %vm9337_vm12 }
0x1cee   :  { %v3392_v44 = vadd.f32 %v3382_v20, %v3289_v42  ;;  %v3494_v39 = vadd.f32 %v9290_v33, %v3391_v47  ;;  %v4000_v26 = vsel %vm9315_vm5, %v9314_v41, %v9313_v19  ;;  %v4001_v57 = vsel %vm9317_vm3, %v9313_v19, %v9316_v36  ;;  %vm9339_vm11 = vmmov %vm9338_vm4 }
0x1cef   :  { %v3290_v5 = vadd.f32 %v3280_v63, %v3187_v28  ;;  %v9318_v28 = vld [vmem:[#allocation169_spill] sm:$0xff]  ;;  %vm9340_vm5 = vmmov %vm9338_vm4 }
0x1cf0   :  { %v3495_v3 = vadd.f32 %v3485_v61, %v3392_v44  ;;  %v3597_v37 = vadd.f32 %v9295_v51, %v3494_v39  ;;  %v4103_v11 = vsel %vm9320_vm1, %v9319_v7, %v9318_v28  ;;  %v4104_v20 = vsel %vm9322_vm6, %v9318_v28, %v9321_v54  ;;  %v9324_v61 = vld [vmem:[#allocation50_spill] sm:$0xff]  ;;  %vm9341_vm3 = vmmov %vm9320_vm1 }
0x1cf1   :  { %v3393_v56 = vadd.f32 %v3383_v29, %v3290_v5  ;;  %vm9342_vm6 = vcmask 384000  }
0x1cf2   :  { %v3598_v27 = vadd.f32 %v3588_v40, %v3495_v3  ;;  %v3700_v48 = vadd.f32 %v9299_v13, %v3597_v37 }
0x1cf3   :  { %v3496_v25 = vadd.f32 %v3486_v2, %v3393_v56  ;;  %v9325_v2 = vld [vmem:[#allocation52_spill] sm:$0xff] }
0x1cf4   :  { %v3701_v32 = vadd.f32 %v3691_v6, %v3598_v27  ;;  %v3803_v21 = vadd.f32 %v9304_v35, %v3700_v48  ;;  %v9326_v6 = vld [vmem:[#allocation55_spill] sm:$0xff]  ;;  %v9328_v35 = vld [vmem:[#allocation10_spill] sm:$0xff] }
0x1cf5   :  { %v3599_v14 = vadd.f32 %v3589_v9, %v3496_v25  ;;  %v5471_v48 = vld [vmem:[%s8694_s7 + $0xa0] ss:$8 sm:$0xf] }
0x1cf6   :  { %v3804_v24 = vadd.f32 %v3794_v10, %v3701_v32  ;;  %v3906_v62 = vadd.f32 %v9309_v23, %v3803_v21  ;;  %v9330_v32 = vld [vmem:[#allocation14_spill] sm:$0xff]  ;;  %v4360_v21 = vperm.slane %v5471_v48, 2 }
0x1cf7   :  { %v3702_v38 = vadd.f32 %v3692_v30, %v3599_v14  ;;  %v9327_v30 = vld [vmem:[#allocation56_spill] sm:$0xff] }
0x1cf8   :  { %v3907_v43 = vadd.f32 %v3897_v46, %v3804_v24  ;;  %v4009_v4 = vadd.f32 %v9314_v41, %v3906_v62  ;;  %v9332_v46 = vld [vmem:[#allocation12_spill] sm:$0xff]  ;;  %v4359_v24 = vperm.slane %v5471_v48, 1  ;;  %v9333_v62 = vld [vmem:[#allocation15_spill] sm:$0xff] }
0x1cf9   :  { %v3805_v55 = vadd.f32 %v3795_v15, %v3702_v38 }
0x1cfa   :  { %v4010_v16 = vadd.f32 %v4000_v26, %v3907_v43  ;;  %v4112_v42 = vadd.f32 %v9319_v7, %v4009_v4 }
0x1cfb   :  { %v3908_v34 = vadd.f32 %v3898_v8, %v3805_v55  ;;  %v4358_v55 = vperm.slane %v5471_v48, 0 }
0x1cfc   :  { %v4113_v5 = vadd.f32 %v4103_v11, %v4010_v16  ;;  %v4215_v33 = vadd.f32 %v9323_v1, %v4112_v42  ;;  %v4361_v16 = vperm.slane %v5471_v48, 3 }
0x1cfd   :  { %v4011_v29 = vadd.f32 %v4001_v57, %v3908_v34 }
0x1cfe   :  { %v4216_v53 = vadd.f32 %v9324_v61, %v4113_v5 }
0x1cff   :  { %v4114_v47 = vadd.f32 %v4104_v20, %v4011_v29 }
0x1d01   :  { %v4301_v63 = vpop.permute.xlu2 %4300  ;;  %v4217_v44 = vadd.f32 %v9325_v2, %v4114_v47 }
0x1d09   :  { %v4307_v25 = vpop.permute.xlu2 %4306 }
0x1d11   :  { %v4345_v58 = vpop.permute.xlu2 %4344 }
0x1d12   :  { %v4347_v23 = vmul.f32 %v4345_v58, %v9331_v0  ;;  %v4348_v17 = vmul.f32 %v4345_v58, %v9332_v46  ;;  %v4349_v19 = vmul.f32 %v4345_v58, %v9333_v62  ;;  %v4350_v54 = vmul.f32 %v4345_v58, %v5955_v12 }
0x1d18   :  { %v4299_v56 = vpop.permute.xlu1 %4298  ;;  %v4303_v39 = vpop.permute.xlu0 %4302 }
0x1d19   :  { %v4309_v60 = vsel %vm4308_vm7, %v4299_v56, %v4301_v63  ;;  %v8306_v51 = vadd.f32 %v4299_v56, %v4215_v33  ;;  %v4310_v40 = vsel %vm4308_vm7, %v4301_v63, %v4303_v39  ;;  %v4427_v56 = vld [vmem:[%s8692_s5 + $0x148] sm:$0xff] }
0x1d1a   :  { %v8308_v9 = vadd.f32 %v4309_v60, %v4216_v53  ;;  %v8310_v3 = vadd.f32 %v4310_v40, %v4217_v44 }
0x1d20   :  { %v4328_v14 = vpop.permute.xlu0 %4327 }
0x1d21   :  { %v4305_v37 = vpop.permute.xlu1 %4304  ;;  %v4330_v10 = vmul.f32 %v4328_v14, %v9328_v35  ;;  %v4331_v15 = vmul.f32 %v4328_v14, %v9329_v18  ;;  %v4332_v38 = vmul.f32 %v4328_v14, %v9330_v32  ;;  %v4333_v63 = vmul.f32 %v4328_v14, %v5933_v45 }
0x1d22   :  { %v4311_v49 = vsel %vm4308_vm7, %v4303_v39, %v4305_v37  ;;  %v4312_v13 = vsel %vm4308_vm7, %v4305_v37, %v4307_v25  ;;  %v4426_v25 = vld [vmem:[%s8693_s6 + $0x148] sm:$0xff]  ;;  %vm9343_vm7 = vmmov %vm9320_vm1 }
0x1d23   :  { %v8313_v52 = vadd.f32 %v4311_v49, %v9326_v6  ;;  %v8316_v27 = vadd.f32 %v4312_v13, %v9327_v30 }
0x1d29   :  { %v4337_v8 = vpop.permute.xlu1 %4336 }
0x1d2a   :  { %v4339_v41 = vadd.f32 %v4337_v8, %v4330_v10  ;;  %v4340_v26 = vadd.f32 %v4337_v8, %v4331_v15  ;;  %v4341_v36 = vadd.f32 %v4337_v8, %v4332_v38  ;;  %v4342_v11 = vadd.f32 %v4337_v8, %v4333_v63 }
0x1d2c   :  { %v4351_v57 = vadd.f32 %v4347_v23, %v4339_v41  ;;  %v4352_v43 = vadd.f32 %v4348_v17, %v4340_v26  ;;  %v4353_v34 = vadd.f32 %v4349_v19, %v4341_v36  ;;  %v4354_v20 = vadd.f32 %v4350_v54, %v4342_v11 }
0x1d2e   :  { %v4368_v4 = vmul.f32 %v4360_v21, %v4353_v34  ;;  %v4367_v28 = vmul.f32 %v4359_v24, %v4352_v43  ;;  %v4366_v7 = vmul.f32 %v4358_v55, %v4351_v57  ;;  %v4369_v29 = vmul.f32 %v4361_v16, %v4354_v20 }
0x1d30   :  { %4378 = vrot.lane.b32.xlu2 %v4368_v4, %s5674_s17  ;;  %4376 = vrot.lane.b32.xlu1 %v4367_v28, %s5674_s17 }
0x1d31   :  { %4374 = vrot.lane.b32.xlu0 %v4366_v7, %s5674_s17 }
0x1d39   :  { %4380 = vrot.lane.b32.xlu0 %v4369_v29, %s5674_s17 }
0x1d8a   :  { %v4379_v42 = vpop.permute.xlu2 %4378 }
0x1da2   :  { %v4377_v5 = vpop.permute.xlu1 %4376 }
0x1da3   :  { %v4384_v47 = vsel %vm4382_vm2, %v4377_v5, %v4379_v42  ;;  %v4375_v1 = vpop.permute.xlu0 %4374 }
0x1da4   :  { %v4393_v33 = vmul.f32 %v4384_v47, %v8929_v50  ;;  %v4383_v61 = vsel %vm4382_vm2, %v4375_v1, %v4377_v5  ;;  %v4391_v53 = vmul.f32 %v4375_v1, %v8913_v31 }
0x1da5   :  { %v4392_v2 = vmul.f32 %v4383_v61, %v8924_v22 }
0x1da6   :  { %4401 = vrot.lane.b32.xlu1 %v4391_v53, %s5675_s0  ;;  %4405 = vrot.lane.b32.xlu0 %v4393_v33, %s5675_s0 }
0x1da7   :  { %4403 = vrot.lane.b32.xlu2 %v4392_v2, %s5675_s0 }
0x1dab   :  { %v4381_v44 = vpop.permute.xlu0 %4380 }
0x1dac   :  { %v4385_v39 = vsel %vm4382_vm2, %v4379_v42, %v4381_v44  ;;  %v4395_v60 = vmul.f32 0.0, %v4381_v44  ;;  %vm9344_vm2 = vmmov %vm9342_vm6 }
0x1dad   :  { %v4394_v40 = vmul.f32 %v4385_v39, %v8930_v59 }
0x1dae   :  { %4430 = vperm.xlu0 %5569, %v4427_v56  }
0x1daf   :  { %4409 = vrot.lane.b32.xlu2 %v4395_v60, %s5675_s0  ;;  %4407 = vrot.lane.b32.xlu1 %v4394_v40, %s5675_s0  ;;  %s5411_s0 = sshll.u32 %s8697_s10, 4  ;;  %s5412_s0 = int_to_ptr.hbm [resolvable:$true] %s5411_s0 }
0x1db7   :  { %4447 = vperm.xlu2 %5572, %v4427_v56   ;;  %4439 = vperm.xlu1 %5571, %v4426_v25   ;;  %v4530_v25 = vld [vmem:[%s8692_s5 + $0x150] sm:$0xff] }
0x1e01   :  { %v4404_v37 = vpop.permute.xlu2 %4403 }
0x1e09   :  { %v4410_v10 = vpop.permute.xlu2 %4409 }
0x1e18   :  { %v4402_v49 = vpop.permute.xlu1 %4401  ;;  %v4406_v13 = vpop.permute.xlu0 %4405 }
0x1e19   :  { %v4412_v6 = vsel %vm4411_vm10, %v4402_v49, %v4404_v37  ;;  %v8340_v30 = vadd.f32 %v4402_v49, %v8306_v51  ;;  %v4413_v14 = vsel %vm4411_vm10, %v4404_v37, %v4406_v13  ;;  %v5472_v51 = vld [vmem:[%s8694_s7 + $0xa1] ss:$8 sm:$0xf] }
0x1e1a   :  { %v8343_v48 = vadd.f32 %v4412_v6, %v8308_v9  ;;  %v8346_v58 = vadd.f32 %v4413_v14, %v8310_v3  ;;  %v4448_v9 = vpop.permute.xlu2 %4447  ;;  %v4463_v19 = vperm.slane %v5472_v51, 2  ;;  %v4461_v36 = vperm.slane %v5472_v51, 0  ;;  %v4529_v6 = vld [vmem:[%s8693_s6 + $0x150] sm:$0xff] }
0x1e1b   :  { %v4450_v41 = vmul.f32 %v4448_v9, %v9331_v0  ;;  %v4452_v57 = vmul.f32 %v4448_v9, %v9333_v62  ;;  %v4453_v42 = vmul.f32 %v4448_v9, %v5955_v12  ;;  %v4464_v47 = vperm.slane %v5472_v51, 3 }
0x1e20   :  { %v4431_v8 = vpop.permute.xlu0 %4430 }
0x1e21   :  { %v4408_v15 = vpop.permute.xlu1 %4407  ;;  %v4433_v24 = vmul.f32 %v4431_v8, %v9328_v35  ;;  %v4434_v3 = vmul.f32 %v4431_v8, %v9329_v18  ;;  %v4435_v55 = vmul.f32 %v4431_v8, %v9330_v32  ;;  %v4436_v11 = vmul.f32 %v4431_v8, %v5933_v45 }
0x1e22   :  { %v4414_v38 = vsel %vm4411_vm10, %v4406_v13, %v4408_v15  ;;  %v4415_v21 = vsel %vm4411_vm10, %v4408_v15, %v4410_v10  ;;  %vm9345_vm10 = vmmov %vm9344_vm2 }
0x1e23   :  { %v8349_v23 = vadd.f32 %v4414_v38, %v8313_v52  ;;  %v8352_v17 = vadd.f32 %v4415_v21, %v8316_v27  ;;  %v4451_v52 = vmul.f32 %v4448_v9, %v9332_v46  ;;  %v4462_v27 = vperm.slane %v5472_v51, 1 }
0x1e29   :  { %v4440_v26 = vpop.permute.xlu1 %4439 }
0x1e2a   :  { %v4442_v43 = vadd.f32 %v4440_v26, %v4433_v24  ;;  %v4443_v34 = vadd.f32 %v4440_v26, %v4434_v3  ;;  %v4444_v63 = vadd.f32 %v4440_v26, %v4435_v55  ;;  %v4445_v29 = vadd.f32 %v4440_v26, %v4436_v11 }
0x1e2c   :  { %v4454_v4 = vadd.f32 %v4450_v41, %v4442_v43  ;;  %v4455_v28 = vadd.f32 %v4451_v52, %v4443_v34  ;;  %v4456_v7 = vadd.f32 %v4452_v57, %v4444_v63  ;;  %v4457_v5 = vadd.f32 %v4453_v42, %v4445_v29 }
0x1e2e   :  { %v4471_v54 = vmul.f32 %v4463_v19, %v4456_v7  ;;  %v4470_v20 = vmul.f32 %v4462_v27, %v4455_v28  ;;  %v4469_v16 = vmul.f32 %v4461_v36, %v4454_v4  ;;  %v4472_v1 = vmul.f32 %v4464_v47, %v4457_v5 }
0x1e30   :  { %4481 = vrot.lane.b32.xlu2 %v4471_v54, %s5676_s25  ;;  %4479 = vrot.lane.b32.xlu1 %v4470_v20, %s5676_s25 }
0x1e31   :  { %4477 = vrot.lane.b32.xlu0 %v4469_v16, %s5676_s25 }
0x1e39   :  { %4483 = vrot.lane.b32.xlu0 %v4472_v1, %s5676_s25 }
0x1e8a   :  { %v4482_v33 = vpop.permute.xlu2 %4481 }
0x1ea2   :  { %v4480_v61 = vpop.permute.xlu1 %4479 }
0x1ea3   :  { %v4487_v53 = vsel %vm4485_vm15, %v4480_v61, %v4482_v33  ;;  %v4478_v2 = vpop.permute.xlu0 %4477 }
0x1ea4   :  { %v4496_v44 = vmul.f32 %v4487_v53, %v8929_v50  ;;  %v4486_v56 = vsel %vm4485_vm15, %v4478_v2, %v4480_v61  ;;  %v4494_v39 = vmul.f32 %v4478_v2, %v8913_v31 }
0x1ea5   :  { %v4495_v60 = vmul.f32 %v4486_v56, %v8924_v22 }
0x1ea6   :  { %4504 = vrot.lane.b32.xlu1 %v4494_v39, %s5677_s26  ;;  %4508 = vrot.lane.b32.xlu0 %v4496_v44, %s5677_s26 }
0x1ea7   :  { %4506 = vrot.lane.b32.xlu2 %v4495_v60, %s5677_s26 }
0x1eab   :  { %v4484_v40 = vpop.permute.xlu0 %4483 }
0x1eac   :  { %v4488_v37 = vsel %vm4485_vm15, %v4482_v33, %v4484_v40  ;;  %v4498_v49 = vmul.f32 0.0, %v4484_v40  ;;  %vm9346_vm15 = vcmask 392192  }
0x1ead   :  { %v4497_v13 = vmul.f32 %v4488_v37, %v8930_v59 }
0x1eae   :  { %4533 = vperm.xlu0 %5569, %v4530_v25  }
0x1eaf   :  { %4512 = vrot.lane.b32.xlu2 %v4498_v49, %s5677_s26  ;;  %4510 = vrot.lane.b32.xlu1 %v4497_v13, %s5677_s26  ;;  %s5678_s26 = smov 49  }
0x1eb7   :  { %4550 = vperm.xlu2 %5572, %v4530_v25   ;;  %4542 = vperm.xlu1 %5571, %v4529_v6   ;;  %v4631_v6 = vld [vmem:[%s8692_s5 + $0x158] sm:$0xff] }
0x1f01   :  { %v4507_v14 = vpop.permute.xlu2 %4506 }
0x1f09   :  { %v4513_v24 = vpop.permute.xlu2 %4512 }
0x1f18   :  { %v4505_v10 = vpop.permute.xlu1 %4504  ;;  %v4509_v15 = vpop.permute.xlu0 %4508 }
0x1f19   :  { %v4515_v38 = vsel %vm4514_vm13, %v4505_v10, %v4507_v14  ;;  %v8376_v21 = vadd.f32 %v4505_v10, %v8340_v30  ;;  %v4516_v8 = vsel %vm4514_vm13, %v4507_v14, %v4509_v15  ;;  %v5473_v30 = vld [vmem:[%s8694_s7 + $0xa2] ss:$8 sm:$0xf] }
0x1f1a   :  { %v8379_v51 = vadd.f32 %v4515_v38, %v8343_v48  ;;  %v8382_v9 = vadd.f32 %v4516_v8, %v8346_v58  ;;  %v4551_v48 = vpop.permute.xlu2 %4550  ;;  %v4566_v57 = vperm.slane %v5473_v30, 2  ;;  %v4564_v63 = vperm.slane %v5473_v30, 0  ;;  %v4732_v38 = vld [vmem:[%s8692_s5 + $0x160] sm:$0xff]  ;;  %v4630_v8 = vld [vmem:[%s8693_s6 + $0x158] sm:$0xff] }
0x1f1b   :  { %v4553_v43 = vmul.f32 %v4551_v48, %v9331_v0  ;;  %v4555_v4 = vmul.f32 %v4551_v48, %v9333_v62  ;;  %v4556_v33 = vmul.f32 %v4551_v48, %v5955_v12  ;;  %v4567_v53 = vperm.slane %v5473_v30, 3 }
0x1f20   :  { %v4534_v26 = vpop.permute.xlu0 %4533 }
0x1f21   :  { %v4511_v3 = vpop.permute.xlu1 %4510  ;;  %v4536_v27 = vmul.f32 %v4534_v26, %v9328_v35  ;;  %v4537_v58 = vmul.f32 %v4534_v26, %v9329_v18  ;;  %v4538_v36 = vmul.f32 %v4534_v26, %v9330_v32  ;;  %v4539_v29 = vmul.f32 %v4534_v26, %v5933_v45  ;;  %v5037_v26 = vld [vmem:[%s8692_s5 + $0x178] sm:$0xff] }
0x1f22   :  { %v4517_v55 = vsel %vm4514_vm13, %v4509_v15, %v4511_v3  ;;  %v4518_v19 = vsel %vm4514_vm13, %v4511_v3, %v4513_v24  ;;  %v4833_v24 = vld [vmem:[%s8692_s5 + $0x168] sm:$0xff]  ;;  %v4731_v3 = vld [vmem:[%s8693_s6 + $0x160] sm:$0xff]  ;;  %vm9347_vm13 = vmmov %vm9346_vm15 }
0x1f23   :  { %v8385_v41 = vadd.f32 %v4517_v55, %v8349_v23  ;;  %v8388_v52 = vadd.f32 %v4518_v19, %v8352_v17  ;;  %v4554_v23 = vmul.f32 %v4551_v48, %v9332_v46  ;;  %v4565_v17 = vperm.slane %v5473_v30, 1  ;;  %v4934_v55 = vld [vmem:[%s8692_s5 + $0x170] sm:$0xff]  ;;  %v4832_v19 = vld [vmem:[%s8693_s6 + $0x168] sm:$0xff]  ;;  %v5140_v48 = vld [vmem:[%s8692_s5 + $0x180] sm:$0xff] }
0x1f24   :  { %v4933_v30 = vld [vmem:[%s8693_s6 + $0x170] sm:$0xff] }
0x1f29   :  { %v4543_v34 = vpop.permute.xlu1 %4542 }
0x1f2a   :  { %v4545_v28 = vadd.f32 %v4543_v34, %v4536_v27  ;;  %v4546_v7 = vadd.f32 %v4543_v34, %v4537_v58  ;;  %v4547_v11 = vadd.f32 %v4543_v34, %v4538_v36  ;;  %v4548_v1 = vadd.f32 %v4543_v34, %v4539_v29  ;;  %v5036_v27 = vld [vmem:[%s8693_s6 + $0x178] sm:$0xff]  ;;  %v5139_v58 = vld [vmem:[%s8693_s6 + $0x180] sm:$0xff] }
0x1f2c   :  { %v4557_v54 = vadd.f32 %v4553_v43, %v4545_v28  ;;  %v4558_v20 = vadd.f32 %v4554_v23, %v4546_v7  ;;  %v4559_v16 = vadd.f32 %v4555_v4, %v4547_v11  ;;  %v4560_v61 = vadd.f32 %v4556_v33, %v4548_v1 }
0x1f2e   :  { %v4574_v42 = vmul.f32 %v4566_v57, %v4559_v16  ;;  %v4573_v5 = vmul.f32 %v4565_v17, %v4558_v20  ;;  %v4572_v47 = vmul.f32 %v4564_v63, %v4557_v54  ;;  %v4575_v2 = vmul.f32 %v4567_v53, %v4560_v61 }
0x1f30   :  { %4584 = vrot.lane.b32.xlu2 %v4574_v42, %s5671_s1  ;;  %4582 = vrot.lane.b32.xlu1 %v4573_v5, %s5671_s1 }
0x1f31   :  { %4580 = vrot.lane.b32.xlu0 %v4572_v47, %s5671_s1 }
0x1f39   :  { %4586 = vrot.lane.b32.xlu0 %v4575_v2, %s5671_s1 }
0x1f8a   :  { %v4585_v44 = vpop.permute.xlu2 %4584 }
0x1fa2   :  { %v4583_v56 = vpop.permute.xlu1 %4582 }
0x1fa3   :  { %v4589_v39 = vsel %vm9334_vm8, %v4583_v56, %v4585_v44  ;;  %v4581_v60 = vpop.permute.xlu0 %4580  ;;  %vm9348_vm8 = vmmov %vm9347_vm13 }
0x1fa4   :  { %v4598_v40 = vmul.f32 %v4589_v39, %v8929_v50  ;;  %v4588_v25 = vsel %vm9335_vm14, %v4581_v60, %v4583_v56  ;;  %v4596_v37 = vmul.f32 %v4581_v60, %v8913_v31  ;;  %vm4992_vm14 = vcmask 400384  }
0x1fa5   :  { %v4597_v49 = vmul.f32 %v4588_v25, %v8924_v22 }
0x1fa6   :  { %4606 = vrot.lane.b32.xlu1 %v4596_v37, %s5670_s30  ;;  %4610 = vrot.lane.b32.xlu0 %v4598_v40, %s5670_s30 }
0x1fa7   :  { %4608 = vrot.lane.b32.xlu2 %v4597_v49, %s5670_s30 }
0x1fab   :  { %v4587_v13 = vpop.permute.xlu0 %4586 }
0x1fac   :  { %v4590_v14 = vsel %vm9336_vm9, %v4585_v44, %v4587_v13  ;;  %v4600_v10 = vmul.f32 0.0, %v4587_v13  ;;  %vm5095_vm9 = vcmask 408576  }
0x1fad   :  { %v4599_v15 = vmul.f32 %v4590_v14, %v8930_v59 }
0x1fae   :  { %4634 = vperm.xlu0 %5569, %v4631_v6  }
0x1faf   :  { %4614 = vrot.lane.b32.xlu2 %v4600_v10, %s5670_s30  ;;  %4612 = vrot.lane.b32.xlu1 %v4599_v15, %s5670_s30  ;;  %v5475_v15 = vld [vmem:[%s8694_s7 + $0xa4] ss:$8 sm:$0xf] }
0x1fb6   :  { %4735 = vperm.xlu0 %5569, %v4732_v38  }
0x1fb7   :  { %4651 = vperm.xlu2 %5572, %v4631_v6   ;;  %4643 = vperm.xlu1 %5571, %v4630_v8  }
0x1fbe   :  { %4836 = vperm.xlu0 %5569, %v4833_v24  }
0x1fbf   :  { %4752 = vperm.xlu2 %5572, %v4732_v38   ;;  %4744 = vperm.xlu1 %5571, %v4731_v3  }
0x1fc6   :  { %4937 = vperm.xlu0 %5569, %v4934_v55  }
0x1fc7   :  { %4853 = vperm.xlu2 %5572, %v4833_v24   ;;  %4845 = vperm.xlu1 %5571, %v4832_v19  }
0x1fce   :  { %5040 = vperm.xlu0 %5569, %v5037_v26  }
0x1fcf   :  { %4954 = vperm.xlu2 %5572, %v4934_v55   ;;  %4946 = vperm.xlu1 %5571, %v4933_v30  }
0x1fd6   :  { %5143 = vperm.xlu0 %5569, %v5140_v48  }
0x1fd7   :  { %5057 = vperm.xlu2 %5572, %v5037_v26   ;;  %5049 = vperm.xlu1 %5571, %v5036_v27   ;;  %v4766_v27 = vperm.slane %v5475_v15, 0 }
0x1fdf   :  { %5160 = vperm.xlu2 %5572, %v5140_v48   ;;  %5152 = vperm.xlu1 %5571, %v5139_v58   ;;  %v4767_v48 = vperm.slane %v5475_v15, 1 }
0x2001   :  { %v4609_v36 = vpop.permute.xlu2 %4608 }
0x2009   :  { %v4615_v23 = vpop.permute.xlu2 %4614 }
0x2011   :  { %v4652_v54 = vpop.permute.xlu2 %4651 }
0x2012   :  { %v4654_v33 = vmul.f32 %v4652_v54, %v9331_v0  ;;  %v4656_v2 = vmul.f32 %v4652_v54, %v9333_v62  ;;  %v4657_v3 = vmul.f32 %v4652_v54, %v5955_v12 }
0x2018   :  { %v4607_v57 = vpop.permute.xlu1 %4606  ;;  %v4611_v43 = vpop.permute.xlu0 %4610 }
0x2019   :  { %v4616_v34 = vsel %vm9337_vm12, %v4607_v57, %v4609_v36  ;;  %v8455_v17 = vadd.f32 %v4607_v57, %v8376_v21  ;;  %v4617_v63 = vsel %vm9338_vm4, %v4609_v36, %v4611_v43  ;;  %v4753_v60 = vpop.permute.xlu2 %4752  ;;  %vm5198_vm12 = vcmask 416768  }
0x201a   :  { %v8459_v4 = vadd.f32 %v4616_v34, %v8379_v51  ;;  %v8462_v28 = vadd.f32 %v4617_v63, %v8382_v9  ;;  %v5474_v51 = vld [vmem:[%s8694_s7 + $0xa3] ss:$8 sm:$0xf]  ;;  %v4755_v55 = vmul.f32 %v4753_v60, %v9331_v0  ;;  %v4756_v19 = vmul.f32 %v4753_v60, %v9332_v46 }
0x201b   :  { %v4667_v1 = vperm.slane %v5474_v51, 2  ;;  %v4666_v53 = vperm.slane %v5474_v51, 1  ;;  %v4668_v57 = vperm.slane %v5474_v51, 3  ;;  %vm9349_vm4 = vcmask 252928  }
0x2020   :  { %v4635_v7 = vpop.permute.xlu0 %4634 }
0x2021   :  { %v4613_v11 = vpop.permute.xlu1 %4612  ;;  %v4637_v9 = vmul.f32 %v4635_v7, %v9328_v35  ;;  %v4638_v42 = vmul.f32 %v4635_v7, %v9329_v18  ;;  %v4639_v5 = vmul.f32 %v4635_v7, %v9330_v32  ;;  %v4640_v49 = vmul.f32 %v4635_v7, %v5933_v45  ;;  %v4854_v7 = vpop.permute.xlu2 %4853 }
0x2022   :  { %v4618_v20 = vsel %vm9339_vm11, %v4611_v43, %v4613_v11  ;;  %v4619_v16 = vsel %vm9340_vm5, %v4613_v11, %v4615_v23  ;;  %vm9350_vm11 = vmmov %vm9349_vm4  ;;  %vm9351_vm5 = vcmask 244736  }
0x2023   :  { %v8467_v29 = vadd.f32 %v4618_v20, %v8385_v41  ;;  %v8470_v21 = vadd.f32 %v4619_v16, %v8388_v52  ;;  %v4655_v41 = vmul.f32 %v4652_v54, %v9332_v46  ;;  %v4665_v52 = vperm.slane %v5474_v51, 0 }
0x2028   :  { %v4736_v61 = vpop.permute.xlu0 %4735 }
0x2029   :  { %v4644_v47 = vpop.permute.xlu1 %4643  ;;  %v4738_v38 = vmul.f32 %v4736_v61, %v9328_v35  ;;  %v4739_v8 = vmul.f32 %v4736_v61, %v9329_v18  ;;  %v4741_v43 = vmul.f32 %v4736_v61, %v5933_v45  ;;  %v4740_v63 = vmul.f32 %v4736_v61, %v9330_v32 }
0x202a   :  { %v4646_v44 = vadd.f32 %v4644_v47, %v4637_v9  ;;  %v4647_v56 = vadd.f32 %v4644_v47, %v4638_v42  ;;  %v4648_v39 = vadd.f32 %v4644_v47, %v4639_v5  ;;  %v4649_v10 = vadd.f32 %v4644_v47, %v4640_v49  ;;  %v5476_v42 = vld [vmem:[%s8694_s7 + $0xa5] ss:$8 sm:$0xf] }
0x202b   :  { %v4758_v5 = vmul.f32 %v4753_v60, %v5955_v12 }
0x202c   :  { %v4658_v40 = vadd.f32 %v4654_v33, %v4646_v44  ;;  %v4659_v25 = vadd.f32 %v4655_v41, %v4647_v56  ;;  %v4660_v37 = vadd.f32 %v4656_v2, %v4648_v39  ;;  %v4661_v58 = vadd.f32 %v4657_v3, %v4649_v10  ;;  %v4955_v3 = vpop.permute.xlu2 %4954 }
0x202d   :  { %v4856_v33 = vmul.f32 %v4854_v7, %v9331_v0  ;;  %v4768_v44 = vperm.slane %v5475_v15, 2 }
0x202e   :  { %v4675_v13 = vmul.f32 %v4667_v1, %v4660_v37  ;;  %v4674_v6 = vmul.f32 %v4666_v53, %v4659_v25  ;;  %v4673_v14 = vmul.f32 %v4665_v52, %v4658_v40  ;;  %v4676_v9 = vmul.f32 %v4668_v57, %v4661_v58 }
0x202f   :  { %v4757_v1 = vmul.f32 %v4753_v60, %v9333_v62  ;;  %v4769_v53 = vperm.slane %v5475_v15, 3  ;;  %v4867_v52 = vperm.slane %v5476_v42, 0 }
0x2030   :  { %4685 = vrot.lane.b32.xlu2 %v4675_v13, %s5669_s12  ;;  %4683 = vrot.lane.b32.xlu1 %v4674_v6, %s5669_s12  ;;  %v4837_v36 = vpop.permute.xlu0 %4836 }
0x2031   :  { %v4745_v24 = vpop.permute.xlu1 %4744  ;;  %4681 = vrot.lane.b32.xlu0 %v4673_v14, %s5669_s12  ;;  %v4839_v51 = vmul.f32 %v4837_v36, %v9328_v35  ;;  %v4841_v56 = vmul.f32 %v4837_v36, %v9330_v32  ;;  %v4842_v39 = vmul.f32 %v4837_v36, %v5933_v45  ;;  %v4840_v25 = vmul.f32 %v4837_v36, %v9329_v18 }
0x2032   :  { %v4747_v26 = vadd.f32 %v4745_v24, %v4738_v38  ;;  %v4748_v30 = vadd.f32 %v4745_v24, %v4739_v8  ;;  %v4750_v11 = vadd.f32 %v4745_v24, %v4741_v43  ;;  %v4749_v16 = vadd.f32 %v4745_v24, %v4740_v63 }
0x2033   :  { %v4858_v38 = vmul.f32 %v4854_v7, %v9333_v62  ;;  %v4859_v8 = vmul.f32 %v4854_v7, %v5955_v12  ;;  %v4857_v24 = vmul.f32 %v4854_v7, %v9332_v46 }
0x2034   :  { %v4759_v23 = vadd.f32 %v4755_v55, %v4747_v26  ;;  %v4760_v34 = vadd.f32 %v4756_v19, %v4748_v30  ;;  %v4762_v41 = vadd.f32 %v4758_v5, %v4750_v11  ;;  %v4761_v2 = vadd.f32 %v4757_v1, %v4749_v16 }
0x2035   :  { %v4869_v26 = vperm.slane %v5476_v42, 2  ;;  %v4870_v30 = vperm.slane %v5476_v42, 3  ;;  %v4958_v16 = vmul.f32 %v4955_v3, %v9332_v46 }
0x2036   :  { %v4775_v54 = vmul.f32 %v4767_v48, %v4760_v34  ;;  %v4774_v20 = vmul.f32 %v4766_v27, %v4759_v23  ;;  %v4777_v13 = vmul.f32 %v4769_v53, %v4762_v41  ;;  %v4776_v10 = vmul.f32 %v4768_v44, %v4761_v2  ;;  %v5058_v41 = vpop.permute.xlu2 %5057 }
0x2037   :  { %v4868_v27 = vperm.slane %v5476_v42, 1  ;;  %v4957_v42 = vmul.f32 %v4955_v3, %v9331_v0 }
0x2038   :  { %4784 = vrot.lane.b32.xlu2 %v4775_v54, %s5667_s16  ;;  %4782 = vrot.lane.b32.xlu1 %v4774_v20, %s5667_s16  ;;  %v4938_v37 = vpop.permute.xlu0 %4937  ;;  %v5477_v20 = vld [vmem:[%s8694_s7 + $0xa6] ss:$8 sm:$0xf] }
0x2039   :  { %v4846_v47 = vpop.permute.xlu1 %4845  ;;  %4687 = vrot.lane.b32.xlu0 %v4676_v9, %s5669_s12  ;;  %v4941_v58 = vmul.f32 %v4938_v37, %v9329_v18  ;;  %v4942_v36 = vmul.f32 %v4938_v37, %v9330_v32  ;;  %v4940_v57 = vmul.f32 %v4938_v37, %v9328_v35  ;;  %v4959_v9 = vmul.f32 %v4955_v3, %v9333_v62 }
0x203a   :  { %v4848_v61 = vadd.f32 %v4846_v47, %v4839_v51  ;;  %v4850_v49 = vadd.f32 %v4846_v47, %v4841_v56  ;;  %v4851_v60 = vadd.f32 %v4846_v47, %v4842_v39  ;;  %v4849_v14 = vadd.f32 %v4846_v47, %v4840_v25 }
0x203b   :  { %v4970_v1 = vperm.slane %v5477_v20, 2  ;;  %v4968_v53 = vperm.slane %v5477_v20, 0  ;;  %v4943_v44 = vmul.f32 %v4938_v37, %v5933_v45 }
0x203c   :  { %v4860_v40 = vadd.f32 %v4856_v33, %v4848_v61  ;;  %v4862_v55 = vadd.f32 %v4858_v38, %v4850_v49  ;;  %v4863_v19 = vadd.f32 %v4859_v8, %v4851_v60  ;;  %v4861_v48 = vadd.f32 %v4857_v24, %v4849_v14 }
0x203d   :  { %v4969_v33 = vperm.slane %v5477_v20, 1  ;;  %v5061_v14 = vmul.f32 %v5058_v41, %v9332_v46 }
0x203e   :  { %v4875_v6 = vmul.f32 %v4867_v52, %v4860_v40  ;;  %v4877_v34 = vmul.f32 %v4869_v26, %v4862_v55  ;;  %v4878_v63 = vmul.f32 %v4870_v30, %v4863_v19  ;;  %v4876_v54 = vmul.f32 %v4868_v27, %v4861_v48  ;;  %v5161_v27 = vpop.permute.xlu2 %5160 }
0x203f   :  { %v4971_v26 = vperm.slane %v5477_v20, 3 }
0x2040   :  { %4788 = vrot.lane.b32.xlu1 %v4777_v13, %s5667_s16  ;;  %4883 = vrot.lane.b32.xlu2 %v4875_v6, %s5665_s27  ;;  %v5041_v11 = vpop.permute.xlu0 %5040  ;;  %v5478_v13 = vld [vmem:[%s8694_s7 + $0xa7] ss:$8 sm:$0xf]  ;;  %v5060_v6 = vmul.f32 %v5058_v41, %v9331_v0 }
0x2041   :  { %v4947_v15 = vpop.permute.xlu1 %4946  ;;  %4786 = vrot.lane.b32.xlu0 %v4776_v10, %s5667_s16  ;;  %v5043_v52 = vmul.f32 %v5041_v11, %v9328_v35  ;;  %v5044_v2 = vmul.f32 %v5041_v11, %v9329_v18  ;;  %v4960_v10 = vmul.f32 %v4955_v3, %v5955_v12  ;;  %v5072_v24 = vperm.slane %v5478_v13, 1 }
0x2042   :  { %v4950_v43 = vadd.f32 %v4947_v15, %v4941_v58  ;;  %v4951_v23 = vadd.f32 %v4947_v15, %v4942_v36  ;;  %v4949_v7 = vadd.f32 %v4947_v15, %v4940_v57  ;;  %v4952_v49 = vadd.f32 %v4947_v15, %v4943_v44 }
0x2043   :  { %v5071_v15 = vperm.slane %v5478_v13, 0  ;;  %v5046_v30 = vmul.f32 %v5041_v11, %v5933_v45  ;;  %v5045_v58 = vmul.f32 %v5041_v11, %v9330_v32  ;;  %v5166_v44 = vmul.f32 %v5161_v27, %v5955_v12 }
0x2044   :  { %v4962_v51 = vadd.f32 %v4958_v16, %v4950_v43  ;;  %v4963_v47 = vadd.f32 %v4959_v9, %v4951_v23  ;;  %v4961_v61 = vadd.f32 %v4957_v42, %v4949_v7  ;;  %v4964_v55 = vadd.f32 %v4960_v10, %v4952_v49 }
0x2045   :  { %v5063_v7 = vmul.f32 %v5058_v41, %v5955_v12  ;;  %v5074_v16 = vperm.slane %v5478_v13, 3 }
0x2046   :  { %v4978_v40 = vmul.f32 %v4970_v1, %v4963_v47  ;;  %v4977_v25 = vmul.f32 %v4969_v33, %v4962_v51  ;;  %v4976_v60 = vmul.f32 %v4968_v53, %v4961_v61 }
0x2048   :  { %4887 = vrot.lane.b32.xlu1 %v4877_v34, %s5665_s27  ;;  %4889 = vrot.lane.b32.xlu2 %v4878_v63, %s5665_s27  ;;  %v5144_v37 = vpop.permute.xlu0 %5143  ;;  %v4979_v34 = vmul.f32 %v4971_v26, %v4964_v55  ;;  %v5479_v63 = vld [vmem:[%s8694_s7 + $0xc0] ss:$8 sm:$0xf]  ;;  %s5680_s7 = smov 51  }
0x2049   :  { %4885 = vrot.lane.b32.xlu0 %v4876_v54, %s5665_s27  ;;  %v5050_v5 = vpop.permute.xlu1 %5049  ;;  %v5146_v48 = vmul.f32 %v5144_v37, %v9328_v35  ;;  %v5163_v54 = vmul.f32 %v5161_v27, %v9331_v0  ;;  %v5062_v35 = vmul.f32 %v5058_v41, %v9333_v62  ;;  %v5174_v9 = vperm.slane %v5479_v63, 0 }
0x204a   :  { %v5052_v56 = vadd.f32 %v5050_v5, %v5043_v52  ;;  %v5053_v39 = vadd.f32 %v5050_v5, %v5044_v2  ;;  %v5055_v36 = vadd.f32 %v5050_v5, %v5046_v30  ;;  %v5054_v23 = vadd.f32 %v5050_v5, %v5045_v58 }
0x204b   :  { %v5073_v5 = vperm.slane %v5478_v13, 2  ;;  %v5148_v51 = vmul.f32 %v5144_v37, %v9330_v32  ;;  %v5149_v47 = vmul.f32 %v5144_v37, %v5933_v45  ;;  %v5147_v1 = vmul.f32 %v5144_v37, %v9329_v18 }
0x204c   :  { %v5064_v38 = vadd.f32 %v5060_v6, %v5052_v56  ;;  %v5065_v8 = vadd.f32 %v5061_v14, %v5053_v39  ;;  %v5067_v11 = vadd.f32 %v5063_v7, %v5055_v36  ;;  %v5066_v42 = vadd.f32 %v5062_v35, %v5054_v23 }
0x204d   :  { %v5165_v41 = vmul.f32 %v5161_v27, %v9333_v62  ;;  %v5164_v32 = vmul.f32 %v5161_v27, %v9332_v46  ;;  %v5176_v18 = vperm.slane %v5479_v63, 2  ;;  %v5177_v39 = vperm.slane %v5479_v63, 3 }
0x204e   :  { %v5080_v43 = vmul.f32 %v5072_v24, %v5065_v8  ;;  %v5079_v3 = vmul.f32 %v5071_v15, %v5064_v38  ;;  %v5082_v61 = vmul.f32 %v5074_v16, %v5067_v11  ;;  %v5081_v2 = vmul.f32 %v5073_v5, %v5066_v42 }
0x2050   :  { %4988 = vrot.lane.b32.xlu2 %v4978_v40, %s5678_s26  ;;  %4986 = vrot.lane.b32.xlu1 %v4977_v25, %s5678_s26  ;;  %v5175_v25 = vperm.slane %v5479_v63, 1 }
0x2051   :  { %4984 = vrot.lane.b32.xlu0 %v4976_v60, %s5678_s26  ;;  %v5153_v19 = vpop.permute.xlu1 %5152 }
0x2052   :  { %v5155_v57 = vadd.f32 %v5153_v19, %v5146_v48  ;;  %v5157_v33 = vadd.f32 %v5153_v19, %v5148_v51  ;;  %v5158_v0 = vadd.f32 %v5153_v19, %v5149_v47  ;;  %v5156_v52 = vadd.f32 %v5153_v19, %v5147_v1 }
0x2054   :  { %v5167_v20 = vadd.f32 %v5163_v54, %v5155_v57  ;;  %v5169_v45 = vadd.f32 %v5165_v41, %v5157_v33  ;;  %v5170_v56 = vadd.f32 %v5166_v44, %v5158_v0  ;;  %v5168_v40 = vadd.f32 %v5164_v32, %v5156_v52 }
0x2056   :  { %v5182_v53 = vmul.f32 %v5174_v9, %v5167_v20  ;;  %v5184_v49 = vmul.f32 %v5176_v18, %v5169_v45  ;;  %v5185_v60 = vmul.f32 %v5177_v39, %v5170_v56  ;;  %v5183_v13 = vmul.f32 %v5175_v25, %v5168_v40 }
0x2058   :  { %5089 = vrot.lane.b32.xlu2 %v5080_v43, %s5679_s13  ;;  %5087 = vrot.lane.b32.xlu1 %v5079_v3, %s5679_s13 }
0x2059   :  { %4990 = vrot.lane.b32.xlu0 %v4979_v34, %s5678_s26 }
0x2060   :  { %5093 = vrot.lane.b32.xlu1 %v5082_v61, %s5679_s13  ;;  %5190 = vrot.lane.b32.xlu2 %v5182_v53, %s5680_s7 }
0x2061   :  { %5091 = vrot.lane.b32.xlu0 %v5081_v2, %s5679_s13 }
0x2068   :  { %5194 = vrot.lane.b32.xlu1 %v5184_v49, %s5680_s7  ;;  %5196 = vrot.lane.b32.xlu2 %v5185_v60, %s5680_s7 }
0x2069   :  { %5192 = vrot.lane.b32.xlu0 %v5183_v13, %s5680_s7 }
0x208a   :  { %v4686_v12 = vpop.permute.xlu2 %4685 }
0x2092   :  { %v4785_v38 = vpop.permute.xlu2 %4784 }
0x209a   :  { %v4884_v48 = vpop.permute.xlu2 %4883 }
0x20a2   :  { %v4684_v62 = vpop.permute.xlu1 %4683  ;;  %v4890_v34 = vpop.permute.xlu2 %4889 }
0x20a3   :  { %v4690_v46 = vsel %vm9341_vm3, %v4684_v62, %v4686_v12  ;;  %v4682_v6 = vpop.permute.xlu0 %4681  ;;  %v4903_v1 = vmul.f32 0.0, %v4890_v34  ;;  %vm9352_vm3 = vmmov %vm9349_vm4 }
0x20a4   :  { %v4699_v14 = vmul.f32 %v4690_v46, %v8929_v50  ;;  %v4689_v10 = vsel %vm9320_vm1, %v4682_v6, %v4684_v62  ;;  %v4697_v33 = vmul.f32 %v4682_v6, %v8913_v31  ;;  %v4899_v6 = vmul.f32 %v4884_v48, %v8913_v31  ;;  %vm9353_vm1 = vmmov %vm9351_vm5 }
0x20a5   :  { %v4698_v37 = vmul.f32 %v4689_v10, %v8924_v22 }
0x20a6   :  { %4711 = vrot.lane.b32.xlu1 %v4699_v14, %s5668_s4 }
0x20a7   :  { %4709 = vrot.lane.b32.xlu0 %v4698_v37, %s5668_s4 }
0x20aa   :  { %v4783_v8 = vpop.permute.xlu1 %4782  ;;  %v4989_v51 = vpop.permute.xlu2 %4988 }
0x20ab   :  { %v4790_v24 = vsel %vm9342_vm6, %v4783_v8, %v4785_v38  ;;  %v4688_v15 = vpop.permute.xlu0 %4687  ;;  %v4798_v40 = vmul.f32 %v4783_v8, %v8913_v31  ;;  %vm9354_vm6 = vmmov %vm9353_vm1 }
0x20ac   :  { %v4799_v55 = vmul.f32 %v4790_v24, %v8924_v22  ;;  %v4691_v19 = vsel %vm9343_vm7, %v4686_v12, %v4688_v15  ;;  %v4701_v26 = vmul.f32 0.0, %v4688_v15  ;;  %vm9355_vm7 = vcmask 236544  }
0x20ad   :  { %v4700_v30 = vmul.f32 %v4691_v19, %v8930_v59 }
0x20ae   :  { %4810 = vrot.lane.b32.xlu1 %v4799_v55, %s5666_s28 }
0x20af   :  { %4715 = vrot.lane.b32.xlu0 %v4701_v26, %s5668_s4  ;;  %4713 = vrot.lane.b32.xlu2 %v4700_v30, %s5668_s4  ;;  %v5247_v26 = vld.sshfl [vmem:[#allocation1 + $0x8] sm:$0xff pattern:$0x75316420] }
0x20b2   :  { %v4789_v27 = vpop.permute.xlu1 %4788  ;;  %v5090_v45 = vpop.permute.xlu2 %5089 }
0x20b3   :  { %v4802_v58 = vmul.f32 0.0, %v4789_v27  ;;  %v4787_v36 = vpop.permute.xlu0 %4786 }
0x20b4   :  { %v4791_v57 = vsel %vm9344_vm2, %v4785_v38, %v4787_v36  ;;  %v4792_v43 = vsel %vm9345_vm10, %v4787_v36, %v4789_v27  ;;  %v5249_v27 = vld.sshfl [vmem:[#allocation1 + $0x18] sm:$0xff pattern:$0x75316420]  ;;  %vm9356_vm2 = vmmov %vm9355_vm7 }
0x20b5   :  { %v4800_v3 = vmul.f32 %v4791_v57, %v8929_v50  ;;  %v4801_v23 = vmul.f32 %v4792_v43, %v8930_v59  ;;  %vm9357_vm10 = vmmov %vm9352_vm3 }
0x20b6   :  { %4816 = vrot.lane.b32.xlu1 %v4802_v58, %s5666_s28 }
0x20b7   :  { %4814 = vrot.lane.b32.xlu0 %v4801_v23, %s5666_s28  ;;  %4812 = vrot.lane.b32.xlu2 %v4800_v3, %s5666_s28 }
0x20ba   :  { %v4888_v63 = vpop.permute.xlu1 %4887  ;;  %v5191_v13 = vpop.permute.xlu2 %5190 }
0x20bb   :  { %v4893_v7 = vsel %vm9346_vm15, %v4888_v63, %v4890_v34  ;;  %v4886_v54 = vpop.permute.xlu0 %4885  ;;  %vm9358_vm15 = vmmov %vm9353_vm1 }
0x20bc   :  { %v4902_v35 = vmul.f32 %v4893_v7, %v8930_v59  ;;  %v4891_v11 = vsel %vm9347_vm13, %v4884_v48, %v4886_v54  ;;  %v4892_v20 = vsel %vm9348_vm8, %v4886_v54, %v4888_v63  ;;  %v5248_v48 = vld.sshfl [vmem:[#allocation1 + $0x10] sm:$0xff pattern:$0x75316420]  ;;  %vm5021_vm13 = vcmask 228352   ;;  %vm9359_vm8 = vmmov %vm9356_vm2 }
0x20bd   :  { %v4900_v16 = vmul.f32 %v4891_v11, %v8924_v22  ;;  %v4901_v9 = vmul.f32 %v4892_v20, %v8929_v50 }
0x20be   :  { %4915 = vrot.lane.b32.xlu1 %v4902_v35, %s5664_s22 }
0x20bf   :  { %4913 = vrot.lane.b32.xlu0 %v4901_v9, %s5664_s22  ;;  %4911 = vrot.lane.b32.xlu2 %v4900_v16, %s5664_s22 }
0x20c2   :  { %v4987_v42 = vpop.permute.xlu1 %4986  ;;  %v5197_v37 = vpop.permute.xlu2 %5196 }
0x20c3   :  { %v4985_v5 = vpop.permute.xlu0 %4984  ;;  %v4994_v61 = vsel %vm4992_vm14, %v4987_v42, %v4989_v51  ;;  %v5211_v30 = vmul.f32 0.0, %v5197_v37 }
0x20c4   :  { %v4993_v47 = vsel %vm4992_vm14, %v4985_v5, %v4987_v42  ;;  %v5003_v44 = vmul.f32 %v4994_v61, %v8929_v50  ;;  %v5001_v58 = vmul.f32 %v4985_v5, %v8913_v31 }
0x20c5   :  { %v5002_v0 = vmul.f32 %v4993_v47, %v8924_v22 }
0x20c7   :  { %4707 = vrot.lane.b32.xlu0 %v4697_v33, %s5668_s4  ;;  %4917 = vrot.lane.b32.xlu2 %v4903_v1, %s5664_s22  ;;  %s5682_s4 = smov 27  }
0x20c8   :  { %5013 = vrot.lane.b32.xlu1 %v5002_v0, %s5681_s20 }
0x20ca   :  { %v5088_v53 = vpop.permute.xlu1 %5087 }
0x20cb   :  { %v4991_v52 = vpop.permute.xlu0 %4990  ;;  %v5096_v56 = vsel %vm5095_vm9, %v5088_v53, %v5090_v45 }
0x20cc   :  { %v4995_v2 = vsel %vm4992_vm14, %v4989_v51, %v4991_v52  ;;  %v5005_v41 = vmul.f32 0.0, %v4991_v52  ;;  %v5105_v25 = vmul.f32 %v5096_v56, %v8924_v22  ;;  %vm5124_vm14 = vcmask 220160  }
0x20cd   :  { %v5004_v32 = vmul.f32 %v4995_v2, %v8930_v59 }
0x20cf   :  { %5015 = vrot.lane.b32.xlu2 %v5003_v44, %s5681_s20  ;;  %5017 = vrot.lane.b32.xlu0 %v5004_v32, %s5681_s20 }
0x20d0   :  { %5019 = vrot.lane.b32.xlu1 %v5005_v41, %s5681_s20 }
0x20d2   :  { %v5094_v49 = vpop.permute.xlu1 %5093 }
0x20d3   :  { %v5092_v18 = vpop.permute.xlu0 %5091  ;;  %v5108_v62 = vmul.f32 0.0, %v5094_v49 }
0x20d4   :  { %v5097_v39 = vsel %vm5095_vm9, %v5090_v45, %v5092_v18  ;;  %v5098_v12 = vsel %vm5095_vm9, %v5092_v18, %v5094_v49  ;;  %vm9360_vm9 = vmmov %vm9356_vm2 }
0x20d5   :  { %v5106_v60 = vmul.f32 %v5097_v39, %v8929_v50  ;;  %v5107_v46 = vmul.f32 %v5098_v12, %v8930_v59 }
0x20d7   :  { %4808 = vrot.lane.b32.xlu2 %v4798_v40, %s5666_s28  ;;  %5116 = vrot.lane.b32.xlu0 %v5105_v25, %s5682_s4  ;;  %s5683_s28 = smov 26  }
0x20d8   :  { %5118 = vrot.lane.b32.xlu1 %v5106_v60, %s5682_s4 }
0x20da   :  { %v5195_v14 = vpop.permute.xlu1 %5194 }
0x20db   :  { %v5193_v10 = vpop.permute.xlu0 %5192  ;;  %v5201_v24 = vsel %vm5198_vm12, %v5195_v14, %v5197_v37 }
0x20dc   :  { %v5199_v38 = vsel %vm5198_vm12, %v5191_v13, %v5193_v10  ;;  %v5200_v8 = vsel %vm5198_vm12, %v5193_v10, %v5195_v14  ;;  %v5210_v19 = vmul.f32 %v5201_v24, %v8930_v59  ;;  %v5207_v59 = vmul.f32 %v5191_v13, %v8913_v31 }
0x20dd   :  { %v5208_v15 = vmul.f32 %v5199_v38, %v8924_v22  ;;  %v5209_v55 = vmul.f32 %v5200_v8, %v8929_v50  ;;  %v5104_v22 = vmul.f32 %v5088_v53, %v8913_v31  ;;  %v5246_v50 = vld.sshfl [vmem:[#allocation1] sm:$0xff pattern:$0x75316420] }
0x20df   :  { %5122 = vrot.lane.b32.xlu0 %v5108_v62, %s5682_s4  ;;  %5120 = vrot.lane.b32.xlu2 %v5107_v46, %s5682_s4 }
0x20e0   :  { %4909 = vrot.lane.b32.xlu1 %v4899_v6, %s5664_s22 }
0x20e7   :  { %5221 = vrot.lane.b32.xlu0 %v5209_v55, %s5683_s28  ;;  %5219 = vrot.lane.b32.xlu2 %v5208_v15, %s5683_s28 }
0x20e8   :  { %5223 = vrot.lane.b32.xlu1 %v5210_v19, %s5683_s28 }
0x20ef   :  { %5252 = vrot.lane.b32.xlu0 %v5247_v26, %s5612_s11  ;;  %5225 = vrot.lane.b32.xlu2 %v5211_v30, %s5683_s28 }
0x20f0   :  { %5254 = vrot.lane.b32.xlu1 %v5248_v48, %s5612_s11 }
0x20f7   :  { %5011 = vrot.lane.b32.xlu0 %v5001_v58, %s5681_s20  ;;  %5256 = vrot.lane.b32.xlu2 %v5249_v27, %s5612_s11 }
0x20f8   :  { %5114 = vrot.lane.b32.xlu1 %v5104_v22, %s5682_s4 }
0x20ff   :  { %5250 = vrot.lane.b32.xlu0 %v5246_v50, %s5612_s11  ;;  %5217 = vrot.lane.b32.xlu2 %v5207_v59, %s5683_s28 }
0x2109   :  { %v4714_v36 = vpop.permute.xlu2 %4713 }
0x2111   :  { %v4813_v57 = vpop.permute.xlu2 %4812 }
0x2118   :  { %v4712_v43 = vpop.permute.xlu1 %4711 }
0x2119   :  { %v4719_v3 = vsel %vm9349_vm4, %v4712_v43, %v4714_v36  ;;  %v4912_v23 = vpop.permute.xlu2 %4911  ;;  %v4710_v34 = vpop.permute.xlu0 %4709  ;;  %vm5227_vm4 = vcmask 211968  }
0x211a   :  { %v4729_v63 = vadd.f32 %v4719_v3, %v8467_v29  ;;  %v4718_v7 = vsel %vm9350_vm11, %v4710_v34, %v4712_v43  ;;  %vm9361_vm11 = vcmask 1043456  }
0x211b   :  { %v4728_v54 = vadd.f32 %v4718_v7, %v8462_v28 }
0x2120   :  { %v4811_v35 = vpop.permute.xlu1 %4810 }
0x2121   :  { %v4819_v11 = vsel %vm9351_vm5, %v4811_v35, %v4813_v57  ;;  %v4918_v31 = vpop.permute.xlu2 %4917  ;;  %v4716_v20 = vpop.permute.xlu0 %4715  ;;  %vm5304_vm5 = vcmask 97280  }
0x2122   :  { %v4829_v16 = vadd.f32 %v4819_v11, %v4728_v54  ;;  %v4720_v9 = vsel %vm9352_vm3, %v4714_v36, %v4716_v20 }
0x2123   :  { %v4730_v42 = vadd.f32 %v4720_v9, %v8470_v21 }
0x2128   :  { %v4817_v5 = vpop.permute.xlu1 %4816 }
0x2129   :  { %v5016_v51 = vpop.permute.xlu2 %5015  ;;  %v4815_v47 = vpop.permute.xlu0 %4814 }
0x212a   :  { %v4820_v1 = vsel %vm9353_vm1, %v4813_v57, %v4815_v47  ;;  %v4821_v33 = vsel %vm9354_vm6, %v4815_v47, %v4817_v5 }
0x212b   :  { %v4830_v29 = vadd.f32 %v4820_v1, %v4729_v63  ;;  %v4831_v0 = vadd.f32 %v4821_v33, %v4730_v42 }
0x2130   :  { %v4916_v28 = vpop.permute.xlu1 %4915 }
0x2131   :  { %v4922_v61 = vsel %vm9355_vm7, %v4916_v28, %v4918_v31  ;;  %v4809_v53 = vpop.permute.xlu2 %4808  ;;  %v4914_v52 = vpop.permute.xlu0 %4913 }
0x2132   :  { %v4932_v2 = vadd.f32 %v4922_v61, %v4831_v0  ;;  %v4920_v41 = vsel %vm9356_vm2, %v4912_v23, %v4914_v52  ;;  %v4818_v39 = vsel %vm9358_vm15, %v4809_v53, %v4811_v35  ;;  %v4921_v10 = vsel %vm9359_vm8, %v4914_v52, %v4916_v28 }
0x2133   :  { %v4930_v44 = vadd.f32 %v4920_v41, %v4829_v16  ;;  %v4931_v24 = vadd.f32 %v4921_v10, %v4830_v29 }
0x2139   :  { %v5121_v32 = vpop.permute.xlu2 %5120  ;;  %v4708_v21 = vpop.permute.xlu0 %4707 }
0x213a   :  { %v5014_v45 = vpop.permute.xlu1 %5013  ;;  %v4717_v56 = vsel %vm9357_vm10, %v4708_v21, %v4710_v34  ;;  %v4726_v3 = vadd.f32 %v4708_v21, %v8455_v17 }
0x213b   :  { %v4727_v18 = vadd.f32 %v4717_v56, %v8459_v4  ;;  %v5023_v37 = vsel %vm5021_vm13, %v5014_v45, %v5016_v51 }
0x213c   :  { %v5033_v55 = vadd.f32 %v5023_v37, %v4930_v44  ;;  %v4827_v11 = vadd.f32 %v4809_v53, %v4726_v3  ;;  %v5261_v44 = vld [vmem:[%s8696_s9] sm:$0xff] }
0x213d   :  { %v4828_v40 = vadd.f32 %v4818_v39, %v4727_v18 }
0x2141   :  { %v5220_v25 = vpop.permute.xlu2 %5219  ;;  %v5018_v49 = vpop.permute.xlu0 %5017 }
0x2142   :  { %v5020_v60 = vpop.permute.xlu1 %5019  ;;  %v5024_v8 = vsel %vm5021_vm13, %v5016_v51, %v5018_v49 }
0x2143   :  { %v5034_v26 = vadd.f32 %v5024_v8, %v4931_v24  ;;  %v5025_v34 = vsel %vm5021_vm13, %v5018_v49, %v5020_v60  ;;  %v5242_v60 = vld [vmem:[%s8695_s8] sm:$0xff]  ;;  %s5684_s8 = smov [#allocation3]  }
0x2144   :  { %v5035_v35 = vadd.f32 %v5025_v34, %v4932_v2  ;;  %s5409_s9 = sshll.u32 %s5684_s8, 4  ;;  %s5410_s9 = int_to_ptr.vmem [resolvable:$true] %s5409_s9 }
0x2149   :  { %v5226_v13 = vpop.permute.xlu2 %5225  ;;  %v5117_v12 = vpop.permute.xlu0 %5116 }
0x214a   :  { %v5119_v62 = vpop.permute.xlu1 %5118 }
0x214b   :  { %v5126_v15 = vsel %vm5124_vm14, %v5117_v12, %v5119_v62  ;;  %v5127_v19 = vsel %vm5124_vm14, %v5119_v62, %v5121_v32 }
0x214c   :  { %v5136_v30 = vadd.f32 %v5126_v15, %v5033_v55  ;;  %v5137_v27 = vadd.f32 %v5127_v19, %v5034_v26 }
0x2151   :  { %v5257_v46 = vpop.permute.xlu2 %5256  ;;  %v5123_v6 = vpop.permute.xlu0 %5122 }
0x2152   :  { %v4910_v14 = vpop.permute.xlu1 %4909  ;;  %5290 = vrot.lane.b32.xlu0 %v5257_v46, %s5680_s7  ;;  %v5128_v54 = vsel %vm5124_vm14, %v5121_v32, %v5123_v6 }
0x2153   :  { %v4919_v4 = vsel %vm9360_vm9, %v4910_v14, %v4912_v23  ;;  %v4928_v20 = vadd.f32 %v4910_v14, %v4827_v11  ;;  %v5138_v16 = vadd.f32 %v5128_v54, %v5035_v35 }
0x2154   :  { %v4929_v38 = vadd.f32 %v4919_v4, %v4828_v40 }
0x2159   :  { %v5222_v48 = vpop.permute.xlu0 %5221  ;;  %v5218_v47 = vpop.permute.xlu2 %5217 }
0x215a   :  { %v5224_v58 = vpop.permute.xlu1 %5223  ;;  %v5229_v22 = vsel %vm5227_vm4, %v5220_v25, %v5222_v48  ;;  %v5228_v28 = vsel %vm5227_vm4, %v5218_v47, %v5220_v25 }
0x215b   :  { %v5230_v50 = vsel %vm5227_vm4, %v5222_v48, %v5224_v58  ;;  %v5239_v59 = vadd.f32 %v5229_v22, %v5136_v30  ;;  %v5231_v31 = vsel %vm5227_vm4, %v5224_v58, %v5226_v13 }
0x215c   :  { %v5240_v36 = vadd.f32 %v5230_v50, %v5137_v27  ;;  %v5241_v9 = vadd.f32 %v5231_v31, %v5138_v16 }
0x215e   :  { %v5573_v57 = vpack.i.bf16 %v5240_v36, %v5239_v59 }
0x2161   :  { %v5253_v43 = vpop.permute.xlu0 %5252 }
0x2162   :  { %v5255_v23 = vpop.permute.xlu1 %5254 }
0x2163   :  { %v5260_v63 = vsel %vm323_vm0, %v5255_v23, %v5257_v46  ;;  %v5259_v7 = vsel %vm323_vm0, %v5253_v43, %v5255_v23 }
0x2164   :  { %5288 = vrot.lane.b32.xlu2 %v5260_v63, %s5680_s7  ;;  %5286 = vrot.lane.b32.xlu1 %v5259_v7, %s5680_s7 }
0x2169   :  { %v5012_v17 = vpop.permute.xlu0 %5011 }
0x216a   :  { %v5115_v42 = vpop.permute.xlu1 %5114  ;;  %v5022_v5 = vsel %vm5021_vm13, %v5012_v17, %v5014_v45  ;;  %v5031_v51 = vadd.f32 %v5012_v17, %v4928_v20 }
0x216b   :  { %v5032_v1 = vadd.f32 %v5022_v5, %v4929_v38  ;;  %v5125_v29 = vsel %vm5124_vm14, %v5115_v42, %v5117_v12 }
0x216c   :  { %v5134_v33 = vadd.f32 %v5115_v42, %v5031_v51  ;;  %5280 = vrot.lane.b32.xlu2 %v5241_v9, %s5680_s7  ;;  %5574 = vrot.lane.b32.xlu1 %v5573_v57, %s5680_s7 }
0x216d   :  { %v5135_v0 = vadd.f32 %v5125_v29, %v5032_v1 }
0x216e   :  { %v5237_v61 = vadd.f32 %v5218_v47, %v5134_v33 }
0x216f   :  { %v5238_v53 = vadd.f32 %v5228_v28, %v5135_v0 }
0x2171   :  { %v5251_v52 = vpop.permute.xlu0 %5250  ;;  %v5578_v2 = vpack.i.bf16 %v5238_v53, %v5237_v61 }
0x2172   :  { %v5258_v41 = vsel %vm323_vm0, %v5251_v52, %v5253_v43  ;;  %5282 = vrot.lane.b32.xlu0 %v5251_v52, %s5680_s7  ;;  %vm9362_vm0 = vmmov %vm9361_vm11 }
0x2173   :  { %vm9363_vm3 = vmmov %vm9362_vm0 }
0x2174   :  { %5579 = vrot.lane.b32.xlu2 %v5578_v2, %s5680_s7  ;;  %5284 = vrot.lane.b32.xlu1 %v5258_v41, %s5680_s7  ;;  %vm9364_vm1 = vmmov %vm9362_vm0 }
0x217a   :  { %5264 = vperm.xlu0 %5569, %v5261_v44  }
0x21be   :  { %v5289_v32 = vpop.permute.xlu2 %5288 }
0x21c4   :  { %v5291_v21 = vpop.permute.xlu0 %5290 }
0x21c5   :  { %v5299_v45 = vsel %vm5198_vm12, %v5289_v32, %v5291_v21 }
0x21c6   :  { %5486 = vmatpush.msk.msra.mxu3 %vm9361_vm11, %v5299_v45  ;;  %v5281_v39 = vpop.permute.xlu2 %5280 }
0x21ce   :  { %v5580_v62 = vpop.permute.xlu2 %5579 }
0x21cf   :  { %v5582_v6 = vunpack.i.h.bf16 %v5580_v62  ;;  %v5581_v14 = vunpack.i.l.bf16 %v5580_v62 }
0x21d1   :  { %v5292_v38 = vsel %vm5198_vm12, %v5581_v14, %v5582_v6 }
0x21d6   :  { %v5287_v56 = vpop.permute.xlu1 %5286 }
0x21d7   :  { %v5298_v18 = vsel %vm5198_vm12, %v5287_v56, %v5289_v32 }
0x21d8   :  { %5484 = vmatpush.msk.msra.mxu2 %vm9362_vm0, %v5298_v18 }
0x21de   :  { %v5575_v40 = vpop.permute.xlu1 %5574 }
0x21df   :  { %v5577_v25 = vunpack.i.h.bf16 %v5575_v40  ;;  %v5576_v49 = vunpack.i.l.bf16 %v5575_v40 }
0x21e1   :  { %v5294_v13 = vsel %vm5198_vm12, %v5576_v49, %v5577_v25  ;;  %v5295_v12 = vsel %vm5198_vm12, %v5577_v25, %v5281_v39  ;;  %v5293_v8 = vsel %vm5198_vm12, %v5582_v6, %v5576_v49 }
0x21e2   :  { %5371 = vmatpush.msra.mxu2 %v5294_v13  ;;  %5391 = vmatpush.msra.mxu3 %v5295_v12 }
0x21e3   :  { %5485 = vmatmul.msk.f32.vlgmr.msra.gmra.mxu2 %vm5304_vm5, %v5242_v60  ;;  %5487 = vmatmul.msk.f32.vlgmr.msra.gmra.mxu3 %vm5304_vm5, %v5242_v60 }
0x21e4   :  { %v5283_v46 = vpop.permute.xlu0 %5282 }
0x21e6   :  { %v5285_v10 = vpop.permute.xlu1 %5284 }
0x21e7   :  { %v5296_v4 = vsel %vm5198_vm12, %v5283_v46, %v5285_v10  ;;  %v5297_v37 = vsel %vm5198_vm12, %v5285_v10, %v5287_v56 }
0x21e8   :  { %5480 = vmatpush.msk.msra.mxu0 %vm9363_vm3, %v5296_v4  ;;  %5482 = vmatpush.msk.msra.mxu1 %vm9364_vm1, %v5297_v37 }
0x21ea   :  { %5331 = vmatpush.msra.mxu0 %v5292_v38  ;;  %5351 = vmatpush.msra.mxu1 %v5293_v8 }
0x21eb   :  { %5481 = vmatmul.msk.f32.vlgmr.msra.gmra.mxu0 %vm5304_vm5, %v5242_v60  ;;  %5483 = vmatmul.msk.f32.vlgmr.msra.gmra.mxu1 %vm5304_vm5, %v5242_v60 }
0x21ec   :  { %v5265_v24 = vpop.permute.xlu0 %5264 }
0x2266   :  { %v5373_v15 = vpop.f32.mrf.mxu2  ;;  %v5393_v55 = vpop.f32.mrf.mxu3 }
0x2267   :  { %v5374_v19 = vadd.f32 %v5373_v15, %v5265_v24  ;;  %v5394_v26 = vadd.f32 %v5393_v55, %v5265_v24 }
0x2268   :  { %v5333_v30 = vpop.f32.mrf.mxu0  ;;  %v5353_v48 = vpop.f32.mrf.mxu1 }
0x2269   :  { %v5398_v27 = vmax.f32 %v5374_v19, 0.0  ;;  %v5399_v58 = vmax.f32 %v5394_v26, 0.0  ;;  %v5334_v22 = vadd.f32 %v5333_v30, %v5265_v24  ;;  %v5354_v50 = vadd.f32 %v5353_v48, %v5265_v24 }
0x226b   :  { %5402 = vst [vmem:[#allocation3 + $0x10] sm:$0xff] %v5398_v27  ;;  %v5396_v59 = vmax.f32 %v5334_v22, 0.0  ;;  %v5397_v36 = vmax.f32 %v5354_v50, 0.0 }
0x226c   :  { %5403 = vst [vmem:[#allocation3 + $0x18] sm:$0xff] %v5399_v58 }
0x226d   :  { %5400 = vst [vmem:[#allocation3] sm:$0xff] %v5396_v59 }
0x226e   :  { %5401 = vst [vmem:[#allocation3 + $0x8] sm:$0xff] %v5397_v36 }
0x226f   :  { %5414 = dma.vmem_to_hbm [thread:$0]  %s5410_s9, 512, %s5412_s0, [#allocation4]  }
0x2270   :  { %5607 = dma.done.wait [#allocation4], 512  }
0x2271   :  { %5608 = vsyncadd [#allocation4], 4294966784 }
0x2272   :  { %5419 = vsyncpa [#allocation4], 1 }

</bundles_post_ra>
